<compile_context>
chip_gen: v6e
topology: v6e:2x2x1
jax: 0.10.0
libtpu: 0.0.40
codegen_flags: <defaults>
</compile_context>

<pallas_src>
import math

import numpy as np
import jax
import jax.numpy as jnp
from jax.experimental import pallas as pl
from jax.experimental.pallas import tpu as pltpu


# ----------------------------- configuration -------------------------------
C_FEAT = 32                 # n_features per plane
N_PLANES = 3                # tri-plane count (sampled_features.mean(1) axis)
DEC_HIDDEN = 64             # OSGDecoder hidden dim
DEC_OUT = 32                # options['decoder_output_dim']
HEAD_COLS = DEC_HIDDEN      # fused head width: cols 0..31 = rgb, col 32 = sigma, rest 0
W_ROWS = C_FEAT + DEC_HIDDEN  # 96 packed weight rows: [W1 (32x64) ; W2_fused (64x64)]
TILE_TARGET = 2048          # target rows of M per grid step (sweep 2048-4096)


# ------------------------- small helpers -----------------------------------
def _softplus(x):
    # numerically stable softplus from ops that lower cleanly in Mosaic
    return jnp.log(1.0 + jnp.exp(-jnp.abs(x))) + jnp.maximum(x, 0.0)


def _round_up(x, m):
    return ((x + m - 1) // m) * m


def _pick_tile(M, N, target):
    """Largest multiple-of-8 divisor of M that is <= target (None if no such divisor).

    Also ensures the grid has >= 2 total steps when possible, so v7x's two
    TensorCores both get work via the 'parallel' grid axes.
    """
    hi = min(target, M)
    best = None
    for d in range(8, hi + 1, 8):
        if M % d == 0:
            best = d
    if best is not None and N * (M // best) < 2:
        for d in range(best - 8, 7, -8):
            if M % d == 0:
                return d
    return best


# =============================== Pallas kernel ==============================
def _osg_decoder_kernel(x_ref, w_ref, b_ref, rgb_ref, sigma_ref):
    """Fused OSGDecoder MLP for one row tile of one batch element.

    x_ref     : (3, T, 32)   natural-layout tri-plane features (no HBM relayout)
    w_ref     : (96, 64)     rows 0..31 = W1, rows 32..95 = fused head [rgb | sigma | 0]
    b_ref     : (2, 64) f32  row 0 = b1, row 1 = fused-head bias (same column order)
    rgb_ref   : (T, 32)      sigmoid-rescaled rgb (output dtype)
    sigma_ref : (T, 1) f32   raw sigma
    """
    x = x_ref[...]                                           # (3, T, 32)
    # plane mean, accumulated in f32 (two VPU adds; replaces the old HBM transpose)
    xm = (x[0].astype(jnp.float32) + x[1].astype(jnp.float32)
          + x[2].astype(jnp.float32)) * (1.0 / 3.0)          # (T, 32) f32

    w1 = w_ref[0:C_FEAT, :]                                  # (32, 64)
    w2 = w_ref[C_FEAT:W_ROWS, :]                              # (64, 64)

    # FC(32 -> 64) + Softplus ; hidden stays 64 lanes wide (no dead EUP lanes)
    h = jnp.dot(xm.astype(w_ref.dtype), w1, preferred_element_type=jnp.float32)
    h = _softplus(h + b_ref[0:1, :])                          # (T, 64) f32

    # fused (rgb | sigma) head: single matmul, columns pre-reordered in the wrapper
    y = jnp.dot(h.astype(w_ref.dtype), w2, preferred_element_type=jnp.float32)
    y = y + b_ref[1:2, :]                                     # (T, 64) f32

    y_rgb = y[:, 0:DEC_OUT]                                   # (T, 32)
    sigma = y[:, DEC_OUT:DEC_OUT + 1]                         # (T, 1)

    # decoder_activation == 'sigmoid' on rgb only: EUP exp + approx reciprocal.
    # Clamp exp argument so the approx vrcp never sees inf (sigmoid(y) ~ 0 there).
    e = jnp.exp(jnp.minimum(-y_rgb, 30.0))
    rgb = pl.reciprocal(1.0 + e, approx=True) * (1.0 + 2 * 0.001) - 0.001

    rgb_ref[...] = rgb.astype(rgb_ref.dtype)
    sigma_ref[...] = sigma


# ============================== Pallas wrapper ==============================
def osg_decoder_forward(sampled_features, ray_directions, params, *,
                        compute_dtype=jnp.bfloat16, out_dtype=None,
                        tile_target=TILE_TARGET):
    """OSGDecoder.forward.

    sampled_features : (N, 3, M, C) tri-plane-sampled features (any float dtype;
                       feeding bf16 halves the dominant input HBM stream)
    ray_directions   : (N, M, 3)    accepted but unused (matches the reference module)
    returns {'rgb': (N, M, DEC_OUT) in out_dtype, 'sigma': (N, M, 1) f32}
    """
    del ray_directions  # unused by OSGDecoder, exactly like the PyTorch reference
    N, P, M, C = sampled_features.shape
    assert P == N_PLANES and C == C_FEAT
    if out_dtype is None:
        out_dtype = sampled_features.dtype

    w1, b1 = params["w1"], params["b1"]          # (32, 64), (64,)
    w2, b2 = params["w2"], params["b2"]          # (64, 1+32), (1+32,)

    # fused head with columns reordered to [rgb(32) | sigma(1) | zeros(31)]
    w2p = jnp.zeros((DEC_HIDDEN, HEAD_COLS), jnp.float32)
    w2p = w2p.at[:, :DEC_OUT].set(w2[:, 1:]).at[:, DEC_OUT].set(w2[:, 0])
    b2p = jnp.zeros((HEAD_COLS,), jnp.float32)
    b2p = b2p.at[:DEC_OUT].set(b2[1:]).at[DEC_OUT].set(b2[0])

    W = jnp.concatenate([w1, w2p], axis=0).astype(compute_dtype)   # (96, 64)
    B = jnp.stack([b1.astype(jnp.float32), b2p])                   # (2, 64) f32

    # ---- tiling: features fed in their natural layout, no transpose/pad copies ----
    T = _pick_tile(M, N, tile_target)
    feats = sampled_features
    Mp = M
    if T is None:
        # TODO(synk): replace this pad with an in-kernel row mask driven by a
        # scalar-prefetched M (only hit when M has no multiple-of-8 divisor).
        T = min(_round_up(M, 8), _round_up(tile_target, 8))
        Mp = _round_up(M, T)
        feats = jnp.pad(sampled_features, ((0, 0), (0, 0), (0, Mp - M), (0, 0)))

    grid = (N, Mp // T)

    in_bytes = feats.size * feats.dtype.itemsize
    out_bytes = N * Mp * (DEC_OUT * np.dtype(out_dtype).itemsize + 4)
    cost = pl.CostEstimate(
        flops=2 * N * Mp * (C_FEAT * DEC_HIDDEN + DEC_HIDDEN * HEAD_COLS),
        transcendentals=N * Mp * (2 * DEC_HIDDEN + 2 * DEC_OUT),
        bytes_accessed=in_bytes + out_bytes + W.size * W.dtype.itemsize + B.size * 4)

    rgb, sigma = pl.pallas_call(
        _osg_decoder_kernel,
        out_shape=(jax.ShapeDtypeStruct((N, Mp, DEC_OUT), out_dtype),
                   jax.ShapeDtypeStruct((N, Mp, 1), jnp.float32)),
        grid=grid,
        in_specs=[
            # features: one batch element, all 3 planes, one row tile (contiguous DMAs)
            pl.BlockSpec((None, N_PLANES, T, C_FEAT), lambda n, i: (n, 0, i, 0)),
            # packed weights / biases: constant index_map -> fetched once
            pl.BlockSpec((W_ROWS, HEAD_COLS), lambda n, i: (0, 0)),
            pl.BlockSpec((2, HEAD_COLS), lambda n, i: (0, 0)),
        ],
        out_specs=(
            pl.BlockSpec((None, T, DEC_OUT), lambda n, i: (n, i, 0)),
            pl.BlockSpec((None, T, 1), lambda n, i: (n, i, 0)),
        ),
        compiler_params=pltpu.CompilerParams(
            dimension_semantics=("parallel", "parallel")),   # v7x: both TensorCores
        cost_estimate=cost,
    )(feats, W, B)

    if Mp != M:
        rgb = rgb[:, :M]
        sigma = sigma[:, :M]
    return {"rgb": rgb, "sigma": sigma}


# =============================== plain-JAX bits =============================
def init_params(key):
    """Synthetic OSGDecoder parameters (FullyConnectedLayer gains folded in)."""
    k1, k2, k3, k4 = jax.random.split(key, 4)
    w1 = jax.random.normal(k1, (C_FEAT, DEC_HIDDEN), jnp.float32) / math.sqrt(C_FEAT)
    w2 = jax.random.normal(k2, (DEC_HIDDEN, 1 + DEC_OUT), jnp.float32) / math.sqrt(DEC_HIDDEN)
    b1 = 0.1 * jax.random.normal(k3, (DEC_HIDDEN,), jnp.float32)
    b2 = 0.1 * jax.random.normal(k4, (1 + DEC_OUT,), jnp.float32)
    return {"w1": w1, "b1": b1, "w2": w2, "b2": b2}


def osg_decoder_reference(sampled_features, params):
    """Pure-JAX reference mirroring the PyTorch module exactly."""
    x = jnp.mean(sampled_features, axis=1)                 # sampled_features.mean(1)
    N, M, C = x.shape
    h = jax.nn.softplus(x.reshape(N * M, C) @ params["w1"] + params["b1"])
    y = (h @ params["w2"] + params["b2"]).reshape(N, M, 1 + DEC_OUT)
    sigma = y[..., 0:1]
    rgb = jax.nn.sigmoid(y[..., 1:]) * (1.0 + 2 * 0.001) - 0.001
    return {"rgb": rgb, "sigma": sigma}


# ==================================== main ==================================
if __name__ == "__main__":
    key = jax.random.PRNGKey(0)
    k_param, k_feat, k_dir = jax.random.split(key, 3)

    params = init_params(k_param)

    N, M = 2, 1024   # e.g. 64 rays * 16 depth samples per batch element
    sampled_features = jax.random.normal(k_feat, (N, N_PLANES, M, C_FEAT), jnp.float32)
    ray_directions = jax.random.normal(k_dir, (N, M, 3), jnp.float32)

    ref = osg_decoder_reference(sampled_features, params)

    # --- default path: bf16 weights on the MXU, f32 accumulation / activations ---
    fwd = jax.jit(lambda sf, rd: osg_decoder_forward(sf, rd, params))
    out = fwd(sampled_features, ray_directions)
    jax.block_until_ready(out)
    assert out["rgb"].shape == (N, M, DEC_OUT)
    assert out["sigma"].shape == (N, M, 1)
    assert bool(jnp.all(jnp.isfinite(out["rgb"])))
    assert bool(jnp.all(jnp.isfinite(out["sigma"])))
    assert bool(jnp.allclose(out["rgb"], ref["rgb"], atol=5e-2, rtol=5e-2)), (
        "rgb mismatch (bf16 weights), max abs diff = %f"
        % float(jnp.max(jnp.abs(out["rgb"] - ref["rgb"]))))
    assert bool(jnp.allclose(out["sigma"], ref["sigma"], atol=5e-2, rtol=5e-2)), (
        "sigma mismatch (bf16 weights), max abs diff = %f"
        % float(jnp.max(jnp.abs(out["sigma"] - ref["sigma"]))))

    # --- f32 weights path (tight check; only the approx-reciprocal sigmoid is inexact) ---
    fwd_f32 = jax.jit(
        lambda sf, rd: osg_decoder_forward(sf, rd, params, compute_dtype=jnp.float32))
    out32 = fwd_f32(sampled_features, ray_directions)
    jax.block_until_ready(out32)
    assert bool(jnp.allclose(out32["sigma"], ref["sigma"], atol=1e-3, rtol=1e-3))
    assert bool(jnp.allclose(out32["rgb"], ref["rgb"], atol=2e-2, rtol=2e-2))

    # --- bf16 feature stream (halves the dominant input HBM traffic; bf16 rgb out) ---
    out_b = fwd(sampled_features.astype(jnp.bfloat16), ray_directions)
    jax.block_until_ready(out_b)
    assert out_b["rgb"].dtype == jnp.bfloat16
    assert out_b["sigma"].dtype == jnp.float32
    rgb_b = out_b["rgb"].astype(jnp.float32)
    assert bool(jnp.all(jnp.isfinite(rgb_b)))
    assert bool(jnp.all(jnp.isfinite(out_b["sigma"])))
    assert bool(jnp.allclose(rgb_b, ref["rgb"], atol=1e-1, rtol=1e-1))
    assert bool(jnp.allclose(out_b["sigma"], ref["sigma"], atol=1e-1, rtol=1e-1))

    print("KERNEL_OK")
</pallas_src>

<mosaic_0001>
module attributes {stable_mosaic.version = 11 : i64} {
  func.func @_osg_decoder_kernel(%arg0: i32, %arg1: i32, %arg2: memref<1x3x1024x32xf32, #tpu.memory_space<vmem>>, %arg3: memref<96x64xbf16, #tpu.memory_space<vmem>>, %arg4: memref<2x64xf32, #tpu.memory_space<vmem>>, %arg5: memref<1x1024x32xf32, #tpu.memory_space<vmem>>, %arg6: memref<1x1024x1xf32, #tpu.memory_space<vmem>>) attributes {dimension_semantics = [#tpu.dimension_semantics<parallel>, #tpu.dimension_semantics<parallel>], iteration_bounds = array<i64: 2, 1>, scalar_prefetch = 0 : i64, scratch_operands = 0 : i64, tpu.core_type = #tpu.core_type<tc>, window_params = [{transform_indices = @transform_0, window_bounds = array<i64: 1, 3, 1024, 32>}, {pipeline_mode = #tpu.pipeline_mode<synchronous>, transform_indices = @transform_1, window_bounds = array<i64: 96, 64>}, {pipeline_mode = #tpu.pipeline_mode<synchronous>, transform_indices = @transform_2, window_bounds = array<i64: 2, 64>}, {transform_indices = @transform_3, window_bounds = array<i64: 1, 1024, 32>}, {transform_indices = @transform_4, window_bounds = array<i64: 1, 1024, 1>}]} {
    %c0 = arith.constant 0 : index
    %c0_0 = arith.constant 0 : index
    %c0_1 = arith.constant 0 : index
    %c0_2 = arith.constant 0 : index
    %0 = vector.load %arg2[%c0, %c0_0, %c0_1, %c0_2] : memref<1x3x1024x32xf32, #tpu.memory_space<vmem>>, vector<1x3x1024x32xf32>
    %1 = vector.shape_cast %0 : vector<1x3x1024x32xf32> to vector<3x1024x32xf32>
    %2 = vector.extract_strided_slice %1 {offsets = [0, 0, 0], sizes = [1, 1024, 32], strides = [1, 1, 1]} : vector<3x1024x32xf32> to vector<1x1024x32xf32>
    %3 = vector.shape_cast %2 : vector<1x1024x32xf32> to vector<1024x32xf32>
    %4 = vector.extract_strided_slice %1 {offsets = [1, 0, 0], sizes = [1, 1024, 32], strides = [1, 1, 1]} : vector<3x1024x32xf32> to vector<1x1024x32xf32>
    %5 = vector.shape_cast %4 : vector<1x1024x32xf32> to vector<1024x32xf32>
    %6 = arith.addf %3, %5 : vector<1024x32xf32>
    %7 = vector.extract_strided_slice %1 {offsets = [2, 0, 0], sizes = [1, 1024, 32], strides = [1, 1, 1]} : vector<3x1024x32xf32> to vector<1x1024x32xf32>
    %8 = vector.shape_cast %7 : vector<1x1024x32xf32> to vector<1024x32xf32>
    %9 = arith.addf %6, %8 : vector<1024x32xf32>
    %cst = arith.constant 0.333333343 : f32
    %10 = vector.broadcast %cst : f32 to vector<1024x32xf32>
    %11 = arith.mulf %9, %10 : vector<1024x32xf32>
    %c0_3 = arith.constant 0 : index
    %c0_4 = arith.constant 0 : index
    %12 = vector.load %arg3[%c0_3, %c0_4] : memref<96x64xbf16, #tpu.memory_space<vmem>>, vector<32x64xbf16>
    %c32 = arith.constant 32 : index
    %c0_5 = arith.constant 0 : index
    %13 = vector.load %arg3[%c32, %c0_5] : memref<96x64xbf16, #tpu.memory_space<vmem>>, vector<64x64xbf16>
    %14 = arith.truncf %11 : vector<1024x32xf32> to vector<1024x32xbf16>
    %cst_6 = arith.constant dense<0.000000e+00> : vector<1024x64xf32>
    %15 = tpu.matmul %14, %12, %cst_6 {dimension_numbers = #tpu.dot_dimension_numbers<[1], [0], [0], [1], [0, 0, 1, 1], [], []>} : vector<1024x32xbf16>, vector<32x64xbf16>, vector<1024x64xf32> -> vector<1024x64xf32>
    %c0_7 = arith.constant 0 : index
    %c0_8 = arith.constant 0 : index
    %16 = vector.load %arg4[%c0_7, %c0_8] : memref<2x64xf32, #tpu.memory_space<vmem>>, vector<1x64xf32>
    %17 = vector.broadcast %16 : vector<1x64xf32> to vector<1024x64xf32>
    %18 = arith.addf %15, %17 : vector<1024x64xf32>
    %19 = math.absf %18 : vector<1024x64xf32>
    %cst_9 = arith.constant 0.000000e+00 : f32
    %20 = vector.broadcast %cst_9 : f32 to vector<1024x64xf32>
    %21 = arith.subf %20, %19 : vector<1024x64xf32>
    %22 = math.exp %21 : vector<1024x64xf32>
    %cst_10 = arith.constant 1.000000e+00 : f32
    %23 = vector.broadcast %cst_10 : f32 to vector<1024x64xf32>
    %24 = arith.addf %23, %22 : vector<1024x64xf32>
    %25 = math.log %24 : vector<1024x64xf32>
    %cst_11 = arith.constant 0.000000e+00 : f32
    %26 = vector.broadcast %cst_11 : f32 to vector<1024x64xf32>
    %27 = arith.maximumf %18, %26 : vector<1024x64xf32>
    %28 = arith.addf %25, %27 : vector<1024x64xf32>
    %29 = arith.truncf %28 : vector<1024x64xf32> to vector<1024x64xbf16>
    %cst_12 = arith.constant dense<0.000000e+00> : vector<1024x64xf32>
    %30 = tpu.matmul %29, %13, %cst_12 {dimension_numbers = #tpu.dot_dimension_numbers<[1], [0], [0], [1], [0, 0, 1, 1], [], []>} : vector<1024x64xbf16>, vector<64x64xbf16>, vector<1024x64xf32> -> vector<1024x64xf32>
    %c1 = arith.constant 1 : index
    %c0_13 = arith.constant 0 : index
    %31 = vector.load %arg4[%c1, %c0_13] : memref<2x64xf32, #tpu.memory_space<vmem>>, vector<1x64xf32>
    %32 = vector.broadcast %31 : vector<1x64xf32> to vector<1024x64xf32>
    %33 = arith.addf %30, %32 : vector<1024x64xf32>
    %34 = vector.extract_strided_slice %33 {offsets = [0, 0], sizes = [1024, 32], strides = [1, 1]} : vector<1024x64xf32> to vector<1024x32xf32>
    %35 = vector.extract_strided_slice %33 {offsets = [0, 32], sizes = [1024, 1], strides = [1, 1]} : vector<1024x64xf32> to vector<1024x1xf32>
    %cst_14 = arith.constant 0.000000e+00 : f32
    %36 = vector.broadcast %cst_14 : f32 to vector<1024x32xf32>
    %37 = arith.subf %36, %34 : vector<1024x32xf32>
    %cst_15 = arith.constant 3.000000e+01 : f32
    %38 = vector.broadcast %cst_15 : f32 to vector<1024x32xf32>
    %39 = arith.minimumf %37, %38 : vector<1024x32xf32>
    %40 = math.exp %39 : vector<1024x32xf32>
    %cst_16 = arith.constant 1.000000e+00 : f32
    %41 = vector.broadcast %cst_16 : f32 to vector<1024x32xf32>
    %42 = arith.addf %41, %40 : vector<1024x32xf32>
    %43 = tpu.reciprocal %42 {approx = true} : vector<1024x32xf32> -> vector<1024x32xf32>
    %cst_17 = arith.constant 1.002000e+00 : f32
    %44 = vector.broadcast %cst_17 : f32 to vector<1024x32xf32>
    %45 = arith.mulf %43, %44 : vector<1024x32xf32>
    %cst_18 = arith.constant 1.000000e-03 : f32
    %46 = vector.broadcast %cst_18 : f32 to vector<1024x32xf32>
    %47 = arith.subf %45, %46 : vector<1024x32xf32>
    %c0_19 = arith.constant 0 : index
    %c0_20 = arith.constant 0 : index
    %c0_21 = arith.constant 0 : index
    %48 = vector.load %arg5[%c0_19, %c0_20, %c0_21] : memref<1x1024x32xf32, #tpu.memory_space<vmem>>, vector<1x1024x32xf32>
    %49 = vector.shape_cast %48 : vector<1x1024x32xf32> to vector<1024x32xf32>
    %50 = vector.shape_cast %47 : vector<1024x32xf32> to vector<1x1024x32xf32>
    tpu.vector_store %arg5[%c0_19, %c0_20, %c0_21], %50 {strides = array<i32>} : memref<1x1024x32xf32, #tpu.memory_space<vmem>>, vector<1x1024x32xf32>,
    %c0_22 = arith.constant 0 : index
    %c0_23 = arith.constant 0 : index
    %c0_24 = arith.constant 0 : index
    %51 = vector.load %arg6[%c0_22, %c0_23, %c0_24] : memref<1x1024x1xf32, #tpu.memory_space<vmem>>, vector<1x1024x1xf32>
    %52 = vector.shape_cast %51 : vector<1x1024x1xf32> to vector<1024x1xf32>
    %53 = vector.shape_cast %35 : vector<1024x1xf32> to vector<1x1024x1xf32>
    tpu.vector_store %arg6[%c0_22, %c0_23, %c0_24], %53 {strides = array<i32>} : memref<1x1024x1xf32, #tpu.memory_space<vmem>>, vector<1x1024x1xf32>,
    return
  }
  func.func @transform_0(%arg0: i32, %arg1: i32) -> (i32, i32, i32, i32) {
    %c0_i32 = arith.constant 0 : i32
    %c0_i32_0 = arith.constant 0 : i32
    %c0_i32_1 = arith.constant 0 : i32
    return %arg0, %c0_i32, %arg1, %c0_i32_0 : i32, i32, i32, i32
  }
  func.func @transform_1(%arg0: i32, %arg1: i32) -> (i32, i32) {
    %c0_i32 = arith.constant 0 : i32
    %c0_i32_0 = arith.constant 0 : i32
    %c0_i32_1 = arith.constant 0 : i32
    return %c0_i32, %c0_i32_0 : i32, i32
  }
  func.func @transform_2(%arg0: i32, %arg1: i32) -> (i32, i32) {
    %c0_i32 = arith.constant 0 : i32
    %c0_i32_0 = arith.constant 0 : i32
    %c0_i32_1 = arith.constant 0 : i32
    return %c0_i32, %c0_i32_0 : i32, i32
  }
  func.func @transform_3(%arg0: i32, %arg1: i32) -> (i32, i32, i32) {
    %c0_i32 = arith.constant 0 : i32
    %c0_i32_0 = arith.constant 0 : i32
    return %arg0, %arg1, %c0_i32 : i32, i32, i32
  }
  func.func @transform_4(%arg0: i32, %arg1: i32) -> (i32, i32, i32) {
    %c0_i32 = arith.constant 0 : i32
    %c0_i32_0 = arith.constant 0 : i32
    return %arg0, %arg1, %c0_i32 : i32, i32, i32
  }
}

</mosaic_0001>

<bundles_post_ra>
// kernel: _lambda_.1
= control target key start
LH: loop header
LB: loop body
LE: loop exit
PB: predicated region body
PF: predicated region fallthrough
CT: control target
= control target key end

     0   :  { %s7566_s15 = smov 0   ;;  %s7568_s16 = smov 0   ;;  %s10871_s0 = inlined_call_operand.vmem [shape: f32[2,3,1024,32], index: 0, kind: input, shape index: {}]   ;;  %s10872_s1 = inlined_call_operand.vmem [shape: bf16[96,64], index: 1, kind: input, shape index: {}]   ;;  %s10873_s2 = inlined_call_operand.vmem [shape: f32[2,64], index: 2, kind: input, shape index: {}]   ;;  %s10874_s3 = inlined_call_operand.vmem [shape: f32[2,1024,32], index: 3, kind: output, shape index: {0}]   ;;  %s10875_s4 = inlined_call_operand.vmem [shape: f32[2,1024,1], index: 4, kind: output, shape index: {1}]  }
   0x1   :  { %s7570_s17 = smov 0  }
   0x2 LB: > { %s27_s18 = sadd.s32 1, %s7534_s16  ;;  %p5778_p0 = scmp.ge.s32.totalorder %s7538_s17, 1  ;;  %s7538_s17 = sphi %s7570_s17, %s15_s17   ;;  %s7534_s16 = sphi %s7568_s16, %s10946_s16   ;;  %s7530_s15 = sphi %s7566_s15, %s10945_s15  }
   0x3   : > { %p29_p1 = scmp.ge.s32.totalorder %s27_s18, 2  ;;  %p188_p2 = scmp.lt.s32.totalorder %s7538_s17, 3 }
   0x5   : > { %s10948_s18 = smov (%p29_p1, %s27_s18), 0  ;;  %p189_p3 = pnand %p5778_p0, %p188_p2 }
   0x7   : > { %192 = sbr.rel (%p189_p3) target bundleno = 960 (0x3c0), region = 32 }
   0xc   : > { %v6480_v0 = vld [vmem:[%s10872_s1 + $0x8] sm:$0xff]   ;;  %p232_p4 = scmp.lt.s32.totalorder %s7530_s15, 1  ;;  %v6481_v1 = vld [vmem:[%s10872_s1] sm:$0xff]   ;;  %vm1123_vm0 = vcmask 261120   ;;  %vm3106_vm1 = vcmask 523264   ;;  %vm5508_vm2 = vcmask 7168  }
   0xd   : > { %6186 = vmatprep.subr.bf16.mxu0 %v6480_v0 }
   0xe   : > { %s10950_s15 = smov (!%p232_p4, %s7530_s15), 1  ;;  %6187 = vmatpush3.bf16.msra.mxu0 %v6480_v0 }
   0xf   : > { %6188 = vmatprep.subr.bf16.mxu0 %v6481_v1  ;;  %s6454_s23 = smul.u32 3072, %s10950_s15  ;;  %s6050_s24 = sshll.u32 %s10950_s15, 10 }
  0x10   : > { %s9785_s27 = scalar_lea.vmem %s10874_s3, %s6050_s24  ;;  %s10123_s6 = scalar_lea.vmem %s10875_s4, %s6050_s24 }
  0x11   : > { %s7596_s26 = scalar_lea.vmem %s10871_s0, %s6454_s23  ;;  %s7540_s23 = smov 96  }
  0x12   : > { %6189 = vmatpush3.bf16.msra.mxu0 %v6481_v1  ;;  %v262_v2 = vld [vmem:[%s7596_s26] sm:$0xff]  ;;  %v263_v3 = vld [vmem:[%s7596_s26 + $0x8] sm:$0xff]  ;;  %v264_v10 = vld [vmem:[%s7596_s26 + $0x10] sm:$0xff] }
  0x13   : > { %v390_v4 = vld [vmem:[%s7596_s26 + $0x400] sm:$0xff]  ;;  %v391_v5 = vld [vmem:[%s7596_s26 + $0x408] sm:$0xff]  ;;  %v265_v11 = vld [vmem:[%s7596_s26 + $0x18] sm:$0xff] }
  0x14   : > { %v518_v6 = vld [vmem:[%s7596_s26 + $0x800] sm:$0xff]  ;;  %v519_v7 = vld [vmem:[%s7596_s26 + $0x808] sm:$0xff]  ;;  %v646_v8 = vadd.f32 %v390_v4, %v262_v2  ;;  %v647_v9 = vadd.f32 %v391_v5, %v263_v3  ;;  %v392_v12 = vld [vmem:[%s7596_s26 + $0x410] sm:$0xff] }
  0x15   : > { %v393_v14 = vld [vmem:[%s7596_s26 + $0x418] sm:$0xff]  ;;  %v520_v15 = vld [vmem:[%s7596_s26 + $0x810] sm:$0xff]  ;;  %v648_v17 = vadd.f32 %v392_v12, %v264_v10  ;;  %v266_v20 = vld [vmem:[%s7596_s26 + $0x20] sm:$0xff] }
  0x16   : > { %v774_v13 = vadd.f32 %v646_v8, %v518_v6  ;;  %v521_v16 = vld [vmem:[%s7596_s26 + $0x818] sm:$0xff]  ;;  %v775_v18 = vadd.f32 %v647_v9, %v519_v7  ;;  %v649_v19 = vadd.f32 %v393_v14, %v265_v11  ;;  %v267_v21 = vld [vmem:[%s7596_s26 + $0x28] sm:$0xff]  ;;  %v394_v22 = vld [vmem:[%s7596_s26 + $0x420] sm:$0xff] }
  0x17   : > { %v776_v24 = vadd.f32 %v648_v17, %v520_v15  ;;  %v395_v25 = vld [vmem:[%s7596_s26 + $0x428] sm:$0xff]  ;;  %v522_v26 = vld [vmem:[%s7596_s26 + $0x820] sm:$0xff]  ;;  %v650_v28 = vadd.f32 %v394_v22, %v266_v20  ;;  %v268_v32 = vld [vmem:[%s7596_s26 + $0x30] sm:$0xff] }
  0x18   : > { %v902_v23 = vmul.f32 0.33333334, %v774_v13  ;;  %v523_v27 = vld [vmem:[%s7596_s26 + $0x828] sm:$0xff]  ;;  %v903_v29 = vmul.f32 0.33333334, %v775_v18  ;;  %v777_v30 = vadd.f32 %v649_v19, %v521_v16  ;;  %v651_v31 = vadd.f32 %v395_v25, %v267_v21  ;;  %v269_v33 = vld [vmem:[%s7596_s26 + $0x38] sm:$0xff] }
  0x19   : > { %v396_v34 = vld [vmem:[%s7596_s26 + $0x430] sm:$0xff]  ;;  %v904_v35 = vmul.f32 0.33333334, %v776_v24  ;;  %v778_v36 = vadd.f32 %v650_v28, %v522_v26  ;;  %v397_v37 = vld [vmem:[%s7596_s26 + $0x438] sm:$0xff]  ;;  %v270_v45 = vld [vmem:[%s7596_s26 + $0x40] sm:$0xff] }
  0x1a   : > { %v524_v38 = vld [vmem:[%s7596_s26 + $0x830] sm:$0xff]  ;;  %v525_v39 = vld [vmem:[%s7596_s26 + $0x838] sm:$0xff]  ;;  %v652_v40 = vadd.f32 %v396_v34, %v268_v32  ;;  %v1042_v41 = vpack.c.bf16 %v903_v29, %v902_v23  ;;  %v905_v42 = vmul.f32 0.33333334, %v777_v30  ;;  %v779_v43 = vadd.f32 %v651_v31, %v523_v27  ;;  %v271_v46 = vld [vmem:[%s7596_s26 + $0x48] sm:$0xff] }
  0x1b   : > { %v653_v44 = vadd.f32 %v397_v37, %v269_v33  ;;  %v398_v47 = vld [vmem:[%s7596_s26 + $0x440] sm:$0xff]  ;;  %v906_v48 = vmul.f32 0.33333334, %v778_v36  ;;  %v399_v50 = vld [vmem:[%s7596_s26 + $0x448] sm:$0xff]  ;;  %v272_v58 = vld [vmem:[%s7596_s26 + $0x50] sm:$0xff] }
  0x1c   : > { %v780_v49 = vadd.f32 %v652_v40, %v524_v38  ;;  %v526_v51 = vld [vmem:[%s7596_s26 + $0x840] sm:$0xff]  ;;  %v527_v52 = vld [vmem:[%s7596_s26 + $0x848] sm:$0xff]  ;;  %v654_v53 = vadd.f32 %v398_v47, %v270_v45  ;;  %6190 = vmatprep.mubr.msk.bf16.mxu0 %vm1123_vm0, %v1042_v41  ;;  %v1043_v54 = vpack.c.bf16 %v905_v42, %v904_v35  ;;  %v907_v55 = vmul.f32 0.33333334, %v779_v43  ;;  %v273_v59 = vld [vmem:[%s7596_s26 + $0x58] sm:$0xff] }
  0x1d   : > { %v781_v56 = vadd.f32 %v653_v44, %v525_v39  ;;  %v655_v57 = vadd.f32 %v399_v50, %v271_v46  ;;  %v400_v60 = vld [vmem:[%s7596_s26 + $0x450] sm:$0xff]  ;;  %v401_v63 = vld [vmem:[%s7596_s26 + $0x458] sm:$0xff]  ;;  %v274_v5 = vld [vmem:[%s7596_s26 + $0x60] sm:$0xff] }
  0x1e   : > { %v908_v61 = vmul.f32 0.33333334, %v780_v49  ;;  %v782_v62 = vadd.f32 %v654_v53, %v526_v51  ;;  %v656_v0 = vadd.f32 %v400_v60, %v272_v58  ;;  %6191 = vmatmul.mubr.msk.bf16.vlgmr.msra.gmra.mxu0 %vm1123_vm0, %v1043_v54  ;;  %v1044_v1 = vpack.c.bf16 %v907_v55, %v906_v48  ;;  %v275_v6 = vld [vmem:[%s7596_s26 + $0x68] sm:$0xff]  ;;  %v402_v7 = vld [vmem:[%s7596_s26 + $0x460] sm:$0xff]  ;;  %v528_v9 = vld [vmem:[%s7596_s26 + $0x850] sm:$0xff] }
  0x1f   : > { %v909_v2 = vmul.f32 0.33333334, %v781_v56  ;;  %v783_v3 = vadd.f32 %v655_v57, %v527_v52  ;;  %v657_v4 = vadd.f32 %v401_v63, %v273_v59  ;;  %v529_v10 = vld [vmem:[%s7596_s26 + $0x858] sm:$0xff]  ;;  %v403_v11 = vld [vmem:[%s7596_s26 + $0x468] sm:$0xff]  ;;  %v658_v12 = vadd.f32 %v402_v7, %v274_v5  ;;  %v530_v14 = vld [vmem:[%s7596_s26 + $0x860] sm:$0xff] }
  0x20   : > { %v910_v8 = vmul.f32 0.33333334, %v782_v62  ;;  %6194 = vmatprep.mubr.msk.bf16.mxu0 %vm1123_vm0, %v1044_v1  ;;  %v531_v15 = vld [vmem:[%s7596_s26 + $0x868] sm:$0xff]  ;;  %v659_v16 = vadd.f32 %v403_v11, %v275_v6  ;;  %v784_v18 = vadd.f32 %v656_v0, %v528_v9  ;;  %v276_v20 = vld [vmem:[%s7596_s26 + $0x70] sm:$0xff]  ;;  %v277_v21 = vld [vmem:[%s7596_s26 + $0x78] sm:$0xff] }
  0x21   : > { %v911_v13 = vmul.f32 0.33333334, %v783_v3  ;;  %v1045_v17 = vpack.c.bf16 %v909_v2, %v908_v61  ;;  %v785_v19 = vadd.f32 %v657_v4, %v529_v10  ;;  %v786_v23 = vadd.f32 %v658_v12, %v530_v14  ;;  %v404_v25 = vld [vmem:[%s7596_s26 + $0x470] sm:$0xff]  ;;  %v405_v26 = vld [vmem:[%s7596_s26 + $0x478] sm:$0xff]  ;;  %v278_v27 = vld [vmem:[%s7596_s26 + $0x80] sm:$0xff] }
  0x22   : > { %v787_v24 = vadd.f32 %v659_v16, %v531_v15  ;;  %v279_v28 = vld [vmem:[%s7596_s26 + $0x88] sm:$0xff]  ;;  %v406_v29 = vld [vmem:[%s7596_s26 + $0x480] sm:$0xff]  ;;  %v912_v31 = vmul.f32 0.33333334, %v784_v18  ;;  %v660_v33 = vadd.f32 %v404_v25, %v276_v20  ;;  %v661_v34 = vadd.f32 %v405_v26, %v277_v21  ;;  %v532_v37 = vld [vmem:[%s7596_s26 + $0x870] sm:$0xff] }
  0x23   : > { %v1046_v22 = vpack.c.bf16 %v911_v13, %v910_v8  ;;  %v407_v30 = vld [vmem:[%s7596_s26 + $0x488] sm:$0xff]  ;;  %v913_v32 = vmul.f32 0.33333334, %v785_v19  ;;  %v914_v35 = vmul.f32 0.33333334, %v786_v23  ;;  %v533_v38 = vld [vmem:[%s7596_s26 + $0x878] sm:$0xff]  ;;  %v662_v39 = vadd.f32 %v406_v29, %v278_v27 }
  0x24   : > { %v915_v36 = vmul.f32 0.33333334, %v787_v24  ;;  %v663_v40 = vadd.f32 %v407_v30, %v279_v28  ;;  %v534_v41 = vld [vmem:[%s7596_s26 + $0x880] sm:$0xff]  ;;  %v535_v42 = vld [vmem:[%s7596_s26 + $0x888] sm:$0xff]  ;;  %v788_v44 = vadd.f32 %v660_v33, %v532_v37  ;;  %v789_v45 = vadd.f32 %v661_v34, %v533_v38  ;;  %v280_v46 = vld [vmem:[%s7596_s26 + $0x90] sm:$0xff] }
  0x25   : > { %v1047_v43 = vpack.c.bf16 %v913_v32, %v912_v31  ;;  %v281_v47 = vld [vmem:[%s7596_s26 + $0x98] sm:$0xff]  ;;  %v790_v49 = vadd.f32 %v662_v39, %v534_v41  ;;  %v408_v51 = vld [vmem:[%s7596_s26 + $0x490] sm:$0xff]  ;;  %v282_v53 = vld [vmem:[%s7596_s26 + $0xa0] sm:$0xff] }
  0x26   : > { %6195 = vmatmul.mubr.msk.bf16.gmra.mxu0 %vm1123_vm0, %v1045_v17  ;;  %v1048_v48 = vpack.c.bf16 %v915_v36, %v914_v35  ;;  %v791_v50 = vadd.f32 %v663_v40, %v535_v42  ;;  %v409_v52 = vld [vmem:[%s7596_s26 + $0x498] sm:$0xff]  ;;  %v283_v54 = vld [vmem:[%s7596_s26 + $0xa8] sm:$0xff]  ;;  %v410_v55 = vld [vmem:[%s7596_s26 + $0x4a0] sm:$0xff]  ;;  %v916_v57 = vmul.f32 0.33333334, %v788_v44  ;;  %v664_v59 = vadd.f32 %v408_v51, %v280_v46 }
  0x27   : > { %6198 = vmatprep.mubr.msk.bf16.mxu0 %vm1123_vm0, %v1046_v22  ;;  %v411_v56 = vld [vmem:[%s7596_s26 + $0x4a8] sm:$0xff]  ;;  %v917_v58 = vmul.f32 0.33333334, %v789_v45  ;;  %v665_v60 = vadd.f32 %v409_v52, %v281_v47  ;;  %v918_v61 = vmul.f32 0.33333334, %v790_v49  ;;  %v536_v63 = vld [vmem:[%s7596_s26 + $0x890] sm:$0xff]  ;;  %v666_v1 = vadd.f32 %v410_v55, %v282_v53 }
  0x28   : > { %v919_v62 = vmul.f32 0.33333334, %v791_v50  ;;  %v537_v0 = vld [vmem:[%s7596_s26 + $0x898] sm:$0xff]  ;;  %v667_v2 = vadd.f32 %v411_v56, %v283_v54  ;;  %v538_v3 = vld [vmem:[%s7596_s26 + $0x8a0] sm:$0xff]  ;;  %v539_v4 = vld [vmem:[%s7596_s26 + $0x8a8] sm:$0xff]  ;;  %v792_v6 = vadd.f32 %v664_v59, %v536_v63 }
  0x29   : > { %v1049_v5 = vpack.c.bf16 %v917_v58, %v916_v57  ;;  %v793_v7 = vadd.f32 %v665_v60, %v537_v0  ;;  %v284_v8 = vld [vmem:[%s7596_s26 + $0xb0] sm:$0xff]  ;;  %v285_v9 = vld [vmem:[%s7596_s26 + $0xb8] sm:$0xff]  ;;  %v794_v11 = vadd.f32 %v666_v1, %v538_v3  ;;  %v286_v15 = vld [vmem:[%s7596_s26 + $0xc0] sm:$0xff] }
  0x2a   : > { %v1050_v10 = vpack.c.bf16 %v919_v62, %v918_v61  ;;  %v795_v12 = vadd.f32 %v667_v2, %v539_v4  ;;  %v412_v13 = vld [vmem:[%s7596_s26 + $0x4b0] sm:$0xff]  ;;  %v413_v14 = vld [vmem:[%s7596_s26 + $0x4b8] sm:$0xff]  ;;  %v287_v16 = vld [vmem:[%s7596_s26 + $0xc8] sm:$0xff]  ;;  %v920_v19 = vmul.f32 0.33333334, %v792_v6 }
  0x2b   : > { %v414_v17 = vld [vmem:[%s7596_s26 + $0x4c0] sm:$0xff]  ;;  %v415_v18 = vld [vmem:[%s7596_s26 + $0x4c8] sm:$0xff]  ;;  %v921_v20 = vmul.f32 0.33333334, %v793_v7  ;;  %v668_v21 = vadd.f32 %v412_v13, %v284_v8  ;;  %v669_v22 = vadd.f32 %v413_v14, %v285_v9  ;;  %v922_v23 = vmul.f32 0.33333334, %v794_v11 }
  0x2c   : > { %v923_v24 = vmul.f32 0.33333334, %v795_v12  ;;  %v540_v25 = vld [vmem:[%s7596_s26 + $0x8b0] sm:$0xff]  ;;  %v541_v26 = vld [vmem:[%s7596_s26 + $0x8b8] sm:$0xff]  ;;  %v670_v27 = vadd.f32 %v414_v17, %v286_v15  ;;  %v671_v28 = vadd.f32 %v415_v18, %v287_v16  ;;  %v542_v29 = vld [vmem:[%s7596_s26 + $0x8c0] sm:$0xff] }
  0x2d   : > { %v543_v30 = vld [vmem:[%s7596_s26 + $0x8c8] sm:$0xff]  ;;  %v1051_v31 = vpack.c.bf16 %v921_v20, %v920_v19  ;;  %v796_v32 = vadd.f32 %v668_v21, %v540_v25  ;;  %v797_v33 = vadd.f32 %v669_v22, %v541_v26  ;;  %v288_v34 = vld [vmem:[%s7596_s26 + $0xd0] sm:$0xff]  ;;  %v289_v35 = vld [vmem:[%s7596_s26 + $0xd8] sm:$0xff] }
  0x2e   : > { %6199 = vmatmul.mubr.msk.bf16.gmra.mxu0 %vm1123_vm0, %v1047_v43  ;;  %v1052_v36 = vpack.c.bf16 %v923_v24, %v922_v23  ;;  %v798_v37 = vadd.f32 %v670_v27, %v542_v29  ;;  %v799_v38 = vadd.f32 %v671_v28, %v543_v30  ;;  %v416_v39 = vld [vmem:[%s7596_s26 + $0x4d0] sm:$0xff]  ;;  %v417_v40 = vld [vmem:[%s7596_s26 + $0x4d8] sm:$0xff]  ;;  %v290_v41 = vld [vmem:[%s7596_s26 + $0xe0] sm:$0xff] }
  0x2f   : > { %6202 = vmatprep.mubr.msk.bf16.mxu0 %vm1123_vm0, %v1048_v48  ;;  %v291_v42 = vld [vmem:[%s7596_s26 + $0xe8] sm:$0xff]  ;;  %v418_v43 = vld [vmem:[%s7596_s26 + $0x4e0] sm:$0xff]  ;;  %v924_v45 = vmul.f32 0.33333334, %v796_v32  ;;  %v925_v46 = vmul.f32 0.33333334, %v797_v33  ;;  %v672_v47 = vadd.f32 %v416_v39, %v288_v34  ;;  %v673_v48 = vadd.f32 %v417_v40, %v289_v35 }
  0x30   : > { %v419_v44 = vld [vmem:[%s7596_s26 + $0x4e8] sm:$0xff]  ;;  %v926_v49 = vmul.f32 0.33333334, %v798_v37  ;;  %v927_v50 = vmul.f32 0.33333334, %v799_v38  ;;  %v544_v51 = vld [vmem:[%s7596_s26 + $0x8d0] sm:$0xff]  ;;  %v674_v53 = vadd.f32 %v418_v43, %v290_v41 }
  0x31   : > { %v545_v52 = vld [vmem:[%s7596_s26 + $0x8d8] sm:$0xff]  ;;  %v675_v54 = vadd.f32 %v419_v44, %v291_v42  ;;  %v546_v55 = vld [vmem:[%s7596_s26 + $0x8e0] sm:$0xff]  ;;  %v547_v56 = vld [vmem:[%s7596_s26 + $0x8e8] sm:$0xff]  ;;  %v1053_v57 = vpack.c.bf16 %v925_v46, %v924_v45  ;;  %v800_v58 = vadd.f32 %v672_v47, %v544_v51 }
  0x32   : > { %v801_v59 = vadd.f32 %v673_v48, %v545_v52  ;;  %v292_v60 = vld [vmem:[%s7596_s26 + $0xf0] sm:$0xff]  ;;  %v293_v61 = vld [vmem:[%s7596_s26 + $0xf8] sm:$0xff]  ;;  %v1054_v62 = vpack.c.bf16 %v927_v50, %v926_v49  ;;  %v802_v63 = vadd.f32 %v674_v53, %v546_v55  ;;  %v294_v3 = vld [vmem:[%s7596_s26 + $0x100] sm:$0xff] }
  0x33   : > { %v803_v0 = vadd.f32 %v675_v54, %v547_v56  ;;  %v420_v1 = vld [vmem:[%s7596_s26 + $0x4f0] sm:$0xff]  ;;  %v421_v2 = vld [vmem:[%s7596_s26 + $0x4f8] sm:$0xff]  ;;  %v295_v4 = vld [vmem:[%s7596_s26 + $0x108] sm:$0xff]  ;;  %v928_v7 = vmul.f32 0.33333334, %v800_v58 }
  0x34   : > { %v423_v6 = vld [vmem:[%s7596_s26 + $0x508] sm:$0xff]  ;;  %v929_v8 = vmul.f32 0.33333334, %v801_v59  ;;  %v676_v9 = vadd.f32 %v420_v1, %v292_v60  ;;  %v930_v11 = vmul.f32 0.33333334, %v802_v63  ;;  %v548_v13 = vld [vmem:[%s7596_s26 + $0x8f0] sm:$0xff] }
  0x35   : > { %v931_v12 = vmul.f32 0.33333334, %v803_v0  ;;  %v549_v14 = vld [vmem:[%s7596_s26 + $0x8f8] sm:$0xff]  ;;  %v679_v16 = vadd.f32 %v423_v6, %v295_v4  ;;  %v550_v17 = vld [vmem:[%s7596_s26 + $0x900] sm:$0xff]  ;;  %v551_v18 = vld [vmem:[%s7596_s26 + $0x908] sm:$0xff] }
  0x36   : > { %6203 = vmatmul.mubr.msk.bf16.gmra.mxu0 %vm1123_vm0, %v1049_v5  ;;  %v422_v5 = vld [vmem:[%s7596_s26 + $0x500] sm:$0xff]  ;;  %v1055_v19 = vpack.c.bf16 %v929_v8, %v928_v7  ;;  %v804_v20 = vadd.f32 %v676_v9, %v548_v13  ;;  %v296_v22 = vld [vmem:[%s7596_s26 + $0x110] sm:$0xff]  ;;  %v297_v23 = vld [vmem:[%s7596_s26 + $0x118] sm:$0xff] }
  0x37   : > { %6206 = vmatprep.mubr.msk.bf16.mxu0 %vm1123_vm0, %v1050_v10  ;;  %v677_v10 = vadd.f32 %v421_v2, %v293_v61  ;;  %v678_v15 = vadd.f32 %v422_v5, %v294_v3  ;;  %v1056_v24 = vpack.c.bf16 %v931_v12, %v930_v11  ;;  %v807_v26 = vadd.f32 %v679_v16, %v551_v18  ;;  %v424_v27 = vld [vmem:[%s7596_s26 + $0x510] sm:$0xff]  ;;  %v425_v28 = vld [vmem:[%s7596_s26 + $0x518] sm:$0xff]  ;;  %v298_v29 = vld [vmem:[%s7596_s26 + $0x120] sm:$0xff] }
  0x38   : > { %v299_v30 = vld [vmem:[%s7596_s26 + $0x128] sm:$0xff]  ;;  %v932_v33 = vmul.f32 0.33333334, %v804_v20  ;;  %v680_v35 = vadd.f32 %v424_v27, %v296_v22  ;;  %v552_v39 = vld [vmem:[%s7596_s26 + $0x910] sm:$0xff]  ;;  %v553_v40 = vld [vmem:[%s7596_s26 + $0x918] sm:$0xff] }
  0x39   : > { %v805_v21 = vadd.f32 %v677_v10, %v549_v14  ;;  %v806_v25 = vadd.f32 %v678_v15, %v550_v17  ;;  %v427_v32 = vld [vmem:[%s7596_s26 + $0x528] sm:$0xff]  ;;  %v935_v38 = vmul.f32 0.33333334, %v807_v26  ;;  %v554_v43 = vld [vmem:[%s7596_s26 + $0x920] sm:$0xff]  ;;  %v300_v48 = vld [vmem:[%s7596_s26 + $0x130] sm:$0xff] }
  0x3a   : > { %v683_v42 = vadd.f32 %v427_v32, %v299_v30  ;;  %v555_v44 = vld [vmem:[%s7596_s26 + $0x928] sm:$0xff]  ;;  %v808_v46 = vadd.f32 %v680_v35, %v552_v39  ;;  %v301_v49 = vld [vmem:[%s7596_s26 + $0x138] sm:$0xff]  ;;  %v428_v53 = vld [vmem:[%s7596_s26 + $0x530] sm:$0xff] }
  0x3b   : > { %v933_v34 = vmul.f32 0.33333334, %v805_v21  ;;  %v934_v37 = vmul.f32 0.33333334, %v806_v25  ;;  %v429_v54 = vld [vmem:[%s7596_s26 + $0x538] sm:$0xff]  ;;  %v302_v55 = vld [vmem:[%s7596_s26 + $0x140] sm:$0xff]  ;;  %v684_v61 = vadd.f32 %v428_v53, %v300_v48 }
  0x3c   : > { %v811_v52 = vadd.f32 %v683_v42, %v555_v44  ;;  %v303_v56 = vld [vmem:[%s7596_s26 + $0x148] sm:$0xff]  ;;  %v936_v59 = vmul.f32 0.33333334, %v808_v46  ;;  %v556_v1 = vld [vmem:[%s7596_s26 + $0x930] sm:$0xff]  ;;  %v557_v2 = vld [vmem:[%s7596_s26 + $0x938] sm:$0xff] }
  0x3d   : > { %v1057_v45 = vpack.c.bf16 %v933_v34, %v932_v33  ;;  %v1058_v50 = vpack.c.bf16 %v935_v38, %v934_v37  ;;  %v431_v58 = vld [vmem:[%s7596_s26 + $0x548] sm:$0xff]  ;;  %v558_v5 = vld [vmem:[%s7596_s26 + $0x940] sm:$0xff]  ;;  %v812_v8 = vadd.f32 %v684_v61, %v556_v1  ;;  %v304_v10 = vld [vmem:[%s7596_s26 + $0x150] sm:$0xff] }
  0x3e   : > { %6207 = vmatmul.mubr.msk.bf16.gmra.mxu0 %vm1123_vm0, %v1051_v31  ;;  %v426_v31 = vld [vmem:[%s7596_s26 + $0x520] sm:$0xff]  ;;  %v939_v0 = vmul.f32 0.33333334, %v811_v52  ;;  %v687_v4 = vadd.f32 %v431_v58, %v303_v56  ;;  %v559_v6 = vld [vmem:[%s7596_s26 + $0x948] sm:$0xff]  ;;  %v305_v11 = vld [vmem:[%s7596_s26 + $0x158] sm:$0xff] }
  0x3f   : > { %6210 = vmatprep.mubr.msk.bf16.mxu0 %vm1123_vm0, %v1052_v36  ;;  %v681_v36 = vadd.f32 %v425_v28, %v297_v23  ;;  %v682_v41 = vadd.f32 %v426_v31, %v298_v29  ;;  %v432_v15 = vld [vmem:[%s7596_s26 + $0x550] sm:$0xff]  ;;  %v433_v16 = vld [vmem:[%s7596_s26 + $0x558] sm:$0xff]  ;;  %v306_v17 = vld [vmem:[%s7596_s26 + $0x160] sm:$0xff]  ;;  %v940_v21 = vmul.f32 0.33333334, %v812_v8 }
  0x40   : > { %v815_v14 = vadd.f32 %v687_v4, %v559_v6  ;;  %v307_v18 = vld [vmem:[%s7596_s26 + $0x168] sm:$0xff]  ;;  %v688_v23 = vadd.f32 %v432_v15, %v304_v10  ;;  %v560_v27 = vld [vmem:[%s7596_s26 + $0x950] sm:$0xff]  ;;  %v561_v28 = vld [vmem:[%s7596_s26 + $0x958] sm:$0xff] }
  0x41   : > { %v809_v47 = vadd.f32 %v681_v36, %v553_v40  ;;  %v810_v51 = vadd.f32 %v682_v41, %v554_v43  ;;  %v435_v20 = vld [vmem:[%s7596_s26 + $0x568] sm:$0xff]  ;;  %v562_v31 = vld [vmem:[%s7596_s26 + $0x960] sm:$0xff]  ;;  %v308_v36 = vld [vmem:[%s7596_s26 + $0x170] sm:$0xff] }
  0x42   : > { %v943_v26 = vmul.f32 0.33333334, %v815_v14  ;;  %v691_v30 = vadd.f32 %v435_v20, %v307_v18  ;;  %v563_v32 = vld [vmem:[%s7596_s26 + $0x968] sm:$0xff]  ;;  %v816_v34 = vadd.f32 %v688_v23, %v560_v27  ;;  %v309_v37 = vld [vmem:[%s7596_s26 + $0x178] sm:$0xff]  ;;  %v436_v41 = vld [vmem:[%s7596_s26 + $0x570] sm:$0xff] }
  0x43   : > { %v937_v60 = vmul.f32 0.33333334, %v809_v47  ;;  %v938_v63 = vmul.f32 0.33333334, %v810_v51  ;;  %v437_v42 = vld [vmem:[%s7596_s26 + $0x578] sm:$0xff]  ;;  %v310_v43 = vld [vmem:[%s7596_s26 + $0x180] sm:$0xff] }
  0x44   : > { %v819_v40 = vadd.f32 %v691_v30, %v563_v32  ;;  %v311_v44 = vld [vmem:[%s7596_s26 + $0x188] sm:$0xff]  ;;  %v944_v47 = vmul.f32 0.33333334, %v816_v34  ;;  %v564_v53 = vld [vmem:[%s7596_s26 + $0x970] sm:$0xff]  ;;  %v441_v4 = vld [vmem:[%s7596_s26 + $0x598] sm:$0xff] }
  0x45   : > { %v1059_v7 = vpack.c.bf16 %v937_v60, %v936_v59  ;;  %v1060_v12 = vpack.c.bf16 %v939_v0, %v938_v63  ;;  %v439_v46 = vld [vmem:[%s7596_s26 + $0x588] sm:$0xff]  ;;  %v313_v63 = vld [vmem:[%s7596_s26 + $0x198] sm:$0xff]  ;;  %v568_v15 = vld [vmem:[%s7596_s26 + $0x990] sm:$0xff] }
  0x46   : > { %6211 = vmatmul.mubr.msk.bf16.gmra.mxu0 %vm1123_vm0, %v1053_v57  ;;  %v430_v57 = vld [vmem:[%s7596_s26 + $0x540] sm:$0xff]  ;;  %v947_v52 = vmul.f32 0.33333334, %v819_v40  ;;  %v695_v56 = vadd.f32 %v439_v46, %v311_v44  ;;  %v567_v58 = vld [vmem:[%s7596_s26 + $0x988] sm:$0xff]  ;;  %v445_v30 = vld [vmem:[%s7596_s26 + $0x5b8] sm:$0xff] }
  0x47   : > { %6214 = vmatprep.mubr.msk.bf16.mxu0 %vm1123_vm0, %v1054_v62  ;;  %v685_v62 = vadd.f32 %v429_v54, %v301_v49  ;;  %v686_v3 = vadd.f32 %v430_v57, %v302_v55  ;;  %v692_v49 = vadd.f32 %v436_v41, %v308_v36  ;;  %v565_v54 = vld [vmem:[%s7596_s26 + $0x978] sm:$0xff]  ;;  %v566_v57 = vld [vmem:[%s7596_s26 + $0x980] sm:$0xff]  ;;  %v315_v6 = vld [vmem:[%s7596_s26 + $0x1a8] sm:$0xff] }
  0x48   : > { %v443_v8 = vld [vmem:[%s7596_s26 + $0x5a8] sm:$0xff]  ;;  %v572_v41 = vld [vmem:[%s7596_s26 + $0x9b0] sm:$0xff] }
  0x49   : > { %v813_v9 = vadd.f32 %v685_v62, %v557_v2  ;;  %v814_v13 = vadd.f32 %v686_v3, %v558_v5  ;;  %v820_v60 = vadd.f32 %v692_v49, %v564_v53  ;;  %v312_v62 = vld [vmem:[%s7596_s26 + $0x190] sm:$0xff]  ;;  %v823_v2 = vadd.f32 %v695_v56, %v567_v58  ;;  %v314_v5 = vld [vmem:[%s7596_s26 + $0x1a0] sm:$0xff]  ;;  %v571_v20 = vld [vmem:[%s7596_s26 + $0x9a8] sm:$0xff] }
  0x4a   : > { %v440_v3 = vld [vmem:[%s7596_s26 + $0x590] sm:$0xff]  ;;  %v699_v18 = vadd.f32 %v443_v8, %v315_v6  ;;  %v319_v32 = vld [vmem:[%s7596_s26 + $0x1c8] sm:$0xff]  ;;  %v449_v56 = vld [vmem:[%s7596_s26 + $0x5d8] sm:$0xff] }
  0x4b   : > { %v941_v22 = vmul.f32 0.33333334, %v813_v9  ;;  %v942_v25 = vmul.f32 0.33333334, %v814_v13  ;;  %v948_v9 = vmul.f32 0.33333334, %v820_v60 }
  0x4c   : > { %v951_v14 = vmul.f32 0.33333334, %v823_v2  ;;  %v447_v34 = vld [vmem:[%s7596_s26 + $0x5c8] sm:$0xff] }
  0x4d   : > { %v1061_v33 = vpack.c.bf16 %v941_v22, %v940_v21  ;;  %v1062_v38 = vpack.c.bf16 %v943_v26, %v942_v25  ;;  %v317_v25 = vld [vmem:[%s7596_s26 + $0x1b8] sm:$0xff]  ;;  %v703_v44 = vadd.f32 %v447_v34, %v319_v32  ;;  %v575_v46 = vld [vmem:[%s7596_s26 + $0x9c8] sm:$0xff]  ;;  %v582_v34 = vld [vmem:[%s7596_s26 + $0xa00] sm:$0xff] }
  0x4e   : > { %6215 = vmatmul.mubr.msk.bf16.gmra.mxu0 %vm1123_vm0, %v1055_v19  ;;  %v434_v19 = vld [vmem:[%s7596_s26 + $0x560] sm:$0xff]  ;;  %v323_v58 = vld [vmem:[%s7596_s26 + $0x1e8] sm:$0xff] }
  0x4f   : > { %6218 = vmatprep.mubr.msk.bf16.mxu0 %vm1123_vm0, %v1056_v24  ;;  %v689_v24 = vadd.f32 %v433_v16, %v305_v11  ;;  %v690_v29 = vadd.f32 %v434_v19, %v306_v17  ;;  %v696_v11 = vadd.f32 %v440_v3, %v312_v62  ;;  %v569_v16 = vld [vmem:[%s7596_s26 + $0x998] sm:$0xff]  ;;  %v570_v19 = vld [vmem:[%s7596_s26 + $0x9a0] sm:$0xff]  ;;  %v451_v60 = vld [vmem:[%s7596_s26 + $0x5e8] sm:$0xff] }
  0x50   : > { %v576_v3 = vld [vmem:[%s7596_s26 + $0x9d0] sm:$0xff]  ;;  %v707_v6 = vadd.f32 %v451_v60, %v323_v58  ;;  %v579_v8 = vld [vmem:[%s7596_s26 + $0x9e8] sm:$0xff] }
  0x51   : > { %v817_v35 = vadd.f32 %v689_v24, %v561_v28  ;;  %v818_v39 = vadd.f32 %v690_v29, %v562_v31  ;;  %v824_v22 = vadd.f32 %v696_v11, %v568_v15  ;;  %v316_v24 = vld [vmem:[%s7596_s26 + $0x1b0] sm:$0xff]  ;;  %v827_v28 = vadd.f32 %v699_v18, %v571_v20  ;;  %v318_v31 = vld [vmem:[%s7596_s26 + $0x1c0] sm:$0xff]  ;;  %v453_v18 = vld [vmem:[%s7596_s26 + $0x5f8] sm:$0xff] }
  0x52   : > { %v444_v29 = vld [vmem:[%s7596_s26 + $0x5b0] sm:$0xff]  ;;  %v327_v20 = vld [vmem:[%s7596_s26 + $0x208] sm:$0xff] }
  0x53   : > { %v945_v48 = vmul.f32 0.33333334, %v817_v35  ;;  %v946_v51 = vmul.f32 0.33333334, %v818_v39  ;;  %v952_v35 = vmul.f32 0.33333334, %v824_v22 }
  0x54   : > { %v955_v40 = vmul.f32 0.33333334, %v827_v28  ;;  %v455_v22 = vld [vmem:[%s7596_s26 + $0x608] sm:$0xff]  ;;  %v584_v58 = vld [vmem:[%s7596_s26 + $0xa10] sm:$0xff] }
  0x55   : > { %v1063_v59 = vpack.c.bf16 %v945_v48, %v944_v47  ;;  %v1064_v0 = vpack.c.bf16 %v947_v52, %v946_v51  ;;  %v321_v51 = vld [vmem:[%s7596_s26 + $0x1d8] sm:$0xff] }
  0x56   : > { %6219 = vmatmul.mubr.msk.bf16.gmra.mxu0 %vm1123_vm0, %v1057_v45  ;;  %v438_v45 = vld [vmem:[%s7596_s26 + $0x580] sm:$0xff] }
  0x57   : > { %6222 = vmatprep.mubr.msk.bf16.mxu0 %vm1123_vm0, %v1058_v50  ;;  %v693_v50 = vadd.f32 %v437_v42, %v309_v37  ;;  %v694_v55 = vadd.f32 %v438_v45, %v310_v43  ;;  %v700_v37 = vadd.f32 %v444_v29, %v316_v24  ;;  %v573_v42 = vld [vmem:[%s7596_s26 + $0x9b8] sm:$0xff]  ;;  %v574_v45 = vld [vmem:[%s7596_s26 + $0x9c0] sm:$0xff] }
  0x59   : > { %v821_v61 = vadd.f32 %v693_v50, %v565_v54  ;;  %v822_v1 = vadd.f32 %v694_v55, %v566_v57  ;;  %v828_v48 = vadd.f32 %v700_v37, %v572_v41  ;;  %v320_v50 = vld [vmem:[%s7596_s26 + $0x1d0] sm:$0xff]  ;;  %v831_v54 = vadd.f32 %v703_v44, %v575_v46  ;;  %v322_v57 = vld [vmem:[%s7596_s26 + $0x1e0] sm:$0xff] }
  0x5a   : > { %v448_v55 = vld [vmem:[%s7596_s26 + $0x5d0] sm:$0xff]  ;;  %v330_v46 = vld [vmem:[%s7596_s26 + $0x220] sm:$0xff] }
  0x5b   : > { %v949_v10 = vmul.f32 0.33333334, %v821_v61  ;;  %v950_v13 = vmul.f32 0.33333334, %v822_v1  ;;  %v956_v61 = vmul.f32 0.33333334, %v828_v48 }
  0x5c   : > { %v959_v2 = vmul.f32 0.33333334, %v831_v54  ;;  %v456_v41 = vld [vmem:[%s7596_s26 + $0x610] sm:$0xff]  ;;  %v6483_v48 = vld [vmem:[%s10872_s1 + $0x20] sm:$0xff]  }
  0x5d   : > { %v1065_v21 = vpack.c.bf16 %v949_v10, %v948_v9  ;;  %v1066_v26 = vpack.c.bf16 %v951_v14, %v950_v13  ;;  %v325_v13 = vld [vmem:[%s7596_s26 + $0x1f8] sm:$0xff] }
  0x5e   : > { %6223 = vmatmul.mubr.msk.bf16.gmra.mxu0 %vm1123_vm0, %v1059_v7  ;;  %v442_v7 = vld [vmem:[%s7596_s26 + $0x5a0] sm:$0xff] }
  0x5f   : > { %6226 = vmatprep.mubr.msk.bf16.mxu0 %vm1123_vm0, %v1060_v12  ;;  %v697_v12 = vadd.f32 %v441_v4, %v313_v63  ;;  %v698_v17 = vadd.f32 %v442_v7, %v314_v5  ;;  %v704_v63 = vadd.f32 %v448_v55, %v320_v50  ;;  %v577_v4 = vld [vmem:[%s7596_s26 + $0x9d8] sm:$0xff]  ;;  %v578_v7 = vld [vmem:[%s7596_s26 + $0x9e0] sm:$0xff]  ;;  %v459_v50 = vld [vmem:[%s7596_s26 + $0x628] sm:$0xff] }
  0x61   : > { %v825_v23 = vadd.f32 %v697_v12, %v569_v16  ;;  %v826_v27 = vadd.f32 %v698_v17, %v570_v19  ;;  %v832_v10 = vadd.f32 %v704_v63, %v576_v3  ;;  %v324_v12 = vld [vmem:[%s7596_s26 + $0x1f0] sm:$0xff]  ;;  %v835_v16 = vadd.f32 %v707_v6, %v579_v8  ;;  %v326_v19 = vld [vmem:[%s7596_s26 + $0x200] sm:$0xff]  ;;  %v587_v63 = vld [vmem:[%s7596_s26 + $0xa28] sm:$0xff] }
  0x62   : > { %v452_v17 = vld [vmem:[%s7596_s26 + $0x5f0] sm:$0xff] }
  0x63   : > { %v953_v36 = vmul.f32 0.33333334, %v825_v23  ;;  %v954_v39 = vmul.f32 0.33333334, %v826_v27  ;;  %v960_v23 = vmul.f32 0.33333334, %v832_v10 }
  0x64   : > { %v6482_v27 = vld [vmem:[%s10872_s1 + $0x28] sm:$0xff]   ;;  %v963_v29 = vmul.f32 0.33333334, %v835_v16  ;;  %v332_v3 = vld [vmem:[%s7596_s26 + $0x230] sm:$0xff]  ;;  %v461_v10 = vld [vmem:[%s7596_s26 + $0x638] sm:$0xff] }
  0x65   : > { %v1067_v47 = vpack.c.bf16 %v953_v36, %v952_v35  ;;  %v1068_v52 = vpack.c.bf16 %v955_v40, %v954_v39  ;;  %v583_v35 = vld [vmem:[%s7596_s26 + $0xa08] sm:$0xff]  ;;  %6318 = vmatprep.subr.bf16.mxu1 %v6482_v27  ;;  %v328_v36 = vld [vmem:[%s7596_s26 + $0x210] sm:$0xff]  ;;  %v329_v40 = vld [vmem:[%s7596_s26 + $0x218] sm:$0xff] }
  0x66   : > { %6227 = vmatmul.mubr.msk.bf16.gmra.mxu0 %vm1123_vm0, %v1061_v33  ;;  %v446_v33 = vld [vmem:[%s7596_s26 + $0x5c0] sm:$0xff]  ;;  %6319 = vmatpush3.bf16.msra.mxu1 %v6482_v27  ;;  %v712_v54 = vadd.f32 %v456_v41, %v328_v36  ;;  %v465_v36 = vld [vmem:[%s7596_s26 + $0x658] sm:$0xff] }
  0x67   : > { %6230 = vmatprep.mubr.msk.bf16.mxu0 %vm1123_vm0, %v1062_v38  ;;  %v701_v38 = vadd.f32 %v445_v30, %v317_v25  ;;  %v702_v43 = vadd.f32 %v446_v33, %v318_v31  ;;  %v708_v25 = vadd.f32 %v452_v17, %v324_v12  ;;  %v580_v30 = vld [vmem:[%s7596_s26 + $0x9f0] sm:$0xff]  ;;  %v581_v31 = vld [vmem:[%s7596_s26 + $0x9f8] sm:$0xff]  ;;  %v711_v33 = vadd.f32 %v455_v22, %v327_v20  ;;  %v335_v12 = vld [vmem:[%s7596_s26 + $0x248] sm:$0xff] }
  0x68   : > { %6320 = vmatprep.subr.bf16.mxu1 %v6483_v48  ;;  %v589_v22 = vld [vmem:[%s7596_s26 + $0xa38] sm:$0xff] }
  0x69   : > { %v829_v49 = vadd.f32 %v701_v38, %v573_v42  ;;  %v830_v53 = vadd.f32 %v702_v43, %v574_v45  ;;  %v836_v38 = vadd.f32 %v708_v25, %v580_v30  ;;  %v457_v42 = vld [vmem:[%s7596_s26 + $0x618] sm:$0xff]  ;;  %v839_v45 = vadd.f32 %v711_v33, %v583_v35  ;;  %v590_v25 = vld [vmem:[%s7596_s26 + $0xa40] sm:$0xff]  ;;  %v336_v30 = vld [vmem:[%s7596_s26 + $0x250] sm:$0xff] }
  0x6a   : > { %v713_v55 = vadd.f32 %v457_v42, %v329_v40  ;;  %6321 = vmatpush3.bf16.msra.mxu1 %v6483_v48  ;;  %v464_v35 = vld [vmem:[%s7596_s26 + $0x650] sm:$0xff]  ;;  %v467_v40 = vld [vmem:[%s7596_s26 + $0x668] sm:$0xff]  ;;  %v593_v48 = vld [vmem:[%s7596_s26 + $0xa58] sm:$0xff] }
  0x6b   : > { %v957_v62 = vmul.f32 0.33333334, %v829_v49  ;;  %v958_v1 = vmul.f32 0.33333334, %v830_v53  ;;  %v458_v49 = vld [vmem:[%s7596_s26 + $0x620] sm:$0xff] }
  0x6c   : > { %v714_v60 = vadd.f32 %v458_v49, %v330_v46 }
  0x6d   : > { %v1069_v9 = vpack.c.bf16 %v957_v62, %v956_v61  ;;  %v1070_v14 = vpack.c.bf16 %v959_v2, %v958_v1  ;;  %v586_v62 = vld [vmem:[%s7596_s26 + $0xa20] sm:$0xff]  ;;  %v840_v1 = vadd.f32 %v712_v54, %v584_v58 }
  0x6e   : > { %6231 = vmatmul.mubr.msk.bf16.gmra.mxu0 %vm1123_vm0, %v1063_v59  ;;  %v450_v59 = vld [vmem:[%s7596_s26 + $0x5e0] sm:$0xff] }
  0x6f   : > { %6234 = vmatprep.mubr.msk.bf16.mxu0 %vm1123_vm0, %v1064_v0  ;;  %v705_v0 = vadd.f32 %v449_v56, %v321_v51  ;;  %v706_v5 = vadd.f32 %v450_v59, %v322_v57  ;;  %v6484_v51 = vld [vmem:[%s10872_s1 + $0x18] sm:$0xff]   ;;  %v967_v57 = vmul.f32 0.33333334, %v839_v45 }
  0x70   : > { %v585_v59 = vld [vmem:[%s7596_s26 + $0xa18] sm:$0xff]  ;;  %6322 = vmatprep.subr.bf16.mxu1 %v6484_v51 }
  0x71   : > { %v833_v11 = vadd.f32 %v705_v0, %v577_v4  ;;  %v834_v15 = vadd.f32 %v706_v5, %v578_v7  ;;  %v841_v2 = vadd.f32 %v713_v55, %v585_v59  ;;  %v333_v4 = vld [vmem:[%s7596_s26 + $0x238] sm:$0xff]  ;;  %6323 = vmatpush3.bf16.msra.mxu1 %v6484_v51  ;;  %v6485_v5 = vld [vmem:[%s10872_s1 + $0x10] sm:$0xff]   ;;  %v842_v7 = vadd.f32 %v714_v60, %v586_v62  ;;  %v594_v51 = vld [vmem:[%s7596_s26 + $0xa60] sm:$0xff] }
  0x72   : > { %6324 = vmatprep.subr.bf16.mxu1 %v6485_v5  ;;  %v469_v62 = vld [vmem:[%s7596_s26 + $0x678] sm:$0xff] }
  0x73   : > { %v961_v24 = vmul.f32 0.33333334, %v833_v11  ;;  %v962_v28 = vmul.f32 0.33333334, %v834_v15  ;;  %v334_v11 = vld [vmem:[%s7596_s26 + $0x240] sm:$0xff] }
  0x74   : > { %v968_v15 = vmul.f32 0.33333334, %v840_v1  ;;  %v969_v16 = vmul.f32 0.33333334, %v841_v2  ;;  %v470_v1 = vld [vmem:[%s7596_s26 + $0x680] sm:$0xff]  ;;  %v471_v2 = vld [vmem:[%s7596_s26 + $0x688] sm:$0xff] }
  0x75   : > { %v1071_v37 = vpack.c.bf16 %v961_v24, %v960_v23  ;;  %v1072_v43 = vpack.c.bf16 %v963_v29, %v962_v28  ;;  %6325 = vmatpush3.bf16.msra.mxu1 %v6485_v5 }
  0x76   : > { %6235 = vmatmul.mubr.msk.bf16.gmra.mxu0 %vm1123_vm0, %v1065_v21  ;;  %v454_v21 = vld [vmem:[%s7596_s26 + $0x600] sm:$0xff]  ;;  %v1075_v27 = vpack.c.bf16 %v969_v16, %v968_v15 }
  0x77   : > { %6238 = vmatprep.mubr.msk.bf16.mxu0 %vm1123_vm0, %v1066_v26  ;;  %v709_v26 = vadd.f32 %v453_v18, %v325_v13  ;;  %v710_v32 = vadd.f32 %v454_v21, %v326_v19  ;;  %v462_v13 = vld [vmem:[%s7596_s26 + $0x640] sm:$0xff]  ;;  %v717_v18 = vadd.f32 %v461_v10, %v333_v4  ;;  %v970_v19 = vmul.f32 0.33333334, %v842_v7  ;;  %v588_v21 = vld [vmem:[%s7596_s26 + $0xa30] sm:$0xff]  ;;  %v597_v10 = vld [vmem:[%s7596_s26 + $0xa78] sm:$0xff] }
  0x78   : > { %v718_v23 = vadd.f32 %v462_v13, %v334_v11  ;;  %v598_v13 = vld [vmem:[%s7596_s26 + $0xa80] sm:$0xff] }
  0x79   : > { %v837_v39 = vadd.f32 %v709_v26, %v581_v31  ;;  %v838_v44 = vadd.f32 %v710_v32, %v582_v34  ;;  %v591_v26 = vld [vmem:[%s7596_s26 + $0xa48] sm:$0xff]  ;;  %v845_v29 = vadd.f32 %v717_v18, %v589_v22  ;;  %v337_v31 = vld [vmem:[%s7596_s26 + $0x258] sm:$0xff]  ;;  %v344_v18 = vld [vmem:[%s7596_s26 + $0x290] sm:$0xff] }
  0x7a   : > { %v846_v33 = vadd.f32 %v718_v23, %v590_v25  ;;  %v472_v23 = vld [vmem:[%s7596_s26 + $0x690] sm:$0xff]  ;;  %v346_v25 = vld [vmem:[%s7596_s26 + $0x2a0] sm:$0xff] }
  0x7b   : > { %v965_v53 = vmul.f32 0.33333334, %v837_v39  ;;  %v966_v56 = vmul.f32 0.33333334, %v838_v44  ;;  %v466_v39 = vld [vmem:[%s7596_s26 + $0x660] sm:$0xff]  ;;  %v721_v44 = vadd.f32 %v465_v36, %v337_v31  ;;  %v728_v31 = vadd.f32 %v472_v23, %v344_v18  ;;  %v601_v36 = vld [vmem:[%s7596_s26 + $0xa98] sm:$0xff] }
  0x7c   : > { %v973_v42 = vmul.f32 0.33333334, %v845_v29  ;;  %v974_v45 = vmul.f32 0.33333334, %v846_v33  ;;  %v609_v23 = vld [vmem:[%s7596_s26 + $0xad8] sm:$0xff] }
  0x7d   : > { %v1074_v6 = vpack.c.bf16 %v967_v57, %v966_v56  ;;  %v849_v55 = vadd.f32 %v721_v44, %v593_v48  ;;  %v340_v56 = vld [vmem:[%s7596_s26 + $0x270] sm:$0xff]  ;;  %v341_v57 = vld [vmem:[%s7596_s26 + $0x278] sm:$0xff] }
  0x7e   : > { %6239 = vmatmul.mubr.msk.bf16.gmra.mxu0 %vm1123_vm0, %v1067_v47  ;;  %v331_v47 = vld [vmem:[%s7596_s26 + $0x228] sm:$0xff]  ;;  %v348_v44 = vld [vmem:[%s7596_s26 + $0x2b0] sm:$0xff] }
  0x7f   : > { %6242 = vmatprep.mubr.msk.bf16.mxu0 %vm1123_vm0, %v1068_v52  ;;  %v964_v52 = vmul.f32 0.33333334, %v836_v38  ;;  %v715_v61 = vadd.f32 %v459_v50, %v331_v47  ;;  %v339_v38 = vld [vmem:[%s7596_s26 + $0x268] sm:$0xff]  ;;  %v592_v47 = vld [vmem:[%s7596_s26 + $0xa50] sm:$0xff]  ;;  %v977_v4 = vmul.f32 0.33333334, %v849_v55 }
  0x80   : > { %v723_v50 = vadd.f32 %v467_v40, %v339_v38  ;;  %v603_v40 = vld [vmem:[%s7596_s26 + $0xaa8] sm:$0xff] }
  0x81   : > { %v1073_v0 = vpack.c.bf16 %v965_v53, %v964_v52  ;;  %v843_v8 = vadd.f32 %v715_v61, %v587_v63  ;;  %v595_v52 = vld [vmem:[%s7596_s26 + $0xa68] sm:$0xff]  ;;  %v468_v61 = vld [vmem:[%s7596_s26 + $0x670] sm:$0xff]  ;;  %v342_v63 = vld [vmem:[%s7596_s26 + $0x280] sm:$0xff] }
  0x82   : > { %v851_v60 = vadd.f32 %v723_v50, %v595_v52  ;;  %v724_v5 = vadd.f32 %v468_v61, %v340_v56  ;;  %v726_v11 = vadd.f32 %v470_v1, %v342_v63  ;;  %v477_v50 = vld [vmem:[%s7596_s26 + $0x6b8] sm:$0xff]  ;;  %v478_v52 = vld [vmem:[%s7596_s26 + $0x6c0] sm:$0xff] }
  0x83   : > { %v971_v20 = vmul.f32 0.33333334, %v843_v8  ;;  %v605_v63 = vld [vmem:[%s7596_s26 + $0xab8] sm:$0xff] }
  0x84   : > { %v979_v8 = vmul.f32 0.33333334, %v851_v60 }
  0x85   : > { %v1076_v32 = vpack.c.bf16 %v971_v20, %v970_v19  ;;  %v345_v19 = vld [vmem:[%s7596_s26 + $0x298] sm:$0xff] }
  0x86   : > { %6243 = vmatmul.mubr.msk.bf16.gmra.mxu0 %vm1123_vm0, %v1069_v9  ;;  %v460_v9 = vld [vmem:[%s7596_s26 + $0x630] sm:$0xff] }
  0x87   : > { %6246 = vmatprep.mubr.msk.bf16.mxu0 %vm1123_vm0, %v1070_v14  ;;  %v463_v14 = vld [vmem:[%s7596_s26 + $0x648] sm:$0xff]  ;;  %v716_v17 = vadd.f32 %v460_v9, %v332_v3  ;;  %v596_v9 = vld [vmem:[%s7596_s26 + $0xa70] sm:$0xff] }
  0x88   : > { %v719_v24 = vadd.f32 %v463_v14, %v335_v12  ;;  %v599_v14 = vld [vmem:[%s7596_s26 + $0xa88] sm:$0xff]  ;;  %v852_v16 = vadd.f32 %v724_v5, %v596_v9  ;;  %v480_v5 = vld [vmem:[%s7596_s26 + $0x6d0] sm:$0xff]  ;;  %v353_v9 = vld [vmem:[%s7596_s26 + $0x2d8] sm:$0xff] }
  0x89   : > { %v844_v28 = vadd.f32 %v716_v17, %v588_v21  ;;  %v854_v21 = vadd.f32 %v726_v11, %v598_v13  ;;  %v354_v13 = vld [vmem:[%s7596_s26 + $0x2e0] sm:$0xff] }
  0x8a   : > { %v847_v34 = vadd.f32 %v719_v24, %v591_v26  ;;  %v473_v24 = vld [vmem:[%s7596_s26 + $0x698] sm:$0xff]  ;;  %v347_v26 = vld [vmem:[%s7596_s26 + $0x2a8] sm:$0xff]  ;;  %v980_v29 = vmul.f32 0.33333334, %v852_v16 }
  0x8b   : > { %v972_v41 = vmul.f32 0.33333334, %v844_v28  ;;  %v475_v28 = vld [vmem:[%s7596_s26 + $0x6a8] sm:$0xff]  ;;  %v982_v33 = vmul.f32 0.33333334, %v854_v21 }
  0x8c   : > { %v975_v46 = vmul.f32 0.33333334, %v847_v34  ;;  %v731_v38 = vadd.f32 %v475_v28, %v347_v26  ;;  %v355_v16 = vld [vmem:[%s7596_s26 + $0x2e8] sm:$0xff]  ;;  %v610_v26 = vld [vmem:[%s7596_s26 + $0xae0] sm:$0xff]  ;;  %v356_v28 = vld [vmem:[%s7596_s26 + $0x2f0] sm:$0xff] }
  0x8d   : > { %v1077_v53 = vpack.c.bf16 %v973_v42, %v972_v41 }
  0x8e   : > { %6247 = vmatmul.mubr.msk.bf16.gmra.mxu0 %vm1123_vm0, %v1071_v37  ;;  %v338_v37 = vld [vmem:[%s7596_s26 + $0x260] sm:$0xff]  ;;  %v1078_v58 = vpack.c.bf16 %v975_v46, %v974_v45  ;;  %v349_v45 = vld [vmem:[%s7596_s26 + $0x2b8] sm:$0xff]  ;;  %v476_v46 = vld [vmem:[%s7596_s26 + $0x6b0] sm:$0xff] }
  0x8f   : > { %6250 = vmatprep.mubr.msk.bf16.mxu0 %vm1123_vm0, %v1072_v43  ;;  %v720_v43 = vadd.f32 %v464_v35, %v336_v30  ;;  %v722_v49 = vadd.f32 %v466_v39, %v338_v37  ;;  %v600_v35 = vld [vmem:[%s7596_s26 + $0xa90] sm:$0xff]  ;;  %v602_v39 = vld [vmem:[%s7596_s26 + $0xaa0] sm:$0xff]  ;;  %v732_v55 = vadd.f32 %v476_v46, %v348_v44  ;;  %v487_v46 = vld [vmem:[%s7596_s26 + $0x708] sm:$0xff] }
  0x90   : > { %v856_v42 = vadd.f32 %v728_v31, %v600_v35  ;;  %v611_v31 = vld [vmem:[%s7596_s26 + $0xae8] sm:$0xff] }
  0x91   : > { %v848_v54 = vadd.f32 %v720_v43, %v592_v47  ;;  %v850_v59 = vadd.f32 %v722_v49, %v594_v51  ;;  %v859_v49 = vadd.f32 %v731_v38, %v603_v40  ;;  %v350_v51 = vld [vmem:[%s7596_s26 + $0x2c0] sm:$0xff] }
  0x92   : > { %v984_v56 = vmul.f32 0.33333334, %v856_v42  ;;  %v734_v60 = vadd.f32 %v478_v52, %v350_v51  ;;  %v486_v40 = vld [vmem:[%s7596_s26 + $0x700] sm:$0xff]  ;;  %v615_v52 = vld [vmem:[%s7596_s26 + $0xb08] sm:$0xff] }
  0x93   : > { %v976_v3 = vmul.f32 0.33333334, %v848_v54  ;;  %v978_v7 = vmul.f32 0.33333334, %v850_v59  ;;  %v479_v54 = vld [vmem:[%s7596_s26 + $0x6c8] sm:$0xff]  ;;  %v733_v59 = vadd.f32 %v477_v50, %v349_v45  ;;  %v488_v50 = vld [vmem:[%s7596_s26 + $0x710] sm:$0xff] }
  0x94   : > { %v359_v45 = vld [vmem:[%s7596_s26 + $0x308] sm:$0xff] }
  0x95   : > { %v1079_v15 = vpack.c.bf16 %v977_v4, %v976_v3  ;;  %v1080_v20 = vpack.c.bf16 %v979_v8, %v978_v7  ;;  %v352_v4 = vld [vmem:[%s7596_s26 + $0x2d0] sm:$0xff]  ;;  %v861_v7 = vadd.f32 %v733_v59, %v605_v63 }
  0x96   : > { %6251 = vmatmul.mubr.msk.bf16.gmra.mxu0 %vm1123_vm0, %v1073_v0  ;;  %v343_v0 = vld [vmem:[%s7596_s26 + $0x288] sm:$0xff]  ;;  %v616_v59 = vld [vmem:[%s7596_s26 + $0xb10] sm:$0xff] }
  0x97   : > { %6254 = vmatprep.mubr.msk.bf16.mxu0 %vm1123_vm0, %v1074_v6  ;;  %v725_v6 = vadd.f32 %v469_v62, %v341_v57  ;;  %v727_v12 = vadd.f32 %v471_v2, %v343_v0  ;;  %v987_v62 = vmul.f32 0.33333334, %v859_v49  ;;  %v606_v0 = vld [vmem:[%s7596_s26 + $0xac0] sm:$0xff]  ;;  %v607_v2 = vld [vmem:[%s7596_s26 + $0xac8] sm:$0xff]  ;;  %v989_v21 = vmul.f32 0.33333334, %v861_v7 }
  0x98   : > { %v862_v8 = vadd.f32 %v734_v60, %v606_v0  ;;  %v360_v49 = vld [vmem:[%s7596_s26 + $0x310] sm:$0xff]  ;;  %v362_v60 = vld [vmem:[%s7596_s26 + $0x320] sm:$0xff]  ;;  %v617_v0 = vld [vmem:[%s7596_s26 + $0xb18] sm:$0xff] }
  0x99   : > { %v853_v17 = vadd.f32 %v725_v6, %v597_v10  ;;  %v855_v22 = vadd.f32 %v727_v12, %v599_v14  ;;  %v481_v10 = vld [vmem:[%s7596_s26 + $0x6d8] sm:$0xff]  ;;  %v482_v14 = vld [vmem:[%s7596_s26 + $0x6e0] sm:$0xff]  ;;  %v492_v7 = vld [vmem:[%s7596_s26 + $0x730] sm:$0xff] }
  0x9b   : > { %v981_v30 = vmul.f32 0.33333334, %v853_v17  ;;  %v983_v34 = vmul.f32 0.33333334, %v855_v22  ;;  %v483_v17 = vld [vmem:[%s7596_s26 + $0x6e8] sm:$0xff] }
  0x9c   : > { %v990_v22 = vmul.f32 0.33333334, %v862_v8 }
  0x9d   : > { %v1081_v41 = vpack.c.bf16 %v981_v30, %v980_v29  ;;  %v1082_v47 = vpack.c.bf16 %v983_v34, %v982_v33  ;;  %v484_v29 = vld [vmem:[%s7596_s26 + $0x6f0] sm:$0xff]  ;;  %v485_v33 = vld [vmem:[%s7596_s26 + $0x6f8] sm:$0xff] }
  0x9e   : > { %6255 = vmatmul.mubr.msk.bf16.gmra.mxu0 %vm1123_vm0, %v1075_v27  ;;  %v474_v27 = vld [vmem:[%s7596_s26 + $0x6a0] sm:$0xff]  ;;  %v740_v38 = vadd.f32 %v484_v29, %v356_v28  ;;  %v496_v28 = vld [vmem:[%s7596_s26 + $0x750] sm:$0xff] }
  0x9f   : > { %6258 = vmatprep.mubr.msk.bf16.mxu0 %vm1123_vm0, %v1076_v32  ;;  %v729_v32 = vadd.f32 %v473_v24, %v345_v19  ;;  %v730_v37 = vadd.f32 %v474_v27, %v346_v25  ;;  %v608_v19 = vld [vmem:[%s7596_s26 + $0xad0] sm:$0xff]  ;;  %v738_v24 = vadd.f32 %v482_v14, %v354_v13  ;;  %v739_v27 = vadd.f32 %v483_v17, %v355_v16  ;;  %v366_v13 = vld [vmem:[%s7596_s26 + $0x340] sm:$0xff] }
  0xa1   : > { %v857_v43 = vadd.f32 %v729_v32, %v601_v36  ;;  %v858_v48 = vadd.f32 %v730_v37, %v602_v39  ;;  %v357_v32 = vld [vmem:[%s7596_s26 + $0x2f8] sm:$0xff]  ;;  %v866_v36 = vadd.f32 %v738_v24, %v610_v26  ;;  %v612_v37 = vld [vmem:[%s7596_s26 + $0xaf0] sm:$0xff]  ;;  %v358_v39 = vld [vmem:[%s7596_s26 + $0x300] sm:$0xff]  ;;  %v867_v42 = vadd.f32 %v739_v27, %v611_v31 }
  0xa2   : > { %v741_v44 = vadd.f32 %v485_v33, %v357_v32  ;;  %v368_v27 = vld [vmem:[%s7596_s26 + $0x350] sm:$0xff]  ;;  %v622_v31 = vld [vmem:[%s7596_s26 + $0xb40] sm:$0xff]  ;;  %v623_v32 = vld [vmem:[%s7596_s26 + $0xb48] sm:$0xff] }
  0xa3   : > { %v985_v57 = vmul.f32 0.33333334, %v857_v43  ;;  %v986_v61 = vmul.f32 0.33333334, %v858_v48  ;;  %v613_v43 = vld [vmem:[%s7596_s26 + $0xaf8] sm:$0xff]  ;;  %v614_v48 = vld [vmem:[%s7596_s26 + $0xb00] sm:$0xff] }
  0xa4   : > { %v869_v63 = vadd.f32 %v741_v44, %v613_v43  ;;  %v369_v33 = vld [vmem:[%s7596_s26 + $0x358] sm:$0xff]  ;;  %v499_v43 = vld [vmem:[%s7596_s26 + $0x768] sm:$0xff] }
  0xa5   : > { %v1083_v6 = vpack.c.bf16 %v985_v57, %v984_v56  ;;  %v1084_v11 = vpack.c.bf16 %v987_v62, %v986_v61  ;;  %v994_v56 = vmul.f32 0.33333334, %v866_v36  ;;  %v868_v57 = vadd.f32 %v740_v38, %v612_v37  ;;  %v490_v61 = vld [vmem:[%s7596_s26 + $0x720] sm:$0xff] }
  0xa6   : > { %6259 = vmatmul.mubr.msk.bf16.gmra.mxu0 %vm1123_vm0, %v1077_v53  ;;  %v351_v53 = vld [vmem:[%s7596_s26 + $0x2c8] sm:$0xff]  ;;  %v995_v62 = vmul.f32 0.33333334, %v867_v42  ;;  %v498_v42 = vld [vmem:[%s7596_s26 + $0x760] sm:$0xff] }
  0xa7   : > { %6262 = vmatprep.mubr.msk.bf16.mxu0 %vm1123_vm0, %v1078_v58  ;;  %v604_v58 = vld [vmem:[%s7596_s26 + $0xab0] sm:$0xff]  ;;  %v735_v1 = vadd.f32 %v479_v54, %v351_v53  ;;  %v742_v53 = vadd.f32 %v486_v40, %v358_v39  ;;  %v361_v54 = vld [vmem:[%s7596_s26 + $0x318] sm:$0xff] }
  0xa8   : > { %v860_v3 = vadd.f32 %v732_v55, %v604_v58  ;;  %v489_v55 = vld [vmem:[%s7596_s26 + $0x718] sm:$0xff]  ;;  %v743_v58 = vadd.f32 %v487_v46, %v359_v45  ;;  %v624_v40 = vld [vmem:[%s7596_s26 + $0xb50] sm:$0xff] }
  0xa9   : > { %v863_v12 = vadd.f32 %v735_v1, %v607_v2  ;;  %v744_v1 = vadd.f32 %v488_v50, %v360_v49  ;;  %v363_v2 = vld [vmem:[%s7596_s26 + $0x328] sm:$0xff]  ;;  %v870_v8 = vadd.f32 %v742_v53, %v614_v48  ;;  %v625_v46 = vld [vmem:[%s7596_s26 + $0xb58] sm:$0xff]  ;;  %v372_v48 = vld [vmem:[%s7596_s26 + $0x370] sm:$0xff] }
  0xaa   : > { %v988_v18 = vmul.f32 0.33333334, %v860_v3  ;;  %v491_v3 = vld [vmem:[%s7596_s26 + $0x728] sm:$0xff]  ;;  %v871_v16 = vadd.f32 %v743_v58, %v615_v52  ;;  %v373_v49 = vld [vmem:[%s7596_s26 + $0x378] sm:$0xff]  ;;  %v500_v50 = vld [vmem:[%s7596_s26 + $0x770] sm:$0xff] }
  0xab   : > { %v991_v25 = vmul.f32 0.33333334, %v863_v12  ;;  %v493_v12 = vld [vmem:[%s7596_s26 + $0x738] sm:$0xff]  ;;  %v747_v17 = vadd.f32 %v491_v3, %v363_v2  ;;  %v872_v24 = vadd.f32 %v744_v1, %v616_v59  ;;  %v7985_v36 = vmul.f32 0.33333334, %v870_v8  ;;  %v502_v58 = vld [vmem:[%s7596_s26 + $0x780] sm:$0xff] }
  0xac   : > { %v1085_v35 = vpack.c.bf16 %v989_v21, %v988_v18  ;;  %v620_v18 = vld [vmem:[%s7596_s26 + $0xb30] sm:$0xff]  ;;  %v495_v21 = vld [vmem:[%s7596_s26 + $0x748] sm:$0xff]  ;;  %v7992_v44 = vmul.f32 0.33333334, %v871_v16 }
  0xad   : > { %v8001_v52 = vmul.f32 0.33333334, %v872_v24  ;;  %v503_v1 = vld [vmem:[%s7596_s26 + $0x788] sm:$0xff]  ;;  %v504_v8 = vld [vmem:[%s7596_s26 + $0x790] sm:$0xff] }
  0xae   : > { %6263 = vmatmul.mubr.msk.bf16.gmra.mxu0 %vm1123_vm0, %v1079_v15  ;;  %v736_v15 = vadd.f32 %v480_v5, %v352_v4  ;;  %v745_v4 = vadd.f32 %v489_v55, %v361_v54  ;;  %v618_v5 = vld [vmem:[%s7596_s26 + $0xb20] sm:$0xff]  ;;  %v1090_v16 = vpack.c.bf16 %v7992_v44, %v7985_v36 }
  0xaf   : > { %6266 = vmatprep.mubr.msk.bf16.mxu0 %vm1123_vm0, %v1080_v20  ;;  %v737_v20 = vadd.f32 %v481_v10, %v353_v9  ;;  %v619_v9 = vld [vmem:[%s7596_s26 + $0xb28] sm:$0xff]  ;;  %v746_v10 = vadd.f32 %v490_v61, %v362_v60  ;;  %v626_v55 = vld [vmem:[%s7596_s26 + $0xb60] sm:$0xff] }
  0xb0   : > { %v864_v30 = vadd.f32 %v736_v15, %v608_v19  ;;  %v7969_v15 = vmul.f32 0.33333334, %v868_v57  ;;  %v367_v19 = vld [vmem:[%s7596_s26 + $0x348] sm:$0xff]  ;;  %v873_v29 = vadd.f32 %v745_v4, %v617_v0  ;;  %v875_v45 = vadd.f32 %v747_v17, %v619_v9  ;;  %v374_v57 = vld [vmem:[%s7596_s26 + $0x380] sm:$0xff] }
  0xb1   : > { %v865_v34 = vadd.f32 %v737_v20, %v609_v23  ;;  %v494_v20 = vld [vmem:[%s7596_s26 + $0x740] sm:$0xff]  ;;  %v7975_v23 = vmul.f32 0.33333334, %v869_v63  ;;  %v874_v37 = vadd.f32 %v746_v10, %v618_v5  ;;  %v751_v39 = vadd.f32 %v495_v21, %v367_v19  ;;  %v627_v61 = vld [vmem:[%s7596_s26 + $0xb68] sm:$0xff]  ;;  %v628_v5 = vld [vmem:[%s7596_s26 + $0xb70] sm:$0xff] }
  0xb2   : > { %v750_v38 = vadd.f32 %v494_v20, %v366_v13  ;;  %v8007_v59 = vmul.f32 0.33333334, %v873_v29  ;;  %v375_v0 = vld [vmem:[%s7596_s26 + $0x388] sm:$0xff]  ;;  %v8017_v9 = vmul.f32 0.33333334, %v875_v45  ;;  %v758_v13 = vadd.f32 %v502_v58, %v374_v57  ;;  %v630_v19 = vld [vmem:[%s7596_s26 + $0xb80] sm:$0xff] }
  0xb3   : > { %v993_v51 = vmul.f32 0.33333334, %v865_v34  ;;  %v497_v34 = vld [vmem:[%s7596_s26 + $0x758] sm:$0xff]  ;;  %v8012_v2 = vmul.f32 0.33333334, %v874_v37  ;;  %v879_v4 = vadd.f32 %v751_v39, %v623_v32  ;;  %v759_v20 = vadd.f32 %v503_v1, %v375_v0  ;;  %v378_v21 = vld [vmem:[%s7596_s26 + $0x3a0] sm:$0xff] }
  0xb4   : > { %v753_v54 = vadd.f32 %v497_v34, %v369_v33  ;;  %v878_v3 = vadd.f32 %v750_v38, %v622_v31  ;;  %v507_v29 = vld [vmem:[%s7596_s26 + $0x7a8] sm:$0xff]  ;;  %v632_v33 = vld [vmem:[%s7596_s26 + $0xb90] sm:$0xff]  ;;  %v886_v37 = vadd.f32 %v758_v13, %v630_v19  ;;  %v633_v38 = vld [vmem:[%s7596_s26 + $0xb98] sm:$0xff] }
  0xb5   : > { %v8036_v31 = vmul.f32 0.33333334, %v879_v4  ;;  %v634_v44 = vld [vmem:[%s7596_s26 + $0xba0] sm:$0xff]  ;;  %v383_v58 = vld [vmem:[%s7596_s26 + $0x3c8] sm:$0xff]  ;;  %v636_v0 = vld [vmem:[%s7596_s26 + $0xbb0] sm:$0xff]  ;;  %v1092_v4 = vpack.c.bf16 %v8017_v9, %v8012_v2 }
  0xb6   : > { %6267 = vmatmul.mubr.msk.bf16.gmra.mxu0 %vm1123_vm0, %v1081_v41  ;;  %v1086_v41 = vpack.c.bf16 %v991_v25, %v990_v22  ;;  %v1088_v22 = vpack.c.bf16 %v995_v62, %v994_v56  ;;  %v621_v25 = vld [vmem:[%s7596_s26 + $0xb38] sm:$0xff] }
  0xb7   : > { %6270 = vmatprep.mubr.msk.bf16.mxu0 %vm1123_vm0, %v1082_v47  ;;  %v7945_v47 = vmul.f32 0.33333334, %v864_v30  ;;  %v501_v56 = vld [vmem:[%s7596_s26 + $0x778] sm:$0xff] }
  0xb8   : > { %v637_v1 = vld [vmem:[%s7596_s26 + $0xbb8] sm:$0xff] }
  0xb9   : > { %v1087_v14 = vpack.c.bf16 %v993_v51, %v7945_v47  ;;  %v752_v47 = vadd.f32 %v496_v28, %v368_v27  ;;  %v1089_v51 = vpack.c.bf16 %v7975_v23, %v7969_v15  ;;  %v505_v15 = vld [vmem:[%s7596_s26 + $0x798] sm:$0xff]  ;;  %v379_v28 = vld [vmem:[%s7596_s26 + $0x3a8] sm:$0xff] }
  0xba   : > { %v763_v45 = vadd.f32 %v507_v29, %v379_v28  ;;  %v515_v28 = vld [vmem:[%s7596_s26 + $0x7e8] sm:$0xff]  ;;  %v388_v29 = vld [vmem:[%s7596_s26 + $0x3f0] sm:$0xff] }
  0xbb   : > { %v880_v10 = vadd.f32 %v752_v47, %v624_v40  ;;  %v380_v40 = vld [vmem:[%s7596_s26 + $0x3b0] sm:$0xff]  ;;  %v509_v47 = vld [vmem:[%s7596_s26 + $0x7b8] sm:$0xff] }
  0xbe   : > { %6271 = vmatmul.mubr.msk.bf16.gmra.mxu0 %vm1123_vm0, %v1083_v6  ;;  %v364_v6 = vld [vmem:[%s7596_s26 + $0x330] sm:$0xff] }
  0xbf   : > { %6274 = vmatprep.mubr.msk.bf16.mxu0 %vm1123_vm0, %v1084_v11  ;;  %v365_v11 = vld [vmem:[%s7596_s26 + $0x338] sm:$0xff]  ;;  %v748_v26 = vadd.f32 %v492_v7, %v364_v6  ;;  %v756_v6 = vadd.f32 %v500_v50, %v372_v48  ;;  %v376_v7 = vld [vmem:[%s7596_s26 + $0x390] sm:$0xff] }
  0xc0   : > { %v749_v30 = vadd.f32 %v493_v12, %v365_v11  ;;  %v629_v11 = vld [vmem:[%s7596_s26 + $0xb78] sm:$0xff]  ;;  %v757_v12 = vadd.f32 %v501_v56, %v373_v49  ;;  %v760_v27 = vadd.f32 %v504_v8, %v376_v7  ;;  %v638_v7 = vld [vmem:[%s7596_s26 + $0xbc0] sm:$0xff]  ;;  %v384_v8 = vld [vmem:[%s7596_s26 + $0x3d0] sm:$0xff] }
  0xc1   : > { %v876_v53 = vadd.f32 %v748_v26, %v620_v18  ;;  %v881_v18 = vadd.f32 %v753_v54, %v625_v46  ;;  %v631_v26 = vld [vmem:[%s7596_s26 + $0xb88] sm:$0xff]  ;;  %v884_v32 = vadd.f32 %v756_v6, %v628_v5  ;;  %v381_v46 = vld [vmem:[%s7596_s26 + $0x3b8] sm:$0xff]  ;;  %v1091_v54 = vpack.c.bf16 %v8007_v59, %v8001_v52 }
  0xc2   : > { %v877_v60 = vadd.f32 %v749_v30, %v621_v25  ;;  %v8034_v30 = vmul.f32 0.33333334, %v878_v3  ;;  %v885_v36 = vadd.f32 %v757_v12, %v629_v11  ;;  %v888_v50 = vadd.f32 %v760_v27, %v632_v33  ;;  %v639_v12 = vld [vmem:[%s7596_s26 + $0xbc8] sm:$0xff] }
  0xc3   : > { %v8024_v17 = vmul.f32 0.33333334, %v876_v53  ;;  %v382_v53 = vld [vmem:[%s7596_s26 + $0x3c0] sm:$0xff]  ;;  %v8071_v52 = vmul.f32 0.33333334, %v886_v37  ;;  %v765_v3 = vadd.f32 %v509_v47, %v381_v46  ;;  %v387_v27 = vld [vmem:[%s7596_s26 + $0x3e8] sm:$0xff] }
  0xc4   : > { %v8029_v23 = vmul.f32 0.33333334, %v877_v60  ;;  %v510_v60 = vld [vmem:[%s7596_s26 + $0x7c0] sm:$0xff]  ;;  %v8082_v11 = vmul.f32 0.33333334, %v888_v50  ;;  %v1094_v9 = vpack.c.bf16 %v8036_v31, %v8034_v30  ;;  %v389_v37 = vld [vmem:[%s7596_s26 + $0x3f8] sm:$0xff] }
  0xc5   : > { %v766_v13 = vadd.f32 %v510_v60, %v382_v53  ;;  %v642_v53 = vld [vmem:[%s7596_s26 + $0xbe0] sm:$0xff]  ;;  %v643_v60 = vld [vmem:[%s7596_s26 + $0xbe8] sm:$0xff] }
  0xc6   : > { %6275 = vmatmul.mubr.msk.bf16.gmra.mxu0 %vm1123_vm0, %v1085_v35  ;;  %v370_v35 = vld [vmem:[%s7596_s26 + $0x360] sm:$0xff]  ;;  %v1093_v2 = vpack.c.bf16 %v8029_v23, %v8024_v17  ;;  %v893_v17 = vadd.f32 %v765_v3, %v637_v1 }
  0xc7   : > { %6278 = vmatprep.mubr.msk.bf16.mxu0 %vm1123_vm0, %v1086_v41  ;;  %v371_v41 = vld [vmem:[%s7596_s26 + $0x368] sm:$0xff]  ;;  %v754_v62 = vadd.f32 %v498_v42, %v370_v35  ;;  %v8040_v35 = vmul.f32 0.33333334, %v880_v10  ;;  %v8046_v42 = vmul.f32 0.33333334, %v881_v18  ;;  %v512_v10 = vld [vmem:[%s7596_s26 + $0x7d0] sm:$0xff] }
  0xc8   : > { %v755_v63 = vadd.f32 %v499_v43, %v371_v41  ;;  %v508_v41 = vld [vmem:[%s7596_s26 + $0x7b0] sm:$0xff]  ;;  %v887_v43 = vadd.f32 %v759_v20, %v631_v26  ;;  %v768_v23 = vadd.f32 %v512_v10, %v384_v8 }
  0xc9   : > { %v882_v24 = vadd.f32 %v754_v62, %v626_v55  ;;  %v8059_v55 = vmul.f32 0.33333334, %v884_v32  ;;  %v764_v57 = vadd.f32 %v508_v41, %v380_v40  ;;  %v8067_v62 = vld [vmem:[%s10873_s2] ss:$0 sm:$0xff]  ;;  %v640_v20 = vld [vmem:[%s7596_s26 + $0xbd0] sm:$0xff]  ;;  %v894_v41 = vadd.f32 %v766_v13, %v638_v7  ;;  %v645_v7 = vld [vmem:[%s7596_s26 + $0xbf8] sm:$0xff] }
  0xca   : > { %v883_v25 = vadd.f32 %v755_v63, %v627_v61  ;;  %v511_v61 = vld [vmem:[%s7596_s26 + $0x7c8] sm:$0xff]  ;;  %v8069_v63 = vmul.f32 0.33333334, %v885_v36  ;;  %v8077_v5 = vmul.f32 0.33333334, %v887_v43 }
  0xcb   : > { %v8051_v48 = vmul.f32 0.33333334, %v882_v24  ;;  %v892_v19 = vadd.f32 %v764_v57, %v636_v0  ;;  %v8125_v57 = vmul.f32 0.33333334, %v893_v17  ;;  %v8136_v10 = vmul.f32 0.33333334, %v894_v41 }
  0xcc   : > { %v8053_v49 = vmul.f32 0.33333334, %v883_v25  ;;  %v1095_v25 = vpack.c.bf16 %v8046_v42, %v8040_v35 }
  0xcd   : > { %v8121_v50 = vmul.f32 0.33333334, %v892_v19 }
  0xce   : > { %6279 = vmatmul.mubr.msk.bf16.gmra.mxu0 %vm1123_vm0, %v1087_v14  ;;  %v377_v14 = vld [vmem:[%s7596_s26 + $0x398] sm:$0xff]  ;;  %v1096_v33 = vpack.c.bf16 %v8053_v49, %v8051_v48 }
  0xcf   : > { %6282 = vmatprep.mubr.msk.bf16.mxu0 %vm1123_vm0, %v1088_v22  ;;  %v506_v22 = vld [vmem:[%s7596_s26 + $0x7a0] sm:$0xff]  ;;  %v761_v34 = vadd.f32 %v505_v15, %v377_v14  ;;  %v767_v14 = vadd.f32 %v511_v61, %v383_v58  ;;  %v385_v15 = vld [vmem:[%s7596_s26 + $0x3d8] sm:$0xff]  ;;  %v896_v58 = vadd.f32 %v768_v23, %v640_v20 }
  0xd0   : > { %v762_v39 = vadd.f32 %v506_v22, %v378_v21  ;;  %v386_v21 = vld [vmem:[%s7596_s26 + $0x3e0] sm:$0xff] }
  0xd1   : > { %v889_v56 = vadd.f32 %v761_v34, %v633_v38  ;;  %v514_v22 = vld [vmem:[%s7596_s26 + $0x7e0] sm:$0xff]  ;;  %v1097_v34 = vpack.c.bf16 %v8069_v63, %v8059_v55  ;;  %v516_v38 = vld [vmem:[%s7596_s26 + $0x7f0] sm:$0xff]  ;;  %v895_v43 = vadd.f32 %v767_v14, %v639_v12 }
  0xd2   : > { %v890_v59 = vadd.f32 %v762_v39, %v634_v44  ;;  %v517_v39 = vld [vmem:[%s7596_s26 + $0x7f8] sm:$0xff]  ;;  %v772_v61 = vadd.f32 %v516_v38, %v388_v29 }
  0xd3   : > { %v8091_v18 = vmul.f32 0.33333334, %v889_v56  ;;  %v8138_v12 = vmul.f32 0.33333334, %v895_v43 }
  0xd4   : > { %v8099_v26 = vmul.f32 0.33333334, %v890_v59  ;;  %v773_v59 = vadd.f32 %v517_v39, %v389_v37 }
  0xd6   : > { %6283 = vmatmul.mubr.msk.bf16.gmra.mxu0 %vm1123_vm0, %v1089_v51  ;;  %v635_v51 = vld [vmem:[%s7596_s26 + $0xba8] sm:$0xff]  ;;  %v901_v23 = vadd.f32 %v773_v59, %v645_v7  ;;  %v1102_v59 = vpack.c.bf16 %v8138_v12, %v8136_v10 }
  0xd7   : > { %6286 = vmatprep.mubr.msk.bf16.mxu0 %vm1123_vm0, %v1090_v16  ;;  %v891_v6 = vadd.f32 %v763_v45, %v635_v51  ;;  %v513_v16 = vld [vmem:[%s7596_s26 + $0x7d8] sm:$0xff]  ;;  %v770_v45 = vadd.f32 %v514_v22, %v386_v21 }
  0xd8   : > { %v769_v44 = vadd.f32 %v513_v16, %v385_v15  ;;  %v641_v51 = vld [vmem:[%s7596_s26 + $0xbd8] sm:$0xff] }
  0xd9   : > { %v8112_v36 = vmul.f32 0.33333334, %v891_v6  ;;  %v644_v6 = vld [vmem:[%s7596_s26 + $0xbf0] sm:$0xff]  ;;  %v898_v14 = vadd.f32 %v770_v45, %v642_v53 }
  0xda   : > { %v897_v13 = vadd.f32 %v769_v44, %v641_v51  ;;  %v900_v17 = vadd.f32 %v772_v61, %v644_v6  ;;  %v1101_v61 = vpack.c.bf16 %v8125_v57, %v8121_v50 }
  0xdc   : > { %v8157_v39 = vmul.f32 0.33333334, %v897_v13 }
  0xde   : > { %v6192_v24 = vpop.f32.mrf.mxu0  ;;  %6287 = vmatmul.mubr.msk.bf16.gmra.mxu0 %vm1123_vm0, %v1091_v54  ;;  %v771_v54 = vadd.f32 %v515_v28, %v387_v27 }
  0xdf   : > { %v8105_v32 = vadd.f32 %v6192_v24, %v8067_v62  ;;  %6290 = vmatprep.mubr.msk.bf16.mxu0 %vm1123_vm0, %v1092_v4  ;;  %v1098_v4 = vpack.c.bf16 %v8077_v5, %v8071_v52  ;;  %v8145_v24 = vmul.f32 0.33333334, %v896_v58 }
  0xe0   : > { %v1350_v40 = vpop.f32.mrf.mxu0  ;;  %v899_v20 = vadd.f32 %v771_v54, %v643_v60  ;;  %v1100_v54 = vpack.c.bf16 %v8112_v36, %v8099_v26 }
  0xe1   : > { %v1863_v46 = vand.u32 2147483647, %v8105_v32  ;;  %v8119_v47 = vadd.f32 %v8067_v62, %v1350_v40  ;;  %v8159_v40 = vmul.f32 0.33333334, %v898_v14  ;;  %v1103_v7 = vpack.c.bf16 %v8157_v39, %v8145_v24 }
  0xe2   : > { %v6193_v56 = vpop.f32.mrf.mxu0  ;;  %v8162_v44 = vmul.f32 0.33333334, %v899_v20 }
  0xe3   : > { %v1991_v0 = vsub.f32 0.0, %v1863_v46  ;;  %v1861_v1 = vand.u32 2147483647, %v8119_v47  ;;  %v8130_v3 = vadd.f32 %v6193_v56, %v8067_v62  ;;  %v8169_v46 = vmul.f32 0.33333334, %v901_v23 }
  0xe4   : > { %v1353_v8 = vpop.f32.mrf.mxu0  ;;  %v1104_v14 = vpack.c.bf16 %v8162_v44, %v8159_v40 }
  0xe5   : > { %v2121_v15 = vmul.f32 1.442695, %v1991_v0  ;;  %v1989_v16 = vsub.f32 0.0, %v1861_v1  ;;  %v1864_v19 = vand.u32 2147483647, %v8130_v3  ;;  %v8142_v21 = vadd.f32 %v8067_v62, %v1353_v8 }
  0xe6   : > { %v6196_v22 = vpop.f32.mrf.mxu0  ;;  %6291 = vmatmul.mubr.msk.bf16.gmra.mxu0 %vm1123_vm0, %v1093_v2  ;;  %v1099_v2 = vpack.c.bf16 %v8091_v18, %v8082_v11  ;;  %v2760_v42 = vmax.f32 %v8130_v3, 0.0 }
  0xe7   : > { %6486 = vpow2.f32 %v2121_v15  ;;  %v2117_v27 = vmul.f32 1.442695, %v1989_v16  ;;  %v1992_v28 = vsub.f32 0.0, %v1864_v19  ;;  %v8148_v29 = vadd.f32 %v6196_v22, %v8067_v62  ;;  %6294 = vmatprep.mubr.msk.bf16.mxu0 %vm1123_vm0, %v1094_v9 }
  0xe8   : > { %v1862_v37 = vand.u32 2147483647, %v8142_v21  ;;  %v1366_v38 = vpop.f32.mrf.mxu0  ;;  %v8167_v9 = vmul.f32 0.33333334, %v900_v17  ;;  %v2759_v16 = vmax.f32 %v8105_v32, 0.0 }
  0xe9   : > { %6488 = vpow2.f32 %v2117_v27  ;;  %v2123_v41 = vmul.f32 1.442695, %v1992_v28  ;;  %v1867_v43 = vand.u32 2147483647, %v8148_v29  ;;  %v8165_v30 = vadd.f32 %v8067_v62, %v1366_v38 }
  0xea   : > { %v1990_v45 = vsub.f32 0.0, %v1862_v37  ;;  %v6197_v31 = vpop.f32.mrf.mxu0  ;;  %v1105_v15 = vpack.c.bf16 %v8169_v46, %v8167_v9  ;;  %v2763_v48 = vmax.f32 %v8148_v29, 0.0 }
  0xeb   : > { %6490 = vpow2.f32 %v2123_v41  ;;  %v1995_v51 = vsub.f32 0.0, %v1867_v43  ;;  %v8172_v53 = vadd.f32 %v6197_v31, %v8067_v62  ;;  %v1865_v58 = vand.u32 2147483647, %v8165_v30 }
  0xec   : > { %v2119_v56 = vmul.f32 1.442695, %v1990_v45  ;;  %v1369_v60 = vpop.f32.mrf.mxu0  ;;  %v2761_v49 = vmax.f32 %v8165_v30, 0.0 }
  0xed   : > { %v2129_v0 = vmul.f32 1.442695, %v1995_v51  ;;  %v1868_v1 = vand.u32 2147483647, %v8172_v53  ;;  %v8183_v6 = vadd.f32 %v8067_v62, %v1369_v60  ;;  %v1993_v8 = vsub.f32 0.0, %v1865_v58 }
  0xee   : > { %6492 = vpow2.f32 %v2119_v56  ;;  %v6200_v13 = vpop.f32.mrf.mxu0  ;;  %6295 = vmatmul.mubr.msk.bf16.gmra.mxu0 %vm1123_vm0, %v1095_v25  ;;  %v2764_v41 = vmax.f32 %v8172_v53, 0.0 }
  0xef   : > { %6494 = vpow2.f32 %v2129_v0  ;;  %v1996_v19 = vsub.f32 0.0, %v1868_v1  ;;  %v1866_v20 = vand.u32 2147483647, %v8183_v6  ;;  %6298 = vmatprep.mubr.msk.bf16.mxu0 %vm1123_vm0, %v1096_v33  ;;  %v2125_v25 = vmul.f32 1.442695, %v1993_v8 }
  0xf0   : > { %v8204_v22 = vadd.f32 %v6200_v13, %v8067_v62  ;;  %v1382_v17 = vpop.f32.mrf.mxu0  ;;  %v2762_v51 = vmax.f32 %v8183_v6, 0.0 }
  0xf1   : > { %v2131_v27 = vmul.f32 1.442695, %v1996_v19  ;;  %v1994_v28 = vsub.f32 0.0, %v1866_v20  ;;  %v8208_v37 = vadd.f32 %v8067_v62, %v1382_v17  ;;  %6496 = vpow2.f32 %v2125_v25 }
  0xf2   : > { %v1871_v33 = vand.u32 2147483647, %v8204_v22  ;;  %v6201_v38 = vpop.f32.mrf.mxu0  ;;  %v2767_v58 = vmax.f32 %v8204_v22, 0.0 }
  0xf3   : > { %6498 = vpow2.f32 %v2131_v27  ;;  %v2127_v43 = vmul.f32 1.442695, %v1994_v28  ;;  %v1869_v45 = vand.u32 2147483647, %v8208_v37  ;;  %v8218_v60 = vadd.f32 %v6201_v38, %v8067_v62 }
  0xf4   : > { %v6487_v31 = vpop.eup %6486  ;;  %v1999_v56 = vsub.f32 0.0, %v1871_v33  ;;  %v1385_v0 = vpop.f32.mrf.mxu0  ;;  %v2765_v25 = vmax.f32 %v8208_v37, 0.0 }
  0xf5   : > { %v2375_v1 = vadd.f32 1.0, %v6487_v31  ;;  %6500 = vpow2.f32 %v2127_v43  ;;  %v1997_v8 = vsub.f32 0.0, %v1869_v45  ;;  %v8221_v13 = vadd.f32 %v8067_v62, %v1385_v0 }
  0xf6   : > { %v6489_v19 = vpop.eup %6488  ;;  %v2137_v20 = vmul.f32 1.442695, %v1999_v56  ;;  %v1872_v17 = vand.u32 2147483647, %v8218_v60  ;;  %v2768_v27 = vmax.f32 %v8218_v60, 0.0  ;;  %v6204_v28 = vpop.f32.mrf.mxu0  ;;  %6299 = vmatmul.mubr.msk.bf16.gmra.mxu0 %vm1123_vm0, %v1097_v34 }
  0xf7   : > { %6502 = vlog2.f32 %v2375_v1  ;;  %v2373_v33 = vadd.f32 1.0, %v6489_v19  ;;  %v2133_v38 = vmul.f32 1.442695, %v1997_v8  ;;  %v1870_v43 = vand.u32 2147483647, %v8221_v13  ;;  %6302 = vmatprep.mubr.msk.bf16.mxu0 %vm1123_vm0, %v1098_v4 }
  0xf8   : > { %v6491_v45 = vpop.eup %6490  ;;  %6504 = vpow2.f32 %v2137_v20  ;;  %v2000_v31 = vsub.f32 0.0, %v1872_v17  ;;  %v2766_v56 = vmax.f32 %v8221_v13, 0.0  ;;  %v8237_v0 = vadd.f32 %v6204_v28, %v8067_v62  ;;  %v1398_v55 = vpop.f32.mrf.mxu0 }
  0xf9   : > { %6506 = vlog2.f32 %v2373_v33  ;;  %v2376_v63 = vadd.f32 1.0, %v6491_v45  ;;  %v1998_v34 = vsub.f32 0.0, %v1870_v43  ;;  %v8240_v1 = vadd.f32 %v8067_v62, %v1398_v55 }
  0xfa   : > { %6508 = vpow2.f32 %v2133_v38  ;;  %v2139_v8 = vmul.f32 1.442695, %v2000_v31  ;;  %v1875_v52 = vand.u32 2147483647, %v8237_v0  ;;  %v6205_v4 = vpop.f32.mrf.mxu0 }
  0xfb   : > { %v6493_v19 = vpop.eup %6492  ;;  %6510 = vlog2.f32 %v2376_v63  ;;  %v2135_v20 = vmul.f32 1.442695, %v1998_v34  ;;  %v1873_v17 = vand.u32 2147483647, %v8240_v1  ;;  %v8247_v55 = vadd.f32 %v6205_v4, %v8067_v62 }
  0xfc   : > { %v6495_v33 = vpop.eup %6494  ;;  %v2374_v45 = vadd.f32 1.0, %v6493_v19  ;;  %6512 = vpow2.f32 %v2139_v8  ;;  %v2003_v43 = vsub.f32 0.0, %v1875_v52  ;;  %v1401_v38 = vpop.f32.mrf.mxu0 }
  0xfd   : > { %v2379_v31 = vadd.f32 1.0, %v6495_v33  ;;  %6514 = vpow2.f32 %v2135_v20  ;;  %v2001_v23 = vsub.f32 0.0, %v1873_v17  ;;  %v8250_v5 = vadd.f32 %v8067_v62, %v1401_v38 }
  0xfe   : > { %v2145_v63 = vmul.f32 1.442695, %v2003_v43  ;;  %v1876_v34 = vand.u32 2147483647, %v8247_v55  ;;  %v2772_v35 = vmax.f32 %v8247_v55, 0.0  ;;  %v6208_v28 = vpop.f32.mrf.mxu0  ;;  %6303 = vmatmul.mubr.msk.bf16.gmra.mxu0 %vm1123_vm0, %v1099_v2  ;;  %6516 = vlog2.f32 %v2374_v45  ;;  %v6497_v8 = vpop.eup %6496 }
  0xff   : > { %6518 = vlog2.f32 %v2379_v31  ;;  %v2141_v52 = vmul.f32 1.442695, %v2001_v23  ;;  %v1874_v4 = vand.u32 2147483647, %v8250_v5  ;;  %v2770_v19 = vmax.f32 %v8250_v5, 0.0  ;;  %6306 = vmatprep.mubr.msk.bf16.mxu0 %vm1123_vm0, %v1100_v54 }
 0x100   : > { %v6499_v20 = vpop.eup %6498  ;;  %v2377_v17 = vadd.f32 1.0, %v6497_v8  ;;  %6520 = vpow2.f32 %v2145_v63  ;;  %v2004_v33 = vsub.f32 0.0, %v1876_v34  ;;  %v8265_v11 = vadd.f32 %v6208_v28, %v8067_v62  ;;  %v1414_v18 = vpop.f32.mrf.mxu0 }
 0x101   : > { %v2380_v2 = vadd.f32 1.0, %v6499_v20  ;;  %6522 = vpow2.f32 %v2141_v52  ;;  %v2002_v23 = vsub.f32 0.0, %v1874_v4  ;;  %v8268_v45 = vadd.f32 %v8067_v62, %v1414_v18 }
 0x102   : > { %v6501_v43 = vpop.eup %6500  ;;  %6524 = vlog2.f32 %v2377_v17  ;;  %v2147_v38 = vmul.f32 1.442695, %v2004_v33  ;;  %v1879_v26 = vand.u32 2147483647, %v8265_v11  ;;  %v6209_v54 = vpop.f32.mrf.mxu0 }
 0x103   : > { %6526 = vlog2.f32 %v2380_v2  ;;  %v2378_v31 = vadd.f32 1.0, %v6501_v43  ;;  %v2143_v63 = vmul.f32 1.442695, %v2002_v23  ;;  %v1877_v28 = vand.u32 2147483647, %v8268_v45 }
 0x104   : > { %v6503_v34 = vpop.eup %6502  ;;  %6528 = vpow2.f32 %v2147_v38  ;;  %v2007_v8 = vsub.f32 0.0, %v1879_v26  ;;  %v2773_v52 = vmax.f32 %v8268_v45, 0.0  ;;  %v8275_v4 = vadd.f32 %v6209_v54, %v8067_v62  ;;  %v1417_v20 = vpop.f32.mrf.mxu0 }
 0x105   : > { %v6505_v17 = vpop.eup %6504  ;;  %v2506_v33 = vmul.f32 0.6931472, %v6503_v34  ;;  %6530 = vlog2.f32 %v2378_v31  ;;  %v2005_v18 = vsub.f32 0.0, %v1877_v28  ;;  %v8278_v36 = vadd.f32 %v8067_v62, %v1417_v20 }
 0x106   : > { %v8280_v2 = vpop.eup %6506  ;;  %v2383_v23 = vadd.f32 1.0, %v6505_v17  ;;  %6532 = vpow2.f32 %v2143_v63  ;;  %v2153_v43 = vmul.f32 1.442695, %v2007_v8  ;;  %v1880_v38 = vand.u32 2147483647, %v8275_v4  ;;  %v6212_v26 = vpop.f32.mrf.mxu0  ;;  %6307 = vmatmul.mubr.msk.bf16.gmra.mxu0 %vm1123_vm0, %v1101_v61 }
 0x107   : > { %v6509_v54 = vpop.eup %6508  ;;  %v8289_v31 = vadd.f32 %v2759_v16, %v2506_v33  ;;  %v2149_v28 = vmul.f32 1.442695, %v2005_v18  ;;  %v1878_v20 = vand.u32 2147483647, %v8278_v36  ;;  %6310 = vmatprep.mubr.msk.bf16.mxu0 %vm1123_vm0, %v1102_v59  ;;  %v8299_v33 = vadd.f32 %v6212_v26, %v8067_v62 }
 0x108   : > { %v6511_v63 = vpop.eup %6510  ;;  %6534 = vlog2.f32 %v2383_v23  ;;  %v2381_v50 = vadd.f32 1.0, %v6509_v54  ;;  %v2008_v57 = vsub.f32 0.0, %v1880_v38  ;;  %v1430_v8 = vpop.f32.mrf.mxu0 }
 0x109   : > { %v6513_v32 = vpop.eup %6512  ;;  %v2508_v16 = vmul.f32 0.6931472, %v6511_v63  ;;  %6536 = vpow2.f32 %v2153_v43  ;;  %v2006_v17 = vsub.f32 0.0, %v1878_v20  ;;  %v8302_v12 = vadd.f32 %v8067_v62, %v1430_v8 }
 0x10a   : > { %v6515_v18 = vpop.eup %6514  ;;  %6538 = vlog2.f32 %v2381_v50  ;;  %v2384_v34 = vadd.f32 1.0, %v6513_v32  ;;  %v2155_v10 = vmul.f32 1.442695, %v2008_v57  ;;  %v6213_v59 = vpop.f32.mrf.mxu0  ;;  %v1883_v26 = vand.u32 2147483647, %v8299_v33 }
 0x10b   : > { %v8304_v23 = vpop.eup %6516  ;;  %v8308_v38 = vadd.f32 %v2760_v42, %v2508_v16  ;;  %v2382_v54 = vadd.f32 1.0, %v6515_v18  ;;  %6540 = vpow2.f32 %v2149_v28  ;;  %v2151_v43 = vmul.f32 1.442695, %v2006_v17 }
 0x10c   : > { %v6519_v20 = vpop.eup %6518  ;;  %6542 = vlog2.f32 %v2384_v34  ;;  %v1881_v50 = vand.u32 2147483647, %v8302_v12  ;;  %v1433_v57 = vpop.f32.mrf.mxu0  ;;  %v2777_v3 = vmax.f32 %v8302_v12, 0.0  ;;  %v2011_v16 = vsub.f32 0.0, %v1883_v26 }
 0x10d   : > { %v6521_v8 = vpop.eup %6520  ;;  %v3014_v32 = vpack.c.bf16 %v8308_v38, %v8289_v31  ;;  %v2514_v61 = vmul.f32 0.6931472, %v6519_v20  ;;  %6544 = vlog2.f32 %v2382_v54  ;;  %v8325_v54 = vadd.f32 %v6213_v59, %v8067_v62 }
 0x10e   : > { %v6523_v42 = vpop.eup %6522  ;;  %v2387_v28 = vadd.f32 1.0, %v6521_v8  ;;  %6546 = vpow2.f32 %v2155_v10  ;;  %v2009_v34 = vsub.f32 0.0, %v1881_v50  ;;  %v6216_v17 = vpop.f32.mrf.mxu0  ;;  %6311 = vmatmul.mubr.msk.bf16.gmra.mxu0 %vm1123_vm0, %v1103_v7  ;;  %v2161_v24 = vmul.f32 1.442695, %v2011_v16 }
 0x10f   : > { %v6525_v18 = vpop.eup %6524  ;;  %v8322_v63 = vadd.f32 %v2763_v48, %v2514_v61  ;;  %v2385_v20 = vadd.f32 1.0, %v6523_v42  ;;  %6548 = vpow2.f32 %v2151_v43  ;;  %6314 = vmatprep.mubr.msk.bf16.mxu0 %vm1123_vm0, %v1104_v14  ;;  %v1884_v48 = vand.u32 2147483647, %v8325_v54 }
 0x110   : > { %v6527_v10 = vpop.eup %6526  ;;  %v2510_v26 = vmul.f32 0.6931472, %v6525_v18  ;;  %6550 = vlog2.f32 %v2387_v28  ;;  %v2157_v39 = vmul.f32 1.442695, %v2009_v34  ;;  %v1446_v7 = vpop.f32.mrf.mxu0  ;;  %v2780_v61 = vmax.f32 %v8325_v54, 0.0 }
 0x111   : > { %v6529_v50 = vpop.eup %6528  ;;  %v2516_v29 = vmul.f32 0.6931472, %v6527_v10  ;;  %6552 = vlog2.f32 %v2385_v20  ;;  %v8338_v44 = vadd.f32 %v8067_v62, %v1433_v57  ;;  %v2012_v16 = vsub.f32 0.0, %v1884_v48 }
 0x112   : > { %v6531_v59 = vpop.eup %6530  ;;  %v8335_v43 = vadd.f32 %v2761_v49, %v2510_v26  ;;  %v2388_v40 = vadd.f32 1.0, %v6529_v50  ;;  %6554 = vpow2.f32 %v2161_v24  ;;  %v8340_v14 = vpop.f32.mrf.mxu0  ;;  %v8358_v50 = vadd.f32 %v8067_v62, %v1446_v7 }
 0x113   : > { %v6533_v8 = vpop.eup %6532  ;;  %v8344_v42 = vadd.f32 %v2764_v41, %v2516_v29  ;;  %v2512_v28 = vmul.f32 0.6931472, %v6531_v59  ;;  %6556 = vpow2.f32 %v2157_v39  ;;  %v1882_v30 = vand.u32 2147483647, %v8338_v44 }
 0x114   : > { %6558 = vlog2.f32 %v2388_v40  ;;  %v2386_v34 = vadd.f32 1.0, %v6533_v8  ;;  %v2778_v49 = vmax.f32 %v8338_v44, 0.0  ;;  %v1449_v18 = vpop.f32.mrf.mxu0  ;;  %v2163_v53 = vmul.f32 1.442695, %v2012_v16 }
 0x115   : > { %v6535_v20 = vpop.eup %6534  ;;  %v3016_v57 = vpack.c.bf16 %v8344_v42, %v8322_v63  ;;  %v8352_v10 = vadd.f32 %v2762_v51, %v2512_v28  ;;  %v8355_v41 = vadd.f32 %v6216_v17, %v8067_v62  ;;  %v2010_v39 = vsub.f32 0.0, %v1882_v30 }
 0x116   : > { %v6537_v26 = vpop.eup %6536  ;;  %v2522_v24 = vmul.f32 0.6931472, %v6535_v20  ;;  %6560 = vlog2.f32 %v2386_v34  ;;  %v8360_v29 = vpop.f32.mrf.mxu0  ;;  %6315 = vmatmul.mubr.msk.bf16.gmra.mxu0 %vm1123_vm0, %v1105_v15  ;;  %v1885_v28 = vand.u32 2147483647, %v8358_v50  ;;  %v2781_v34 = vmax.f32 %v8358_v50, 0.0 }
 0x117   : > { %v6539_v6 = vpop.eup %6538  ;;  %v2391_v51 = vadd.f32 1.0, %v6537_v26  ;;  %6562 = vpow2.f32 %v2163_v53  ;;  %v1887_v17 = vand.u32 2147483647, %v8355_v41  ;;  %v2783_v48 = vmax.f32 %v8355_v41, 0.0 }
 0x118   : > { %v6541_v59 = vpop.eup %6540  ;;  %v8370_v7 = vadd.f32 %v2767_v58, %v2522_v24  ;;  %v2518_v40 = vmul.f32 0.6931472, %v6539_v6  ;;  %v2159_v8 = vmul.f32 1.442695, %v2010_v39  ;;  %v1462_v9 = vpop.f32.mrf.mxu0  ;;  %v2013_v22 = vsub.f32 0.0, %v1885_v28 }
 0x119   : > { %v6543_v46 = vpop.eup %6542  ;;  %6564 = vlog2.f32 %v2391_v51  ;;  %v2389_v15 = vadd.f32 1.0, %v6541_v59  ;;  %v2015_v16 = vsub.f32 0.0, %v1887_v17  ;;  %v2502_v6 = vmul.f32 0.6931472, %v8280_v2 }
 0x11a   : > { %v6545_v30 = vpop.eup %6544  ;;  %v8376_v20 = vadd.f32 %v2765_v25, %v2518_v40  ;;  %v2524_v53 = vmul.f32 0.6931472, %v6543_v46  ;;  %6566 = vpow2.f32 %v2159_v8  ;;  %v8378_v58 = vpop.f32.mrf.mxu0  ;;  %v2165_v37 = vmul.f32 1.442695, %v2013_v22 }
 0x11b   : > { %v6547_v26 = vpop.eup %6546  ;;  %v2520_v24 = vmul.f32 0.6931472, %v6545_v30  ;;  %6568 = vlog2.f32 %v2389_v15  ;;  %v2169_v39 = vmul.f32 1.442695, %v2015_v16  ;;  %v2504_v25 = vmul.f32 0.6931472, %v8304_v23 }
 0x11c   : > { %v6549_v51 = vpop.eup %6548  ;;  %v8383_v17 = vadd.f32 %v2768_v27, %v2524_v53  ;;  %v2392_v59 = vadd.f32 1.0, %v6547_v26  ;;  %v8386_v40 = vpop.f32.mrf.mxu0  ;;  %v10876_v2 = vmax.f32 %v8119_v47, 0.0  ;;  %v10877_v23 = vmax.f32 %v8142_v21, 0.0 }
 0x11d   : > { %v6551_v8 = vpop.eup %6550  ;;  %v8390_v28 = vadd.f32 %v2766_v56, %v2520_v24  ;;  %v2390_v46 = vadd.f32 1.0, %v6549_v51  ;;  %6570 = vpow2.f32 %v2169_v39  ;;  %v8402_v56 = vadd.f32 %v8340_v14, %v8067_v62 }
 0x11e   : > { %v2885_v15 = vadd.f32 %v10876_v2, %v2502_v6  ;;  %v6553_v16 = vpop.eup %6552  ;;  %v3018_v60 = vpack.c.bf16 %v8383_v17, %v8370_v7  ;;  %v2530_v27 = vmul.f32 0.6931472, %v6551_v8  ;;  %6572 = vlog2.f32 %v2392_v59  ;;  %v8398_v53 = vpop.f32.mrf.mxu0 }
 0x11f   : > { %v2886_v30 = vadd.f32 %v10877_v23, %v2504_v25  ;;  %v6555_v22 = vpop.eup %6554  ;;  %v2526_v13 = vmul.f32 0.6931472, %v6553_v16  ;;  %6574 = vlog2.f32 %v2390_v46  ;;  %v8405_v47 = vadd.f32 %v8067_v62, %v1449_v18 }
 0x120   : > { %v6557_v26 = vpop.eup %6556  ;;  %v10878_v24 = vmax.f32 %v8237_v0, 0.0  ;;  %v2395_v6 = vadd.f32 1.0, %v6555_v22  ;;  %6576 = vpow2.f32 %v2165_v37  ;;  %v8411_v51 = vpop.f32.mrf.mxu0  ;;  %v10879_v25 = vmax.f32 %v8240_v1, 0.0 }
 0x121   : > { %v3013_v21 = vpack.c.bf16 %v2886_v30, %v2885_v15  ;;  %v6559_v59 = vpop.eup %6558  ;;  %v2393_v14 = vadd.f32 1.0, %v6557_v26  ;;  %v1888_v46 = vand.u32 2147483647, %v8402_v56  ;;  %v2784_v18 = vmax.f32 %v8402_v56, 0.0 }
 0x122   : > { %v8409_v39 = vadd.f32 %v10878_v24, %v2530_v27  ;;  %v8415_v8 = vadd.f32 %v10879_v25, %v2526_v13  ;;  %v2532_v2 = vmul.f32 0.6931472, %v6559_v59  ;;  %6578 = vlog2.f32 %v2395_v6  ;;  %v8422_v15 = vpop.f32.mrf.mxu0 }
 0x123   : > { %6326 = vmatprep.mubr.msk.bf16.mxu1 %vm3106_vm1, %v3013_v21  ;;  %v1886_v0 = vand.u32 2147483647, %v8405_v47  ;;  %v2782_v37 = vmax.f32 %v8405_v47, 0.0  ;;  %v6561_v16 = vpop.eup %6560  ;;  %6580 = vlog2.f32 %v2393_v14  ;;  %v2016_v1 = vsub.f32 0.0, %v1888_v46 }
 0x124   : > { %6327 = vmatmul.mubr.msk.bf16.vlgmr.msra.gmra.mxu1 %vm3106_vm1, %v3014_v32  ;;  %v8430_v27 = vadd.f32 %v8360_v29, %v8067_v62  ;;  %v8433_v23 = vadd.f32 %v8067_v62, %v1462_v9  ;;  %v6563_v30 = vpop.eup %6562  ;;  %v8437_v22 = vadd.f32 %v2772_v35, %v2532_v2  ;;  %v2528_v13 = vmul.f32 0.6931472, %v6561_v16  ;;  %v8441_v31 = vpop.f32.mrf.mxu0 }
 0x125   : > { %v2014_v26 = vsub.f32 0.0, %v1886_v0  ;;  %v3015_v24 = vpack.c.bf16 %v8352_v10, %v8335_v43  ;;  %v2396_v38 = vadd.f32 1.0, %v6563_v30  ;;  %v2171_v32 = vmul.f32 1.442695, %v2016_v1 }
 0x126   : > { %v1891_v29 = vand.u32 2147483647, %v8430_v27  ;;  %v2787_v6 = vmax.f32 %v8430_v27, 0.0  ;;  %v6565_v9 = vpop.eup %6564  ;;  %v3020_v21 = vpack.c.bf16 %v8437_v22, %v8409_v39  ;;  %v8449_v35 = vadd.f32 %v2770_v19, %v2528_v13  ;;  %v8453_v43 = vpop.f32.mrf.mxu0 }
 0x127   : > { %v2167_v55 = vmul.f32 1.442695, %v2014_v26  ;;  %v1889_v59 = vand.u32 2147483647, %v8433_v23  ;;  %6330 = vmatprep.mubr.msk.bf16.mxu1 %vm3106_vm1, %v3015_v24  ;;  %v6567_v10 = vpop.eup %6566  ;;  %v2538_v25 = vmul.f32 0.6931472, %v6565_v9  ;;  %6582 = vlog2.f32 %v2396_v38 }
 0x128   : > { %v2019_v14 = vsub.f32 0.0, %v1891_v29  ;;  %v2785_v46 = vmax.f32 %v8433_v23, 0.0  ;;  %v6569_v2 = vpop.eup %6568  ;;  %v2394_v0 = vadd.f32 1.0, %v6567_v10  ;;  %6584 = vpow2.f32 %v2171_v32  ;;  %v8460_v19 = vpop.f32.mrf.mxu0 }
 0x129   : > { %v2017_v16 = vsub.f32 0.0, %v1889_v59  ;;  %v8458_v5 = vadd.f32 %v8378_v58, %v8067_v62  ;;  %v10880_v1 = vmax.f32 %v8265_v11, 0.0  ;;  %v2534_v13 = vmul.f32 0.6931472, %v6569_v2 }
 0x12a   : > { %6586 = vpow2.f32 %v2167_v55  ;;  %v2177_v26 = vmul.f32 1.442695, %v2019_v14  ;;  %v6571_v24 = vpop.eup %6570  ;;  %v8468_v9 = vpop.f32.mrf.mxu0  ;;  %v8480_v55 = vadd.f32 %v8067_v62, %v8386_v40  ;;  %v8484_v45 = vadd.f32 %v8398_v53, %v8067_v62 }
 0x12b   : > { %v8464_v30 = vadd.f32 %v10880_v1, %v2538_v25  ;;  %6588 = vlog2.f32 %v2394_v0  ;;  %v2173_v38 = vmul.f32 1.442695, %v2017_v16  ;;  %v1892_v29 = vand.u32 2147483647, %v8458_v5  ;;  %v6573_v58 = vpop.eup %6572 }
 0x12c   : > { %v2788_v32 = vmax.f32 %v8458_v5, 0.0  ;;  %v8472_v59 = vadd.f32 %v2773_v52, %v2534_v13  ;;  %v2399_v11 = vadd.f32 1.0, %v6571_v24  ;;  %6590 = vpow2.f32 %v2177_v26  ;;  %6331 = vmatmul.mubr.msk.bf16.gmra.mxu1 %vm3106_vm1, %v3016_v57  ;;  %v6575_v10 = vpop.eup %6574  ;;  %v8486_v52 = vpop.f32.mrf.mxu0 }
 0x12d   : > { %v2540_v25 = vmul.f32 0.6931472, %v6573_v58  ;;  %6592 = vpow2.f32 %v2173_v38  ;;  %v2020_v14 = vsub.f32 0.0, %v1892_v29  ;;  %v6577_v2 = vpop.eup %6576  ;;  %v2536_v0 = vmul.f32 0.6931472, %v6575_v10 }
 0x12e   : > { %6594 = vlog2.f32 %v2399_v11  ;;  %v1890_v63 = vand.u32 2147483647, %v8480_v55  ;;  %v10881_v57 = vmax.f32 %v8275_v4, 0.0  ;;  %v2397_v16 = vadd.f32 1.0, %v6577_v2  ;;  %v8495_v26 = vpop.f32.mrf.mxu0 }
 0x12f   : > { %v2179_v1 = vmul.f32 1.442695, %v2020_v14  ;;  %v1895_v13 = vand.u32 2147483647, %v8484_v45  ;;  %v6579_v53 = vpop.eup %6578  ;;  %v10882_v24 = vmax.f32 %v8278_v36, 0.0  ;;  %v8504_v11 = vadd.f32 %v8067_v62, %v8411_v51 }
 0x130   : > { %v8492_v40 = vadd.f32 %v10881_v57, %v2540_v25  ;;  %v2018_v29 = vsub.f32 0.0, %v1890_v63  ;;  %v6581_v4 = vpop.eup %6580  ;;  %v2546_v25 = vmul.f32 0.6931472, %v6579_v53  ;;  %6596 = vlog2.f32 %v2397_v16  ;;  %v8508_v2 = vpop.f32.mrf.mxu0 }
 0x131   : > { %v8499_v38 = vadd.f32 %v10882_v24, %v2536_v0  ;;  %v2023_v14 = vsub.f32 0.0, %v1895_v13  ;;  %v2542_v0 = vmul.f32 0.6931472, %v6581_v4  ;;  %6598 = vpow2.f32 %v2179_v1 }
 0x132   : > { %v3022_v10 = vpack.c.bf16 %v8492_v40, %v8464_v30  ;;  %v2175_v63 = vmul.f32 1.442695, %v2018_v29  ;;  %v10883_v57 = vmax.f32 %v8299_v33, 0.0  ;;  %v1893_v58 = vand.u32 2147483647, %v8504_v11  ;;  %v8518_v53 = vpop.f32.mrf.mxu0 }
 0x133   : > { %v3021_v36 = vpack.c.bf16 %v8499_v38, %v8472_v59  ;;  %v2185_v51 = vmul.f32 1.442695, %v2023_v14  ;;  %v8522_v16 = vadd.f32 %v2777_v3, %v2542_v0  ;;  %v3017_v1 = vpack.c.bf16 %v8390_v28, %v8376_v20 }
 0x134   : > { %v8514_v24 = vadd.f32 %v10883_v57, %v2546_v25  ;;  %6600 = vpow2.f32 %v2175_v63  ;;  %v8528_v33 = vadd.f32 %v8422_v15, %v8067_v62  ;;  %v6583_v13 = vpop.eup %6582  ;;  %v2021_v29 = vsub.f32 0.0, %v1893_v58  ;;  %v8538_v3 = vpop.f32.mrf.mxu0 }
 0x135   : > { %6602 = vpow2.f32 %v2185_v51  ;;  %v8532_v4 = vadd.f32 %v8067_v62, %v8441_v31  ;;  %v8536_v12 = vadd.f32 %v8453_v43, %v8067_v62  ;;  %v6585_v25 = vpop.eup %6584  ;;  %v2548_v14 = vmul.f32 0.6931472, %v6583_v13  ;;  %6334 = vmatprep.mubr.msk.bf16.mxu1 %vm3106_vm1, %v3017_v1 }
 0x136   : > { %v1896_v20 = vand.u32 2147483647, %v8528_v33  ;;  %v8545_v15 = vadd.f32 %v8067_v62, %v8460_v19  ;;  %v2400_v58 = vadd.f32 1.0, %v6585_v25  ;;  %v2181_v0 = vmul.f32 1.442695, %v2021_v29  ;;  %6335 = vmatmul.mubr.msk.bf16.gmra.mxu1 %vm3106_vm1, %v3018_v60  ;;  %v8553_v57 = vpop.f32.mrf.mxu0 }
 0x137   : > { %v6587_v31 = vpop.eup %6586  ;;  %v1894_v43 = vand.u32 2147483647, %v8532_v4  ;;  %v8557_v1 = vadd.f32 %v2780_v61, %v2548_v14  ;;  %v1899_v13 = vand.u32 2147483647, %v8536_v12  ;;  %v3019_v44 = vpack.c.bf16 %v8449_v35, %v8415_v8 }
 0x138   : > { %v6589_v51 = vpop.eup %6588  ;;  %v2398_v62 = vadd.f32 1.0, %v6587_v31  ;;  %v2024_v19 = vsub.f32 0.0, %v1896_v20  ;;  %6604 = vlog2.f32 %v2400_v58  ;;  %v8561_v60 = vpop.f32.mrf.mxu0  ;;  %v1897_v42 = vand.u32 2147483647, %v8545_v15 }
 0x139   : > { %v6591_v29 = vpop.eup %6590  ;;  %v2544_v25 = vmul.f32 0.6931472, %v6589_v51  ;;  %v2022_v7 = vsub.f32 0.0, %v1894_v43  ;;  %v3024_v28 = vpack.c.bf16 %v8557_v1, %v8514_v24  ;;  %v2027_v17 = vsub.f32 0.0, %v1899_v13  ;;  %6338 = vmatprep.mubr.msk.bf16.mxu1 %vm3106_vm1, %v3019_v44 }
 0x13a   : > { %v6593_v63 = vpop.eup %6592  ;;  %6606 = vlog2.f32 %v2398_v62  ;;  %v2403_v54 = vadd.f32 1.0, %v6591_v29  ;;  %v2187_v61 = vmul.f32 1.442695, %v2024_v19  ;;  %v8569_v43 = vpop.f32.mrf.mxu0  ;;  %v2793_v19 = vmax.f32 %v8545_v15, 0.0 }
 0x13b   : > { %v6595_v14 = vpop.eup %6594  ;;  %v8567_v20 = vadd.f32 %v2778_v49, %v2544_v25  ;;  %v2401_v31 = vadd.f32 1.0, %v6593_v63  ;;  %6608 = vpow2.f32 %v2181_v0  ;;  %v2183_v58 = vmul.f32 1.442695, %v2022_v7 }
 0x13c   : > { %v2554_v51 = vmul.f32 0.6931472, %v6595_v14  ;;  %6610 = vlog2.f32 %v2403_v54  ;;  %v8577_v49 = vpop.f32.mrf.mxu0  ;;  %v2193_v13 = vmul.f32 1.442695, %v2027_v17  ;;  %v2025_v29 = vsub.f32 0.0, %v1897_v42 }
 0x13d   : > { %v3023_v62 = vpack.c.bf16 %v8567_v20, %v8522_v16  ;;  %6612 = vlog2.f32 %v2401_v31  ;;  %v6597_v0 = vpop.eup %6596  ;;  %v8587_v54 = vld [vmem:[%s10873_s2] ss:$0 sm:$0xff] }
 0x13e   : > { %v8581_v63 = vadd.f32 %v2783_v48, %v2554_v51  ;;  %6614 = vpow2.f32 %v2187_v61  ;;  %v6599_v25 = vpop.eup %6598  ;;  %v2550_v7 = vmul.f32 0.6931472, %v6597_v0  ;;  %v8591_v8 = vadd.f32 %v8587_v54, %v8468_v9  ;;  %v8597_v48 = vpop.f32.mrf.mxu0  ;;  %6339 = vmatmul.mubr.msk.bf16.gmra.mxu1 %vm3106_vm1, %v3020_v21 }
 0x13f   : > { %6616 = vpow2.f32 %v2183_v58  ;;  %v8595_v41 = vadd.f32 %v8587_v54, %v8486_v52  ;;  %v2404_v35 = vadd.f32 1.0, %v6599_v25  ;;  %v2189_v42 = vmul.f32 1.442695, %v2025_v29  ;;  %6342 = vmatprep.mubr.msk.bf16.mxu1 %vm3106_vm1, %v3021_v36 }
 0x140   : > { %6618 = vpow2.f32 %v2193_v13  ;;  %v8605_v17 = vadd.f32 %v8587_v54, %v8495_v26  ;;  %v8609_v61 = vadd.f32 %v2781_v34, %v2550_v7  ;;  %v1900_v52 = vand.u32 2147483647, %v8591_v8  ;;  %v8618_v39 = vpop.f32.mrf.mxu0 }
 0x141   : > { %v6601_v9 = vpop.eup %6600  ;;  %v2796_v14 = vmax.f32 %v8591_v8, 0.0  ;;  %v1898_v31 = vand.u32 2147483647, %v8595_v41  ;;  %6620 = vlog2.f32 %v2404_v35  ;;  %v2794_v50 = vmax.f32 %v8595_v41, 0.0 }
 0x142   : > { %v6603_v22 = vpop.eup %6602  ;;  %v2402_v21 = vadd.f32 1.0, %v6601_v9  ;;  %v1903_v34 = vand.u32 2147483647, %v8605_v17  ;;  %6622 = vpow2.f32 %v2189_v42  ;;  %v2028_v58 = vsub.f32 0.0, %v1900_v52  ;;  %v8622_v44 = vpop.f32.mrf.mxu0 }
 0x143   : > { %v2407_v26 = vadd.f32 1.0, %v6603_v22  ;;  %v2026_v51 = vsub.f32 0.0, %v1898_v31  ;;  %v2799_v59 = vmax.f32 %v8605_v17, 0.0  ;;  %v8627_v38 = vadd.f32 %v8587_v54, %v8508_v2 }
 0x144   : > { %6624 = vlog2.f32 %v2402_v21  ;;  %v2031_v0 = vsub.f32 0.0, %v1903_v34  ;;  %v2195_v36 = vmul.f32 1.442695, %v2028_v58  ;;  %v8631_v29 = vadd.f32 %v8587_v54, %v8518_v53  ;;  %v8633_v25 = vpop.f32.mrf.mxu0 }
 0x145   : > { %6626 = vlog2.f32 %v2407_v26  ;;  %v2191_v13 = vmul.f32 1.442695, %v2026_v51  ;;  %v6605_v7 = vpop.eup %6604  ;;  %v1901_v42 = vand.u32 2147483647, %v8627_v38  ;;  %v2797_v9 = vmax.f32 %v8627_v38, 0.0 }
 0x146   : > { %v2201_v35 = vmul.f32 1.442695, %v2031_v0  ;;  %v8639_v52 = vadd.f32 %v8587_v54, %v8538_v3  ;;  %v2556_v31 = vmul.f32 0.6931472, %v6605_v7  ;;  %6628 = vpow2.f32 %v2195_v36  ;;  %v8643_v21 = vpop.f32.mrf.mxu0  ;;  %6343 = vmatmul.mubr.msk.bf16.gmra.mxu1 %vm3106_vm1, %v3022_v10 }
 0x147   : > { %v6607_v2 = vpop.eup %6606  ;;  %v1904_v22 = vand.u32 2147483647, %v8631_v29  ;;  %v2800_v53 = vmax.f32 %v8631_v29, 0.0  ;;  %6630 = vpow2.f32 %v2191_v13  ;;  %v2029_v58 = vsub.f32 0.0, %v1901_v42  ;;  %6346 = vmatprep.mubr.msk.bf16.mxu1 %vm3106_vm1, %v3023_v62 }
 0x148   : > { %v6609_v34 = vpop.eup %6608  ;;  %v2552_v26 = vmul.f32 0.6931472, %v6607_v2  ;;  %v1902_v3 = vand.u32 2147483647, %v8639_v52  ;;  %v8652_v0 = vadd.f32 %v2784_v18, %v2556_v31  ;;  %6632 = vpow2.f32 %v2201_v35  ;;  %v8658_v13 = vpop.f32.mrf.mxu0 }
 0x149   : > { %v6611_v51 = vpop.eup %6610  ;;  %v2405_v36 = vadd.f32 1.0, %v6609_v34  ;;  %v2032_v7 = vsub.f32 0.0, %v1904_v22  ;;  %v2197_v42 = vmul.f32 1.442695, %v2029_v58  ;;  %v8680_v27 = vadd.f32 %v8587_v54, %v8553_v57 }
 0x14a   : > { %v6613_v30 = vpop.eup %6612  ;;  %v2910_v40 = vadd.f32 %v2782_v37, %v2552_v26  ;;  %v2562_v10 = vmul.f32 0.6931472, %v6611_v51  ;;  %v2030_v2 = vsub.f32 0.0, %v1902_v3  ;;  %v3026_v18 = vpack.c.bf16 %v8652_v0, %v8581_v63  ;;  %v8664_v22 = vpop.f32.mrf.mxu0 }
 0x14b   : > { %v6615_v56 = vpop.eup %6614  ;;  %v2558_v35 = vmul.f32 0.6931472, %v6613_v30  ;;  %6634 = vlog2.f32 %v2405_v36  ;;  %v2203_v31 = vmul.f32 1.442695, %v2032_v7  ;;  %v8684_v23 = vadd.f32 %v8587_v54, %v8561_v60 }
 0x14c   : > { %v6617_v16 = vpop.eup %6616  ;;  %v3025_v20 = vpack.c.bf16 %v2910_v40, %v8609_v61  ;;  %v8669_v62 = vadd.f32 %v2787_v6, %v2562_v10  ;;  %v2408_v47 = vadd.f32 1.0, %v6615_v56  ;;  %6636 = vpow2.f32 %v2197_v42  ;;  %v8675_v3 = vpop.f32.mrf.mxu0 }
 0x14d   : > { %v6619_v37 = vpop.eup %6618  ;;  %v8673_v34 = vadd.f32 %v2785_v46, %v2558_v35  ;;  %v2406_v26 = vadd.f32 1.0, %v6617_v16  ;;  %6638 = vpow2.f32 %v2203_v31  ;;  %v2199_v58 = vmul.f32 1.442695, %v2030_v2 }
 0x14e   : > { %6640 = vlog2.f32 %v2408_v47  ;;  %v2411_v51 = vadd.f32 1.0, %v6619_v37  ;;  %v6621_v6 = vpop.eup %6620  ;;  %v8688_v46 = vadd.f32 %v8587_v54, %v8569_v43  ;;  %v8692_v36 = vadd.f32 %v8587_v54, %v8577_v49  ;;  %v8694_v7 = vpop.f32.mrf.mxu0  ;;  %6347 = vmatmul.mubr.msk.bf16.gmra.mxu1 %vm3106_vm1, %v3024_v28 }
 0x14f   : > { %6642 = vlog2.f32 %v2406_v26  ;;  %v6623_v30 = vpop.eup %6622  ;;  %v2564_v40 = vmul.f32 0.6931472, %v6621_v6  ;;  %v1907_v57 = vand.u32 2147483647, %v8680_v27  ;;  %v1905_v49 = vand.u32 2147483647, %v8684_v23  ;;  %6350 = vmatprep.mubr.msk.bf16.mxu1 %vm3106_vm1, %v3025_v20 }
 0x150   : > { %6644 = vlog2.f32 %v2411_v51  ;;  %v2409_v43 = vadd.f32 1.0, %v6623_v30  ;;  %v8705_v2 = vpop.f32.mrf.mxu0  ;;  %v1908_v28 = vand.u32 2147483647, %v8688_v46  ;;  %v10885_v30 = vmax.f32 %v8484_v45, 0.0 }
 0x151   : > { %v6625_v60 = vpop.eup %6624  ;;  %6646 = vpow2.f32 %v2199_v58  ;;  %v8709_v35 = vadd.f32 %v2788_v32, %v2564_v40  ;;  %v2035_v24 = vsub.f32 0.0, %v1907_v57  ;;  %v2033_v16 = vsub.f32 0.0, %v1905_v49 }
 0x152   : > { %v6627_v56 = vpop.eup %6626  ;;  %v2560_v31 = vmul.f32 0.6931472, %v6625_v60  ;;  %6648 = vlog2.f32 %v2409_v43  ;;  %v8713_v37 = vpop.f32.mrf.mxu0  ;;  %v10884_v58 = vmax.f32 %v8480_v55, 0.0  ;;  %v2036_v51 = vsub.f32 0.0, %v1908_v28 }
 0x153   : > { %v2570_v1 = vmul.f32 0.6931472, %v6627_v56  ;;  %v6629_v26 = vpop.eup %6628  ;;  %v3028_v20 = vpack.c.bf16 %v8709_v35, %v8669_v62  ;;  %v2209_v32 = vmul.f32 1.442695, %v2035_v24  ;;  %v2205_v60 = vmul.f32 1.442695, %v2033_v16 }
 0x154   : > { %v2914_v5 = vadd.f32 %v10884_v58, %v2560_v31  ;;  %v6631_v6 = vpop.eup %6630  ;;  %v2412_v57 = vadd.f32 1.0, %v6629_v26  ;;  %v1906_v43 = vand.u32 2147483647, %v8692_v36  ;;  %v8724_v49 = vpop.f32.mrf.mxu0  ;;  %v2211_v55 = vmul.f32 1.442695, %v2036_v51 }
 0x155   : > { %v8721_v40 = vadd.f32 %v10885_v30, %v2570_v1  ;;  %v6633_v56 = vpop.eup %6632  ;;  %v2410_v42 = vadd.f32 1.0, %v6631_v6  ;;  %6650 = vpow2.f32 %v2209_v32  ;;  %v8732_v16 = vadd.f32 %v8587_v54, %v8597_v48 }
 0x156   : > { %v3027_v47 = vpack.c.bf16 %v2914_v5, %v8673_v34  ;;  %6652 = vlog2.f32 %v2412_v57  ;;  %v2415_v31 = vadd.f32 1.0, %v6633_v56  ;;  %v2034_v24 = vsub.f32 0.0, %v1906_v43  ;;  %v8728_v45 = vpop.f32.mrf.mxu0  ;;  %6351 = vmatmul.mubr.msk.bf16.gmra.mxu1 %vm3106_vm1, %v3026_v18 }
 0x157   : > { %6654 = vlog2.f32 %v2410_v42  ;;  %v8736_v26 = vadd.f32 %v8587_v54, %v8618_v39  ;;  %v8740_v34 = vadd.f32 %v8587_v54, %v8622_v44  ;;  %v8748_v48 = vadd.f32 %v8587_v54, %v8633_v25 }
 0x158   : > { %v6635_v1 = vpop.eup %6634  ;;  %6656 = vlog2.f32 %v2415_v31  ;;  %v2207_v42 = vmul.f32 1.442695, %v2034_v24  ;;  %6354 = vmatprep.mubr.msk.bf16.mxu1 %vm3106_vm1, %v3027_v47  ;;  %v8751_v39 = vpop.f32.mrf.mxu0  ;;  %v1911_v51 = vand.u32 2147483647, %v8732_v16  ;;  %v10886_v18 = vmax.f32 %v8504_v11, 0.0 }
 0x159   : > { %v6637_v58 = vpop.eup %6636  ;;  %v2566_v5 = vmul.f32 0.6931472, %v6635_v1  ;;  %6658 = vpow2.f32 %v2205_v60  ;;  %v1909_v25 = vand.u32 2147483647, %v8736_v26  ;;  %v10889_v10 = vmax.f32 %v8536_v12, 0.0 }
 0x15a   : > { %v6639_v32 = vpop.eup %6638  ;;  %v2413_v44 = vadd.f32 1.0, %v6637_v58  ;;  %6660 = vpow2.f32 %v2211_v55  ;;  %v8758_v57 = vpop.f32.mrf.mxu0  ;;  %v2039_v56 = vsub.f32 0.0, %v1911_v51  ;;  %v1912_v58 = vand.u32 2147483647, %v8740_v34 }
 0x15b   : > { %v6641_v0 = vpop.eup %6640  ;;  %v2917_v6 = vadd.f32 %v10886_v18, %v2566_v5  ;;  %v2416_v30 = vadd.f32 1.0, %v6639_v32  ;;  %v2037_v1 = vsub.f32 0.0, %v1909_v25  ;;  %v10887_v55 = vmax.f32 %v8528_v33, 0.0 }
 0x15c   : > { %v6643_v47 = vpop.eup %6642  ;;  %v2572_v43 = vmul.f32 0.6931472, %v6641_v0  ;;  %6662 = vlog2.f32 %v2413_v44  ;;  %v8762_v11 = vpop.f32.mrf.mxu0  ;;  %v2217_v63 = vmul.f32 1.442695, %v2039_v56  ;;  %v10888_v44 = vmax.f32 %v8532_v4, 0.0 }
 0x15d   : > { %v6645_v31 = vpop.eup %6644  ;;  %v2568_v24 = vmul.f32 0.6931472, %v6643_v47  ;;  %6664 = vlog2.f32 %v2416_v30  ;;  %v2213_v60 = vmul.f32 1.442695, %v2037_v1  ;;  %v2040_v28 = vsub.f32 0.0, %v1912_v58 }
 0x15e   : > { %v6647_v5 = vpop.eup %6646  ;;  %v2920_v32 = vadd.f32 %v10887_v55, %v2572_v43  ;;  %v2578_v18 = vmul.f32 0.6931472, %v6645_v31  ;;  %6666 = vpow2.f32 %v2207_v42  ;;  %v8768_v47 = vpop.f32.mrf.mxu0  ;;  %v2808_v33 = vmax.f32 %v8740_v34, 0.0  ;;  %6355 = vmatmul.mubr.msk.bf16.gmra.mxu1 %vm3106_vm1, %v3028_v20 }
 0x15f   : > { %v2918_v51 = vadd.f32 %v10888_v44, %v2568_v24  ;;  %v2414_v0 = vadd.f32 1.0, %v6647_v5  ;;  %v6649_v30 = vpop.eup %6648  ;;  %6668 = vpow2.f32 %v2217_v63  ;;  %v2219_v43 = vmul.f32 1.442695, %v2040_v28 }
 0x160   : > { %v3030_v25 = vpack.c.bf16 %v2920_v32, %v8721_v40  ;;  %v8773_v61 = vadd.f32 %v10889_v10, %v2578_v18  ;;  %v2574_v42 = vmul.f32 0.6931472, %v6649_v30  ;;  %v8780_v56 = vpop.f32.mrf.mxu0  ;;  %v1910_v40 = vand.u32 2147483647, %v8748_v48 }
 0x161   : > { %v3029_v4 = vpack.c.bf16 %v2918_v51, %v2917_v6  ;;  %6670 = vlog2.f32 %v2414_v0  ;;  %v2806_v12 = vmax.f32 %v8748_v48, 0.0  ;;  %v8786_v10 = vadd.f32 %v8587_v54, %v8643_v21 }
 0x162   : > { %6672 = vpow2.f32 %v2213_v60  ;;  %v6651_v63 = vpop.eup %6650  ;;  %v2921_v62 = vadd.f32 %v2793_v19, %v2574_v42  ;;  %v8792_v35 = vadd.f32 %v8587_v54, %v8658_v13  ;;  %v8796_v20 = vadd.f32 %v8587_v54, %v8664_v22  ;;  %v8799_v28 = vpop.f32.mrf.mxu0 }
 0x163   : > { %6674 = vpow2.f32 %v2219_v43  ;;  %6358 = vmatprep.mubr.msk.bf16.mxu1 %vm3106_vm1, %v3029_v4  ;;  %v6653_v6 = vpop.eup %6652  ;;  %v2419_v21 = vadd.f32 1.0, %v6651_v63  ;;  %v2038_v60 = vsub.f32 0.0, %v1910_v40  ;;  %v1915_v31 = vand.u32 2147483647, %v8786_v10 }
 0x164   : > { %v2811_v15 = vmax.f32 %v8786_v10, 0.0  ;;  %v6655_v19 = vpop.eup %6654  ;;  %v2580_v24 = vmul.f32 0.6931472, %v6653_v6  ;;  %v1913_v13 = vand.u32 2147483647, %v8792_v35  ;;  %v2809_v1 = vmax.f32 %v8792_v35, 0.0  ;;  %v8806_v58 = vpop.f32.mrf.mxu0 }
 0x165   : > { %v2812_v22 = vmax.f32 %v8796_v20, 0.0  ;;  %v6657_v5 = vpop.eup %6656  ;;  %v2576_v55 = vmul.f32 0.6931472, %v6655_v19  ;;  %6676 = vlog2.f32 %v2419_v21  ;;  %v2215_v32 = vmul.f32 1.442695, %v2038_v60 }
 0x166   : > { %v2043_v18 = vsub.f32 0.0, %v1915_v31  ;;  %v6659_v44 = vpop.eup %6658  ;;  %v2924_v51 = vadd.f32 %v2796_v14, %v2580_v24  ;;  %v2586_v0 = vmul.f32 0.6931472, %v6657_v5  ;;  %v2041_v30 = vsub.f32 0.0, %v1913_v13  ;;  %v8811_v42 = vpop.f32.mrf.mxu0  ;;  %6359 = vmatmul.mubr.msk.bf16.gmra.mxu1 %vm3106_vm1, %v3030_v25 }
 0x167   : > { %v1916_v4 = vand.u32 2147483647, %v8796_v20  ;;  %v6661_v43 = vpop.eup %6660  ;;  %v2922_v40 = vadd.f32 %v2794_v50, %v2576_v55  ;;  %v2417_v63 = vadd.f32 1.0, %v6659_v44  ;;  %6678 = vpow2.f32 %v2215_v32 }
 0x168   : > { %v2225_v6 = vmul.f32 1.442695, %v2043_v18  ;;  %v3032_v60 = vpack.c.bf16 %v2924_v51, %v8773_v61  ;;  %v8819_v8 = vadd.f32 %v2799_v59, %v2586_v0  ;;  %v2420_v14 = vadd.f32 1.0, %v6661_v43  ;;  %v8821_v19 = vpop.f32.mrf.mxu0 }
 0x169   : > { %v6663_v21 = vpop.eup %6662  ;;  %v2221_v31 = vmul.f32 1.442695, %v2041_v30  ;;  %v3031_v13 = vpack.c.bf16 %v2922_v40, %v2921_v62  ;;  %6680 = vlog2.f32 %v2417_v63  ;;  %v2044_v50 = vsub.f32 0.0, %v1916_v4 }
 0x16a   : > { %v6665_v24 = vpop.eup %6664  ;;  %v2582_v41 = vmul.f32 0.6931472, %v6663_v21  ;;  %6682 = vlog2.f32 %v2420_v14  ;;  %v8825_v25 = vadd.f32 %v8587_v54, %v8675_v3  ;;  %v8829_v17 = vadd.f32 %v8587_v54, %v8694_v7  ;;  %v8831_v59 = vpop.f32.mrf.mxu0 }
 0x16b   : > { %v6667_v5 = vpop.eup %6666  ;;  %v2588_v55 = vmul.f32 0.6931472, %v6665_v24  ;;  %6684 = vpow2.f32 %v2225_v6  ;;  %v2227_v32 = vmul.f32 1.442695, %v2044_v50  ;;  %6362 = vmatprep.mubr.msk.bf16.mxu1 %vm3106_vm1, %v3031_v13  ;;  %v8852_v14 = vadd.f32 %v8587_v54, %v8705_v2 }
 0x16c   : > { %v2925_v61 = vadd.f32 %v2797_v9, %v2582_v41  ;;  %v2418_v62 = vadd.f32 1.0, %v6667_v5  ;;  %v6669_v18 = vpop.eup %6668  ;;  %6686 = vpow2.f32 %v2221_v31  ;;  %v1914_v3 = vand.u32 2147483647, %v8825_v25  ;;  %v8842_v51 = vpop.f32.mrf.mxu0 }
 0x16d   : > { %v8838_v44 = vadd.f32 %v2800_v53, %v2588_v55  ;;  %v2810_v7 = vmax.f32 %v8825_v25, 0.0  ;;  %v2423_v38 = vadd.f32 1.0, %v6669_v18  ;;  %v1919_v9 = vand.u32 2147483647, %v8829_v17 }
 0x16e   : > { %v6671_v0 = vpop.eup %6670  ;;  %6688 = vlog2.f32 %v2418_v62  ;;  %v2815_v30 = vmax.f32 %v8829_v17, 0.0  ;;  %v2042_v43 = vsub.f32 0.0, %v1914_v3  ;;  %v8848_v40 = vpop.f32.mrf.mxu0  ;;  %6363 = vmatmul.mubr.msk.bf16.gmra.mxu1 %vm3106_vm1, %v3032_v60  ;;  %v10890_v31 = vmax.f32 %v8639_v52, 0.0 }
 0x16f   : > { %v6673_v4 = vpop.eup %6672  ;;  %v3034_v29 = vpack.c.bf16 %v8838_v44, %v8819_v8  ;;  %v2584_v53 = vmul.f32 0.6931472, %v6671_v0  ;;  %6690 = vpow2.f32 %v2227_v32  ;;  %v2047_v21 = vsub.f32 0.0, %v1919_v9 }
 0x170   : > { %v6675_v63 = vpop.eup %6674  ;;  %6692 = vlog2.f32 %v2423_v38  ;;  %v2421_v6 = vadd.f32 1.0, %v6673_v4  ;;  %v2223_v8 = vmul.f32 1.442695, %v2042_v43  ;;  %v8859_v41 = vadd.f32 %v8587_v54, %v8713_v37  ;;  %v8861_v50 = vpop.f32.mrf.mxu0 }
 0x171   : > { %v2926_v24 = vadd.f32 %v10890_v31, %v2584_v53  ;;  %v2424_v13 = vadd.f32 1.0, %v6675_v63  ;;  %v2233_v5 = vmul.f32 1.442695, %v2047_v21  ;;  %v1917_v55 = vand.u32 2147483647, %v8852_v14 }
 0x172   : > { %6694 = vlog2.f32 %v2421_v6  ;;  %v6677_v62 = vpop.eup %6676  ;;  %v1920_v52 = vand.u32 2147483647, %v8859_v41  ;;  %v8867_v18 = vpop.f32.mrf.mxu0  ;;  %v8871_v3 = vadd.f32 %v8587_v54, %v8724_v49  ;;  %v8879_v9 = vadd.f32 %v8587_v54, %v8751_v39 }
 0x173   : > { %v3033_v32 = vpack.c.bf16 %v2926_v24, %v2925_v61  ;;  %6696 = vlog2.f32 %v2424_v13  ;;  %v2594_v44 = vmul.f32 0.6931472, %v6677_v62  ;;  %v2045_v37 = vsub.f32 0.0, %v1917_v55 }
 0x174   : > { %6698 = vpow2.f32 %v2223_v8  ;;  %v6679_v0 = vpop.eup %6678  ;;  %v2048_v38 = vsub.f32 0.0, %v1920_v52  ;;  %v8875_v61 = vadd.f32 %v8587_v54, %v8728_v45  ;;  %v8882_v4 = vpop.f32.mrf.mxu0  ;;  %v10891_v53 = vmax.f32 %v8680_v27, 0.0 }
 0x175   : > { %6700 = vpow2.f32 %v2233_v5  ;;  %6366 = vmatprep.mubr.msk.bf16.mxu1 %vm3106_vm1, %v3033_v32  ;;  %v2422_v49 = vadd.f32 1.0, %v6679_v0  ;;  %v2229_v63 = vmul.f32 1.442695, %v2045_v37  ;;  %v1918_v6 = vand.u32 2147483647, %v8871_v3 }
 0x176   : > { %v8886_v43 = vadd.f32 %v10891_v53, %v2594_v44  ;;  %v6681_v21 = vpop.eup %6680  ;;  %v2235_v31 = vmul.f32 1.442695, %v2048_v38  ;;  %v1923_v24 = vand.u32 2147483647, %v8875_v61  ;;  %v8892_v13 = vpop.f32.mrf.mxu0  ;;  %v1921_v55 = vand.u32 2147483647, %v8879_v9  ;;  %6367 = vmatmul.mubr.msk.bf16.gmra.mxu1 %vm3106_vm1, %v3034_v29 }
 0x177   : > { %v6683_v8 = vpop.eup %6682  ;;  %v2590_v5 = vmul.f32 0.6931472, %v6681_v21  ;;  %6702 = vlog2.f32 %v2422_v49  ;;  %v2046_v27 = vsub.f32 0.0, %v1918_v6  ;;  %v10892_v38 = vmax.f32 %v8684_v23, 0.0 }
 0x178   : > { %v6685_v62 = vpop.eup %6684  ;;  %v2596_v32 = vmul.f32 0.6931472, %v6683_v8  ;;  %6704 = vpow2.f32 %v2229_v63  ;;  %v2051_v52 = vsub.f32 0.0, %v1923_v24  ;;  %v8897_v37 = vpop.f32.mrf.mxu0  ;;  %v10893_v21 = vmax.f32 %v8688_v46, 0.0 }
 0x179   : > { %v6687_v0 = vpop.eup %6686  ;;  %v2929_v53 = vadd.f32 %v10892_v38, %v2590_v5  ;;  %v2427_v39 = vadd.f32 1.0, %v6685_v62  ;;  %6706 = vpow2.f32 %v2235_v31  ;;  %v2231_v49 = vmul.f32 1.442695, %v2046_v27 }
 0x17a   : > { %v2932_v45 = vadd.f32 %v10893_v21, %v2596_v32  ;;  %v2425_v29 = vadd.f32 1.0, %v6687_v0  ;;  %v2241_v60 = vmul.f32 1.442695, %v2051_v52  ;;  %v2049_v8 = vsub.f32 0.0, %v1921_v55  ;;  %v8903_v63 = vpop.f32.mrf.mxu0 }
 0x17b   : > { %v6689_v6 = vpop.eup %6688  ;;  %6708 = vlog2.f32 %v2427_v39  ;;  %v8907_v2 = vadd.f32 %v8587_v54, %v8758_v57  ;;  %v8911_v23 = vadd.f32 %v8587_v54, %v8762_v11  ;;  %v10894_v62 = vmax.f32 %v8692_v36, 0.0 }
 0x17c   : > { %v6691_v24 = vpop.eup %6690  ;;  %v2592_v44 = vmul.f32 0.6931472, %v6689_v6  ;;  %v3036_v46 = vpack.c.bf16 %v2932_v45, %v8886_v43  ;;  %6710 = vlog2.f32 %v2425_v29  ;;  %v2237_v27 = vmul.f32 1.442695, %v2049_v8  ;;  %v8914_v55 = vpop.f32.mrf.mxu0 }
 0x17d   : > { %v6693_v31 = vpop.eup %6692  ;;  %v2428_v5 = vadd.f32 1.0, %v6691_v24  ;;  %6712 = vpow2.f32 %v2231_v49  ;;  %v1924_v57 = vand.u32 2147483647, %v8907_v2  ;;  %v1922_v0 = vand.u32 2147483647, %v8911_v23 }
 0x17e   : > { %v2930_v32 = vadd.f32 %v10894_v62, %v2592_v44  ;;  %v2602_v39 = vmul.f32 0.6931472, %v6693_v31  ;;  %v8922_v45 = vpop.f32.mrf.mxu0  ;;  %v10895_v21 = vmax.f32 %v8732_v16, 0.0  ;;  %v10896_v62 = vmax.f32 %v8736_v26, 0.0 }
 0x17f   : > { %v6695_v52 = vpop.eup %6694  ;;  %6714 = vlog2.f32 %v2428_v5  ;;  %v2052_v8 = vsub.f32 0.0, %v1924_v57  ;;  %v2050_v24 = vsub.f32 0.0, %v1922_v0  ;;  %v8938_v16 = vadd.f32 %v8587_v54, %v8780_v56 }
 0x180   : > { %v6697_v38 = vpop.eup %6696  ;;  %v3035_v6 = vpack.c.bf16 %v2930_v32, %v2929_v53  ;;  %v8926_v36 = vadd.f32 %v10895_v21, %v2602_v39  ;;  %v2598_v44 = vmul.f32 0.6931472, %v6695_v52  ;;  %6716 = vpow2.f32 %v2241_v60  ;;  %v8928_v31 = vpop.f32.mrf.mxu0 }
 0x181   : > { %v6699_v49 = vpop.eup %6698  ;;  %v2604_v29 = vmul.f32 0.6931472, %v6697_v38  ;;  %6718 = vpow2.f32 %v2237_v27  ;;  %v8934_v53 = vadd.f32 %v8587_v54, %v8768_v47  ;;  %v2243_v32 = vmul.f32 1.442695, %v2052_v8 }
 0x182   : > { %v6701_v5 = vpop.eup %6700  ;;  %v2933_v43 = vadd.f32 %v10896_v62, %v2598_v44  ;;  %v2426_v11 = vadd.f32 1.0, %v6699_v49  ;;  %6370 = vmatprep.mubr.msk.bf16.mxu1 %vm3106_vm1, %v3035_v6  ;;  %v2239_v39 = vmul.f32 1.442695, %v2050_v24  ;;  %v8944_v26 = vpop.f32.mrf.mxu0  ;;  %v1925_v56 = vand.u32 2147483647, %v8938_v16 }
 0x183   : > { %v2936_v60 = vadd.f32 %v2808_v33, %v2604_v29  ;;  %v2431_v27 = vadd.f32 1.0, %v6701_v5  ;;  %6371 = vmatmul.mubr.msk.bf16.gmra.mxu1 %vm3106_vm1, %v3036_v46  ;;  %v1927_v47 = vand.u32 2147483647, %v8934_v53  ;;  %v2823_v57 = vmax.f32 %v8934_v53, 0.0 }
 0x184   : > { %6720 = vlog2.f32 %v2426_v11  ;;  %v6703_v52 = vpop.eup %6702  ;;  %v2821_v34 = vmax.f32 %v8938_v16, 0.0  ;;  %v8953_v33 = vadd.f32 %v8587_v54, %v8799_v28  ;;  %v8955_v46 = vpop.f32.mrf.mxu0  ;;  %v2053_v21 = vsub.f32 0.0, %v1925_v56 }
 0x185   : > { %v3038_v0 = vpack.c.bf16 %v2936_v60, %v8926_v36  ;;  %6722 = vlog2.f32 %v2431_v27  ;;  %v6705_v38 = vpop.eup %6704  ;;  %v2600_v11 = vmul.f32 0.6931472, %v6703_v52  ;;  %v2055_v6 = vsub.f32 0.0, %v1927_v47 }
 0x186   : > { %6724 = vpow2.f32 %v2243_v32  ;;  %v6707_v44 = vpop.eup %6706  ;;  %v2429_v49 = vadd.f32 1.0, %v6705_v38  ;;  %v1928_v29 = vand.u32 2147483647, %v8953_v33  ;;  %v2824_v36 = vmax.f32 %v8953_v33, 0.0  ;;  %v8959_v8 = vpop.f32.mrf.mxu0 }
 0x187   : > { %6726 = vpow2.f32 %v2239_v39  ;;  %v2934_v28 = vadd.f32 %v2806_v12, %v2600_v11  ;;  %v2432_v24 = vadd.f32 1.0, %v6707_v44  ;;  %v2249_v5 = vmul.f32 1.442695, %v2055_v6 }
 0x188   : > { %v2245_v62 = vmul.f32 1.442695, %v2053_v21  ;;  %v6709_v60 = vpop.eup %6708  ;;  %6728 = vlog2.f32 %v2429_v49  ;;  %v2056_v27 = vsub.f32 0.0, %v1928_v29  ;;  %v8965_v32 = vadd.f32 %v8587_v54, %v8806_v58  ;;  %v8971_v47 = vpop.f32.mrf.mxu0 }
 0x189   : > { %v8969_v39 = vadd.f32 %v8587_v54, %v8811_v42  ;;  %v6711_v56 = vpop.eup %6710  ;;  %v3037_v52 = vpack.c.bf16 %v2934_v28, %v2933_v43  ;;  %v2610_v48 = vmul.f32 0.6931472, %v6709_v60  ;;  %6730 = vlog2.f32 %v2432_v24 }
 0x18a   : > { %v8975_v12 = vadd.f32 %v8587_v54, %v8821_v19  ;;  %v6713_v38 = vpop.eup %6712  ;;  %v2606_v11 = vmul.f32 0.6931472, %v6711_v56  ;;  %6732 = vpow2.f32 %v2249_v5  ;;  %v2251_v6 = vmul.f32 1.442695, %v2056_v27  ;;  %v8978_v21 = vpop.f32.mrf.mxu0 }
 0x18b   : > { %v1926_v58 = vand.u32 2147483647, %v8965_v32  ;;  %v8982_v44 = vadd.f32 %v2811_v15, %v2610_v48  ;;  %v2430_v43 = vadd.f32 1.0, %v6713_v38  ;;  %6734 = vpow2.f32 %v2245_v62  ;;  %6374 = vmatprep.mubr.msk.bf16.mxu1 %vm3106_vm1, %v3037_v52 }
 0x18c   : > { %v6715_v42 = vpop.eup %6714  ;;  %v2822_v49 = vmax.f32 %v8965_v32, 0.0  ;;  %v2937_v29 = vadd.f32 %v2809_v1, %v2606_v11  ;;  %6736 = vpow2.f32 %v2251_v6  ;;  %6375 = vmatmul.mubr.msk.bf16.gmra.mxu1 %vm3106_vm1, %v3038_v0  ;;  %v8989_v5 = vpop.f32.mrf.mxu0  ;;  %v1931_v62 = vand.u32 2147483647, %v8969_v39 }
 0x18d   : > { %v6717_v19 = vpop.eup %6716  ;;  %v2612_v28 = vmul.f32 0.6931472, %v6715_v42  ;;  %v2054_v24 = vsub.f32 0.0, %v1926_v58  ;;  %6738 = vlog2.f32 %v2430_v43  ;;  %v2827_v60 = vmax.f32 %v8969_v39, 0.0 }
 0x18e   : > { %v6719_v10 = vpop.eup %6718  ;;  %v2435_v15 = vadd.f32 1.0, %v6717_v19  ;;  %v1929_v1 = vand.u32 2147483647, %v8975_v12  ;;  %v8996_v52 = vpop.f32.mrf.mxu0  ;;  %v2059_v0 = vsub.f32 0.0, %v1931_v62  ;;  %v2825_v48 = vmax.f32 %v8975_v12, 0.0 }
 0x18f   : > { %v2940_v27 = vadd.f32 %v2812_v22, %v2612_v28  ;;  %v2433_v56 = vadd.f32 1.0, %v6719_v10  ;;  %v2247_v35 = vmul.f32 1.442695, %v2054_v24  ;;  %v9001_v38 = vadd.f32 %v8587_v54, %v8831_v59 }
 0x190   : > { %6740 = vlog2.f32 %v2435_v15  ;;  %v2057_v20 = vsub.f32 0.0, %v1929_v1  ;;  %v9006_v22 = vadd.f32 %v8587_v54, %v8842_v51  ;;  %v9008_v58 = vpop.f32.mrf.mxu0  ;;  %v2257_v19 = vmul.f32 1.442695, %v2059_v0 }
 0x191   : > { %v6721_v11 = vpop.eup %6720  ;;  %v3040_v6 = vpack.c.bf16 %v2940_v27, %v8982_v44  ;;  %6742 = vlog2.f32 %v2433_v56  ;;  %v1932_v28 = vand.u32 2147483647, %v9001_v38  ;;  %v9024_v25 = vadd.f32 %v8587_v54, %v8848_v40 }
 0x192   : > { %v6723_v42 = vpop.eup %6722  ;;  %v2608_v43 = vmul.f32 0.6931472, %v6721_v11  ;;  %6744 = vpow2.f32 %v2247_v35  ;;  %v2253_v10 = vmul.f32 1.442695, %v2057_v20  ;;  %v9015_v1 = vpop.f32.mrf.mxu0  ;;  %v1930_v11 = vand.u32 2147483647, %v9006_v22 }
 0x193   : > { %v6725_v24 = vpop.eup %6724  ;;  %v2618_v59 = vmul.f32 0.6931472, %v6723_v42  ;;  %6746 = vpow2.f32 %v2257_v19  ;;  %v2060_v56 = vsub.f32 0.0, %v1932_v28  ;;  %v9028_v17 = vadd.f32 %v8587_v54, %v8861_v50 }
 0x194   : > { %v6727_v62 = vpop.eup %6726  ;;  %v2938_v51 = vadd.f32 %v2810_v7, %v2608_v43  ;;  %v2436_v27 = vadd.f32 1.0, %v6725_v24  ;;  %6748 = vpow2.f32 %v2253_v10  ;;  %v2058_v19 = vsub.f32 0.0, %v1930_v11 }
 0x195   : > { %v9019_v35 = vadd.f32 %v2815_v30, %v2618_v59  ;;  %v2434_v0 = vadd.f32 1.0, %v6727_v62  ;;  %v6729_v20 = vpop.eup %6728  ;;  %v2259_v44 = vmul.f32 1.442695, %v2060_v56  ;;  %v1935_v24 = vand.u32 2147483647, %v9024_v25  ;;  %v9033_v59 = vpop.f32.mrf.mxu0 }
 0x196   : > { %v3039_v42 = vpack.c.bf16 %v2938_v51, %v2937_v29  ;;  %6750 = vlog2.f32 %v2436_v27  ;;  %v6731_v7 = vpop.eup %6730  ;;  %v2614_v43 = vmul.f32 0.6931472, %v6729_v20  ;;  %v10897_v10 = vmax.f32 %v8852_v14, 0.0 }
 0x197   : > { %6752 = vlog2.f32 %v2434_v0  ;;  %v6733_v30 = vpop.eup %6732  ;;  %v2620_v28 = vmul.f32 0.6931472, %v6731_v7  ;;  %v2255_v27 = vmul.f32 1.442695, %v2058_v19  ;;  %v1933_v50 = vand.u32 2147483647, %v9028_v17 }
 0x198   : > { %6754 = vpow2.f32 %v2259_v44  ;;  %6378 = vmatprep.mubr.msk.bf16.mxu1 %vm3106_vm1, %v3039_v42  ;;  %v6735_v40 = vpop.eup %6734  ;;  %v2941_v62 = vadd.f32 %v10897_v10, %v2614_v43  ;;  %v2439_v51 = vadd.f32 1.0, %v6733_v30  ;;  %v10898_v44 = vmax.f32 %v8859_v41, 0.0  ;;  %v9047_v30 = vpop.f32.mrf.mxu0 }
 0x199   : > { %6379 = vmatmul.mubr.msk.bf16.gmra.mxu1 %vm3106_vm1, %v3040_v6  ;;  %v6737_v56 = vpop.eup %6736  ;;  %v2437_v11 = vadd.f32 1.0, %v6735_v40  ;;  %v2063_v20 = vsub.f32 0.0, %v1935_v24  ;;  %v2829_v42 = vmax.f32 %v9028_v17, 0.0  ;;  %v2061_v15 = vsub.f32 0.0, %v1933_v50 }
 0x19a   : > { %v2944_v0 = vadd.f32 %v10898_v44, %v2620_v28  ;;  %v6739_v7 = vpop.eup %6738  ;;  %6756 = vlog2.f32 %v2439_v51  ;;  %v2440_v29 = vadd.f32 1.0, %v6737_v56  ;;  %v9044_v14 = vadd.f32 %v8587_v54, %v8867_v18  ;;  %v9056_v18 = vld [vmem:[%s10873_s2] ss:$0 sm:$0xff] }
 0x19b   : > { %v2616_v19 = vmul.f32 0.6931472, %v6739_v7  ;;  %6758 = vlog2.f32 %v2437_v11  ;;  %v2265_v6 = vmul.f32 1.442695, %v2063_v20  ;;  %v2261_v28 = vmul.f32 1.442695, %v2061_v15  ;;  %v9070_v20 = vpop.f32.mrf.mxu0 }
 0x19c   : > { %v3042_v43 = vpack.c.bf16 %v2944_v0, %v9019_v35  ;;  %6760 = vlog2.f32 %v2440_v29  ;;  %v1936_v24 = vand.u32 2147483647, %v9044_v14  ;;  %v2832_v40 = vmax.f32 %v9044_v14, 0.0 }
 0x19d   : > { %v6741_v41 = vpop.eup %6740  ;;  %v10899_v51 = vmax.f32 %v8871_v3, 0.0  ;;  %6762 = vpow2.f32 %v2255_v27  ;;  %v9060_v35 = vadd.f32 %v9056_v18, %v8882_v4  ;;  %v9064_v44 = vadd.f32 %v9056_v18, %v8892_v13 }
 0x19e   : > { %v6743_v10 = vpop.eup %6742  ;;  %v2626_v54 = vmul.f32 0.6931472, %v6741_v41  ;;  %6764 = vpow2.f32 %v2265_v6  ;;  %v2064_v56 = vsub.f32 0.0, %v1936_v24  ;;  %v10900_v27 = vmax.f32 %v8875_v61, 0.0 }
 0x19f   : > { %v2942_v50 = vadd.f32 %v10899_v51, %v2616_v19  ;;  %v6745_v15 = vpop.eup %6744  ;;  %v2622_v29 = vmul.f32 0.6931472, %v6743_v10  ;;  %6766 = vpow2.f32 %v2261_v28  ;;  %v10901_v4 = vmax.f32 %v8879_v9, 0.0 }
 0x1a0   : > { %v9068_v0 = vadd.f32 %v10900_v27, %v2626_v54  ;;  %v2438_v11 = vadd.f32 1.0, %v6745_v15  ;;  %v6747_v7 = vpop.eup %6746  ;;  %v2267_v41 = vmul.f32 1.442695, %v2064_v56  ;;  %v1934_v6 = vand.u32 2147483647, %v9060_v35  ;;  %v9088_v27 = vpop.f32.mrf.mxu0 }
 0x1a1   : > { %v3041_v3 = vpack.c.bf16 %v2942_v50, %v2941_v62  ;;  %v2945_v19 = vadd.f32 %v10901_v4, %v2622_v29  ;;  %v2830_v24 = vmax.f32 %v9060_v35, 0.0  ;;  %v6749_v13 = vpop.eup %6748  ;;  %v2443_v62 = vadd.f32 1.0, %v6747_v7 }
 0x1a2   : > { %6768 = vlog2.f32 %v2438_v11  ;;  %v1939_v61 = vand.u32 2147483647, %v9064_v44  ;;  %v2441_v51 = vadd.f32 1.0, %v6749_v13  ;;  %v2062_v50 = vsub.f32 0.0, %v1934_v6 }
 0x1a3   : > { %6382 = vmatprep.mubr.msk.bf16.mxu1 %vm3106_vm1, %v3041_v3  ;;  %v6751_v28 = vpop.eup %6750  ;;  %6770 = vpow2.f32 %v2267_v41  ;;  %v9081_v9 = vadd.f32 %v9056_v18, %v8897_v37  ;;  %v9086_v56 = vadd.f32 %v9056_v18, %v8903_v63  ;;  %v10902_v37 = vmax.f32 %v8907_v2, 0.0 }
 0x1a4   : > { %6383 = vmatmul.mubr.msk.bf16.gmra.mxu1 %vm3106_vm1, %v3042_v43  ;;  %v6753_v54 = vpop.eup %6752  ;;  %v2628_v15 = vmul.f32 0.6931472, %v6751_v28  ;;  %6772 = vlog2.f32 %v2443_v62  ;;  %v2067_v29 = vsub.f32 0.0, %v1939_v61  ;;  %v2263_v7 = vmul.f32 1.442695, %v2062_v50 }
 0x1a5   : > { %v6755_v3 = vpop.eup %6754  ;;  %v2624_v11 = vmul.f32 0.6931472, %v6753_v54  ;;  %6774 = vlog2.f32 %v2441_v51  ;;  %v1937_v4 = vand.u32 2147483647, %v9081_v9  ;;  %v2833_v13 = vmax.f32 %v9081_v9, 0.0  ;;  %v9103_v54 = vpop.f32.mrf.mxu0 }
 0x1a6   : > { %v2948_v41 = vadd.f32 %v10902_v37, %v2628_v15  ;;  %v2444_v43 = vadd.f32 1.0, %v6755_v3  ;;  %v2273_v6 = vmul.f32 1.442695, %v2067_v29  ;;  %v10903_v62 = vmax.f32 %v8911_v23, 0.0 }
 0x1a7   : > { %6776 = vpow2.f32 %v2263_v7  ;;  %v2065_v63 = vsub.f32 0.0, %v1937_v4  ;;  %v1940_v28 = vand.u32 2147483647, %v9086_v56  ;;  %v6757_v10 = vpop.eup %6756  ;;  %v2836_v50 = vmax.f32 %v9086_v56, 0.0  ;;  %v9119_v53 = vpop.f32.mrf.mxu0 }
 0x1a8   : > { %v2946_v61 = vadd.f32 %v10903_v62, %v2624_v11  ;;  %v3044_v51 = vpack.c.bf16 %v2948_v41, %v9068_v0  ;;  %6778 = vlog2.f32 %v2444_v43  ;;  %v9101_v2 = vadd.f32 %v9056_v18, %v8914_v55  ;;  %v6759_v15 = vpop.eup %6758 }
 0x1a9   : > { %v2634_v23 = vmul.f32 0.6931472, %v6757_v10  ;;  %6780 = vpow2.f32 %v2273_v6  ;;  %v2269_v3 = vmul.f32 1.442695, %v2065_v63  ;;  %v6761_v11 = vpop.eup %6760  ;;  %v2630_v7 = vmul.f32 0.6931472, %v6759_v15 }
 0x1aa   : > { %v3043_v29 = vpack.c.bf16 %v2946_v61, %v2945_v19  ;;  %v2068_v4 = vsub.f32 0.0, %v1940_v28  ;;  %v1938_v37 = vand.u32 2147483647, %v9101_v2  ;;  %v2834_v0 = vmax.f32 %v9101_v2, 0.0  ;;  %v6763_v41 = vpop.eup %6762 }
 0x1ab   : > { %v9109_v43 = vadd.f32 %v2823_v57, %v2634_v23  ;;  %v2636_v55 = vmul.f32 0.6931472, %v6761_v11  ;;  %6782 = vpow2.f32 %v2269_v3  ;;  %v9113_v19 = vadd.f32 %v9056_v18, %v8922_v45  ;;  %v6765_v10 = vpop.eup %6764 }
 0x1ac   : > { %6386 = vmatprep.mubr.msk.bf16.mxu1 %vm3106_vm1, %v3043_v29  ;;  %v2949_v6 = vadd.f32 %v2821_v34, %v2630_v7  ;;  %v2442_v62 = vadd.f32 1.0, %v6763_v41  ;;  %v2275_v61 = vmul.f32 1.442695, %v2068_v4  ;;  %v2066_v63 = vsub.f32 0.0, %v1938_v37  ;;  %v6767_v57 = vpop.eup %6766  ;;  %v9136_v41 = vpop.f32.mrf.mxu0 }
 0x1ad   : > { %6387 = vmatmul.mubr.msk.bf16.gmra.mxu1 %vm3106_vm1, %v3044_v51  ;;  %v2952_v28 = vadd.f32 %v2824_v36, %v2636_v55  ;;  %v2447_v15 = vadd.f32 1.0, %v6765_v10  ;;  %v1943_v45 = vand.u32 2147483647, %v9113_v19  ;;  %v2839_v29 = vmax.f32 %v9113_v19, 0.0 }
 0x1ae   : > { %6784 = vlog2.f32 %v2442_v62  ;;  %v2445_v23 = vadd.f32 1.0, %v6767_v57  ;;  %v2271_v16 = vmul.f32 1.442695, %v2066_v63  ;;  %v9127_v34 = vadd.f32 %v9056_v18, %v8928_v31 }
 0x1af   : > { %v6769_v3 = vpop.eup %6768  ;;  %v3046_v51 = vpack.c.bf16 %v2952_v28, %v9109_v43  ;;  %6786 = vlog2.f32 %v2447_v15  ;;  %v2071_v11 = vsub.f32 0.0, %v1943_v45  ;;  %v9132_v33 = vadd.f32 %v9056_v18, %v8944_v26 }
 0x1b0   : > { %v6771_v36 = vpop.eup %6770  ;;  %v2632_v7 = vmul.f32 0.6931472, %v6769_v3  ;;  %6788 = vlog2.f32 %v2445_v23  ;;  %v1941_v4 = vand.u32 2147483647, %v9127_v34  ;;  %v2837_v37 = vmax.f32 %v9127_v34, 0.0 }
 0x1b1   : > { %v6773_v31 = vpop.eup %6772  ;;  %v2448_v55 = vadd.f32 1.0, %v6771_v36  ;;  %6790 = vpow2.f32 %v2275_v61  ;;  %v2281_v10 = vmul.f32 1.442695, %v2071_v11  ;;  %v1944_v43 = vand.u32 2147483647, %v9132_v33  ;;  %v9146_v36 = vpop.f32.mrf.mxu0 }
 0x1b2   : > { %v6775_v62 = vpop.eup %6774  ;;  %v2950_v26 = vadd.f32 %v2822_v49, %v2632_v7  ;;  %v2642_v63 = vmul.f32 0.6931472, %v6773_v31  ;;  %6792 = vpow2.f32 %v2271_v16  ;;  %v2069_v57 = vsub.f32 0.0, %v1941_v4 }
 0x1b3   : > { %v2638_v28 = vmul.f32 0.6931472, %v6775_v62  ;;  %6794 = vlog2.f32 %v2448_v55  ;;  %v2072_v15 = vsub.f32 0.0, %v1944_v43  ;;  %v2840_v45 = vmax.f32 %v9132_v33, 0.0  ;;  %v9172_v62 = vpop.f32.mrf.mxu0 }
 0x1b4   : > { %v6777_v23 = vpop.eup %6776  ;;  %v3045_v3 = vpack.c.bf16 %v2950_v26, %v2949_v6  ;;  %v9144_v61 = vadd.f32 %v2827_v60, %v2642_v63  ;;  %6796 = vpow2.f32 %v2281_v10  ;;  %v2277_v11 = vmul.f32 1.442695, %v2069_v57 }
 0x1b5   : > { %v6779_v32 = vpop.eup %6778  ;;  %v9150_v49 = vadd.f32 %v2825_v48, %v2638_v28  ;;  %v2446_v16 = vadd.f32 1.0, %v6777_v23  ;;  %v2283_v7 = vmul.f32 1.442695, %v2072_v15  ;;  %v9154_v4 = vadd.f32 %v9056_v18, %v8955_v46 }
 0x1b6   : > { %v6781_v6 = vpop.eup %6780  ;;  %v2644_v31 = vmul.f32 0.6931472, %v6779_v32  ;;  %6798 = vpow2.f32 %v2277_v11  ;;  %v9158_v39 = vadd.f32 %v9056_v18, %v8959_v8  ;;  %v9162_v60 = vadd.f32 %v9056_v18, %v8971_v47  ;;  %6390 = vmatprep.mubr.msk.bf16.mxu1 %vm3106_vm1, %v3045_v3 }
 0x1b7   : > { %6800 = vlog2.f32 %v2446_v16  ;;  %v2451_v12 = vadd.f32 1.0, %v6781_v6  ;;  %v1942_v48 = vand.u32 2147483647, %v9154_v4  ;;  %v2838_v46 = vmax.f32 %v9154_v4, 0.0  ;;  %6391 = vmatmul.mubr.msk.bf16.gmra.mxu1 %vm3106_vm1, %v3046_v51 }
 0x1b8   : > { %v6783_v55 = vpop.eup %6782  ;;  %v10904_v10 = vmax.f32 %v9001_v38, 0.0  ;;  %6802 = vpow2.f32 %v2283_v7  ;;  %v1947_v8 = vand.u32 2147483647, %v9158_v39  ;;  %v2843_v47 = vmax.f32 %v9158_v39, 0.0 }
 0x1b9   : > { %6804 = vlog2.f32 %v2451_v12  ;;  %v2449_v26 = vadd.f32 1.0, %v6783_v55  ;;  %v2070_v63 = vsub.f32 0.0, %v1942_v48  ;;  %v1945_v57 = vand.u32 2147483647, %v9162_v60  ;;  %v9190_v12 = vpop.f32.mrf.mxu0 }
 0x1ba   : > { %v2956_v43 = vadd.f32 %v10904_v10, %v2644_v31  ;;  %v2075_v15 = vsub.f32 0.0, %v1947_v8  ;;  %v2841_v51 = vmax.f32 %v9162_v60, 0.0  ;;  %v9179_v38 = vadd.f32 %v9056_v18, %v8978_v21 }
 0x1bb   : > { %v6785_v23 = vpop.eup %6784  ;;  %6806 = vlog2.f32 %v2449_v26  ;;  %v2279_v3 = vmul.f32 1.442695, %v2070_v63  ;;  %v2073_v11 = vsub.f32 0.0, %v1945_v57  ;;  %v9183_v32 = vadd.f32 %v9056_v18, %v8989_v5 }
 0x1bc   : > { %v3048_v28 = vpack.c.bf16 %v2956_v43, %v9144_v61  ;;  %v6787_v16 = vpop.eup %6786  ;;  %v2640_v7 = vmul.f32 0.6931472, %v6785_v23  ;;  %v2289_v6 = vmul.f32 1.442695, %v2075_v15  ;;  %v1948_v61 = vand.u32 2147483647, %v9179_v38 }
 0x1bd   : > { %v9188_v31 = vadd.f32 %v9056_v18, %v8996_v52  ;;  %v6789_v21 = vpop.eup %6788  ;;  %v2650_v48 = vmul.f32 0.6931472, %v6787_v16  ;;  %6808 = vpow2.f32 %v2279_v3  ;;  %v2285_v55 = vmul.f32 1.442695, %v2073_v11 }
 0x1be   : > { %v6791_v43 = vpop.eup %6790  ;;  %v10905_v5 = vmax.f32 %v9006_v22, 0.0  ;;  %v2646_v26 = vmul.f32 0.6931472, %v6789_v21  ;;  %6810 = vpow2.f32 %v2289_v6  ;;  %v2076_v63 = vsub.f32 0.0, %v1948_v61  ;;  %v9203_v21 = vpop.f32.mrf.mxu0 }
 0x1bf   : > { %v6793_v57 = vpop.eup %6792  ;;  %v10906_v15 = vmax.f32 %v9024_v25, 0.0  ;;  %v2452_v23 = vadd.f32 1.0, %v6791_v43  ;;  %6812 = vpow2.f32 %v2285_v55  ;;  %v1946_v16 = vand.u32 2147483647, %v9183_v32 }
 0x1c0   : > { %v2954_v8 = vadd.f32 %v10905_v5, %v2640_v7  ;;  %v6795_v3 = vpop.eup %6794  ;;  %v2957_v10 = vadd.f32 %v2829_v42, %v2646_v26  ;;  %v2450_v22 = vadd.f32 1.0, %v6793_v57  ;;  %v2291_v7 = vmul.f32 1.442695, %v2076_v63 }
 0x1c1   : > { %v9197_v52 = vadd.f32 %v10906_v15, %v2650_v48  ;;  %v6797_v6 = vpop.eup %6796  ;;  %v2652_v61 = vmul.f32 0.6931472, %v6795_v3  ;;  %6814 = vlog2.f32 %v2452_v23  ;;  %v2074_v25 = vsub.f32 0.0, %v1946_v16  ;;  %v9220_v23 = vpop.f32.mrf.mxu0 }
 0x1c2   : > { %v3047_v11 = vpack.c.bf16 %v2954_v8, %v9150_v49  ;;  %v2842_v48 = vmax.f32 %v9183_v32, 0.0  ;;  %6816 = vlog2.f32 %v2450_v22  ;;  %v2455_v55 = vadd.f32 1.0, %v6797_v6 }
 0x1c3   : > { %v1951_v43 = vand.u32 2147483647, %v9188_v31  ;;  %v2847_v5 = vmax.f32 %v9188_v31, 0.0  ;;  %v6799_v17 = vpop.eup %6798  ;;  %v2960_v42 = vadd.f32 %v2832_v40, %v2652_v61  ;;  %6818 = vpow2.f32 %v2291_v7 }
 0x1c4   : > { %6394 = vmatprep.mubr.msk.bf16.mxu1 %vm3106_vm1, %v3047_v11  ;;  %v2287_v49 = vmul.f32 1.442695, %v2074_v25  ;;  %v9213_v8 = vadd.f32 %v9056_v18, %v9008_v58  ;;  %v6801_v26 = vpop.eup %6800  ;;  %6820 = vlog2.f32 %v2455_v55  ;;  %v2453_v63 = vadd.f32 1.0, %v6799_v17  ;;  %v9237_v17 = vpop.f32.mrf.mxu0 }
 0x1c5   : > { %6395 = vmatmul.mubr.msk.bf16.gmra.mxu1 %vm3106_vm1, %v3048_v28  ;;  %v2079_v57 = vsub.f32 0.0, %v1951_v43  ;;  %v9218_v15 = vadd.f32 %v9056_v18, %v9015_v1  ;;  %v6803_v14 = vpop.eup %6802  ;;  %v3050_v40 = vpack.c.bf16 %v2960_v42, %v9197_v52  ;;  %v2648_v16 = vmul.f32 0.6931472, %v6801_v26 }
 0x1c6   : > { %6822 = vpow2.f32 %v2287_v49  ;;  %v1949_v58 = vand.u32 2147483647, %v9213_v8  ;;  %v6805_v3 = vpop.eup %6804  ;;  %v2456_v28 = vadd.f32 1.0, %v6803_v14  ;;  %v2845_v22 = vmax.f32 %v9213_v8, 0.0 }
 0x1c7   : > { %6824 = vlog2.f32 %v2453_v63  ;;  %v2297_v11 = vmul.f32 1.442695, %v2079_v57  ;;  %v2958_v7 = vadd.f32 %v2830_v24, %v2648_v16  ;;  %v2658_v1 = vmul.f32 0.6931472, %v6805_v3 }
 0x1c8   : > { %v2077_v6 = vsub.f32 0.0, %v1949_v58  ;;  %v1952_v61 = vand.u32 2147483647, %v9218_v15  ;;  %v6807_v25 = vpop.eup %6806  ;;  %6826 = vlog2.f32 %v2456_v28  ;;  %v2848_v52 = vmax.f32 %v9218_v15, 0.0 }
 0x1c9   : > { %v9231_v55 = vadd.f32 %v9056_v18, %v9033_v59  ;;  %v9235_v43 = vadd.f32 %v9056_v18, %v9047_v30  ;;  %v3049_v35 = vpack.c.bf16 %v2958_v7, %v2957_v10  ;;  %v10907_v24 = vmax.f32 %v9064_v44, 0.0 }
 0x1ca   : > { %v2654_v49 = vmul.f32 0.6931472, %v6807_v25  ;;  %6828 = vpow2.f32 %v2297_v11  ;;  %v6809_v26 = vpop.eup %6808  ;;  %v2293_v63 = vmul.f32 1.442695, %v2077_v6  ;;  %v2080_v57 = vsub.f32 0.0, %v1952_v61 }
 0x1cb   : > { %v9241_v42 = vadd.f32 %v10907_v24, %v2658_v1  ;;  %v1950_v14 = vand.u32 2147483647, %v9231_v55  ;;  %v2846_v59 = vmax.f32 %v9231_v55, 0.0  ;;  %v6811_v16 = vpop.eup %6810  ;;  %v2454_v58 = vadd.f32 1.0, %v6809_v26  ;;  %6398 = vmatprep.mubr.msk.bf16.mxu1 %vm3106_vm1, %v3049_v35  ;;  %v9253_v1 = vpop.f32.mrf.mxu0 }
 0x1cc   : > { %v9247_v30 = vadd.f32 %v2833_v13, %v2654_v49  ;;  %v1955_v10 = vand.u32 2147483647, %v9235_v43  ;;  %v6813_v3 = vpop.eup %6812  ;;  %v2459_v28 = vadd.f32 1.0, %v6811_v16  ;;  %6830 = vpow2.f32 %v2293_v63 }
 0x1cd   : > { %v2299_v11 = vmul.f32 1.442695, %v2080_v57  ;;  %v2078_v7 = vsub.f32 0.0, %v1950_v14  ;;  %6399 = vmatmul.mubr.msk.bf16.gmra.mxu1 %vm3106_vm1, %v3050_v40  ;;  %6832 = vlog2.f32 %v2454_v58  ;;  %v2457_v9 = vadd.f32 1.0, %v6813_v3  ;;  %v9270_v58 = vpop.f32.mrf.mxu0 }
 0x1ce   : > { %v2083_v13 = vsub.f32 0.0, %v1955_v10  ;;  %v9257_v6 = vadd.f32 %v9056_v18, %v9070_v20  ;;  %v6815_v61 = vpop.eup %6814  ;;  %6834 = vlog2.f32 %v2459_v28  ;;  %v9261_v35 = vadd.f32 %v9056_v18, %v9088_v27 }
 0x1cf   : > { %v2295_v25 = vmul.f32 1.442695, %v2078_v7  ;;  %v9265_v24 = vadd.f32 %v9056_v18, %v9103_v54  ;;  %v6817_v40 = vpop.eup %6816  ;;  %v2660_v49 = vmul.f32 0.6931472, %v6815_v61  ;;  %6836 = vlog2.f32 %v2457_v9 }
 0x1d0   : > { %v2305_v26 = vmul.f32 1.442695, %v2083_v13  ;;  %v1953_v63 = vand.u32 2147483647, %v9257_v6  ;;  %v6819_v57 = vpop.eup %6818  ;;  %v2656_v20 = vmul.f32 0.6931472, %v6817_v40  ;;  %6838 = vpow2.f32 %v2299_v11 }
 0x1d1   : > { %v1956_v16 = vand.u32 2147483647, %v9261_v35  ;;  %v6821_v27 = vpop.eup %6820  ;;  %v2964_v54 = vadd.f32 %v2836_v50, %v2660_v49  ;;  %v2460_v10 = vadd.f32 1.0, %v6819_v57  ;;  %6840 = vpow2.f32 %v2295_v25  ;;  %v9282_v49 = vpop.f32.mrf.mxu0 }
 0x1d2   : > { %v2081_v3 = vsub.f32 0.0, %v1953_v63  ;;  %v2962_v7 = vadd.f32 %v2834_v0, %v2656_v20  ;;  %v2666_v9 = vmul.f32 0.6931472, %v6821_v27  ;;  %6842 = vpow2.f32 %v2305_v26 }
 0x1d3   : > { %v6823_v28 = vpop.eup %6822  ;;  %v2084_v11 = vsub.f32 0.0, %v1956_v16  ;;  %v3052_v61 = vpack.c.bf16 %v2964_v54, %v9241_v42  ;;  %6844 = vlog2.f32 %v2460_v10  ;;  %v2852_v0 = vmax.f32 %v9261_v35, 0.0 }
 0x1d4   : > { %v6825_v13 = vpop.eup %6824  ;;  %v2458_v40 = vadd.f32 1.0, %v6823_v28  ;;  %v2301_v14 = vmul.f32 1.442695, %v2081_v3  ;;  %v3051_v44 = vpack.c.bf16 %v2962_v7, %v9247_v30  ;;  %v9280_v56 = vadd.f32 %v2839_v29, %v2666_v9 }
 0x1d5   : > { %v2662_v50 = vmul.f32 0.6931472, %v6825_v13  ;;  %v2307_v25 = vmul.f32 1.442695, %v2084_v11  ;;  %v6827_v2 = vpop.eup %6826  ;;  %v1954_v26 = vand.u32 2147483647, %v9265_v24  ;;  %v9291_v19 = vadd.f32 %v9056_v18, %v9119_v53 }
 0x1d6   : > { %6846 = vlog2.f32 %v2458_v40  ;;  %v2850_v42 = vmax.f32 %v9265_v24, 0.0  ;;  %v2668_v57 = vmul.f32 0.6931472, %v6827_v2  ;;  %6402 = vmatprep.mubr.msk.bf16.mxu1 %vm3106_vm1, %v3051_v44  ;;  %v9296_v16 = vadd.f32 %v9056_v18, %v9136_v41  ;;  %v9307_v44 = vpop.f32.mrf.mxu0 }
 0x1d7   : > { %v6829_v63 = vpop.eup %6828  ;;  %v2965_v30 = vadd.f32 %v2837_v37, %v2662_v50  ;;  %6848 = vpow2.f32 %v2301_v14  ;;  %v2082_v20 = vsub.f32 0.0, %v1954_v26  ;;  %6403 = vmatmul.mubr.msk.bf16.gmra.mxu1 %vm3106_vm1, %v3052_v61  ;;  %v1959_v37 = vand.u32 2147483647, %v9291_v19 }
 0x1d8   : > { %v2463_v29 = vadd.f32 1.0, %v6829_v63  ;;  %6850 = vpow2.f32 %v2307_v25  ;;  %v2968_v34 = vadd.f32 %v2840_v45, %v2668_v57  ;;  %v2855_v14 = vmax.f32 %v9291_v19, 0.0  ;;  %v9314_v2 = vpop.f32.mrf.mxu0  ;;  %v9485_v19 = vld [vmem:[%s10873_s2] ss:$0 sm:$0xff] }
 0x1d9   : > { %v9305_v53 = vadd.f32 %v9056_v18, %v9146_v36  ;;  %v6831_v27 = vpop.eup %6830  ;;  %v2303_v54 = vmul.f32 1.442695, %v2082_v20  ;;  %v1957_v41 = vand.u32 2147483647, %v9296_v16  ;;  %v2853_v10 = vmax.f32 %v9296_v16, 0.0 }
 0x1da   : > { %6852 = vlog2.f32 %v2463_v29  ;;  %v6833_v3 = vpop.eup %6832  ;;  %v3054_v33 = vpack.c.bf16 %v2968_v34, %v9280_v56  ;;  %v2461_v45 = vadd.f32 1.0, %v6831_v27  ;;  %v2087_v28 = vsub.f32 0.0, %v1959_v37  ;;  %v9330_v39 = vpop.f32.mrf.mxu0 }
 0x1db   : > { %v1960_v7 = vand.u32 2147483647, %v9305_v53  ;;  %v6835_v9 = vpop.eup %6834  ;;  %v2664_v11 = vmul.f32 0.6931472, %v6833_v3  ;;  %6854 = vpow2.f32 %v2303_v54  ;;  %v2085_v36 = vsub.f32 0.0, %v1957_v41 }
 0x1dc   : > { %v2856_v13 = vmax.f32 %v9305_v53, 0.0  ;;  %v6837_v61 = vpop.eup %6836  ;;  %v2674_v40 = vmul.f32 0.6931472, %v6835_v9  ;;  %6856 = vlog2.f32 %v2461_v45  ;;  %v2313_v50 = vmul.f32 1.442695, %v2087_v28 }
 0x1dd   : > { %v2088_v25 = vsub.f32 0.0, %v1960_v7  ;;  %v6839_v26 = vpop.eup %6838  ;;  %v2966_v56 = vadd.f32 %v2838_v46, %v2664_v11  ;;  %v2670_v63 = vmul.f32 0.6931472, %v6837_v61  ;;  %v2309_v57 = vmul.f32 1.442695, %v2085_v36 }
 0x1de   : > { %v9320_v29 = vadd.f32 %v9056_v18, %v9172_v62  ;;  %v6841_v20 = vpop.eup %6840  ;;  %v9324_v34 = vadd.f32 %v2843_v47, %v2674_v40  ;;  %v2464_v37 = vadd.f32 1.0, %v6839_v26  ;;  %6858 = vpow2.f32 %v2313_v50 }
 0x1df   : > { %v2315_v27 = vmul.f32 1.442695, %v2088_v25  ;;  %v6843_v54 = vpop.eup %6842  ;;  %v3053_v41 = vpack.c.bf16 %v2966_v56, %v2965_v30  ;;  %v2969_v4 = vadd.f32 %v2841_v51, %v2670_v63  ;;  %v2462_v46 = vadd.f32 1.0, %v6841_v20  ;;  %v9355_v63 = vpop.f32.mrf.mxu0 }
 0x1e0   : > { %6860 = vpow2.f32 %v2309_v57  ;;  %v6845_v3 = vpop.eup %6844  ;;  %v2467_v45 = vadd.f32 1.0, %v6843_v54  ;;  %v1958_v62 = vand.u32 2147483647, %v9320_v29  ;;  %v2854_v28 = vmax.f32 %v9320_v29, 0.0 }
 0x1e1   : > { %6862 = vlog2.f32 %v2464_v37  ;;  %v2676_v47 = vmul.f32 0.6931472, %v6845_v3  ;;  %v9334_v7 = vadd.f32 %v9056_v18, %v9190_v12  ;;  %v9338_v60 = vadd.f32 %v9056_v18, %v9203_v21  ;;  %6406 = vmatprep.mubr.msk.bf16.mxu1 %vm3106_vm1, %v3053_v41 }
 0x1e2   : > { %6864 = vlog2.f32 %v2462_v46  ;;  %v2086_v30 = vsub.f32 0.0, %v1958_v62  ;;  %v9343_v9 = vadd.f32 %v9056_v18, %v9220_v23  ;;  %v9347_v11 = vadd.f32 %v9056_v18, %v9237_v17  ;;  %6407 = vmatmul.mubr.msk.bf16.gmra.mxu1 %vm3106_vm1, %v3054_v33 }
 0x1e3   : > { %v6847_v51 = vpop.eup %6846  ;;  %6866 = vlog2.f32 %v2467_v45  ;;  %v10908_v36 = vmax.f32 %v9179_v38, 0.0  ;;  %v1963_v40 = vand.u32 2147483647, %v9334_v7  ;;  %v2859_v23 = vmax.f32 %v9334_v7, 0.0 }
 0x1e4   : > { %v6849_v12 = vpop.eup %6848  ;;  %v2672_v61 = vmul.f32 0.6931472, %v6847_v51  ;;  %6868 = vpow2.f32 %v2315_v27  ;;  %v2311_v26 = vmul.f32 1.442695, %v2086_v30  ;;  %v1961_v56 = vand.u32 2147483647, %v9338_v60  ;;  %v9357_v17 = vpop.f32.mrf.mxu1 }
 0x1e5   : > { %v2972_v21 = vadd.f32 %v10908_v36, %v2676_v47  ;;  %v6851_v50 = vpop.eup %6850  ;;  %v2465_v25 = vadd.f32 1.0, %v6849_v12  ;;  %v2091_v20 = vsub.f32 0.0, %v1963_v40  ;;  %v2857_v54 = vmax.f32 %v9338_v60, 0.0  ;;  %v9367_v51 = vpop.f32.mrf.mxu0 }
 0x1e6   : > { %v2970_v38 = vadd.f32 %v2842_v48, %v2672_v61  ;;  %v2468_v57 = vadd.f32 1.0, %v6851_v50  ;;  %v2089_v27 = vsub.f32 0.0, %v1961_v56  ;;  %v1964_v41 = vand.u32 2147483647, %v9343_v9  ;;  %v9364_v46 = vpop.f32.mrf.mxu1 }
 0x1e7   : > { %v3056_v33 = vpack.c.bf16 %v2972_v21, %v9324_v34  ;;  %v6853_v37 = vpop.eup %6852  ;;  %6870 = vlog2.f32 %v2465_v25  ;;  %v2321_v62 = vmul.f32 1.442695, %v2091_v20  ;;  %v2860_v48 = vmax.f32 %v9343_v9, 0.0 }
 0x1e8   : > { %v3055_v3 = vpack.c.bf16 %v2970_v38, %v2969_v4  ;;  %v2682_v45 = vmul.f32 0.6931472, %v6853_v37  ;;  %6872 = vlog2.f32 %v2468_v57  ;;  %v6855_v47 = vpop.eup %6854  ;;  %v2317_v34 = vmul.f32 1.442695, %v2089_v27  ;;  %v9369_v30 = vpop.f32.mrf.mxu1 }
 0x1e9   : > { %6874 = vpow2.f32 %v2311_v26  ;;  %v2092_v32 = vsub.f32 0.0, %v1964_v41  ;;  %v6857_v12 = vpop.eup %6856  ;;  %v2466_v21 = vadd.f32 1.0, %v6855_v47  ;;  %v1962_v4 = vand.u32 2147483647, %v9347_v11  ;;  %v9395_v37 = vpop.f32.mrf.mxu0 }
 0x1ea   : > { %v9373_v36 = vadd.f32 %v2847_v5, %v2682_v45  ;;  %6876 = vpow2.f32 %v2321_v62  ;;  %6410 = vmatprep.mubr.msk.bf16.mxu1 %vm3106_vm1, %v3055_v3  ;;  %v2678_v61 = vmul.f32 0.6931472, %v6857_v12  ;;  %v2858_v50 = vmax.f32 %v9347_v11, 0.0  ;;  %v9379_v25 = vpop.f32.mrf.mxu1 }
 0x1eb   : > { %6878 = vpow2.f32 %v2317_v34  ;;  %v2323_v40 = vmul.f32 1.442695, %v2092_v32  ;;  %6411 = vmatmul.mubr.msk.bf16.gmra.mxu1 %vm3106_vm1, %v3056_v33  ;;  %v6859_v26 = vpop.eup %6858  ;;  %v2090_v31 = vsub.f32 0.0, %v1962_v4  ;;  %v9383_v5 = vadd.f32 %v9056_v18, %v9253_v1 }
 0x1ec   : > { %6880 = vlog2.f32 %v2466_v21  ;;  %v9387_v56 = vadd.f32 %v9056_v18, %v9270_v58  ;;  %v2973_v57 = vadd.f32 %v2845_v22, %v2678_v61  ;;  %v2471_v20 = vadd.f32 1.0, %v6859_v26  ;;  %v9397_v27 = vpop.f32.mrf.mxu1 }
 0x1ed   : > { %v6861_v38 = vpop.eup %6860  ;;  %6882 = vpow2.f32 %v2323_v40  ;;  %v9393_v33 = vadd.f32 %v9056_v18, %v9282_v49  ;;  %v2319_v3 = vmul.f32 1.442695, %v2090_v31  ;;  %v1967_v58 = vand.u32 2147483647, %v9383_v5  ;;  %v9408_v31 = vpop.f32.mrf.mxu0 }
 0x1ee   : > { %v6863_v1 = vpop.eup %6862  ;;  %v2469_v41 = vadd.f32 1.0, %v6861_v38  ;;  %6884 = vlog2.f32 %v2471_v20  ;;  %v1965_v22 = vand.u32 2147483647, %v9387_v56  ;;  %v9403_v49 = vpop.f32.mrf.mxu1  ;;  %v10909_v47 = vmax.f32 %v9235_v43, 0.0 }
 0x1ef   : > { %v6865_v62 = vpop.eup %6864  ;;  %v2684_v8 = vmul.f32 0.6931472, %v6863_v1  ;;  %v2095_v12 = vsub.f32 0.0, %v1967_v58  ;;  %v1968_v21 = vand.u32 2147483647, %v9393_v33  ;;  %v9422_v55 = vadd.f32 %v9056_v18, %v9307_v44 }
 0x1f0   : > { %v6867_v34 = vpop.eup %6866  ;;  %v2680_v32 = vmul.f32 0.6931472, %v6865_v62  ;;  %6886 = vlog2.f32 %v2469_v41  ;;  %v2093_v26 = vsub.f32 0.0, %v1965_v22  ;;  %v9410_v38 = vpop.f32.mrf.mxu1  ;;  %v9428_v43 = vadd.f32 %v9056_v18, %v9314_v2 }
 0x1f1   : > { %v6869_v4 = vpop.eup %6868  ;;  %v2976_v61 = vadd.f32 %v2848_v52, %v2684_v8  ;;  %v2690_v40 = vmul.f32 0.6931472, %v6867_v34  ;;  %6888 = vpow2.f32 %v2319_v3  ;;  %v2329_v62 = vmul.f32 1.442695, %v2095_v12 }
 0x1f2   : > { %v2974_v20 = vadd.f32 %v2846_v59, %v2680_v32  ;;  %v2472_v1 = vadd.f32 1.0, %v6869_v4  ;;  %v2096_v41 = vsub.f32 0.0, %v1968_v21  ;;  %v2325_v15 = vmul.f32 1.442695, %v2093_v26  ;;  %v9424_v59 = vpop.f32.mrf.mxu1 }
 0x1f3   : > { %v3058_v58 = vpack.c.bf16 %v2976_v61, %v9373_v36  ;;  %v9417_v45 = vadd.f32 %v10909_v47, %v2690_v40  ;;  %v2864_v52 = vmax.f32 %v9393_v33, 0.0  ;;  %v9432_v36 = vadd.f32 %v9056_v18, %v9330_v39 }
 0x1f4   : > { %v6871_v3 = vpop.eup %6870  ;;  %v3057_v8 = vpack.c.bf16 %v2974_v20, %v2973_v57  ;;  %6890 = vlog2.f32 %v2472_v1  ;;  %v2331_v22 = vmul.f32 1.442695, %v2096_v41  ;;  %v9434_v57 = vpop.f32.mrf.mxu0  ;;  %v1966_v44 = vand.u32 2147483647, %v9422_v55 }
 0x1f5   : > { %v6873_v34 = vpop.eup %6872  ;;  %v2686_v32 = vmul.f32 0.6931472, %v6871_v3  ;;  %6892 = vpow2.f32 %v2329_v62  ;;  %v10910_v61 = vmax.f32 %v9257_v6, 0.0  ;;  %v1971_v39 = vand.u32 2147483647, %v9428_v43 }
 0x1f6   : > { %v6875_v47 = vpop.eup %6874  ;;  %v2692_v12 = vmul.f32 0.6931472, %v6873_v34  ;;  %6894 = vpow2.f32 %v2325_v15  ;;  %6414 = vmatprep.mubr.msk.bf16.mxu1 %vm3106_vm1, %v3057_v8  ;;  %v2094_v62 = vsub.f32 0.0, %v1966_v44  ;;  %v9446_v15 = vpop.f32.mrf.mxu1  ;;  %v9493_v16 = vadd.f32 %v9485_v19, %v9408_v31 }
 0x1f7   : > { %v6877_v4 = vpop.eup %6876  ;;  %v2977_v2 = vadd.f32 %v10910_v61, %v2686_v32  ;;  %v2470_v40 = vadd.f32 1.0, %v6875_v47  ;;  %6896 = vpow2.f32 %v2331_v22  ;;  %6415 = vmatmul.mubr.msk.bf16.gmra.mxu1 %vm3106_vm1, %v3058_v58  ;;  %v2099_v8 = vsub.f32 0.0, %v1971_v39  ;;  %v1801_v34 = vpop.f32.mrf.mxu0 }
 0x1f8   : > { %v6879_v26 = vpop.eup %6878  ;;  %v2980_v20 = vadd.f32 %v2852_v0, %v2692_v12  ;;  %v2475_v1 = vadd.f32 1.0, %v6877_v4  ;;  %v1969_v22 = vand.u32 2147483647, %v9432_v36  ;;  %v2327_v35 = vmul.f32 1.442695, %v2094_v62  ;;  %v9450_v0 = vpop.f32.mrf.mxu1 }
 0x1f9   : > { %v6881_v3 = vpop.eup %6880  ;;  %6898 = vlog2.f32 %v2470_v40  ;;  %v2473_v6 = vadd.f32 1.0, %v6879_v26  ;;  %v2337_v44 = vmul.f32 1.442695, %v2099_v8  ;;  %v9457_v26 = vadd.f32 %v9056_v18, %v9355_v63 }
 0x1fa   : > { %v6883_v32 = vpop.eup %6882  ;;  %v3060_v58 = vpack.c.bf16 %v2980_v20, %v9417_v45  ;;  %v2688_v47 = vmul.f32 0.6931472, %v6881_v3  ;;  %6900 = vlog2.f32 %v2475_v1  ;;  %v2097_v4 = vsub.f32 0.0, %v1969_v22  ;;  %v9459_v45 = vpop.f32.mrf.mxu1 }
 0x1fb   : > { %6902 = vlog2.f32 %v2473_v6  ;;  %v2476_v12 = vadd.f32 1.0, %v6883_v32  ;;  %v6885_v61 = vpop.eup %6884  ;;  %v9463_v3 = vadd.f32 %v9056_v18, %v9367_v51  ;;  %v9465_v6 = vpop.f32.mrf.mxu0  ;;  %v1972_v22 = vand.u32 2147483647, %v9457_v26 }
 0x1fc   : > { %v2978_v40 = vadd.f32 %v2850_v42, %v2688_v47  ;;  %6904 = vpow2.f32 %v2327_v35  ;;  %v2698_v1 = vmul.f32 0.6931472, %v6885_v61  ;;  %v2333_v62 = vmul.f32 1.442695, %v2097_v4  ;;  %v9468_v63 = vpop.f32.mrf.mxu1 }
 0x1fd   : > { %v6887_v20 = vpop.eup %6886  ;;  %6906 = vlog2.f32 %v2476_v12  ;;  %v2100_v51 = vsub.f32 0.0, %v1972_v22  ;;  %v9499_v4 = vpop.f32.mrf.mxu0 }
 0x1fe   : > { %v6889_v24 = vpop.eup %6888  ;;  %v3059_v42 = vpack.c.bf16 %v2978_v40, %v2977_v2  ;;  %v2694_v8 = vmul.f32 0.6931472, %v6887_v20  ;;  %6908 = vpow2.f32 %v2337_v44  ;;  %v9472_v32 = vadd.f32 %v2855_v14, %v2698_v1  ;;  %v9502_v61 = vpop.f32.mrf.mxu1 }
 0x1ff   : > { %v2474_v47 = vadd.f32 1.0, %v6889_v24  ;;  %6910 = vpow2.f32 %v2333_v62  ;;  %v1970_v2 = vand.u32 2147483647, %v9463_v3  ;;  %v9489_v14 = vadd.f32 %v9485_v19, %v9395_v37 }
 0x200   : > { %v9477_v18 = vadd.f32 %v2853_v10, %v2694_v8  ;;  %6418 = vmatprep.mubr.msk.bf16.mxu1 %vm3106_vm1, %v3059_v42  ;;  %v9497_v10 = vadd.f32 %v9485_v19, %v9434_v57  ;;  %v2339_v1 = vmul.f32 1.442695, %v2100_v51  ;;  %v9505_v37 = vadd.f32 %v9485_v19, %v1801_v34  ;;  %v9510_v22 = vpop.f32.mrf.mxu1 }
 0x201   : > { %v6891_v44 = vpop.eup %6890  ;;  %6912 = vlog2.f32 %v2474_v47  ;;  %6419 = vmatmul.mubr.msk.bf16.gmra.mxu1 %vm3106_vm1, %v3060_v58  ;;  %v2098_v62 = vsub.f32 0.0, %v1970_v2  ;;  %v1975_v42 = vand.u32 2147483647, %v9489_v14  ;;  %v1973_v8 = vand.u32 2147483647, %v9493_v16 }
 0x202   : > { %v6893_v40 = vpop.eup %6892  ;;  %v2700_v20 = vmul.f32 0.6931472, %v6891_v44  ;;  %6914 = vpow2.f32 %v2339_v1  ;;  %v9514_v35 = vpop.f32.mrf.mxu1  ;;  %v1976_v21 = vand.u32 2147483647, %v9497_v10 }
 0x203   : > { %v6895_v24 = vpop.eup %6894  ;;  %v2479_v31 = vadd.f32 1.0, %v6893_v40  ;;  %v2335_v51 = vmul.f32 1.442695, %v2098_v62  ;;  %v2103_v2 = vsub.f32 0.0, %v1975_v42  ;;  %v2101_v12 = vsub.f32 0.0, %v1973_v8  ;;  %v6309_v40 = vpop.f32.mrf.mxu0 }
 0x204   : > { %v6897_v58 = vpop.eup %6896  ;;  %v2984_v47 = vadd.f32 %v2856_v13, %v2700_v20  ;;  %v2477_v44 = vadd.f32 1.0, %v6895_v24  ;;  %v9519_v62 = vpop.f32.mrf.mxu1  ;;  %v2104_v42 = vsub.f32 0.0, %v1976_v21 }
 0x205   : > { %6916 = vlog2.f32 %v2479_v31  ;;  %v2480_v34 = vadd.f32 1.0, %v6897_v58  ;;  %v2345_v20 = vmul.f32 1.442695, %v2103_v2  ;;  %v2341_v1 = vmul.f32 1.442695, %v2101_v12 }
 0x206   : > { %v6899_v39 = vpop.eup %6898  ;;  %v3062_v57 = vpack.c.bf16 %v2984_v47, %v9472_v32  ;;  %6918 = vlog2.f32 %v2477_v44  ;;  %v1974_v44 = vand.u32 2147483647, %v9505_v37  ;;  %v2347_v21 = vmul.f32 1.442695, %v2104_v42 }
 0x207   : > { %v6901_v53 = vpop.eup %6900  ;;  %v2696_v13 = vmul.f32 0.6931472, %v6899_v39  ;;  %6920 = vlog2.f32 %v2480_v34  ;;  %v1817_v39 = vpop.f32.mrf.mxu0 }
 0x208   : > { %v6903_v24 = vpop.eup %6902  ;;  %v2706_v31 = vmul.f32 0.6931472, %v6901_v53  ;;  %6922 = vpow2.f32 %v2335_v51  ;;  %v9525_v34 = vpop.f32.mrf.mxu1 }
 0x209   : > { %v6905_v58 = vpop.eup %6904  ;;  %v2982_v32 = vadd.f32 %v2854_v28, %v2696_v13  ;;  %v2702_v47 = vmul.f32 0.6931472, %v6903_v24  ;;  %6924 = vpow2.f32 %v2345_v20  ;;  %v2102_v13 = vsub.f32 0.0, %v1974_v44 }
 0x20a   : > { %v6907_v12 = vpop.eup %6906  ;;  %v9529_v2 = vadd.f32 %v2859_v23, %v2706_v31  ;;  %v2478_v51 = vadd.f32 1.0, %v6905_v58  ;;  %6926 = vpow2.f32 %v2341_v1  ;;  %v9534_v20 = vpop.f32.mrf.mxu1  ;;  %v9539_v23 = vadd.f32 %v9485_v19, %v9465_v6 }
 0x20b   : > { %v6909_v53 = vpop.eup %6908  ;;  %v3061_v8 = vpack.c.bf16 %v2982_v32, %v9477_v18  ;;  %v2985_v29 = vadd.f32 %v2857_v54, %v2702_v47  ;;  %v2708_v28 = vmul.f32 0.6931472, %v6907_v12  ;;  %v2343_v60 = vmul.f32 1.442695, %v2102_v13  ;;  %v6312_v54 = vpop.f32.mrf.mxu0 }
 0x20c   : > { %v6911_v24 = vpop.eup %6910  ;;  %6928 = vlog2.f32 %v2478_v51  ;;  %v2483_v41 = vadd.f32 1.0, %v6909_v53  ;;  %v9544_v31 = vpop.f32.mrf.mxu1  ;;  %v1979_v58 = vand.u32 2147483647, %v9539_v23  ;;  %v9550_v6 = vadd.f32 %v9485_v19, %v9499_v4 }
 0x20d   : > { %v2988_v1 = vadd.f32 %v2860_v48, %v2708_v28  ;;  %v2481_v18 = vadd.f32 1.0, %v6911_v24  ;;  %6930 = vpow2.f32 %v2347_v21  ;;  %6422 = vmatprep.mubr.msk.bf16.mxu1 %vm3106_vm1, %v3061_v8  ;;  %v9555_v8 = vadd.f32 %v9485_v19, %v6309_v40  ;;  %v1830_v40 = vpop.f32.mrf.mxu0 }
 0x20e   : > { %v6913_v42 = vpop.eup %6912  ;;  %6932 = vlog2.f32 %v2483_v41  ;;  %6423 = vmatmul.mubr.msk.bf16.gmra.mxu1 %vm3106_vm1, %v3062_v57  ;;  %v9557_v47 = vpop.f32.mrf.mxu1  ;;  %v2107_v41 = vsub.f32 0.0, %v1979_v58  ;;  %v1977_v44 = vand.u32 2147483647, %v9550_v6  ;;  %v9566_v21 = vadd.f32 %v9485_v19, %v1817_v39 }
 0x20f   : > { %v3064_v9 = vpack.c.bf16 %v2988_v1, %v9529_v2  ;;  %v2704_v48 = vmul.f32 0.6931472, %v6913_v42  ;;  %6934 = vlog2.f32 %v2481_v18  ;;  %v6915_v51 = vpop.eup %6914  ;;  %v1980_v57 = vand.u32 2147483647, %v9555_v8 }
 0x210   : > { %6936 = vpow2.f32 %v2343_v60  ;;  %v9568_v53 = vpop.f32.mrf.mxu1  ;;  %v2484_v13 = vadd.f32 1.0, %v6915_v51  ;;  %v2353_v24 = vmul.f32 1.442695, %v2107_v41  ;;  %v2105_v1 = vsub.f32 0.0, %v1977_v44 }
 0x211   : > { %v2986_v4 = vadd.f32 %v2858_v50, %v2704_v48  ;;  %v9571_v18 = vadd.f32 %v9485_v19, %v6312_v54  ;;  %v2108_v42 = vsub.f32 0.0, %v1980_v57  ;;  %v1978_v58 = vand.u32 2147483647, %v9566_v21 }
 0x212   : > { %v6917_v28 = vpop.eup %6916  ;;  %v9574_v48 = vpop.f32.mrf.mxu1  ;;  %6938 = vlog2.f32 %v2484_v13  ;;  %v2349_v12 = vmul.f32 1.442695, %v2105_v1  ;;  %v10911_v41 = vmax.f32 %v9383_v5, 0.0 }
 0x213   : > { %v6919_v60 = vpop.eup %6918  ;;  %v3063_v11 = vpack.c.bf16 %v2986_v4, %v2985_v29  ;;  %v2714_v50 = vmul.f32 0.6931472, %v6917_v28  ;;  %6940 = vpow2.f32 %v2353_v24  ;;  %v2355_v29 = vmul.f32 1.442695, %v2108_v42  ;;  %v6313_v4 = vpop.f32.mrf.mxu0 }
 0x214   : > { %v6921_v39 = vpop.eup %6920  ;;  %v2710_v2 = vmul.f32 0.6931472, %v6919_v60  ;;  %v9582_v57 = vpop.f32.mrf.mxu1  ;;  %v10912_v60 = vmax.f32 %v9387_v56, 0.0  ;;  %6942 = vpow2.f32 %v2349_v12  ;;  %v2106_v32 = vsub.f32 0.0, %v1978_v58 }
 0x215   : > { %v6923_v51 = vpop.eup %6922  ;;  %v9579_v44 = vadd.f32 %v10911_v41, %v2714_v50  ;;  %v2716_v54 = vmul.f32 0.6931472, %v6921_v39  ;;  %6426 = vmatprep.mubr.msk.bf16.mxu1 %vm3106_vm1, %v3063_v11  ;;  %6944 = vpow2.f32 %v2355_v29  ;;  %v1983_v42 = vand.u32 2147483647, %v9571_v18  ;;  %v9593_v11 = vld [vmem:[%s10873_s2 + $0x1] ss:$0 sm:$0xff] }
 0x216   : > { %v6925_v28 = vpop.eup %6924  ;;  %v2989_v13 = vadd.f32 %v10912_v60, %v2710_v2  ;;  %v2482_v1 = vadd.f32 1.0, %v6923_v51  ;;  %6427 = vmatmul.mubr.msk.bf16.gmra.mxu1 %vm3106_vm1, %v3064_v9  ;;  %v9595_v56 = vpop.f32.mrf.mxu1  ;;  %v2351_v2 = vmul.f32 1.442695, %v2106_v32  ;;  %v9600_v39 = vadd.f32 %v9485_v19, %v1830_v40 }
 0x217   : > { %v6927_v5 = vpop.eup %6926  ;;  %v2992_v50 = vadd.f32 %v2864_v52, %v2716_v54  ;;  %v2487_v24 = vadd.f32 1.0, %v6925_v28  ;;  %10913 = vst [vmem:[#allocation2_spill] sm:$0xff] %v9595_v56  ;;  %v2111_v52 = vsub.f32 0.0, %v1983_v42  ;;  %v1833_v51 = vpop.f32.mrf.mxu0  ;;  %v9605_v28 = vadd.f32 %v9485_v19, %v6313_v4 }
 0x218   : > { %6946 = vlog2.f32 %v2482_v1  ;;  %v2485_v12 = vadd.f32 1.0, %v6927_v5  ;;  %v9602_v41 = vpop.f32.mrf.mxu1  ;;  %v3342_v32 = vadd.f32 %v9357_v17, %v9593_v11  ;;  %v1981_v5 = vand.u32 2147483647, %v9600_v39 }
 0x219   : > { %v6929_v58 = vpop.eup %6928  ;;  %v3066_v33 = vpack.c.bf16 %v2992_v50, %v9579_v44  ;;  %6948 = vlog2.f32 %v2487_v24  ;;  %10914 = vst [vmem:[#allocation3_spill] sm:$0xff] %v9602_v41  ;;  %v2361_v44 = vmul.f32 1.442695, %v2111_v52  ;;  %v10916_v24 = vmax.f32 %v9422_v55, 0.0  ;;  %v6316_v9 = vpop.f32.mrf.mxu0 }
 0x21a   : > { %v6931_v54 = vpop.eup %6930  ;;  %v2712_v29 = vmul.f32 0.6931472, %v6929_v58  ;;  %6950 = vlog2.f32 %v2485_v12  ;;  %v9610_v40 = vpop.f32.mrf.mxu1  ;;  %v1984_v4 = vand.u32 2147483647, %v9605_v28  ;;  %5128 = vrot.lane.b32.xlu1 %v3342_v32, %s7540_s23  ;;  %v10918_v55 = vmax.f32 %v9428_v43, 0.0 }
 0x21b   : > { %v6933_v60 = vpop.eup %6932  ;;  %v2488_v1 = vadd.f32 1.0, %v6931_v54  ;;  %6952 = vpow2.f32 %v2351_v2  ;;  %10915 = vst [vmem:[#allocation4_spill] sm:$0xff] %v9610_v40  ;;  %v2109_v2 = vsub.f32 0.0, %v1981_v5  ;;  %v9631_v52 = vadd.f32 %v9485_v19, %v1833_v51 }
 0x21c   : > { %v6935_v50 = vpop.eup %6934  ;;  %v2990_v42 = vadd.f32 %v10916_v24, %v2712_v29  ;;  %v2722_v58 = vmul.f32 0.6931472, %v6933_v60  ;;  %v9618_v7 = vpop.f32.mrf.mxu1  ;;  %v10919_v24 = vmax.f32 %v9432_v36, 0.0  ;;  %v3334_v43 = vadd.f32 %v9593_v11, %v9364_v46 }
 0x21d   : > { %v6937_v17 = vpop.eup %6936  ;;  %v2718_v54 = vmul.f32 0.6931472, %v6935_v50  ;;  %6954 = vlog2.f32 %v2488_v1  ;;  %10917 = vst [vmem:[#allocation5_spill] sm:$0xff] %v9618_v7  ;;  %v2357_v41 = vmul.f32 1.442695, %v2109_v2  ;;  %v2112_v50 = vsub.f32 0.0, %v1984_v4 }
 0x21e   : > { %v3065_v40 = vpack.c.bf16 %v2990_v42, %v2989_v13  ;;  %v9622_v29 = vadd.f32 %v10918_v55, %v2722_v58  ;;  %v2486_v60 = vadd.f32 1.0, %v6937_v17  ;;  %6956 = vpow2.f32 %v2361_v44  ;;  %v9628_v5 = vpop.f32.mrf.mxu1  ;;  %5124 = vrot.lane.b32.xlu0 %v3334_v43, %s7540_s23 }
 0x21f   : > { %v9626_v12 = vadd.f32 %v10919_v24, %v2718_v54  ;;  %v3846_v1 = vsub.f32 0.0, %v3342_v32  ;;  %10920 = vst [vmem:[#allocation6_spill] sm:$0xff] %v9628_v5  ;;  %v9636_v13 = vadd.f32 %v9485_v19, %v6316_v9  ;;  %v6939_v36 = vpop.eup %6938  ;;  %v2363_v44 = vmul.f32 1.442695, %v2112_v50 }
 0x220   : > { %6958 = vlog2.f32 %v2486_v60  ;;  %6430 = vmatprep.mubr.msk.bf16.mxu1 %vm3106_vm1, %v3065_v40  ;;  %v3345_v32 = vadd.f32 %v9369_v30, %v9593_v11  ;;  %v9642_v58 = vpop.f32.mrf.mxu1  ;;  %v6941_v51 = vpop.eup %6940  ;;  %v2724_v4 = vmul.f32 0.6931472, %v6939_v36  ;;  %v1982_v46 = vand.u32 2147483647, %v9631_v52 }
 0x221   : > { %6960 = vpow2.f32 %v2357_v41  ;;  %v3974_v42 = vmin.f32 %v3846_v1, 30.0  ;;  %6431 = vmatmul.mubr.msk.bf16.gmra.mxu1 %vm3106_vm1, %v3066_v33  ;;  %10921 = vst [vmem:[#allocation7_spill] sm:$0xff] %v9642_v58  ;;  %v3844_v17 = vsub.f32 0.0, %v3334_v43  ;;  %v6943_v40 = vpop.eup %6942  ;;  %v2491_v41 = vadd.f32 1.0, %v6941_v51  ;;  %v1846_v30 = vpop.f32.mrf.mxu0 }
 0x222   : > { %6962 = vpow2.f32 %v2363_v44  ;;  %v1987_v2 = vand.u32 2147483647, %v9636_v13  ;;  %5130 = vrot.lane.b32.xlu1 %v3345_v32, %s7540_s23  ;;  %v9649_v33 = vpop.f32.mrf.mxu1  ;;  %v6945_v55 = vpop.eup %6944  ;;  %v10923_v60 = vmax.f32 %v9457_v26, 0.0  ;;  %v2489_v50 = vadd.f32 1.0, %v6943_v40 }
 0x223   : > { %v4104_v54 = vmul.f32 1.442695, %v3974_v42  ;;  %10922 = vst [vmem:[#allocation8_spill] sm:$0xff] %v9649_v33  ;;  %v2110_v1 = vsub.f32 0.0, %v1982_v46  ;;  %v3972_v36 = vmin.f32 %v3844_v17, 30.0  ;;  %6964 = vlog2.f32 %v2491_v41  ;;  %v6317_v17 = vpop.f32.mrf.mxu0 }
 0x224   : > { %v2996_v24 = vadd.f32 %v10923_v60, %v2724_v4  ;;  %v2492_v43 = vadd.f32 1.0, %v6945_v55  ;;  %v2115_v51 = vsub.f32 0.0, %v1987_v2  ;;  %v9654_v42 = vpop.f32.mrf.mxu1  ;;  %6966 = vlog2.f32 %v2489_v50 }
 0x225   : > { %v6947_v9 = vpop.eup %6946  ;;  %v2359_v33 = vmul.f32 1.442695, %v2110_v1  ;;  %v4100_v4 = vmul.f32 1.442695, %v3972_v36  ;;  %v10924_v2 = vmax.f32 %v9463_v3, 0.0  ;;  %v3847_v44 = vsub.f32 0.0, %v3345_v32 }
 0x226   : > { %v6949_v58 = vpop.eup %6948  ;;  %v3068_v5 = vpack.c.bf16 %v2996_v24, %v9622_v29  ;;  %v2720_v7 = vmul.f32 0.6931472, %v6947_v9  ;;  %6968 = vlog2.f32 %v2492_v43  ;;  %v2369_v46 = vmul.f32 1.442695, %v2115_v51  ;;  %v9657_v40 = vpop.f32.mrf.mxu1 }
 0x227   : > { %v6951_v56 = vpop.eup %6950  ;;  %v2730_v26 = vmul.f32 0.6931472, %v6949_v58  ;;  %6970 = vpow2.f32 %v4104_v54  ;;  %v10925_v29 = vmax.f32 %v9489_v14, 0.0  ;;  %v9666_v58 = vadd.f32 %v9485_v19, %v1846_v30  ;;  %v1849_v43 = vpop.f32.mrf.mxu0 }
 0x228   : > { %v6953_v41 = vpop.eup %6952  ;;  %v2994_v55 = vadd.f32 %v10924_v2, %v2720_v7  ;;  %v2726_v60 = vmul.f32 0.6931472, %v6951_v56  ;;  %6972 = vpow2.f32 %v2359_v33  ;;  %v9668_v50 = vpop.f32.mrf.mxu1  ;;  %v10926_v3 = vmax.f32 %v9493_v16, 0.0 }
 0x229   : > { %v9663_v9 = vadd.f32 %v10925_v29, %v2730_v26  ;;  %v2490_v24 = vadd.f32 1.0, %v6953_v41  ;;  %6974 = vpow2.f32 %v4100_v4  ;;  %v3975_v56 = vmin.f32 %v3847_v44, 30.0 }
 0x22a   : > { %v6955_v1 = vpop.eup %6954  ;;  %v3067_v36 = vpack.c.bf16 %v2994_v55, %v9626_v12  ;;  %v2997_v7 = vadd.f32 %v10926_v3, %v2726_v60  ;;  %v1985_v14 = vand.u32 2147483647, %v9666_v58  ;;  %v2881_v33 = vmax.f32 %v9666_v58, 0.0  ;;  %v9675_v30 = vpop.f32.mrf.mxu1 }
 0x22b   : > { %v6957_v32 = vpop.eup %6956  ;;  %v2732_v54 = vmul.f32 0.6931472, %v6955_v1  ;;  %6976 = vlog2.f32 %v2490_v24  ;;  %v4106_v26 = vmul.f32 1.442695, %v3975_v56  ;;  %v3337_v12 = vadd.f32 %v9593_v11, %v9379_v25 }
 0x22c   : > { %v2495_v51 = vadd.f32 1.0, %v6957_v32  ;;  %6978 = vpow2.f32 %v2369_v46  ;;  %6434 = vmatprep.mubr.msk.bf16.mxu1 %vm3106_vm1, %v3067_v36  ;;  %v10927_v44 = vmax.f32 %v9497_v10, 0.0  ;;  %v2113_v41 = vsub.f32 0.0, %v1985_v14  ;;  %v9688_v46 = vpop.f32.mrf.mxu1 }
 0x22d   : > { %v6959_v16 = vpop.eup %6958  ;;  %v9683_v2 = vadd.f32 %v9485_v19, %v6317_v17  ;;  %v3358_v55 = vadd.f32 %v9397_v27, %v9593_v11  ;;  %6435 = vmatmul.mubr.msk.bf16.gmra.mxu1 %vm3106_vm1, %v3068_v5  ;;  %v3845_v25 = vsub.f32 0.0, %v3337_v12  ;;  %5126 = vrot.lane.b32.xlu0 %v3337_v12, %s7540_s23  ;;  %v9692_v10 = vadd.f32 %v9485_v19, %v1849_v43 }
 0x22e   : > { %v3000_v4 = vadd.f32 %v10927_v44, %v2732_v54  ;;  %v6961_v60 = vpop.eup %6960  ;;  %v2728_v29 = vmul.f32 0.6931472, %v6959_v16  ;;  %6980 = vlog2.f32 %v2495_v51  ;;  %v2365_v1 = vmul.f32 1.442695, %v2113_v41  ;;  %v9695_v36 = vpop.f32.mrf.mxu1 }
 0x22f   : > { %v2493_v17 = vadd.f32 1.0, %v6961_v60  ;;  %6982 = vpow2.f32 %v4106_v26  ;;  %v6963_v27 = vpop.eup %6962  ;;  %v10928_v5 = vmax.f32 %v9505_v37, 0.0  ;;  %v3973_v56 = vmin.f32 %v3845_v25, 30.0 }
 0x230   : > { %v3070_v24 = vpack.c.bf16 %v3000_v4, %v9663_v9  ;;  %v1988_v32 = vand.u32 2147483647, %v9683_v2  ;;  %v2884_v54 = vmax.f32 %v9683_v2, 0.0  ;;  %v2496_v14 = vadd.f32 1.0, %v6963_v27  ;;  %v9702_v9 = vpop.f32.mrf.mxu1  ;;  %v6965_v51 = vpop.eup %6964 }
 0x231   : > { %v2998_v3 = vadd.f32 %v10928_v5, %v2728_v29  ;;  %6984 = vlog2.f32 %v2493_v17  ;;  %v3850_v19 = vsub.f32 0.0, %v3358_v55  ;;  %v1986_v43 = vand.u32 2147483647, %v9692_v10  ;;  %5136 = vrot.lane.b32.xlu0 %v3358_v55, %s7540_s23  ;;  %v6967_v37 = vpop.eup %6966 }
 0x232   : > { %6986 = vpow2.f32 %v2365_v1  ;;  %v4102_v12 = vmul.f32 1.442695, %v3973_v56  ;;  %v2116_v16 = vsub.f32 0.0, %v1988_v32  ;;  %v2738_v44 = vmul.f32 0.6931472, %v6965_v51  ;;  %v9705_v60 = vpop.f32.mrf.mxu1 }
 0x233   : > { %v3069_v26 = vpack.c.bf16 %v2998_v3, %v2997_v7  ;;  %6988 = vlog2.f32 %v2496_v14  ;;  %v3978_v4 = vmin.f32 %v3850_v19, 30.0  ;;  %v2114_v41 = vsub.f32 0.0, %v1986_v43  ;;  %v6969_v29 = vpop.eup %6968 }
 0x234   : > { %v2734_v25 = vmul.f32 0.6931472, %v6967_v37  ;;  %6990 = vpow2.f32 %v4102_v12  ;;  %v2371_v17 = vmul.f32 1.442695, %v2116_v16  ;;  %v2882_v27 = vmax.f32 %v9692_v10, 0.0  ;;  %v6971_v7 = vpop.eup %6970  ;;  %v9714_v32 = vpop.f32.mrf.mxu1 }
 0x235   : > { %6438 = vmatprep.mubr.msk.bf16.mxu1 %vm3106_vm1, %v3069_v26  ;;  %v10929_v1 = vmax.f32 %v9539_v23, 0.0  ;;  %v2740_v55 = vmul.f32 0.6931472, %v6969_v29  ;;  %v4112_v3 = vmul.f32 1.442695, %v3978_v4  ;;  %v6973_v14 = vpop.eup %6972  ;;  %v10930_v19 = vmax.f32 %v9550_v6, 0.0 }
 0x236   : > { %v2367_v56 = vmul.f32 1.442695, %v2114_v41  ;;  %6439 = vmatmul.mubr.msk.bf16.gmra.mxu1 %vm3106_vm1, %v3070_v24  ;;  %v4358_v51 = vadd.f32 1.0, %v6971_v7  ;;  %6992 = vpow2.f32 %v2371_v17  ;;  %v3350_v26 = vadd.f32 %v9593_v11, %v9403_v49  ;;  %v6975_v12 = vpop.eup %6974 }
 0x237   : > { %v9711_v5 = vadd.f32 %v10929_v1, %v2738_v44  ;;  %v3001_v43 = vadd.f32 %v10930_v19, %v2734_v25  ;;  %v10931_v23 = vmax.f32 %v9555_v8, 0.0  ;;  %v2494_v37 = vadd.f32 1.0, %v6973_v14  ;;  %v9724_v44 = vpop.f32.mrf.mxu1 }
 0x238   : > { %6994 = vpow2.f32 %v4112_v3  ;;  %v3361_v24 = vadd.f32 %v9410_v38, %v9593_v11  ;;  %v6977_v4 = vpop.eup %6976  ;;  %v4356_v6 = vadd.f32 1.0, %v6975_v12  ;;  %v3848_v41 = vsub.f32 0.0, %v3350_v26  ;;  %5132 = vrot.lane.b32.xlu0 %v3350_v26, %s7540_s23 }
 0x239   : > { %v3004_v16 = vadd.f32 %v10931_v23, %v2740_v55  ;;  %6996 = vrcp.f32 %v4358_v51  ;;  %v3353_v29 = vadd.f32 %v9593_v11, %v9424_v59  ;;  %v6979_v49 = vpop.eup %6978  ;;  %v2736_v25 = vmul.f32 0.6931472, %v6977_v4  ;;  %v9731_v38 = vpop.f32.mrf.mxu1 }
 0x23a   : > { %6998 = vlog2.f32 %v2494_v37  ;;  %v3851_v17 = vsub.f32 0.0, %v3361_v24  ;;  %5138 = vrot.lane.b32.xlu1 %v3361_v24, %s7540_s23  ;;  %v2499_v7 = vadd.f32 1.0, %v6979_v49  ;;  %v3976_v1 = vmin.f32 %v3848_v41, 30.0 }
 0x23b   : > { %v3072_v8 = vpack.c.bf16 %v3004_v16, %v9711_v5  ;;  %7000 = vrcp.f32 %v4356_v6  ;;  %v3849_v55 = vsub.f32 0.0, %v3353_v29  ;;  %v6981_v3 = vpop.eup %6980  ;;  %v10932_v14 = vmax.f32 %v9566_v21, 0.0  ;;  %v9737_v51 = vpop.f32.mrf.mxu1 }
 0x23c   : > { %7002 = vpow2.f32 %v2367_v56  ;;  %v3979_v19 = vmin.f32 %v3851_v17, 30.0  ;;  %v3374_v5 = vadd.f32 %v9446_v15, %v9593_v11  ;;  %v6983_v26 = vpop.eup %6982  ;;  %v2746_v12 = vmul.f32 0.6931472, %v6981_v3 }
 0x23d   : > { %v3002_v59 = vadd.f32 %v10932_v14, %v2736_v25  ;;  %7004 = vlog2.f32 %v2499_v7  ;;  %v4108_v23 = vmul.f32 1.442695, %v3976_v1  ;;  %v3977_v16 = vmin.f32 %v3849_v55, 30.0  ;;  %v9741_v21 = vpop.f32.mrf.mxu1 }
 0x23e   : > { %v4359_v24 = vadd.f32 1.0, %v6983_v26  ;;  %v4114_v4 = vmul.f32 1.442695, %v3979_v19  ;;  %v3854_v6 = vsub.f32 0.0, %v3374_v5  ;;  %5134 = vrot.lane.b32.xlu1 %v3353_v29, %s7540_s23  ;;  %5144 = vrot.lane.b32.xlu0 %v3374_v5, %s7540_s23  ;;  %v6985_v56 = vpop.eup %6984  ;;  %v10933_v15 = vmax.f32 %v9571_v18, 0.0 }
 0x23f   : > { %v3071_v37 = vpack.c.bf16 %v3002_v59, %v3001_v43  ;;  %7006 = vpow2.f32 %v4108_v23  ;;  %v4110_v49 = vmul.f32 1.442695, %v3977_v16  ;;  %v3366_v25 = vadd.f32 %v9593_v11, %v9450_v0  ;;  %v6987_v43 = vpop.eup %6986  ;;  %v9755_v14 = vpop.f32.mrf.mxu1 }
 0x240   : > { %v9745_v41 = vadd.f32 %v10933_v15, %v2746_v12  ;;  %v2742_v17 = vmul.f32 0.6931472, %v6985_v56  ;;  %7008 = vrcp.f32 %v4359_v24  ;;  %v3982_v7 = vmin.f32 %v3854_v6, 30.0  ;;  %v6989_v1 = vpop.eup %6988 }
 0x241   : > { %v3377_v29 = vadd.f32 %v9459_v45, %v9593_v11  ;;  %6442 = vmatprep.mubr.msk.bf16.mxu1 %vm3106_vm1, %v3071_v37  ;;  %v2497_v55 = vadd.f32 1.0, %v6987_v43  ;;  %7010 = vpow2.f32 %v4114_v4  ;;  %v3852_v18 = vsub.f32 0.0, %v3366_v25  ;;  %v6991_v0 = vpop.eup %6990 }
 0x242   : > { %v3369_v3 = vadd.f32 %v9593_v11, %v9468_v63  ;;  %6443 = vmatmul.mubr.msk.bf16.gmra.mxu1 %vm3106_vm1, %v3072_v8  ;;  %v10934_v59 = vmax.f32 %v9600_v39, 0.0  ;;  %v2748_v45 = vmul.f32 0.6931472, %v6989_v1  ;;  %7012 = vpow2.f32 %v4110_v49  ;;  %5140 = vrot.lane.b32.xlu0 %v3366_v25, %s7540_s23 }
 0x243   : > { %v4120_v5 = vmul.f32 1.442695, %v3982_v7  ;;  %5146 = vrot.lane.b32.xlu1 %v3377_v29, %s7540_s23  ;;  %7014 = vlog2.f32 %v2497_v55  ;;  %v4357_v26 = vadd.f32 1.0, %v6991_v0  ;;  %v3980_v63 = vmin.f32 %v3852_v18, 30.0  ;;  %v6993_v8 = vpop.eup %6992  ;;  %v9770_v15 = vpop.f32.mrf.mxu1 }
 0x244   : > { %v9759_v19 = vadd.f32 %v10934_v59, %v2742_v17  ;;  %v3855_v12 = vsub.f32 0.0, %v3377_v29  ;;  %v10935_v23 = vmax.f32 %v9605_v28, 0.0  ;;  %v3853_v39 = vsub.f32 0.0, %v3369_v3 }
 0x245   : > { %7016 = vpow2.f32 %v4120_v5  ;;  %v3390_v37 = vadd.f32 %v9502_v61, %v9593_v11  ;;  %v6995_v24 = vpop.eup %6994  ;;  %v2500_v4 = vadd.f32 1.0, %v6993_v8  ;;  %v4116_v6 = vmul.f32 1.442695, %v3980_v63  ;;  %v9778_v55 = vpop.f32.mrf.mxu1 }
 0x246   : > { %v9765_v16 = vadd.f32 %v10935_v23, %v2748_v45  ;;  %7018 = vrcp.f32 %v4357_v26  ;;  %v3983_v56 = vmin.f32 %v3855_v12, 30.0  ;;  %v6997_v49 = vpop.eup %6996  ;;  %v4362_v25 = vadd.f32 1.0, %v6995_v24 }
 0x247   : > { %v3981_v43 = vmin.f32 %v3853_v39, 30.0  ;;  %v3858_v17 = vsub.f32 0.0, %v3390_v37  ;;  %5142 = vrot.lane.b32.xlu1 %v3369_v3, %s7540_s23  ;;  %5152 = vrot.lane.b32.xlu0 %v3390_v37, %s7540_s23  ;;  %v6999_v61 = vpop.eup %6998  ;;  %v4614_v7 = vmul.f32 1.002, %v6997_v49  ;;  %7020 = vlog2.f32 %v2500_v4 }
 0x248   : > { %v3074_v28 = vpack.c.bf16 %v9765_v16, %v9745_v41  ;;  %v4122_v29 = vmul.f32 1.442695, %v3983_v56  ;;  %v3382_v1 = vadd.f32 %v9593_v11, %v9510_v22  ;;  %v7001_v18 = vpop.eup %7000  ;;  %v2744_v41 = vmul.f32 0.6931472, %v6999_v61  ;;  %v9787_v22 = vpop.f32.mrf.mxu1 }
 0x249   : > { %7022 = vrcp.f32 %v4362_v25  ;;  %v4118_v3 = vmul.f32 1.442695, %v3981_v43  ;;  %v3986_v0 = vmin.f32 %v3858_v17, 30.0  ;;  %v7003_v59 = vpop.eup %7002  ;;  %v5922_v45 = vadd.f32 -0.001, %v4614_v7 }
 0x24a   : > { %v4612_v5 = vmul.f32 1.002, %v7001_v18  ;;  %7024 = vpow2.f32 %v4116_v6  ;;  %v3856_v26 = vsub.f32 0.0, %v3382_v1  ;;  %v7005_v63 = vpop.eup %7004  ;;  %v10936_v12 = vmax.f32 %v9631_v52, 0.0  ;;  %v9794_v4 = vpop.f32.mrf.mxu1 }
 0x24b   : > { %v2498_v23 = vadd.f32 1.0, %v7003_v59  ;;  %7026 = vpow2.f32 %v4122_v29  ;;  %v4128_v16 = vmul.f32 1.442695, %v3986_v0  ;;  %5148 = vrot.lane.b32.xlu0 %v3382_v1, %s7540_s23  ;;  %4870 = vst.msk [vmem:[%s9785_s27 + $0x10] sm:$0xff] %vm1123_vm0, %v5922_v45  ;;  %v2754_v37 = vmul.f32 0.6931472, %v7005_v63 }
 0x24c   : > { %v3006_v8 = vadd.f32 %v10936_v12, %v2744_v41  ;;  %v5920_v39 = vadd.f32 -0.001, %v4612_v5  ;;  %7028 = vpow2.f32 %v4118_v3  ;;  %v3984_v24 = vmin.f32 %v3856_v26, 30.0  ;;  %v7007_v6 = vpop.eup %7006  ;;  %v9816_v0 = vpop.f32.mrf.mxu1 }
 0x24d   : > { %7030 = vlog2.f32 %v2498_v23  ;;  %v3393_v52 = vadd.f32 %v9514_v35, %v9593_v11  ;;  %v3385_v49 = vadd.f32 %v9593_v11, %v9519_v62  ;;  %v7009_v25 = vpop.eup %7008  ;;  %v10937_v43 = vmax.f32 %v9636_v13, 0.0 }
 0x24e   : > { %v3073_v56 = vpack.c.bf16 %v3006_v8, %v9759_v19  ;;  %4868 = vst.msk [vmem:[%s9785_s27] sm:$0xff] %vm1123_vm0, %v5920_v39  ;;  %v4360_v61 = vadd.f32 1.0, %v7007_v6  ;;  %7032 = vpow2.f32 %v4128_v16  ;;  %v4124_v7 = vmul.f32 1.442695, %v3984_v24  ;;  %v7011_v29 = vpop.eup %7010  ;;  %v9819_v8 = vpop.f32.mrf.mxu1 }
 0x24f   : > { %v9805_v17 = vadd.f32 %v10937_v43, %v2754_v37  ;;  %v4615_v1 = vmul.f32 1.002, %v7009_v25  ;;  %v3859_v19 = vsub.f32 0.0, %v3393_v52  ;;  %v3857_v18 = vsub.f32 0.0, %v3385_v49  ;;  %5154 = vrot.lane.b32.xlu1 %v3393_v52, %s7540_s23  ;;  %v7013_v62 = vpop.eup %7012 }
 0x250   : > { %v3406_v35 = vadd.f32 %v9525_v34, %v9593_v11  ;;  %6446 = vmatprep.mubr.msk.bf16.mxu1 %vm3106_vm1, %v3073_v56  ;;  %7034 = vrcp.f32 %v4360_v61  ;;  %v4363_v41 = vadd.f32 1.0, %v7011_v29  ;;  %v3398_v13 = vadd.f32 %v9593_v11, %v9534_v20  ;;  %v7015_v59 = vpop.eup %7014  ;;  %v9828_v56 = vpop.f32.mrf.mxu1 }
 0x251   : > { %v3409_v3 = vadd.f32 %v9544_v31, %v9593_v11  ;;  %6447 = vmatmul.mubr.msk.bf16.gmra.mxu1 %vm3106_vm1, %v3074_v28  ;;  %v5923_v45 = vadd.f32 -0.001, %v4615_v1  ;;  %v4361_v5 = vadd.f32 1.0, %v7013_v62  ;;  %7036 = vpow2.f32 %v4124_v7 }
 0x252   : > { %v3987_v34 = vmin.f32 %v3859_v19, 30.0  ;;  %5160 = vrot.lane.b32.xlu0 %v3406_v35, %s7540_s23  ;;  %v7017_v26 = vpop.eup %7016  ;;  %v2750_v63 = vmul.f32 0.6931472, %v7015_v59  ;;  %7038 = vrcp.f32 %v4363_v41  ;;  %v3985_v12 = vmin.f32 %v3857_v18, 30.0 }
 0x253   : > { %v3862_v20 = vsub.f32 0.0, %v3406_v35  ;;  %v7019_v31 = vpop.eup %7018  ;;  %4871 = vst.msk [vmem:[%s9785_s27 + $0x18] sm:$0xff] %vm1123_vm0, %v5923_v45  ;;  %7040 = vrcp.f32 %v4361_v5  ;;  %v4366_v28 = vadd.f32 1.0, %v7017_v26  ;;  %v3860_v16 = vsub.f32 0.0, %v3398_v13  ;;  %5150 = vrot.lane.b32.xlu1 %v3385_v49, %s7540_s23 }
 0x254   : > { %v4130_v23 = vmul.f32 1.442695, %v3987_v34  ;;  %v9826_v39 = vadd.f32 %v2881_v33, %v2750_v63  ;;  %v4613_v37 = vmul.f32 1.002, %v7019_v31  ;;  %v4126_v24 = vmul.f32 1.442695, %v3985_v12  ;;  %v7021_v52 = vpop.eup %7020 }
 0x255   : > { %v3990_v6 = vmin.f32 %v3862_v20, 30.0  ;;  %7042 = vrcp.f32 %v4366_v28  ;;  %v3988_v25 = vmin.f32 %v3860_v16, 30.0  ;;  %v3863_v43 = vsub.f32 0.0, %v3409_v3 }
 0x256   : > { %v3401_v61 = vadd.f32 %v9593_v11, %v9557_v47  ;;  %5156 = vrot.lane.b32.xlu0 %v3398_v13, %s7540_s23  ;;  %v7023_v49 = vpop.eup %7022  ;;  %v5921_v7 = vadd.f32 -0.001, %v4613_v37  ;;  %v2756_v58 = vmul.f32 0.6931472, %v7021_v52  ;;  %7044 = vpow2.f32 %v4130_v23  ;;  %v9840_v13 = vpop.f32.mrf.mxu1 }
 0x257   : > { %v4136_v33 = vmul.f32 1.442695, %v3990_v6  ;;  %v7025_v29 = vpop.eup %7024  ;;  %v4618_v1 = vmul.f32 1.002, %v7023_v49  ;;  %7046 = vpow2.f32 %v4126_v24  ;;  %v4132_v19 = vmul.f32 1.442695, %v3988_v25  ;;  %5162 = vrot.lane.b32.xlu1 %v3409_v3, %s7540_s23 }
 0x258   : > { %v3991_v18 = vmin.f32 %v3863_v43, 30.0  ;;  %v7027_v35 = vpop.eup %7026  ;;  %4869 = vst.msk [vmem:[%s9785_s27 + $0x8] sm:$0xff] %vm1123_vm0, %v5921_v7  ;;  %v9838_v47 = vadd.f32 %v2884_v54, %v2756_v58  ;;  %v4364_v62 = vadd.f32 1.0, %v7025_v29  ;;  %v3861_v41 = vsub.f32 0.0, %v3401_v61  ;;  %v10938_v43 = vld [vmem:[#allocation2_spill] sm:$0xff] }
 0x259   : > { %7048 = vpow2.f32 %v4136_v33  ;;  %v7029_v59 = vpop.eup %7028  ;;  %v5926_v45 = vadd.f32 -0.001, %v4618_v1  ;;  %v4367_v5 = vadd.f32 1.0, %v7027_v35  ;;  %v3422_v20 = vadd.f32 %v9568_v53, %v9593_v11  ;;  %v9853_v16 = vpop.f32.mrf.mxu1 }
 0x25a   : > { %7050 = vpow2.f32 %v4132_v19  ;;  %v4138_v34 = vmul.f32 1.442695, %v3991_v18  ;;  %v7031_v26 = vpop.eup %7030  ;;  %v3076_v3 = vpack.c.bf16 %v9838_v47, %v9805_v17  ;;  %v4365_v63 = vadd.f32 1.0, %v7029_v59 }
 0x25b   : > { %7052 = vrcp.f32 %v4364_v62  ;;  %v3989_v2 = vmin.f32 %v3861_v41, 30.0  ;;  %v7033_v54 = vpop.eup %7032  ;;  %4874 = vst.msk [vmem:[%s9785_s27 + $0x30] sm:$0xff] %vm1123_vm0, %v5926_v45  ;;  %v2752_v12 = vmul.f32 0.6931472, %v7031_v26  ;;  %v3414_v31 = vadd.f32 %v9593_v11, %v9574_v48  ;;  %5158 = vrot.lane.b32.xlu1 %v3401_v61, %s7540_s23  ;;  %5168 = vrot.lane.b32.xlu0 %v3422_v20, %s7540_s23  ;;  %v9860_v49 = vpop.f32.mrf.mxu1 }
 0x25c   : > { %7054 = vrcp.f32 %v4367_v5  ;;  %v4370_v28 = vadd.f32 1.0, %v7033_v54  ;;  %v3425_v17 = vadd.f32 %v9582_v57, %v9593_v11  ;;  %v3866_v6 = vsub.f32 0.0, %v3422_v20  ;;  %v10939_v5 = vld [vmem:[#allocation3_spill] sm:$0xff] }
 0x25d   : > { %7056 = vrcp.f32 %v4365_v63  ;;  %v4134_v23 = vmul.f32 1.442695, %v3989_v2  ;;  %v7035_v37 = vpop.eup %7034  ;;  %v3010_v24 = vadd.f32 %v2882_v27, %v2752_v12  ;;  %v3864_v53 = vsub.f32 0.0, %v3414_v31  ;;  %v9864_v18 = vpop.f32.mrf.mxu1 }
 0x25e   : > { %7058 = vpow2.f32 %v4138_v34  ;;  %v7037_v48 = vpop.eup %7036  ;;  %v4616_v52 = vmul.f32 1.002, %v7035_v37  ;;  %v3867_v25 = vsub.f32 0.0, %v3425_v17  ;;  %v3417_v61 = vadd.f32 %v9593_v11, %v10938_v43 }
 0x25f   : > { %7060 = vrcp.f32 %v4370_v28  ;;  %v7039_v57 = vpop.eup %7038  ;;  %v3075_v7 = vpack.c.bf16 %v3010_v24, %v9826_v39  ;;  %v4368_v58 = vadd.f32 1.0, %v7037_v48  ;;  %v3994_v10 = vmin.f32 %v3866_v6, 30.0  ;;  %5170 = vrot.lane.b32.xlu1 %v3425_v17, %s7540_s23  ;;  %5164 = vrot.lane.b32.xlu0 %v3414_v31, %s7540_s23  ;;  %v9873_v26 = vpop.f32.mrf.mxu1 }
 0x260   : > { %7062 = vpow2.f32 %v4134_v23  ;;  %v7041_v27 = vpop.eup %7040  ;;  %v5924_v33 = vadd.f32 -0.001, %v4616_v52  ;;  %v4619_v29 = vmul.f32 1.002, %v7039_v57  ;;  %v3992_v1 = vmin.f32 %v3864_v53, 30.0  ;;  %v10940_v23 = vld [vmem:[#allocation4_spill] sm:$0xff] }
 0x261   : > { %v3995_v19 = vmin.f32 %v3867_v25, 30.0  ;;  %v4617_v35 = vmul.f32 1.002, %v7041_v27  ;;  %7064 = vrcp.f32 %v4368_v58  ;;  %v4144_v47 = vmul.f32 1.442695, %v3994_v10  ;;  %6450 = vmatprep.mubr.msk.bf16.mxu1 %vm3106_vm1, %v3075_v7  ;;  %v10941_v7 = vld [vmem:[#allocation5_spill] sm:$0xff] }
 0x262   : > { %v3865_v62 = vsub.f32 0.0, %v3417_v61  ;;  %v7043_v39 = vpop.eup %7042  ;;  %4872 = vst.msk [vmem:[%s9785_s27 + $0x20] sm:$0xff] %vm1123_vm0, %v5924_v33  ;;  %v5927_v41 = vadd.f32 -0.001, %v4619_v29  ;;  %v4140_v59 = vmul.f32 1.442695, %v3992_v1  ;;  %v3438_v34 = vadd.f32 %v10939_v5, %v9593_v11  ;;  %6451 = vmatmul.mubr.msk.bf16.gmra.mxu1 %vm3106_vm1, %v3076_v3 }
 0x263   : > { %v4146_v45 = vmul.f32 1.442695, %v3995_v19  ;;  %v7045_v63 = vpop.eup %7044  ;;  %v5925_v2 = vadd.f32 -0.001, %v4617_v35  ;;  %v4622_v54 = vmul.f32 1.002, %v7043_v39  ;;  %7066 = vpow2.f32 %v4144_v47  ;;  %5166 = vrot.lane.b32.xlu1 %v3417_v61, %s7540_s23 }
 0x264   : > { %v3993_v12 = vmin.f32 %v3865_v62, 30.0  ;;  %v7047_v20 = vpop.eup %7046  ;;  %4875 = vst.msk [vmem:[%s9785_s27 + $0x38] sm:$0xff] %vm1123_vm0, %v5927_v41  ;;  %v4371_v31 = vadd.f32 1.0, %v7045_v63  ;;  %7068 = vpow2.f32 %v4140_v59  ;;  %v3870_v28 = vsub.f32 0.0, %v3438_v34  ;;  %5176 = vrot.lane.b32.xlu0 %v3438_v34, %s7540_s23  ;;  %v9883_v43 = vpop.f32.mrf.mxu1  ;;  %v10942_v10 = vld [vmem:[#allocation6_spill] sm:$0xff] }
 0x265   : > { %v3430_v17 = vadd.f32 %v9593_v11, %v10940_v23  ;;  %4873 = vst.msk [vmem:[%s9785_s27 + $0x28] sm:$0xff] %vm1123_vm0, %v5925_v2  ;;  %v5930_v37 = vadd.f32 -0.001, %v4622_v54  ;;  %v4369_v24 = vadd.f32 1.0, %v7047_v20  ;;  %7070 = vpow2.f32 %v4146_v45 }
 0x266   : > { %v7049_v3 = vpop.eup %7048  ;;  %v4142_v6 = vmul.f32 1.442695, %v3993_v12  ;;  %7072 = vrcp.f32 %v4371_v31  ;;  %v3998_v52 = vmin.f32 %v3870_v28, 30.0  ;;  %v3441_v58 = vadd.f32 %v10941_v7, %v9593_v11  ;;  %v9891_v35 = vpop.f32.mrf.mxu1 }
 0x267   : > { %v7051_v53 = vpop.eup %7050  ;;  %v4374_v48 = vadd.f32 1.0, %v7049_v3  ;;  %v3868_v25 = vsub.f32 0.0, %v3430_v17  ;;  %4878 = vst.msk [vmem:[%s9785_s27 + $0x50] sm:$0xff] %vm1123_vm0, %v5930_v37  ;;  %7074 = vrcp.f32 %v4369_v24  ;;  %v3433_v27 = vadd.f32 %v9593_v11, %v10942_v10 }
 0x268   : > { %v7053_v61 = vpop.eup %7052  ;;  %v4372_v57 = vadd.f32 1.0, %v7051_v53  ;;  %v4152_v1 = vmul.f32 1.442695, %v3998_v52  ;;  %v3871_v39 = vsub.f32 0.0, %v3441_v58  ;;  %5178 = vrot.lane.b32.xlu1 %v3441_v58, %s7540_s23  ;;  %5172 = vrot.lane.b32.xlu0 %v3430_v17, %s7540_s23  ;;  %v9895_v63 = vpop.f32.mrf.mxu1  ;;  %v3457_v7 = vadd.f32 %v9654_v42, %v9593_v11  ;;  %v9922_v42 = vld [vmem:[%s10873_s2 + $0x1] ss:$0 sm:$0xff] }
 0x269   : > { %v7055_v33 = vpop.eup %7054  ;;  %v4620_v29 = vmul.f32 1.002, %v7053_v61  ;;  %7076 = vrcp.f32 %v4374_v48  ;;  %v3996_v19 = vmin.f32 %v3868_v25, 30.0  ;;  %v3869_v41 = vsub.f32 0.0, %v3433_v27  ;;  %v10944_v61 = vld [vmem:[#allocation8_spill] sm:$0xff] }
 0x26a   : > { %v7057_v47 = vpop.eup %7056  ;;  %v4623_v62 = vmul.f32 1.002, %v7055_v33  ;;  %7078 = vrcp.f32 %v4372_v57  ;;  %v3999_v20 = vmin.f32 %v3871_v39, 30.0  ;;  %v9899_v3 = vpop.f32.mrf.mxu1  ;;  %v3446_v57 = vadd.f32 %v9593_v11, %v10944_v61 }
 0x26b   : > { %v7059_v59 = vpop.eup %7058  ;;  %v5928_v45 = vadd.f32 -0.001, %v4620_v29  ;;  %v4621_v5 = vmul.f32 1.002, %v7057_v47  ;;  %7080 = vpow2.f32 %v4142_v6  ;;  %v4148_v34 = vmul.f32 1.442695, %v3996_v19 }
 0x26c   : > { %v7061_v2 = vpop.eup %7060  ;;  %v5931_v54 = vadd.f32 -0.001, %v4623_v62  ;;  %v4375_v12 = vadd.f32 1.0, %v7059_v59  ;;  %7082 = vpow2.f32 %v4152_v1  ;;  %v3997_v17 = vmin.f32 %v3869_v41, 30.0  ;;  %v10943_v6 = vld [vmem:[#allocation7_spill] sm:$0xff]  ;;  %5174 = vrot.lane.b32.xlu1 %v3433_v27, %s7540_s23 }
 0x26d   : > { %v7063_v31 = vpop.eup %7062  ;;  %4876 = vst.msk [vmem:[%s9785_s27 + $0x40] sm:$0xff] %vm1123_vm0, %v5928_v45  ;;  %v5929_v28 = vadd.f32 -0.001, %v4621_v5  ;;  %v4626_v23 = vmul.f32 1.002, %v7061_v2  ;;  %7084 = vpow2.f32 %v4148_v34  ;;  %v3454_v53 = vadd.f32 %v10943_v6, %v9593_v11  ;;  %v9915_v27 = vpop.f32.mrf.mxu1 }
 0x26e   : > { %4879 = vst.msk [vmem:[%s9785_s27 + $0x58] sm:$0xff] %vm1123_vm0, %v5931_v54  ;;  %7086 = vrcp.f32 %v4375_v12  ;;  %v4373_v37 = vadd.f32 1.0, %v7063_v31  ;;  %v4154_v24 = vmul.f32 1.442695, %v3999_v20  ;;  %v7065_v48 = vpop.eup %7064  ;;  %v4150_v25 = vmul.f32 1.442695, %v3997_v17 }
 0x26f   : > { %4877 = vst.msk [vmem:[%s9785_s27 + $0x48] sm:$0xff] %vm1123_vm0, %v5929_v28  ;;  %v5934_v52 = vadd.f32 -0.001, %v4626_v23  ;;  %v4624_v58 = vmul.f32 1.002, %v7065_v48  ;;  %v3874_v10 = vsub.f32 0.0, %v3454_v53  ;;  %5184 = vrot.lane.b32.xlu0 %v3454_v53, %s7540_s23  ;;  %v3449_v33 = vadd.f32 %v9593_v11, %v9657_v40  ;;  %v9927_v41 = vpop.f32.mrf.mxu1 }
 0x270   : > { %7088 = vrcp.f32 %v4373_v37  ;;  %v7067_v29 = vpop.eup %7066  ;;  %v3872_v1 = vsub.f32 0.0, %v3446_v57  ;;  %v3875_v19 = vsub.f32 0.0, %v3457_v7  ;;  %v3470_v47 = vadd.f32 %v9922_v42, %v9668_v50  ;;  %5186 = vrot.lane.b32.xlu1 %v3457_v7, %s7540_s23 }
 0x271   : > { %4882 = vst.msk [vmem:[%s9785_s27 + $0x70] sm:$0xff] %vm1123_vm0, %v5934_v52  ;;  %7090 = vpow2.f32 %v4154_v24  ;;  %v7069_v62 = vpop.eup %7068  ;;  %v5932_v39 = vadd.f32 -0.001, %v4624_v58  ;;  %v4378_v11 = vadd.f32 1.0, %v7067_v29  ;;  %v4002_v40 = vmin.f32 %v3874_v10, 30.0  ;;  %v9932_v31 = vpop.f32.mrf.mxu1 }
 0x272   : > { %7092 = vpow2.f32 %v4150_v25  ;;  %v7071_v59 = vpop.eup %7070  ;;  %v4376_v45 = vadd.f32 1.0, %v7069_v62  ;;  %v4000_v5 = vmin.f32 %v3872_v1, 30.0  ;;  %v4003_v34 = vmin.f32 %v3875_v19, 30.0 }
 0x273   : > { %v3873_v2 = vsub.f32 0.0, %v3449_v33  ;;  %v7073_v54 = vpop.eup %7072  ;;  %4880 = vst.msk [vmem:[%s9785_s27 + $0x60] sm:$0xff] %vm1123_vm0, %v5932_v39  ;;  %7094 = vrcp.f32 %v4378_v11  ;;  %v4379_v12 = vadd.f32 1.0, %v7071_v59  ;;  %v4160_v50 = vmul.f32 1.442695, %v4002_v40  ;;  %5180 = vrot.lane.b32.xlu0 %v3446_v57, %s7540_s23  ;;  %v9937_v7 = vpop.f32.mrf.mxu1 }
 0x274   : > { %v3878_v20 = vsub.f32 0.0, %v3470_v47  ;;  %v7075_v28 = vpop.eup %7074  ;;  %v4627_v23 = vmul.f32 1.002, %v7073_v54  ;;  %7096 = vrcp.f32 %v4376_v45  ;;  %v4156_v17 = vmul.f32 1.442695, %v4000_v5  ;;  %5182 = vrot.lane.b32.xlu1 %v3449_v33, %s7540_s23 }
 0x275   : > { %v4162_v37 = vmul.f32 1.442695, %v4003_v34  ;;  %v4625_v6 = vmul.f32 1.002, %v7075_v28  ;;  %7098 = vrcp.f32 %v4379_v12  ;;  %v4001_v53 = vmin.f32 %v3873_v2, 30.0 }
 0x276   : > { %v7077_v24 = vpop.eup %7076  ;;  %v4006_v48 = vmin.f32 %v3878_v20, 30.0  ;;  %v5935_v25 = vadd.f32 -0.001, %v4627_v23  ;;  %7100 = vpow2.f32 %v4160_v50  ;;  %v3462_v57 = vadd.f32 %v9922_v42, %v9675_v30 }
 0x277   : > { %v7079_v52 = vpop.eup %7078  ;;  %v4630_v61 = vmul.f32 1.002, %v7077_v24  ;;  %v5933_v10 = vadd.f32 -0.001, %v4625_v6  ;;  %7102 = vpow2.f32 %v4156_v17  ;;  %v4158_v1 = vmul.f32 1.442695, %v4001_v53  ;;  %5192 = vrot.lane.b32.xlu0 %v3470_v47, %s7540_s23  ;;  %v9950_v2 = vpop.f32.mrf.mxu1 }
 0x278   : > { %v7081_v58 = vpop.eup %7080  ;;  %v4628_v29 = vmul.f32 1.002, %v7079_v52  ;;  %4883 = vst.msk [vmem:[%s9785_s27 + $0x78] sm:$0xff] %vm1123_vm0, %v5935_v25  ;;  %7104 = vpow2.f32 %v4162_v37  ;;  %v4168_v39 = vmul.f32 1.442695, %v4006_v48  ;;  %v3876_v59 = vsub.f32 0.0, %v3462_v57 }
 0x279   : > { %v7083_v19 = vpop.eup %7082  ;;  %v5938_v33 = vadd.f32 -0.001, %v4630_v61  ;;  %v4377_v62 = vadd.f32 1.0, %v7081_v58  ;;  %4881 = vst.msk [vmem:[%s9785_s27 + $0x68] sm:$0xff] %vm1123_vm0, %v5933_v10  ;;  %7106 = vpow2.f32 %v4158_v1  ;;  %v3473_v5 = vadd.f32 %v9922_v42, %v9688_v46  ;;  %v9960_v23 = vpop.f32.mrf.mxu1 }
 0x27a   : > { %v7085_v11 = vpop.eup %7084  ;;  %v5936_v30 = vadd.f32 -0.001, %v4628_v29  ;;  %v4382_v40 = vadd.f32 1.0, %v7083_v19  ;;  %v3465_v34 = vadd.f32 %v9922_v42, %v9695_v36  ;;  %v4004_v12 = vmin.f32 %v3876_v59, 30.0 }
 0x27b   : > { %v7087_v45 = vpop.eup %7086  ;;  %4886 = vst.msk [vmem:[%s9785_s27 + $0x90] sm:$0xff] %vm1123_vm0, %v5938_v33  ;;  %7108 = vrcp.f32 %v4377_v62  ;;  %v4380_v47 = vadd.f32 1.0, %v7085_v11  ;;  %v3486_v50 = vadd.f32 %v9922_v42, %v9702_v9  ;;  %5188 = vrot.lane.b32.xlu0 %v3462_v57, %s7540_s23  ;;  %v3879_v28 = vsub.f32 0.0, %v3473_v5  ;;  %5194 = vrot.lane.b32.xlu1 %v3473_v5, %s7540_s23  ;;  %v9962_v61 = vpop.f32.mrf.mxu1 }
 0x27c   : > { %4884 = vst.msk [vmem:[%s9785_s27 + $0x80] sm:$0xff] %vm1123_vm0, %v5936_v30  ;;  %v4631_v54 = vmul.f32 1.002, %v7087_v45  ;;  %7110 = vrcp.f32 %v4382_v40  ;;  %v3877_v46 = vsub.f32 0.0, %v3465_v34  ;;  %v3478_v36 = vadd.f32 %v9922_v42, %v9705_v60 }
 0x27d   : > { %v7089_v20 = vpop.eup %7088  ;;  %7112 = vrcp.f32 %v4380_v47  ;;  %v4164_v6 = vmul.f32 1.442695, %v4004_v12  ;;  %v4007_v48 = vmin.f32 %v3879_v28, 30.0  ;;  %v3882_v25 = vsub.f32 0.0, %v3486_v50  ;;  %v9974_v47 = vpop.f32.mrf.mxu1 }
 0x27e   : > { %v7091_v17 = vpop.eup %7090  ;;  %v5939_v37 = vadd.f32 -0.001, %v4631_v54  ;;  %v4629_v24 = vmul.f32 1.002, %v7089_v20  ;;  %7114 = vpow2.f32 %v4168_v39  ;;  %v4005_v52 = vmin.f32 %v3877_v46, 30.0 }
 0x27f   : > { %v7093_v9 = vpop.eup %7092  ;;  %v4383_v53 = vadd.f32 1.0, %v7091_v17  ;;  %7116 = vpow2.f32 %v4164_v6  ;;  %v3880_v60 = vsub.f32 0.0, %v3478_v36  ;;  %5200 = vrot.lane.b32.xlu0 %v3486_v50, %s7540_s23  ;;  %v4170_v29 = vmul.f32 1.442695, %v4007_v48  ;;  %5190 = vrot.lane.b32.xlu1 %v3465_v34, %s7540_s23 }
 0x280   : > { %4887 = vst.msk [vmem:[%s9785_s27 + $0x98] sm:$0xff] %vm1123_vm0, %v5939_v37  ;;  %v5937_v57 = vadd.f32 -0.001, %v4629_v24  ;;  %v4381_v58 = vadd.f32 1.0, %v7093_v9  ;;  %v7095_v10 = vpop.eup %7094  ;;  %v4166_v1 = vmul.f32 1.442695, %v4005_v52  ;;  %v3489_v11 = vadd.f32 %v9922_v42, %v9714_v32 }
 0x281   : > { %7118 = vrcp.f32 %v4383_v53  ;;  %v4010_v19 = vmin.f32 %v3882_v25, 30.0  ;;  %v7097_v33 = vpop.eup %7096  ;;  %v4634_v62 = vmul.f32 1.002, %v7095_v10  ;;  %v4008_v39 = vmin.f32 %v3880_v60, 30.0 }
 0x282   : > { %4885 = vst.msk [vmem:[%s9785_s27 + $0x88] sm:$0xff] %vm1123_vm0, %v5937_v57  ;;  %7120 = vrcp.f32 %v4381_v58  ;;  %v7099_v30 = vpop.eup %7098  ;;  %v4632_v40 = vmul.f32 1.002, %v7097_v33  ;;  %v3481_v45 = vadd.f32 %v9922_v42, %v9724_v44  ;;  %v3883_v28 = vsub.f32 0.0, %v3489_v11 }
 0x283   : > { %7122 = vpow2.f32 %v4170_v29  ;;  %v4176_v59 = vmul.f32 1.442695, %v4010_v19  ;;  %v7101_v5 = vpop.eup %7100  ;;  %v5942_v34 = vadd.f32 -0.001, %v4634_v62  ;;  %v4635_v54 = vmul.f32 1.002, %v7099_v30  ;;  %5196 = vrot.lane.b32.xlu0 %v3478_v36, %s7540_s23  ;;  %5202 = vrot.lane.b32.xlu1 %v3489_v11, %s7540_s23 }
 0x284   : > { %7124 = vpow2.f32 %v4166_v1  ;;  %v4172_v12 = vmul.f32 1.442695, %v4008_v39  ;;  %v7103_v50 = vpop.eup %7102  ;;  %v5940_v32 = vadd.f32 -0.001, %v4632_v40  ;;  %v4386_v20 = vadd.f32 1.0, %v7101_v5 }
 0x285   : > { %7126 = vpow2.f32 %v4176_v59  ;;  %v7105_v46 = vpop.eup %7104  ;;  %4890 = vst.msk [vmem:[%s9785_s27 + $0xb0] sm:$0xff] %vm1123_vm0, %v5942_v34  ;;  %v5943_v44 = vadd.f32 -0.001, %v4635_v54  ;;  %v4384_v17 = vadd.f32 1.0, %v7103_v50  ;;  %v3881_v37 = vsub.f32 0.0, %v3481_v45  ;;  %v9984_v53 = vpop.f32.mrf.mxu1 }
 0x286   : > { %7128 = vpow2.f32 %v4172_v12  ;;  %v7107_v24 = vpop.eup %7106  ;;  %4888 = vst.msk [vmem:[%s9785_s27 + $0xa0] sm:$0xff] %vm1123_vm0, %v5940_v32  ;;  %v4387_v36 = vadd.f32 1.0, %v7105_v46  ;;  %v4011_v6 = vmin.f32 %v3883_v28, 30.0  ;;  %v3502_v9 = vadd.f32 %v9922_v42, %v9731_v38 }
 0x287   : > { %7130 = vrcp.f32 %v4386_v20  ;;  %4891 = vst.msk [vmem:[%s9785_s27 + $0xb8] sm:$0xff] %vm1123_vm0, %v5943_v44  ;;  %v4385_v52 = vadd.f32 1.0, %v7107_v24  ;;  %v4009_v25 = vmin.f32 %v3881_v37, 30.0  ;;  %v3494_v57 = vadd.f32 %v9922_v42, %v9737_v51  ;;  %5198 = vrot.lane.b32.xlu1 %v3481_v45, %s7540_s23  ;;  %v9992_v38 = vpop.f32.mrf.mxu1 }
 0x288   : > { %v7109_v48 = vpop.eup %7108  ;;  %7132 = vrcp.f32 %v4384_v17  ;;  %v4178_v10 = vmul.f32 1.442695, %v4011_v6  ;;  %v3886_v29 = vsub.f32 0.0, %v3502_v9  ;;  %5208 = vrot.lane.b32.xlu0 %v3502_v9, %s7540_s23  ;;  %v3505_v50 = vadd.f32 %v9922_v42, %v9741_v21 }
 0x289   : > { %v7111_v58 = vpop.eup %7110  ;;  %v4633_v60 = vmul.f32 1.002, %v7109_v48  ;;  %7134 = vrcp.f32 %v4387_v36  ;;  %v4174_v33 = vmul.f32 1.442695, %v4009_v25  ;;  %v3884_v62 = vsub.f32 0.0, %v3494_v57  ;;  %v9994_v40 = vpop.f32.mrf.mxu1 }
 0x28a   : > { %v7113_v1 = vpop.eup %7112  ;;  %v4638_v19 = vmul.f32 1.002, %v7111_v58  ;;  %7136 = vrcp.f32 %v4385_v52  ;;  %v4014_v30 = vmin.f32 %v3886_v29, 30.0  ;;  %v3497_v32 = vadd.f32 %v9922_v42, %v9755_v14 }
 0x28b   : > { %v7115_v39 = vpop.eup %7114  ;;  %v5941_v11 = vadd.f32 -0.001, %v4633_v60  ;;  %v4636_v51 = vmul.f32 1.002, %v7113_v1  ;;  %7138 = vpow2.f32 %v4178_v10  ;;  %v4012_v5 = vmin.f32 %v3884_v62, 30.0  ;;  %v10003_v20 = vpop.f32.mrf.mxu1  ;;  %5210 = vrot.lane.b32.xlu1 %v3505_v50, %s7540_s23 }
 0x28c   : > { %v5946_v59 = vadd.f32 -0.001, %v4638_v19  ;;  %v4390_v45 = vadd.f32 1.0, %v7115_v39  ;;  %7140 = vpow2.f32 %v4174_v33  ;;  %v7117_v34 = vpop.eup %7116  ;;  %v4184_v12 = vmul.f32 1.442695, %v4014_v30  ;;  %5204 = vrot.lane.b32.xlu0 %v3494_v57, %s7540_s23 }
 0x28d   : > { %4889 = vst.msk [vmem:[%s9785_s27 + $0xa8] sm:$0xff] %vm1123_vm0, %v5941_v11  ;;  %v5944_v54 = vadd.f32 -0.001, %v4636_v51  ;;  %v4388_v46 = vadd.f32 1.0, %v7117_v34  ;;  %v4180_v44 = vmul.f32 1.442695, %v4012_v5  ;;  %v3518_v17 = vadd.f32 %v9922_v42, %v9770_v15  ;;  %v10014_v52 = vpop.f32.mrf.mxu1 }
 0x28e   : > { %v7119_v28 = vpop.eup %7118  ;;  %4894 = vst.msk [vmem:[%s9785_s27 + $0xd0] sm:$0xff] %vm1123_vm0, %v5946_v59  ;;  %7142 = vrcp.f32 %v4390_v45  ;;  %v3887_v24 = vsub.f32 0.0, %v3505_v50  ;;  %v3885_v14 = vsub.f32 0.0, %v3497_v32  ;;  %v3510_v48 = vadd.f32 %v9922_v42, %v9778_v55 }
 0x28f   : > { %v7121_v37 = vpop.eup %7120  ;;  %4892 = vst.msk [vmem:[%s9785_s27 + $0xc0] sm:$0xff] %vm1123_vm0, %v5944_v54  ;;  %v4639_v21 = vmul.f32 1.002, %v7119_v28  ;;  %7144 = vpow2.f32 %v4184_v12  ;;  %v3890_v9 = vsub.f32 0.0, %v3518_v17  ;;  %v10017_v33 = vpop.f32.mrf.mxu1  ;;  %5206 = vrot.lane.b32.xlu1 %v3497_v32, %s7540_s23  ;;  %v3521_v50 = vadd.f32 %v9922_v42, %v9787_v22 }
 0x290   : > { %v7123_v36 = vpop.eup %7122  ;;  %v4637_v6 = vmul.f32 1.002, %v7121_v37  ;;  %7146 = vrcp.f32 %v4388_v46  ;;  %v4015_v58 = vmin.f32 %v3887_v24, 30.0  ;;  %5216 = vrot.lane.b32.xlu0 %v3518_v17, %s7540_s23  ;;  %v4013_v1 = vmin.f32 %v3885_v14, 30.0 }
 0x291   : > { %v7125_v15 = vpop.eup %7124  ;;  %v5947_v25 = vadd.f32 -0.001, %v4639_v21  ;;  %v4391_v57 = vadd.f32 1.0, %v7123_v36  ;;  %7148 = vpow2.f32 %v4180_v44  ;;  %v4018_v19 = vmin.f32 %v3890_v9, 30.0  ;;  %v10024_v5 = vpop.f32.mrf.mxu1 }
 0x292   : > { %v7127_v60 = vpop.eup %7126  ;;  %v5945_v10 = vadd.f32 -0.001, %v4637_v6  ;;  %v4389_v29 = vadd.f32 1.0, %v7125_v15  ;;  %v4186_v39 = vmul.f32 1.442695, %v4015_v58  ;;  %v3888_v11 = vsub.f32 0.0, %v3510_v48 }
 0x293   : > { %v7129_v62 = vpop.eup %7128  ;;  %4895 = vst.msk [vmem:[%s9785_s27 + $0xd8] sm:$0xff] %vm1123_vm0, %v5947_v25  ;;  %7150 = vrcp.f32 %v4391_v57  ;;  %v4394_v55 = vadd.f32 1.0, %v7127_v60  ;;  %v4182_v59 = vmul.f32 1.442695, %v4013_v1  ;;  %v4192_v45 = vmul.f32 1.442695, %v4018_v19  ;;  %5218 = vrot.lane.b32.xlu1 %v3521_v50, %s7540_s23  ;;  %v10034_v22 = vpop.f32.mrf.mxu1 }
 0x294   : > { %v7131_v51 = vpop.eup %7130  ;;  %4893 = vst.msk [vmem:[%s9785_s27 + $0xc8] sm:$0xff] %vm1123_vm0, %v5945_v10  ;;  %7152 = vrcp.f32 %v4389_v29  ;;  %v4392_v30 = vadd.f32 1.0, %v7129_v62  ;;  %v4016_v12 = vmin.f32 %v3888_v11, 30.0  ;;  %5212 = vrot.lane.b32.xlu0 %v3510_v48, %s7540_s23  ;;  %v3513_v46 = vadd.f32 %v9922_v42, %v9794_v4 }
 0x295   : > { %v7133_v34 = vpop.eup %7132  ;;  %v4642_v54 = vmul.f32 1.002, %v7131_v51  ;;  %7154 = vrcp.f32 %v4394_v55  ;;  %v3534_v44 = vadd.f32 %v9922_v42, %v9816_v0  ;;  %v3891_v9 = vsub.f32 0.0, %v3521_v50 }
 0x296   : > { %v7135_v28 = vpop.eup %7134  ;;  %v4640_v32 = vmul.f32 1.002, %v7133_v34  ;;  %7156 = vrcp.f32 %v4392_v30  ;;  %v4188_v24 = vmul.f32 1.442695, %v4016_v12  ;;  %v3889_v15 = vsub.f32 0.0, %v3513_v46 }
 0x297   : > { %v7137_v17 = vpop.eup %7136  ;;  %v5950_v37 = vadd.f32 -0.001, %v4642_v54  ;;  %v4643_v21 = vmul.f32 1.002, %v7135_v28  ;;  %7158 = vpow2.f32 %v4186_v39  ;;  %v4019_v58 = vmin.f32 %v3891_v9, 30.0  ;;  %5214 = vrot.lane.b32.xlu1 %v3513_v46, %s7540_s23  ;;  %v10046_v19 = vpop.f32.mrf.mxu1 }
 0x298   : > { %v7139_v14 = vpop.eup %7138  ;;  %v5948_v36 = vadd.f32 -0.001, %v4640_v32  ;;  %v4641_v6 = vmul.f32 1.002, %v7137_v17  ;;  %7160 = vpow2.f32 %v4182_v59  ;;  %5224 = vrot.lane.b32.xlu0 %v3534_v44, %s7540_s23  ;;  %v4017_v10 = vmin.f32 %v3889_v15, 30.0 }
 0x299   : > { %v7141_v4 = vpop.eup %7140  ;;  %4898 = vst.msk [vmem:[%s9785_s27 + $0xf0] sm:$0xff] %vm1123_vm0, %v5950_v37  ;;  %v5951_v0 = vadd.f32 -0.001, %v4643_v21  ;;  %v4395_v48 = vadd.f32 1.0, %v7139_v14  ;;  %7162 = vpow2.f32 %v4192_v45  ;;  %v3894_v29 = vsub.f32 0.0, %v3534_v44  ;;  %v10055_v54 = vpop.f32.mrf.mxu1 }
 0x29a   : > { %4896 = vst.msk [vmem:[%s9785_s27 + $0xe0] sm:$0xff] %vm1123_vm0, %v5948_v36  ;;  %v5949_v25 = vadd.f32 -0.001, %v4641_v6  ;;  %v4393_v57 = vadd.f32 1.0, %v7141_v4  ;;  %7164 = vpow2.f32 %v4188_v24  ;;  %v3526_v1 = vadd.f32 %v9922_v42, %v9819_v8  ;;  %v10053_v8 = vpop.permute.xlu0 %5124 }
 0x29b   : > { %v7143_v60 = vpop.eup %7142  ;;  %4899 = vst.msk [vmem:[%s9785_s27 + $0xf8] sm:$0xff] %vm1123_vm0, %v5951_v0  ;;  %7166 = vrcp.f32 %v4395_v48  ;;  %v4194_v39 = vmul.f32 1.442695, %v4019_v58  ;;  %v3537_v11 = vadd.f32 %v9922_v42, %v9828_v56  ;;  %v4190_v59 = vmul.f32 1.442695, %v4017_v10  ;;  %v10058_v17 = vpop.f32.mrf.mxu1 }
 0x29c   : > { %v7145_v62 = vpop.eup %7144  ;;  %4897 = vst.msk [vmem:[%s9785_s27 + $0xe8] sm:$0xff] %vm1123_vm0, %v5949_v25  ;;  %v4646_v55 = vmul.f32 1.002, %v7143_v60  ;;  %7168 = vrcp.f32 %v4393_v57  ;;  %v4022_v45 = vmin.f32 %v3894_v29, 30.0  ;;  %v3892_v34 = vsub.f32 0.0, %v3526_v1  ;;  %5220 = vrot.lane.b32.xlu0 %v3526_v1, %s7540_s23 }
 0x29d   : > { %v7147_v51 = vpop.eup %7146  ;;  %v4398_v30 = vadd.f32 1.0, %v7145_v62  ;;  %7170 = vpow2.f32 %v4194_v39  ;;  %v3895_v32 = vsub.f32 0.0, %v3537_v11  ;;  %5226 = vrot.lane.b32.xlu1 %v3537_v11, %s7540_s23  ;;  %v3529_v14 = vadd.f32 %v9922_v42, %v9840_v13  ;;  %v10068_v57 = vpop.f32.mrf.mxu1  ;;  %5509 = vst.msk [vmem:[%s10123_s6] sm:$0xff] %vm5508_vm2, %v10053_v8 }
 0x29e   : > { %v7149_v12 = vpop.eup %7148  ;;  %v5954_v50 = vadd.f32 -0.001, %v4646_v55  ;;  %v4644_v28 = vmul.f32 1.002, %v7147_v51  ;;  %v4200_v56 = vmul.f32 1.442695, %v4022_v45  ;;  %v3550_v4 = vadd.f32 %v9922_v42, %v9853_v16  ;;  %v10074_v39 = vpop.permute.xlu1 %5128 }
 0x29f   : > { %7172 = vrcp.f32 %v4398_v30  ;;  %v4396_v46 = vadd.f32 1.0, %v7149_v12  ;;  %v4020_v44 = vmin.f32 %v3892_v34, 30.0  ;;  %v4023_v24 = vmin.f32 %v3895_v32, 30.0  ;;  %v10072_v16 = vpop.permute.xlu0 %5126  ;;  %5511 = vst.msk [vmem:[%s10123_s6 + $0x10] sm:$0xff] %vm5508_vm2, %v10074_v39 }
 0x2a0   : > { %v7151_v37 = vpop.eup %7150  ;;  %4902 = vst.msk [vmem:[%s9785_s27 + $0x110] sm:$0xff] %vm1123_vm0, %v5954_v50  ;;  %v5952_v21 = vadd.f32 -0.001, %v4644_v28  ;;  %7174 = vpow2.f32 %v4190_v59  ;;  %v3893_v25 = vsub.f32 0.0, %v3529_v14  ;;  %v3898_v10 = vsub.f32 0.0, %v3550_v4  ;;  %5232 = vrot.lane.b32.xlu0 %v3550_v4, %s7540_s23 }
 0x2a1   : > { %v7153_v36 = vpop.eup %7152  ;;  %v4647_v6 = vmul.f32 1.002, %v7151_v37  ;;  %7176 = vrcp.f32 %v4396_v46  ;;  %v4196_v9 = vmul.f32 1.442695, %v4020_v44  ;;  %v4202_v15 = vmul.f32 1.442695, %v4023_v24  ;;  %5222 = vrot.lane.b32.xlu1 %v3529_v14, %s7540_s23 }
 0x2a2   : > { %v7155_v0 = vpop.eup %7154  ;;  %4900 = vst.msk [vmem:[%s9785_s27 + $0x100] sm:$0xff] %vm1123_vm0, %v5952_v21  ;;  %v4645_v48 = vmul.f32 1.002, %v7153_v36  ;;  %7178 = vpow2.f32 %v4200_v56  ;;  %v4021_v55 = vmin.f32 %v3893_v25, 30.0  ;;  %v4026_v59 = vmin.f32 %v3898_v10, 30.0  ;;  %v10084_v46 = vpop.f32.mrf.mxu1 }
 0x2a3   : > { %v7157_v58 = vpop.eup %7156  ;;  %v5955_v60 = vadd.f32 -0.001, %v4647_v6  ;;  %v4650_v13 = vmul.f32 1.002, %v7155_v0  ;;  %7180 = vpow2.f32 %v4196_v9  ;;  %v3542_v45 = vadd.f32 %v9922_v42, %v9860_v49  ;;  %v10089_v49 = vpop.permute.xlu0 %5136  ;;  %5510 = vst.msk [vmem:[%s10123_s6 + $0x8] sm:$0xff] %vm5508_vm2, %v10072_v16 }
 0x2a4   : > { %v7159_v29 = vpop.eup %7158  ;;  %v5953_v1 = vadd.f32 -0.001, %v4645_v48  ;;  %v4648_v62 = vmul.f32 1.002, %v7157_v58  ;;  %7182 = vpow2.f32 %v4202_v15  ;;  %v4198_v28 = vmul.f32 1.442695, %v4021_v55  ;;  %v10096_v6 = vpop.f32.mrf.mxu1 }
 0x2a5   : > { %v7161_v11 = vpop.eup %7160  ;;  %4903 = vst.msk [vmem:[%s9785_s27 + $0x118] sm:$0xff] %vm1123_vm0, %v5955_v60  ;;  %v5958_v51 = vadd.f32 -0.001, %v4650_v13  ;;  %v4399_v30 = vadd.f32 1.0, %v7159_v29  ;;  %v3553_v32 = vadd.f32 %v9922_v42, %v9864_v18  ;;  %v4208_v37 = vmul.f32 1.442695, %v4026_v59  ;;  %5228 = vrot.lane.b32.xlu0 %v3542_v45, %s7540_s23  ;;  %v10100_v60 = vpop.permute.xlu1 %5130 }
 0x2a6   : > { %v7163_v34 = vpop.eup %7162  ;;  %4901 = vst.msk [vmem:[%s9785_s27 + $0x108] sm:$0xff] %vm1123_vm0, %v5953_v1  ;;  %v5956_v12 = vadd.f32 -0.001, %v4648_v62  ;;  %v4397_v50 = vadd.f32 1.0, %v7161_v11  ;;  %v3896_v21 = vsub.f32 0.0, %v3542_v45  ;;  %v3545_v18 = vadd.f32 %v9922_v42, %v9873_v26  ;;  %v10102_v13 = vpop.f32.mrf.mxu1 }
 0x2a7   : > { %v7165_v56 = vpop.eup %7164  ;;  %4906 = vst.msk [vmem:[%s9785_s27 + $0x130] sm:$0xff] %vm1123_vm0, %v5958_v51  ;;  %7184 = vrcp.f32 %v4399_v30  ;;  %v4402_v44 = vadd.f32 1.0, %v7163_v34  ;;  %v3899_v36 = vsub.f32 0.0, %v3553_v32  ;;  %5234 = vrot.lane.b32.xlu1 %v3553_v32, %s7540_s23  ;;  %v3566_v48 = vadd.f32 %v9922_v42, %v9883_v43 }
 0x2a8   : > { %v7167_v24 = vpop.eup %7166  ;;  %4904 = vst.msk [vmem:[%s9785_s27 + $0x120] sm:$0xff] %vm1123_vm0, %v5956_v12  ;;  %7186 = vrcp.f32 %v4397_v50  ;;  %v4400_v14 = vadd.f32 1.0, %v7165_v56  ;;  %v4024_v0 = vmin.f32 %v3896_v21, 30.0  ;;  %v3897_v58 = vsub.f32 0.0, %v3545_v18  ;;  %v10106_v51 = vpop.f32.mrf.mxu1 }
 0x2a9   : > { %v7169_v9 = vpop.eup %7168  ;;  %v4651_v4 = vmul.f32 1.002, %v7167_v24  ;;  %7188 = vrcp.f32 %v4402_v44  ;;  %v4027_v25 = vmin.f32 %v3899_v36, 30.0  ;;  %v3902_v1 = vsub.f32 0.0, %v3566_v48  ;;  %5240 = vrot.lane.b32.xlu0 %v3566_v48, %s7540_s23  ;;  %5512 = vst.msk [vmem:[%s10123_s6 + $0x18] sm:$0xff] %vm5508_vm2, %v10100_v60  ;;  %5515 = vst.msk [vmem:[%s10123_s6 + $0x30] sm:$0xff] %vm5508_vm2, %v10089_v49 }
 0x2aa   : > { %v4649_v15 = vmul.f32 1.002, %v7169_v9  ;;  %7190 = vrcp.f32 %v4400_v14  ;;  %v7171_v26 = vpop.eup %7170  ;;  %v4204_v29 = vmul.f32 1.442695, %v4024_v0  ;;  %v4025_v45 = vmin.f32 %v3897_v58, 30.0  ;;  %v5133_v12 = vpop.permute.xlu0 %5132 }
 0x2ab   : > { %v5959_v10 = vadd.f32 -0.001, %v4651_v4  ;;  %7192 = vpow2.f32 %v4198_v28  ;;  %v4403_v43 = vadd.f32 1.0, %v7171_v26  ;;  %v4210_v11 = vmul.f32 1.442695, %v4027_v25  ;;  %5230 = vrot.lane.b32.xlu1 %v3545_v18, %s7540_s23  ;;  %5513 = vst.msk [vmem:[%s10123_s6 + $0x20] sm:$0xff] %vm5508_vm2, %v5133_v12 }
 0x2ac   : > { %v7173_v62 = vpop.eup %7172  ;;  %v5957_v55 = vadd.f32 -0.001, %v4649_v15  ;;  %7194 = vpow2.f32 %v4208_v37  ;;  %v4030_v34 = vmin.f32 %v3902_v1, 30.0  ;;  %v3558_v32 = vadd.f32 %v9922_v42, %v9891_v35  ;;  %v5139_v44 = vpop.permute.xlu1 %5138 }
 0x2ad   : > { %v7175_v30 = vpop.eup %7174  ;;  %4907 = vst.msk [vmem:[%s9785_s27 + $0x138] sm:$0xff] %vm1123_vm0, %v5959_v10  ;;  %v4654_v59 = vmul.f32 1.002, %v7173_v62  ;;  %7196 = vpow2.f32 %v4204_v29  ;;  %v3569_v56 = vadd.f32 %v9922_v42, %v9895_v63  ;;  %v10116_v37 = vpop.f32.mrf.mxu1  ;;  %v4206_v36 = vmul.f32 1.442695, %v4025_v45 }
 0x2ae   : > { %v7177_v50 = vpop.eup %7176  ;;  %4905 = vst.msk [vmem:[%s9785_s27 + $0x128] sm:$0xff] %vm1123_vm0, %v5957_v55  ;;  %7198 = vrcp.f32 %v4403_v43  ;;  %v4401_v28 = vadd.f32 1.0, %v7175_v30  ;;  %v4216_v4 = vmul.f32 1.442695, %v4030_v34  ;;  %v3900_v0 = vsub.f32 0.0, %v3558_v32  ;;  %5236 = vrot.lane.b32.xlu0 %v3558_v32, %s7540_s23 }
 0x2af   : > { %v7179_v21 = vpop.eup %7178  ;;  %v5962_v24 = vadd.f32 -0.001, %v4654_v59  ;;  %v4652_v14 = vmul.f32 1.002, %v7177_v50  ;;  %7200 = vpow2.f32 %v4210_v11  ;;  %5242 = vrot.lane.b32.xlu1 %v3569_v56, %s7540_s23  ;;  %v10127_v35 = vpop.f32.mrf.mxu1  ;;  %v3903_v25 = vsub.f32 0.0, %v3569_v56  ;;  %5516 = vst.msk [vmem:[%s10123_s6 + $0x38] sm:$0xff] %vm5508_vm2, %v5139_v44 }
 0x2b0   : > { %v7181_v18 = vpop.eup %7180  ;;  %7202 = vrcp.f32 %v4401_v28  ;;  %v4406_v9 = vadd.f32 1.0, %v7179_v21  ;;  %v4028_v26 = vmin.f32 %v3900_v0, 30.0  ;;  %v5135_v10 = vpop.permute.xlu1 %5134  ;;  %v3561_v62 = vadd.f32 %v9922_v42, %v9899_v3 }
 0x2b1   : > { %v7183_v63 = vpop.eup %7182  ;;  %4910 = vst.msk [vmem:[%s9785_s27 + $0x150] sm:$0xff] %vm1123_vm0, %v5962_v24  ;;  %v5960_v48 = vadd.f32 -0.001, %v4652_v14  ;;  %v4404_v15 = vadd.f32 1.0, %v7181_v18  ;;  %7204 = vpow2.f32 %v4206_v36  ;;  %v5145_v29 = vpop.permute.xlu0 %5144  ;;  %v4031_v1 = vmin.f32 %v3903_v25, 30.0 }
 0x2b2   : > { %7206 = vrcp.f32 %v4406_v9  ;;  %v4407_v58 = vadd.f32 1.0, %v7183_v63  ;;  %v3582_v55 = vadd.f32 %v9922_v42, %v9915_v27  ;;  %5514 = vst.msk [vmem:[%s10123_s6 + $0x28] sm:$0xff] %vm5508_vm2, %v5135_v10  ;;  %5519 = vst.msk [vmem:[%s10123_s6 + $0x50] sm:$0xff] %vm5508_vm2, %v5145_v29  ;;  %v10160_v3 = vpop.f32.mrf.mxu1  ;;  %v4212_v8 = vmul.f32 1.442695, %v4028_v26 }
 0x2b3   : > { %4908 = vst.msk [vmem:[%s9785_s27 + $0x140] sm:$0xff] %vm1123_vm0, %v5960_v48  ;;  %7208 = vrcp.f32 %v4404_v15  ;;  %v3574_v39 = vadd.f32 %v9922_v42, %v9927_v41  ;;  %v3585_v16 = vadd.f32 %v9922_v42, %v9932_v31  ;;  %v4218_v43 = vmul.f32 1.442695, %v4031_v1  ;;  %5238 = vrot.lane.b32.xlu1 %v3561_v62, %s7540_s23 }
 0x2b4   : > { %v7185_v27 = vpop.eup %7184  ;;  %7210 = vrcp.f32 %v4407_v58  ;;  %v3901_v11 = vsub.f32 0.0, %v3561_v62  ;;  %5248 = vrot.lane.b32.xlu0 %v3582_v55, %s7540_s23  ;;  %v3906_v45 = vsub.f32 0.0, %v3582_v55  ;;  %v10172_v56 = vpop.f32.mrf.mxu1  ;;  %v3577_v26 = vadd.f32 %v9922_v42, %v9937_v7 }
 0x2b5   : > { %v7187_v49 = vpop.eup %7186  ;;  %v4655_v60 = vmul.f32 1.002, %v7185_v27  ;;  %7212 = vpow2.f32 %v4216_v4  ;;  %v3904_v34 = vsub.f32 0.0, %v3574_v39  ;;  %v5147_v41 = vpop.permute.xlu1 %5146  ;;  %v3907_v63 = vsub.f32 0.0, %v3585_v16 }
 0x2b6   : > { %v7189_v30 = vpop.eup %7188  ;;  %v4653_v59 = vmul.f32 1.002, %v7187_v49  ;;  %7214 = vpow2.f32 %v4212_v8  ;;  %v5141_v12 = vpop.permute.xlu0 %5140  ;;  %v4029_v32 = vmin.f32 %v3901_v11, 30.0  ;;  %5520 = vst.msk [vmem:[%s10123_s6 + $0x58] sm:$0xff] %vm5508_vm2, %v5147_v41  ;;  %v4034_v14 = vmin.f32 %v3906_v45, 30.0 }
 0x2b7   : > { %v7191_v31 = vpop.eup %7190  ;;  %v5963_v50 = vadd.f32 -0.001, %v4655_v60  ;;  %v4658_v28 = vmul.f32 1.002, %v7189_v30  ;;  %7216 = vpow2.f32 %v4218_v43  ;;  %5517 = vst.msk [vmem:[%s10123_s6 + $0x40] sm:$0xff] %vm5508_vm2, %v5141_v12  ;;  %v4032_v36 = vmin.f32 %v3904_v34, 30.0  ;;  %5250 = vrot.lane.b32.xlu1 %v3585_v16, %s7540_s23  ;;  %v10188_v8 = vpop.f32.mrf.mxu1 }
 0x2b8   : > { %v7193_v44 = vpop.eup %7192  ;;  %v5961_v21 = vadd.f32 -0.001, %v4653_v59  ;;  %v4656_v24 = vmul.f32 1.002, %v7191_v31  ;;  %v4214_v0 = vmul.f32 1.442695, %v4029_v32  ;;  %5244 = vrot.lane.b32.xlu0 %v3574_v39, %s7540_s23  ;;  %v3598_v49 = vadd.f32 %v9922_v42, %v9950_v2 }
 0x2b9   : > { %v7195_v18 = vpop.eup %7194  ;;  %4911 = vst.msk [vmem:[%s9785_s27 + $0x158] sm:$0xff] %vm1123_vm0, %v5963_v50  ;;  %v5966_v9 = vadd.f32 -0.001, %v4658_v28  ;;  %v4405_v4 = vadd.f32 1.0, %v7193_v44  ;;  %v4224_v58 = vmul.f32 1.442695, %v4034_v14  ;;  %v5143_v10 = vpop.permute.xlu1 %5142  ;;  %v3590_v30 = vadd.f32 %v9922_v42, %v9960_v23 }
 0x2ba   : > { %v7197_v48 = vpop.eup %7196  ;;  %4909 = vst.msk [vmem:[%s9785_s27 + $0x148] sm:$0xff] %vm1123_vm0, %v5961_v21  ;;  %v5964_v15 = vadd.f32 -0.001, %v4656_v24  ;;  %v4410_v25 = vadd.f32 1.0, %v7195_v18  ;;  %v5153_v29 = vpop.permute.xlu0 %5152  ;;  %v4220_v55 = vmul.f32 1.442695, %v4032_v36 }
 0x2bb   : > { %v7199_v1 = vpop.eup %7198  ;;  %4914 = vst.msk [vmem:[%s9785_s27 + $0x170] sm:$0xff] %vm1123_vm0, %v5966_v9  ;;  %7218 = vrcp.f32 %v4405_v4  ;;  %v4408_v62 = vadd.f32 1.0, %v7197_v48  ;;  %v4035_v27 = vmin.f32 %v3907_v63, 30.0  ;;  %v3905_v7 = vsub.f32 0.0, %v3577_v26  ;;  %5246 = vrot.lane.b32.xlu1 %v3577_v26, %s7540_s23  ;;  %v10197_v59 = vpop.f32.mrf.mxu1 }
 0x2bc   : > { %5518 = vst.msk [vmem:[%s10123_s6 + $0x48] sm:$0xff] %vm5508_vm2, %v5143_v10  ;;  %5523 = vst.msk [vmem:[%s10123_s6 + $0x70] sm:$0xff] %vm5508_vm2, %v5153_v29  ;;  %v7201_v39 = vpop.eup %7200  ;;  %v4659_v16 = vmul.f32 1.002, %v7199_v1  ;;  %7220 = vrcp.f32 %v4410_v25  ;;  %5256 = vrot.lane.b32.xlu0 %v3598_v49, %s7540_s23  ;;  %v3910_v28 = vsub.f32 0.0, %v3598_v49  ;;  %v3908_v32 = vsub.f32 0.0, %v3590_v30 }
 0x2bd   : > { %4912 = vst.msk [vmem:[%s9785_s27 + $0x160] sm:$0xff] %vm1123_vm0, %v5964_v15  ;;  %v7203_v60 = vpop.eup %7202  ;;  %7222 = vrcp.f32 %v4408_v62  ;;  %v4411_v43 = vadd.f32 1.0, %v7201_v39  ;;  %v4226_v11 = vmul.f32 1.442695, %v4035_v27  ;;  %v4033_v12 = vmin.f32 %v3905_v7, 30.0  ;;  %v10202_v42 = vpop.f32.mrf.mxu1 }
 0x2be   : > { %v7205_v45 = vpop.eup %7204  ;;  %v5967_v34 = vadd.f32 -0.001, %v4659_v16  ;;  %v4657_v41 = vmul.f32 1.002, %v7203_v60  ;;  %7224 = vpow2.f32 %v4214_v0  ;;  %v5149_v2 = vpop.permute.xlu0 %5148  ;;  %v4038_v18 = vmin.f32 %v3910_v28, 30.0 }
 0x2bf   : > { %v7207_v31 = vpop.eup %7206  ;;  %7226 = vrcp.f32 %v4411_v43  ;;  %v4409_v50 = vadd.f32 1.0, %v7205_v45  ;;  %5521 = vst.msk [vmem:[%s10123_s6 + $0x60] sm:$0xff] %vm5508_vm2, %v5149_v2  ;;  %v4222_v24 = vmul.f32 1.442695, %v4033_v12  ;;  %v4036_v9 = vmin.f32 %v3908_v32, 30.0  ;;  %v10206_v4 = vpop.f32.mrf.mxu1 }
 0x2c0   : > { %v7209_v23 = vpop.eup %7208  ;;  %4915 = vst.msk [vmem:[%s9785_s27 + $0x178] sm:$0xff] %vm1123_vm0, %v5967_v34  ;;  %v5965_v44 = vadd.f32 -0.001, %v4657_v41  ;;  %v4662_v21 = vmul.f32 1.002, %v7207_v31  ;;  %7228 = vpow2.f32 %v4224_v58  ;;  %5252 = vrot.lane.b32.xlu0 %v3590_v30, %s7540_s23 }
 0x2c1   : > { %v7211_v14 = vpop.eup %7210  ;;  %v4660_v36 = vmul.f32 1.002, %v7209_v23  ;;  %7230 = vrcp.f32 %v4409_v50  ;;  %v10213_v15 = vld [vmem:[%s10873_s2 + $0x1] ss:$0 sm:$0xff]  ;;  %v5155_v58 = vpop.permute.xlu1 %5154  ;;  %v4232_v1 = vmul.f32 1.442695, %v4038_v18 }
 0x2c2   : > { %v7213_v0 = vpop.eup %7212  ;;  %4913 = vst.msk [vmem:[%s9785_s27 + $0x168] sm:$0xff] %vm1123_vm0, %v5965_v44  ;;  %v5970_v63 = vadd.f32 -0.001, %v4662_v21  ;;  %v4663_v48 = vmul.f32 1.002, %v7211_v14  ;;  %7232 = vpow2.f32 %v4220_v55  ;;  %v3601_v25 = vadd.f32 %v10213_v15, %v9962_v61  ;;  %v10223_v16 = vpop.f32.mrf.mxu1 }
 0x2c3   : > { %v7215_v26 = vpop.eup %7214  ;;  %v5968_v10 = vadd.f32 -0.001, %v4660_v36  ;;  %v4414_v29 = vadd.f32 1.0, %v7213_v0  ;;  %7234 = vpow2.f32 %v4226_v11  ;;  %5524 = vst.msk [vmem:[%s10123_s6 + $0x78] sm:$0xff] %vm5508_vm2, %v5155_v58  ;;  %v4228_v61 = vmul.f32 1.442695, %v4036_v9 }
 0x2c4   : > { %v7217_v62 = vpop.eup %7216  ;;  %4918 = vst.msk [vmem:[%s9785_s27 + $0x190] sm:$0xff] %vm1123_vm0, %v5970_v63  ;;  %v5971_v55 = vadd.f32 -0.001, %v4663_v48  ;;  %v4412_v27 = vadd.f32 1.0, %v7215_v26  ;;  %7236 = vpow2.f32 %v4222_v24  ;;  %5258 = vrot.lane.b32.xlu1 %v3601_v25, %s7540_s23  ;;  %v5161_v39 = vpop.permute.xlu0 %5160  ;;  %v3911_v49 = vsub.f32 0.0, %v3601_v25 }
 0x2c5   : > { %4916 = vst.msk [vmem:[%s9785_s27 + $0x180] sm:$0xff] %vm1123_vm0, %v5968_v10  ;;  %7238 = vrcp.f32 %v4414_v29  ;;  %v4415_v7 = vadd.f32 1.0, %v7217_v62  ;;  %v3593_v60 = vadd.f32 %v10213_v15, %v9974_v47  ;;  %v3614_v43 = vadd.f32 %v10213_v15, %v9984_v53  ;;  %v5151_v45 = vpop.permute.xlu1 %5150  ;;  %v10239_v34 = vpop.f32.mrf.mxu1 }
 0x2c6   : > { %5527 = vst.msk [vmem:[%s10123_s6 + $0x90] sm:$0xff] %vm5508_vm2, %v5161_v39  ;;  %7240 = vrcp.f32 %v4412_v27  ;;  %v3606_v11 = vadd.f32 %v10213_v15, %v9992_v38  ;;  %v3617_v30 = vadd.f32 %v10213_v15, %v9994_v40  ;;  %v4039_v41 = vmin.f32 %v3911_v49, 30.0  ;;  %5522 = vst.msk [vmem:[%s10123_s6 + $0x68] sm:$0xff] %vm5508_vm2, %v5151_v45 }
 0x2c7   : > { %4919 = vst.msk [vmem:[%s9785_s27 + $0x198] sm:$0xff] %vm1123_vm0, %v5971_v55  ;;  %7242 = vrcp.f32 %v4415_v7  ;;  %v3909_v47 = vsub.f32 0.0, %v3593_v60  ;;  %v3609_v12 = vadd.f32 %v10213_v15, %v10003_v20  ;;  %v3914_v53 = vsub.f32 0.0, %v3614_v43  ;;  %5264 = vrot.lane.b32.xlu0 %v3614_v43, %s7540_s23  ;;  %v10249_v20 = vpop.f32.mrf.mxu1 }
 0x2c8   : > { %v7219_v2 = vpop.eup %7218  ;;  %7244 = vpow2.f32 %v4232_v1  ;;  %v3912_v31 = vsub.f32 0.0, %v3606_v11  ;;  %5254 = vrot.lane.b32.xlu1 %v3593_v60, %s7540_s23  ;;  %v3915_v38 = vsub.f32 0.0, %v3617_v30  ;;  %v5157_v40 = vpop.permute.xlu0 %5156  ;;  %v4234_v32 = vmul.f32 1.442695, %v4039_v41 }
 0x2c9   : > { %v7221_v50 = vpop.eup %7220  ;;  %v4661_v28 = vmul.f32 1.002, %v7219_v2  ;;  %7246 = vpow2.f32 %v4228_v61  ;;  %v4037_v23 = vmin.f32 %v3909_v47, 30.0  ;;  %5525 = vst.msk [vmem:[%s10123_s6 + $0x80] sm:$0xff] %vm5508_vm2, %v5157_v40  ;;  %v4042_v24 = vmin.f32 %v3914_v53, 30.0  ;;  %v5163_v18 = vpop.permute.xlu1 %5162 }
 0x2ca   : > { %v7223_v44 = vpop.eup %7222  ;;  %v4666_v21 = vmul.f32 1.002, %v7221_v50  ;;  %v4040_v14 = vmin.f32 %v3912_v31, 30.0  ;;  %v4043_v36 = vmin.f32 %v3915_v38, 30.0  ;;  %7248 = vpow2.f32 %v4234_v32  ;;  %5528 = vst.msk [vmem:[%s10123_s6 + $0x98] sm:$0xff] %vm5508_vm2, %v5163_v18  ;;  %v10257_v61 = vpop.f32.mrf.mxu1 }
 0x2cb   : > { %v7225_v9 = vpop.eup %7224  ;;  %v5969_v0 = vadd.f32 -0.001, %v4661_v28  ;;  %v4664_v63 = vmul.f32 1.002, %v7223_v44  ;;  %v4230_v48 = vmul.f32 1.442695, %v4037_v23  ;;  %5260 = vrot.lane.b32.xlu0 %v3606_v11, %s7540_s23  ;;  %v3630_v41 = vadd.f32 %v10213_v15, %v10014_v52 }
 0x2cc   : > { %v7227_v25 = vpop.eup %7226  ;;  %v5974_v58 = vadd.f32 -0.001, %v4666_v21  ;;  %v4413_v26 = vadd.f32 1.0, %v7225_v9  ;;  %v4240_v10 = vmul.f32 1.442695, %v4042_v24  ;;  %v3913_v29 = vsub.f32 0.0, %v3609_v12  ;;  %5266 = vrot.lane.b32.xlu1 %v3617_v30, %s7540_s23 }
 0x2cd   : > { %v7229_v1 = vpop.eup %7228  ;;  %4917 = vst.msk [vmem:[%s9785_s27 + $0x188] sm:$0xff] %vm1123_vm0, %v5969_v0  ;;  %v5972_v62 = vadd.f32 -0.001, %v4664_v63  ;;  %v4667_v55 = vmul.f32 1.002, %v7227_v25  ;;  %7250 = vpow2.f32 %v4230_v48  ;;  %v5159_v43 = vpop.permute.xlu1 %5158  ;;  %v3622_v31 = vadd.f32 %v10213_v15, %v10017_v33 }
 0x2ce   : > { %v4236_v27 = vmul.f32 1.442695, %v4040_v14  ;;  %v7231_v39 = vpop.eup %7230  ;;  %4922 = vst.msk [vmem:[%s9785_s27 + $0x1b0] sm:$0xff] %vm1123_vm0, %v5974_v58  ;;  %7252 = vrcp.f32 %v4413_v26  ;;  %v4418_v7 = vadd.f32 1.0, %v7229_v1  ;;  %v4242_v49 = vmul.f32 1.442695, %v4043_v36  ;;  %v5169_v38 = vpop.permute.xlu0 %5168 }
 0x2cf   : > { %v4041_v60 = vmin.f32 %v3913_v29, 30.0  ;;  %v7233_v11 = vpop.eup %7232  ;;  %4920 = vst.msk [vmem:[%s9785_s27 + $0x1a0] sm:$0xff] %vm1123_vm0, %v5972_v62  ;;  %v5975_v30 = vadd.f32 -0.001, %v4667_v55  ;;  %v4665_v45 = vmul.f32 1.002, %v7231_v39  ;;  %7254 = vpow2.f32 %v4240_v10  ;;  %5272 = vrot.lane.b32.xlu0 %v3630_v41, %s7540_s23  ;;  %v10275_v32 = vpop.f32.mrf.mxu1 }
 0x2d0   : > { %5526 = vst.msk [vmem:[%s10123_s6 + $0x88] sm:$0xff] %vm5508_vm2, %v5159_v43  ;;  %v7235_v47 = vpop.eup %7234  ;;  %7256 = vrcp.f32 %v4418_v7  ;;  %v4416_v2 = vadd.f32 1.0, %v7233_v11  ;;  %5262 = vrot.lane.b32.xlu1 %v3609_v12, %s7540_s23  ;;  %v3918_v52 = vsub.f32 0.0, %v3630_v41  ;;  %5531 = vst.msk [vmem:[%s10123_s6 + $0xb0] sm:$0xff] %vm5508_vm2, %v5169_v38  ;;  %v3916_v12 = vsub.f32 0.0, %v3622_v31 }
 0x2d1   : > { %v4238_v53 = vmul.f32 1.442695, %v4041_v60  ;;  %v7237_v40 = vpop.eup %7236  ;;  %4923 = vst.msk [vmem:[%s9785_s27 + $0x1b8] sm:$0xff] %vm1123_vm0, %v5975_v30  ;;  %v5973_v50 = vadd.f32 -0.001, %v4665_v45  ;;  %v4419_v28 = vadd.f32 1.0, %v7235_v47  ;;  %7258 = vpow2.f32 %v4236_v27  ;;  %v5171_v21 = vpop.permute.xlu1 %5170 }
 0x2d2   : > { %v7239_v23 = vpop.eup %7238  ;;  %7260 = vrcp.f32 %v4416_v2  ;;  %v4417_v33 = vadd.f32 1.0, %v7237_v40  ;;  %v3633_v44 = vadd.f32 %v10213_v15, %v10024_v5  ;;  %v4046_v36 = vmin.f32 %v3918_v52, 30.0  ;;  %5532 = vst.msk [vmem:[%s10123_s6 + $0xb8] sm:$0xff] %vm5508_vm2, %v5171_v21  ;;  %v10285_v9 = vpop.f32.mrf.mxu1 }
 0x2d3   : > { %v7241_v24 = vpop.eup %7240  ;;  %4921 = vst.msk [vmem:[%s9785_s27 + $0x1a8] sm:$0xff] %vm1123_vm0, %v5973_v50  ;;  %v4670_v14 = vmul.f32 1.002, %v7239_v23  ;;  %7262 = vrcp.f32 %v4419_v28  ;;  %v3625_v18 = vadd.f32 %v10213_v15, %v10034_v22  ;;  %v4044_v48 = vmin.f32 %v3916_v12, 30.0  ;;  %v5165_v25 = vpop.permute.xlu0 %5164  ;;  %5268 = vrot.lane.b32.xlu0 %v3622_v31, %s7540_s23 }
 0x2d4   : > { %v7243_v0 = vpop.eup %7242  ;;  %v4668_v63 = vmul.f32 1.002, %v7241_v24  ;;  %7264 = vrcp.f32 %v4417_v33  ;;  %v3919_v5 = vsub.f32 0.0, %v3633_v44  ;;  %5274 = vrot.lane.b32.xlu1 %v3633_v44, %s7540_s23  ;;  %v4248_v22 = vmul.f32 1.442695, %v4046_v36  ;;  %5529 = vst.msk [vmem:[%s10123_s6 + $0xa0] sm:$0xff] %vm5508_vm2, %v5165_v25  ;;  %v10291_v29 = vpop.f32.mrf.mxu1 }
 0x2d5   : > { %v7245_v58 = vpop.eup %7244  ;;  %v5978_v26 = vadd.f32 -0.001, %v4670_v14  ;;  %v4671_v10 = vmul.f32 1.002, %v7243_v0  ;;  %7266 = vpow2.f32 %v4242_v49  ;;  %v4244_v27 = vmul.f32 1.442695, %v4044_v48  ;;  %v5167_v39 = vpop.permute.xlu1 %5166 }
 0x2d6   : > { %v7247_v1 = vpop.eup %7246  ;;  %v5976_v62 = vadd.f32 -0.001, %v4668_v63  ;;  %v4422_v55 = vadd.f32 1.0, %v7245_v58  ;;  %7268 = vpow2.f32 %v4238_v53  ;;  %v4047_v60 = vmin.f32 %v3919_v5, 30.0  ;;  %5530 = vst.msk [vmem:[%s10123_s6 + $0xa8] sm:$0xff] %vm5508_vm2, %v5167_v39  ;;  %v10297_v43 = vpop.f32.mrf.mxu1 }
 0x2d7   : > { %4926 = vst.msk [vmem:[%s9785_s27 + $0x1d0] sm:$0xff] %vm1123_vm0, %v5978_v26  ;;  %v5979_v7 = vadd.f32 -0.001, %v4671_v10  ;;  %v4420_v49 = vadd.f32 1.0, %v7247_v1  ;;  %7270 = vpow2.f32 %v4248_v22  ;;  %v7249_v11 = vpop.eup %7248  ;;  %v3917_v30 = vsub.f32 0.0, %v3625_v18  ;;  %v5177_v47 = vpop.permute.xlu0 %5176 }
 0x2d8   : > { %4924 = vst.msk [vmem:[%s9785_s27 + $0x1c0] sm:$0xff] %vm1123_vm0, %v5976_v62  ;;  %7272 = vrcp.f32 %v4422_v55  ;;  %v3646_v45 = vadd.f32 %v10213_v15, %v10046_v19  ;;  %v3638_v41 = vadd.f32 %v10213_v15, %v10055_v54  ;;  %5270 = vrot.lane.b32.xlu1 %v3625_v18, %s7540_s23  ;;  %v4423_v2 = vadd.f32 1.0, %v7249_v11  ;;  %v10312_v38 = vpop.f32.mrf.mxu1 }
 0x2d9   : > { %4927 = vst.msk [vmem:[%s9785_s27 + $0x1d8] sm:$0xff] %vm1123_vm0, %v5979_v7  ;;  %7274 = vrcp.f32 %v4420_v49  ;;  %v4250_v53 = vmul.f32 1.442695, %v4047_v60  ;;  %v3649_v31 = vadd.f32 %v10213_v15, %v10058_v17  ;;  %v4045_v19 = vmin.f32 %v3917_v30, 30.0 }
 0x2da   : > { %5535 = vst.msk [vmem:[%s10123_s6 + $0xd0] sm:$0xff] %vm5508_vm2, %v5177_v47  ;;  %v7251_v40 = vpop.eup %7250  ;;  %7276 = vpow2.f32 %v4244_v27  ;;  %v3922_v50 = vsub.f32 0.0, %v3646_v45  ;;  %v3920_v54 = vsub.f32 0.0, %v3638_v41  ;;  %5280 = vrot.lane.b32.xlu0 %v3646_v45, %s7540_s23  ;;  %v3641_v33 = vadd.f32 %v10213_v15, %v10068_v57  ;;  %v10317_v17 = vpop.f32.mrf.mxu1 }
 0x2db   : > { %v7253_v28 = vpop.eup %7252  ;;  %7278 = vrcp.f32 %v4423_v2  ;;  %v4421_v52 = vadd.f32 1.0, %v7251_v40  ;;  %v3923_v23 = vsub.f32 0.0, %v3649_v31  ;;  %v4246_v21 = vmul.f32 1.442695, %v4045_v19  ;;  %v5179_v14 = vpop.permute.xlu1 %5178 }
 0x2dc   : > { %v7255_v12 = vpop.eup %7254  ;;  %v4669_v44 = vmul.f32 1.002, %v7253_v28  ;;  %7280 = vpow2.f32 %v4250_v53  ;;  %v4050_v24 = vmin.f32 %v3922_v50, 30.0  ;;  %5282 = vrot.lane.b32.xlu1 %v3649_v31, %s7540_s23  ;;  %v5173_v36 = vpop.permute.xlu0 %5172  ;;  %v4048_v63 = vmin.f32 %v3920_v54, 30.0  ;;  %5536 = vst.msk [vmem:[%s10123_s6 + $0xd8] sm:$0xff] %vm5508_vm2, %v5179_v14 }
 0x2dd   : > { %v7257_v18 = vpop.eup %7256  ;;  %7282 = vrcp.f32 %v4421_v52  ;;  %v4426_v0 = vadd.f32 1.0, %v7255_v12  ;;  %v4051_v48 = vmin.f32 %v3923_v23, 30.0  ;;  %5533 = vst.msk [vmem:[%s10123_s6 + $0xc0] sm:$0xff] %vm5508_vm2, %v5173_v36  ;;  %v3921_v39 = vsub.f32 0.0, %v3641_v33  ;;  %v10328_v49 = vpop.f32.mrf.mxu1 }
 0x2de   : > { %v7259_v57 = vpop.eup %7258  ;;  %v5977_v5 = vadd.f32 -0.001, %v4669_v44  ;;  %v4674_v25 = vmul.f32 1.002, %v7257_v18  ;;  %7284 = vpow2.f32 %v4246_v21  ;;  %v4256_v58 = vmul.f32 1.442695, %v4050_v24  ;;  %5276 = vrot.lane.b32.xlu0 %v3638_v41, %s7540_s23 }
 0x2df   : > { %v7261_v26 = vpop.eup %7260  ;;  %7286 = vrcp.f32 %v4426_v0  ;;  %v4424_v10 = vadd.f32 1.0, %v7259_v57  ;;  %v4252_v22 = vmul.f32 1.442695, %v4048_v63  ;;  %v4258_v1 = vmul.f32 1.442695, %v4051_v48  ;;  %v5175_v7 = vpop.permute.xlu1 %5174 }
 0x2e0   : > { %v7263_v62 = vpop.eup %7262  ;;  %4925 = vst.msk [vmem:[%s9785_s27 + $0x1c8] sm:$0xff] %vm1123_vm0, %v5977_v5  ;;  %v5982_v55 = vadd.f32 -0.001, %v4674_v25  ;;  %v4672_v27 = vmul.f32 1.002, %v7261_v26  ;;  %7288 = vpow2.f32 %v4256_v58  ;;  %5278 = vrot.lane.b32.xlu1 %v3641_v33, %s7540_s23  ;;  %v3662_v30 = vadd.f32 %v10213_v15, %v10084_v46  ;;  %v10343_v12 = vpop.f32.mrf.mxu1 }
 0x2e1   : > { %v7265_v60 = vpop.eup %7264  ;;  %v4675_v11 = vmul.f32 1.002, %v7263_v62  ;;  %7290 = vrcp.f32 %v4424_v10  ;;  %v3654_v45 = vadd.f32 %v10213_v15, %v10096_v6  ;;  %5534 = vst.msk [vmem:[%s10123_s6 + $0xc8] sm:$0xff] %vm5508_vm2, %v5175_v7  ;;  %v4049_v53 = vmin.f32 %v3921_v39, 30.0  ;;  %v5185_v31 = vpop.permute.xlu0 %5184 }
 0x2e2   : > { %v7267_v41 = vpop.eup %7266  ;;  %4930 = vst.msk [vmem:[%s9785_s27 + $0x1f0] sm:$0xff] %vm1123_vm0, %v5982_v55  ;;  %v5980_v47 = vadd.f32 -0.001, %v4672_v27  ;;  %v4673_v2 = vmul.f32 1.002, %v7265_v60  ;;  %7292 = vpow2.f32 %v4252_v22  ;;  %v3926_v46 = vsub.f32 0.0, %v3662_v30  ;;  %5288 = vrot.lane.b32.xlu0 %v3662_v30, %s7540_s23 }
 0x2e3   : > { %v7269_v40 = vpop.eup %7268  ;;  %v5983_v19 = vadd.f32 -0.001, %v4675_v11  ;;  %v4427_v50 = vadd.f32 1.0, %v7267_v41  ;;  %7294 = vpow2.f32 %v4258_v1  ;;  %5539 = vst.msk [vmem:[%s10123_s6 + $0xf0] sm:$0xff] %vm5508_vm2, %v5185_v31  ;;  %v4254_v52 = vmul.f32 1.442695, %v4049_v53  ;;  %v5187_v33 = vpop.permute.xlu1 %5186 }
 0x2e4   : > { %v7271_v6 = vpop.eup %7270  ;;  %4928 = vst.msk [vmem:[%s9785_s27 + $0x1e0] sm:$0xff] %vm1123_vm0, %v5980_v47  ;;  %v5981_v54 = vadd.f32 -0.001, %v4673_v2  ;;  %v4425_v28 = vadd.f32 1.0, %v7269_v40  ;;  %v3924_v23 = vsub.f32 0.0, %v3654_v45  ;;  %v4054_v24 = vmin.f32 %v3926_v46, 30.0  ;;  %v10359_v1 = vpop.f32.mrf.mxu1 }
 0x2e5   : > { %v7273_v44 = vpop.eup %7272  ;;  %4931 = vst.msk [vmem:[%s9785_s27 + $0x1f8] sm:$0xff] %vm1123_vm0, %v5983_v19  ;;  %7296 = vrcp.f32 %v4427_v50  ;;  %v4430_v21 = vadd.f32 1.0, %v7271_v6  ;;  %v3665_v14 = vadd.f32 %v10213_v15, %v10102_v13  ;;  %v3657_v63 = vadd.f32 %v10213_v15, %v10106_v51  ;;  %v5181_v48 = vpop.permute.xlu0 %5180 }
 0x2e6   : > { %5540 = vst.msk [vmem:[%s10123_s6 + $0xf8] sm:$0xff] %vm5508_vm2, %v5187_v33  ;;  %v7275_v36 = vpop.eup %7274  ;;  %v4678_v18 = vmul.f32 1.002, %v7273_v44  ;;  %7298 = vrcp.f32 %v4425_v28  ;;  %v4052_v0 = vmin.f32 %v3924_v23, 30.0  ;;  %v4264_v25 = vmul.f32 1.442695, %v4054_v24  ;;  %5284 = vrot.lane.b32.xlu0 %v3654_v45, %s7540_s23 }
 0x2e7   : > { %4929 = vst.msk [vmem:[%s9785_s27 + $0x1e8] sm:$0xff] %vm1123_vm0, %v5981_v54  ;;  %v7277_v57 = vpop.eup %7276  ;;  %v4676_v5 = vmul.f32 1.002, %v7275_v36  ;;  %7300 = vrcp.f32 %v4430_v21  ;;  %v3927_v58 = vsub.f32 0.0, %v3665_v14  ;;  %5290 = vrot.lane.b32.xlu1 %v3665_v14, %s7540_s23  ;;  %v5183_v51 = vpop.permute.xlu1 %5182  ;;  %v3925_v11 = vsub.f32 0.0, %v3657_v63 }
 0x2e8   : > { %5537 = vst.msk [vmem:[%s10123_s6 + $0xe0] sm:$0xff] %vm5508_vm2, %v5181_v48  ;;  %v7279_v13 = vpop.eup %7278  ;;  %v5986_v26 = vadd.f32 -0.001, %v4678_v18  ;;  %v4428_v10 = vadd.f32 1.0, %v7277_v57  ;;  %7302 = vpow2.f32 %v4254_v52  ;;  %v4260_v22 = vmul.f32 1.442695, %v4052_v0 }
 0x2e9   : > { %v7281_v62 = vpop.eup %7280  ;;  %v5984_v55 = vadd.f32 -0.001, %v4676_v5  ;;  %v4679_v27 = vmul.f32 1.002, %v7279_v13  ;;  %7304 = vpow2.f32 %v4264_v25  ;;  %v4055_v39 = vmin.f32 %v3927_v58, 30.0  ;;  %5538 = vst.msk [vmem:[%s10123_s6 + $0xe8] sm:$0xff] %vm5508_vm2, %v5183_v51  ;;  %v5193_v45 = vpop.permute.xlu0 %5192 }
 0x2ea   : > { %v7283_v7 = vpop.eup %7282  ;;  %4934 = vst.msk [vmem:[%s9785_s27 + $0x210] sm:$0xff] %vm1123_vm0, %v5986_v26  ;;  %7306 = vrcp.f32 %v4428_v10  ;;  %v4431_v60 = vadd.f32 1.0, %v7281_v62  ;;  %v3678_v30 = vadd.f32 %v10213_v15, %v10116_v37  ;;  %v4053_v19 = vmin.f32 %v3925_v11, 30.0  ;;  %v10373_v37 = vpop.f32.mrf.mxu1 }
 0x2eb   : > { %v7285_v41 = vpop.eup %7284  ;;  %4932 = vst.msk [vmem:[%s9785_s27 + $0x200] sm:$0xff] %vm1123_vm0, %v5984_v55  ;;  %v5987_v47 = vadd.f32 -0.001, %v4679_v27  ;;  %v4677_v2 = vmul.f32 1.002, %v7283_v7  ;;  %7308 = vpow2.f32 %v4260_v22  ;;  %5286 = vrot.lane.b32.xlu1 %v3657_v63, %s7540_s23  ;;  %v3670_v28 = vadd.f32 %v10213_v15, %v10127_v35 }
 0x2ec   : > { %v4266_v53 = vmul.f32 1.442695, %v4055_v39  ;;  %5543 = vst.msk [vmem:[%s10123_s6 + $0x110] sm:$0xff] %vm5508_vm2, %v5193_v45  ;;  %v7287_v31 = vpop.eup %7286  ;;  %7310 = vrcp.f32 %v4431_v60  ;;  %v4429_v40 = vadd.f32 1.0, %v7285_v41  ;;  %v3930_v50 = vsub.f32 0.0, %v3678_v30  ;;  %5296 = vrot.lane.b32.xlu0 %v3678_v30, %s7540_s23  ;;  %v10390_v25 = vpop.f32.mrf.mxu1 }
 0x2ed   : > { %v7289_v46 = vpop.eup %7288  ;;  %4935 = vst.msk [vmem:[%s9785_s27 + $0x218] sm:$0xff] %vm1123_vm0, %v5987_v47  ;;  %v5985_v6 = vadd.f32 -0.001, %v4677_v2  ;;  %v4682_v54 = vmul.f32 1.002, %v7287_v31  ;;  %v5189_v21 = vpop.permute.xlu0 %5188  ;;  %v3928_v18 = vsub.f32 0.0, %v3670_v28  ;;  %v3681_v0 = vadd.f32 %v10213_v15, %v10160_v3 }
 0x2ee   : > { %7312 = vpow2.f32 %v4266_v53  ;;  %v7291_v52 = vpop.eup %7290  ;;  %v4434_v23 = vadd.f32 1.0, %v7289_v46  ;;  %v4262_v33 = vmul.f32 1.442695, %v4053_v19  ;;  %v4058_v44 = vmin.f32 %v3930_v50, 30.0  ;;  %v5195_v63 = vpop.permute.xlu1 %5194  ;;  %5541 = vst.msk [vmem:[%s10123_s6 + $0x100] sm:$0xff] %vm5508_vm2, %v5189_v21 }
 0x2ef   : > { %7314 = vrcp.f32 %v4429_v40  ;;  %v7293_v24 = vpop.eup %7292  ;;  %4933 = vst.msk [vmem:[%s9785_s27 + $0x208] sm:$0xff] %vm1123_vm0, %v5985_v6  ;;  %v5990_v14 = vadd.f32 -0.001, %v4682_v54  ;;  %v4680_v36 = vmul.f32 1.002, %v7291_v52  ;;  %v3673_v5 = vadd.f32 %v10213_v15, %v10172_v56  ;;  %5298 = vrot.lane.b32.xlu1 %v3681_v0, %s7540_s23 }
 0x2f0   : > { %v7295_v35 = vpop.eup %7294  ;;  %7316 = vrcp.f32 %v4434_v23  ;;  %v4432_v48 = vadd.f32 1.0, %v7293_v24  ;;  %v4272_v57 = vmul.f32 1.442695, %v4058_v44  ;;  %5292 = vrot.lane.b32.xlu0 %v3670_v28, %s7540_s23  ;;  %5544 = vst.msk [vmem:[%s10123_s6 + $0x118] sm:$0xff] %vm5508_vm2, %v5195_v63  ;;  %v4056_v13 = vmin.f32 %v3928_v18, 30.0 }
 0x2f1   : > { %4938 = vst.msk [vmem:[%s9785_s27 + $0x230] sm:$0xff] %vm1123_vm0, %v5990_v14  ;;  %v5988_v3 = vadd.f32 -0.001, %v4680_v36  ;;  %v4435_v58 = vadd.f32 1.0, %v7295_v35  ;;  %7318 = vpow2.f32 %v4262_v33  ;;  %v3931_v10 = vsub.f32 0.0, %v3681_v0  ;;  %v5201_v51 = vpop.permute.xlu0 %5200 }
 0x2f2   : > { %v7297_v26 = vpop.eup %7296  ;;  %7320 = vrcp.f32 %v4432_v48  ;;  %v3929_v56 = vsub.f32 0.0, %v3673_v5  ;;  %v3694_v22 = vadd.f32 %v10213_v15, %v10188_v8  ;;  %v4268_v27 = vmul.f32 1.442695, %v4056_v13  ;;  %v5191_v7 = vpop.permute.xlu1 %5190  ;;  %5547 = vst.msk [vmem:[%s10123_s6 + $0x130] sm:$0xff] %vm5508_vm2, %v5201_v51 }
 0x2f3   : > { %v7299_v62 = vpop.eup %7298  ;;  %4936 = vst.msk [vmem:[%s9785_s27 + $0x220] sm:$0xff] %vm1123_vm0, %v5988_v3  ;;  %v4683_v55 = vmul.f32 1.002, %v7297_v26  ;;  %7322 = vrcp.f32 %v4435_v58  ;;  %v3686_v39 = vadd.f32 %v10213_v15, %v10197_v59  ;;  %v4059_v30 = vmin.f32 %v3931_v10, 30.0  ;;  %v10406_v8 = vpop.f32.mrf.mxu1  ;;  %5294 = vrot.lane.b32.xlu1 %v3673_v5, %s7540_s23 }
 0x2f4   : > { %v7301_v60 = vpop.eup %7300  ;;  %v4681_v11 = vmul.f32 1.002, %v7299_v62  ;;  %7324 = vpow2.f32 %v4272_v57  ;;  %v4057_v45 = vmin.f32 %v3929_v56, 30.0  ;;  %5304 = vrot.lane.b32.xlu0 %v3694_v22, %s7540_s23  ;;  %5542 = vst.msk [vmem:[%s10123_s6 + $0x108] sm:$0xff] %vm5508_vm2, %v5191_v7  ;;  %v3934_v59 = vsub.f32 0.0, %v3694_v22 }
 0x2f5   : > { %v7303_v41 = vpop.eup %7302  ;;  %v5991_v47 = vadd.f32 -0.001, %v4683_v55  ;;  %v4686_v2 = vmul.f32 1.002, %v7301_v60  ;;  %7326 = vpow2.f32 %v4268_v27  ;;  %v4274_v19 = vmul.f32 1.442695, %v4059_v30  ;;  %v5197_v46 = vpop.permute.xlu0 %5196 }
 0x2f6   : > { %v7305_v53 = vpop.eup %7304  ;;  %v5989_v31 = vadd.f32 -0.001, %v4681_v11  ;;  %v4433_v40 = vadd.f32 1.0, %v7303_v41  ;;  %v3932_v50 = vsub.f32 0.0, %v3686_v39  ;;  %v4270_v52 = vmul.f32 1.442695, %v4057_v45  ;;  %v5203_v33 = vpop.permute.xlu1 %5202 }
 0x2f7   : > { %v7307_v6 = vpop.eup %7306  ;;  %4939 = vst.msk [vmem:[%s9785_s27 + $0x238] sm:$0xff] %vm1123_vm0, %v5991_v47  ;;  %v5994_v54 = vadd.f32 -0.001, %v4686_v2  ;;  %v4438_v28 = vadd.f32 1.0, %v7305_v53  ;;  %v4062_v23 = vmin.f32 %v3934_v59, 30.0  ;;  %v3697_v14 = vadd.f32 %v10213_v15, %v10202_v42  ;;  %v10420_v36 = vpop.f32.mrf.mxu1 }
 0x2f8   : > { %5545 = vst.msk [vmem:[%s10123_s6 + $0x120] sm:$0xff] %vm5508_vm2, %v5197_v46  ;;  %v7309_v44 = vpop.eup %7308  ;;  %v4684_v21 = vmul.f32 1.002, %v7307_v6  ;;  %7328 = vrcp.f32 %v4433_v40  ;;  %v4060_v24 = vmin.f32 %v3932_v50, 30.0  ;;  %5300 = vrot.lane.b32.xlu0 %v3686_v39, %s7540_s23  ;;  %5548 = vst.msk [vmem:[%s10123_s6 + $0x138] sm:$0xff] %vm5508_vm2, %v5203_v33  ;;  %v3689_v35 = vadd.f32 %v10213_v15, %v10206_v4 }
 0x2f9   : > { %4937 = vst.msk [vmem:[%s9785_s27 + $0x228] sm:$0xff] %vm1123_vm0, %v5989_v31  ;;  %v7311_v18 = vpop.eup %7310  ;;  %4942 = vst.msk [vmem:[%s9785_s27 + $0x250] sm:$0xff] %vm1123_vm0, %v5994_v54  ;;  %7330 = vrcp.f32 %v4438_v28  ;;  %v4436_v0 = vadd.f32 1.0, %v7309_v44  ;;  %v4280_v63 = vmul.f32 1.442695, %v4062_v23  ;;  %5306 = vrot.lane.b32.xlu1 %v3697_v14, %s7540_s23  ;;  %v3935_v13 = vsub.f32 0.0, %v3697_v14  ;;  %v10435_v62 = vpop.f32.mrf.mxu1 }
 0x2fa   : > { %v5992_v57 = vadd.f32 -0.001, %v4684_v21  ;;  %v4687_v5 = vmul.f32 1.002, %v7311_v18  ;;  %7332 = vpow2.f32 %v4274_v19  ;;  %v4276_v42 = vmul.f32 1.442695, %v4060_v24  ;;  %v5199_v10 = vpop.permute.xlu1 %5198  ;;  %v5209_v56 = vpop.permute.xlu0 %5208 }
 0x2fb   : > { %v7313_v48 = vpop.eup %7312  ;;  %7334 = vrcp.f32 %v4436_v0  ;;  %v3933_v26 = vsub.f32 0.0, %v3689_v35  ;;  %v3710_v51 = vadd.f32 %v10213_v15, %v10223_v16  ;;  %5546 = vst.msk [vmem:[%s10123_s6 + $0x128] sm:$0xff] %vm5508_vm2, %v5199_v10  ;;  %5551 = vst.msk [vmem:[%s10123_s6 + $0x150] sm:$0xff] %vm5508_vm2, %v5209_v56  ;;  %v4063_v27 = vmin.f32 %v3935_v13, 30.0  ;;  %v10447_v50 = vpop.f32.mrf.mxu1 }
 0x2fc   : > { %v7315_v3 = vpop.eup %7314  ;;  %v4439_v58 = vadd.f32 1.0, %v7313_v48  ;;  %4940 = vst.msk [vmem:[%s9785_s27 + $0x240] sm:$0xff] %vm1123_vm0, %v5992_v57  ;;  %v5995_v4 = vadd.f32 -0.001, %v4687_v5  ;;  %7336 = vpow2.f32 %v4270_v52  ;;  %v3702_v7 = vadd.f32 %v10213_v15, %v10239_v34 }
 0x2fd   : > { %v4685_v22 = vmul.f32 1.002, %v7315_v3  ;;  %v7317_v55 = vpop.eup %7316  ;;  %v4061_v39 = vmin.f32 %v3933_v26, 30.0  ;;  %v3938_v16 = vsub.f32 0.0, %v3710_v51  ;;  %5302 = vrot.lane.b32.xlu1 %v3689_v35, %s7540_s23  ;;  %5312 = vrot.lane.b32.xlu0 %v3710_v51, %s7540_s23  ;;  %v4282_v47 = vmul.f32 1.442695, %v4063_v27  ;;  %v10465_v35 = vpop.f32.mrf.mxu1 }
 0x2fe   : > { %7338 = vrcp.f32 %v4439_v58  ;;  %v7319_v60 = vpop.eup %7318  ;;  %4943 = vst.msk [vmem:[%s9785_s27 + $0x258] sm:$0xff] %vm1123_vm0, %v5995_v4  ;;  %v4690_v30 = vmul.f32 1.002, %v7317_v55  ;;  %v5205_v59 = vpop.permute.xlu0 %5204  ;;  %v3936_v19 = vsub.f32 0.0, %v3702_v7  ;;  %v3713_v54 = vadd.f32 %v10213_v15, %v10249_v20 }
 0x2ff   : > { %v5993_v11 = vadd.f32 -0.001, %v4685_v22  ;;  %7340 = vpow2.f32 %v4280_v63  ;;  %v7321_v45 = vpop.eup %7320  ;;  %v4437_v41 = vadd.f32 1.0, %v7319_v60  ;;  %v4278_v2 = vmul.f32 1.442695, %v4061_v39  ;;  %5549 = vst.msk [vmem:[%s10123_s6 + $0x140] sm:$0xff] %vm5508_vm2, %v5205_v59  ;;  %v5211_v52 = vpop.permute.xlu1 %5210 }
 0x300   : > { %7342 = vpow2.f32 %v4276_v42  ;;  %v7323_v34 = vpop.eup %7322  ;;  %v5998_v53 = vadd.f32 -0.001, %v4690_v30  ;;  %v4688_v31 = vmul.f32 1.002, %v7321_v45  ;;  %v4066_v40 = vmin.f32 %v3938_v16, 30.0  ;;  %5552 = vst.msk [vmem:[%s10123_s6 + $0x158] sm:$0xff] %vm5508_vm2, %v5211_v52 }
 0x301   : > { %4941 = vst.msk [vmem:[%s9785_s27 + $0x248] sm:$0xff] %vm1123_vm0, %v5993_v11  ;;  %v7325_v46 = vpop.eup %7324  ;;  %v4691_v6 = vmul.f32 1.002, %v7323_v34  ;;  %7344 = vrcp.f32 %v4437_v41  ;;  %v3705_v28 = vadd.f32 %v10213_v15, %v10257_v61  ;;  %5308 = vrot.lane.b32.xlu0 %v3702_v7, %s7540_s23  ;;  %v4064_v14 = vmin.f32 %v3936_v19, 30.0  ;;  %5314 = vrot.lane.b32.xlu1 %v3713_v54, %s7540_s23  ;;  %v10479_v7 = vpop.f32.mrf.mxu1 }
 0x302   : > { %v7327_v23 = vpop.eup %7326  ;;  %4946 = vst.msk [vmem:[%s9785_s27 + $0x270] sm:$0xff] %vm1123_vm0, %v5998_v53  ;;  %v5996_v33 = vadd.f32 -0.001, %v4688_v31  ;;  %v4442_v44 = vadd.f32 1.0, %v7325_v46  ;;  %7346 = vpow2.f32 %v4282_v47  ;;  %v4288_v21 = vmul.f32 1.442695, %v4066_v40  ;;  %v5217_v61 = vpop.permute.xlu0 %5216 }
 0x303   : > { %v5999_v24 = vadd.f32 -0.001, %v4691_v6  ;;  %v4440_v20 = vadd.f32 1.0, %v7327_v23  ;;  %7348 = vpow2.f32 %v4278_v2  ;;  %v3939_v18 = vsub.f32 0.0, %v3713_v54  ;;  %5555 = vst.msk [vmem:[%s10123_s6 + $0x170] sm:$0xff] %vm5508_vm2, %v5217_v61  ;;  %v5207_v3 = vpop.permute.xlu1 %5206 }
 0x304   : > { %4944 = vst.msk [vmem:[%s9785_s27 + $0x260] sm:$0xff] %vm1123_vm0, %v5996_v33  ;;  %7350 = vrcp.f32 %v4442_v44  ;;  %v3937_v0 = vsub.f32 0.0, %v3705_v28  ;;  %v3726_v63 = vadd.f32 %v10213_v15, %v10275_v32  ;;  %v4284_v57 = vmul.f32 1.442695, %v4064_v14 }
 0x305   : > { %v7329_v48 = vpop.eup %7328  ;;  %4947 = vst.msk [vmem:[%s9785_s27 + $0x278] sm:$0xff] %vm1123_vm0, %v5999_v24  ;;  %7352 = vrcp.f32 %v4440_v20  ;;  %v3718_v5 = vadd.f32 %v10213_v15, %v10285_v9  ;;  %v3729_v42 = vadd.f32 %v10213_v15, %v10291_v29  ;;  %v4067_v32 = vmin.f32 %v3939_v18, 30.0  ;;  %5310 = vrot.lane.b32.xlu1 %v3705_v28, %s7540_s23  ;;  %v10493_v28 = vpop.f32.mrf.mxu1  ;;  %v10500_v20 = vld [vmem:[%s10873_s2 + $0x1] ss:$0 sm:$0xff] }
 0x306   : > { %v7331_v58 = vpop.eup %7330  ;;  %v4689_v13 = vmul.f32 1.002, %v7329_v48  ;;  %7354 = vpow2.f32 %v4288_v21  ;;  %v4065_v26 = vmin.f32 %v3937_v0, 30.0  ;;  %5320 = vrot.lane.b32.xlu0 %v3726_v63, %s7540_s23  ;;  %5550 = vst.msk [vmem:[%s10123_s6 + $0x148] sm:$0xff] %vm5508_vm2, %v5207_v3  ;;  %v3942_v4 = vsub.f32 0.0, %v3726_v63  ;;  %v5213_v9 = vpop.permute.xlu0 %5212 }
 0x307   : > { %v7333_v10 = vpop.eup %7332  ;;  %v4694_v56 = vmul.f32 1.002, %v7331_v58  ;;  %7356 = vpow2.f32 %v4284_v57  ;;  %v3940_v22 = vsub.f32 0.0, %v3718_v5  ;;  %v4290_v27 = vmul.f32 1.442695, %v4067_v32  ;;  %5553 = vst.msk [vmem:[%s10123_s6 + $0x160] sm:$0xff] %vm5508_vm2, %v5213_v9  ;;  %v5219_v41 = vpop.permute.xlu1 %5218 }
 0x308   : > { %v7335_v29 = vpop.eup %7334  ;;  %v5997_v51 = vadd.f32 -0.001, %v4689_v13  ;;  %v4443_v55 = vadd.f32 1.0, %v7333_v10  ;;  %v3943_v39 = vsub.f32 0.0, %v3729_v42  ;;  %v4286_v16 = vmul.f32 1.442695, %v4065_v26  ;;  %v10518_v3 = vpop.f32.mrf.mxu1 }
 0x309   : > { %v7337_v60 = vpop.eup %7336  ;;  %v6002_v11 = vadd.f32 -0.001, %v4694_v56  ;;  %v4692_v30 = vmul.f32 1.002, %v7335_v29  ;;  %v3721_v45 = vadd.f32 %v10213_v15, %v10297_v43  ;;  %v4070_v59 = vmin.f32 %v3942_v4, 30.0  ;;  %5556 = vst.msk [vmem:[%s10123_s6 + $0x178] sm:$0xff] %vm5508_vm2, %v5219_v41  ;;  %5322 = vrot.lane.b32.xlu1 %v3729_v42, %s7540_s23 }
 0x30a   : > { %4945 = vst.msk [vmem:[%s9785_s27 + $0x268] sm:$0xff] %vm1123_vm0, %v5997_v51  ;;  %7358 = vrcp.f32 %v4443_v55  ;;  %v4441_v2 = vadd.f32 1.0, %v7337_v60  ;;  %v4068_v34 = vmin.f32 %v3940_v22, 30.0  ;;  %5316 = vrot.lane.b32.xlu0 %v3718_v5, %s7540_s23  ;;  %v4071_v15 = vmin.f32 %v3943_v39, 30.0  ;;  %v5225_v43 = vpop.permute.xlu0 %5224 }
 0x30b   : > { %v7339_v47 = vpop.eup %7338  ;;  %4950 = vst.msk [vmem:[%s9785_s27 + $0x290] sm:$0xff] %vm1123_vm0, %v6002_v11  ;;  %v6000_v31 = vadd.f32 -0.001, %v4692_v30  ;;  %7360 = vpow2.f32 %v4290_v27  ;;  %v4296_v6 = vmul.f32 1.442695, %v4070_v59  ;;  %v5215_v44 = vpop.permute.xlu1 %5214  ;;  %v3941_v24 = vsub.f32 0.0, %v3721_v45 }
 0x30c   : > { %v7341_v53 = vpop.eup %7340  ;;  %v4695_v40 = vmul.f32 1.002, %v7339_v47  ;;  %7362 = vrcp.f32 %v4441_v2  ;;  %v4292_v54 = vmul.f32 1.442695, %v4068_v34  ;;  %5559 = vst.msk [vmem:[%s10123_s6 + $0x190] sm:$0xff] %vm5508_vm2, %v5225_v43  ;;  %v3742_v14 = vadd.f32 %v10500_v20, %v10312_v38  ;;  %5554 = vst.msk [vmem:[%s10123_s6 + $0x168] sm:$0xff] %vm5508_vm2, %v5215_v44  ;;  %v10526_v11 = vpop.f32.mrf.mxu1 }
 0x30d   : > { %v7343_v19 = vpop.eup %7342  ;;  %v4446_v46 = vadd.f32 1.0, %v7341_v53  ;;  %4948 = vst.msk [vmem:[%s9785_s27 + $0x280] sm:$0xff] %vm1123_vm0, %v6000_v31  ;;  %7364 = vpow2.f32 %v4286_v16  ;;  %v4298_v33 = vmul.f32 1.442695, %v4071_v15  ;;  %v3734_v61 = vadd.f32 %v10500_v20, %v10317_v17  ;;  %5318 = vrot.lane.b32.xlu1 %v3721_v45, %s7540_s23 }
 0x30e   : > { %v6003_v52 = vadd.f32 -0.001, %v4695_v40  ;;  %v4444_v23 = vadd.f32 1.0, %v7343_v19  ;;  %v7345_v21 = vpop.eup %7344  ;;  %v3745_v63 = vadd.f32 %v10500_v20, %v10328_v49  ;;  %v3737_v48 = vadd.f32 %v10500_v20, %v10343_v12  ;;  %v5221_v38 = vpop.permute.xlu0 %5220  ;;  %5328 = vrot.lane.b32.xlu0 %v3742_v14, %s7540_s23 }
 0x30f   : > { %7366 = vrcp.f32 %v4446_v46  ;;  %v7347_v18 = vpop.eup %7346  ;;  %v4693_v0 = vmul.f32 1.002, %v7345_v21  ;;  %v4069_v17 = vmin.f32 %v3941_v24, 30.0  ;;  %v3946_v42 = vsub.f32 0.0, %v3742_v14  ;;  %5557 = vst.msk [vmem:[%s10123_s6 + $0x180] sm:$0xff] %vm5508_vm2, %v5221_v38  ;;  %v5227_v12 = vpop.permute.xlu1 %5226 }
 0x310   : > { %4951 = vst.msk [vmem:[%s9785_s27 + $0x298] sm:$0xff] %vm1123_vm0, %v6003_v52  ;;  %7368 = vrcp.f32 %v4444_v23  ;;  %v7349_v57 = vpop.eup %7348  ;;  %v4447_v5 = vadd.f32 1.0, %v7347_v18  ;;  %v3944_v32 = vsub.f32 0.0, %v3734_v61  ;;  %v3947_v51 = vsub.f32 0.0, %v3745_v63 }
 0x311   : > { %7370 = vpow2.f32 %v4296_v6  ;;  %v7351_v58 = vpop.eup %7350  ;;  %v6001_v13 = vadd.f32 -0.001, %v4693_v0  ;;  %v4445_v49 = vadd.f32 1.0, %v7349_v57  ;;  %v4294_v56 = vmul.f32 1.442695, %v4069_v17  ;;  %5560 = vst.msk [vmem:[%s10123_s6 + $0x198] sm:$0xff] %vm5508_vm2, %v5227_v12  ;;  %5330 = vrot.lane.b32.xlu1 %v3745_v63, %s7540_s23 }
 0x312   : > { %7372 = vpow2.f32 %v4292_v54  ;;  %v7353_v26 = vpop.eup %7352  ;;  %v4698_v10 = vmul.f32 1.002, %v7351_v58  ;;  %v4074_v4 = vmin.f32 %v3946_v42, 30.0  ;;  %v4072_v29 = vmin.f32 %v3944_v32, 30.0  ;;  %5324 = vrot.lane.b32.xlu0 %v3734_v61, %s7540_s23  ;;  %v5233_v47 = vpop.permute.xlu0 %5232 }
 0x313   : > { %7374 = vrcp.f32 %v4447_v5  ;;  %v7355_v22 = vpop.eup %7354  ;;  %4949 = vst.msk [vmem:[%s9785_s27 + $0x288] sm:$0xff] %vm1123_vm0, %v6001_v13  ;;  %v4696_v9 = vmul.f32 1.002, %v7353_v26  ;;  %v5223_v41 = vpop.permute.xlu1 %5222  ;;  %v4075_v2 = vmin.f32 %v3947_v51, 30.0  ;;  %v3945_v59 = vsub.f32 0.0, %v3737_v48 }
 0x314   : > { %7376 = vrcp.f32 %v4445_v49  ;;  %v7357_v55 = vpop.eup %7356  ;;  %v6006_v27 = vadd.f32 -0.001, %v4698_v10  ;;  %v4450_v39 = vadd.f32 1.0, %v7355_v22  ;;  %v4304_v60 = vmul.f32 1.442695, %v4074_v4  ;;  %5558 = vst.msk [vmem:[%s10123_s6 + $0x188] sm:$0xff] %vm5508_vm2, %v5223_v41 }
 0x315   : > { %7378 = vpow2.f32 %v4298_v33  ;;  %v6004_v30 = vadd.f32 -0.001, %v4696_v9  ;;  %v4448_v16 = vadd.f32 1.0, %v7357_v55  ;;  %v4300_v45 = vmul.f32 1.442695, %v4072_v29  ;;  %5563 = vst.msk [vmem:[%s10123_s6 + $0x1b0] sm:$0xff] %vm5508_vm2, %v5233_v47  ;;  %5326 = vrot.lane.b32.xlu1 %v3737_v48, %s7540_s23  ;;  %v10546_v33 = vpop.f32.mrf.mxu1 }
 0x316   : > { %7380 = vpow2.f32 %v4294_v56  ;;  %4954 = vst.msk [vmem:[%s9785_s27 + $0x2b0] sm:$0xff] %vm1123_vm0, %v6006_v27  ;;  %v3758_v34 = vadd.f32 %v10500_v20, %v10359_v1  ;;  %v3750_v31 = vadd.f32 %v10500_v20, %v10373_v37  ;;  %v3761_v40 = vadd.f32 %v10500_v20, %v10390_v25 }
 0x317   : > { %7382 = vrcp.f32 %v4450_v39  ;;  %v7359_v53 = vpop.eup %7358  ;;  %4952 = vst.msk [vmem:[%s9785_s27 + $0x2a0] sm:$0xff] %vm1123_vm0, %v6004_v30  ;;  %v3753_v15 = vadd.f32 %v10500_v20, %v10406_v8  ;;  %v4306_v19 = vmul.f32 1.442695, %v4075_v2  ;;  %v4073_v46 = vmin.f32 %v3945_v59, 30.0  ;;  %v5229_v23 = vpop.permute.xlu0 %5228 }
 0x318   : > { %7384 = vrcp.f32 %v4448_v16  ;;  %v7361_v1 = vpop.eup %7360  ;;  %v4699_v43 = vmul.f32 1.002, %v7359_v53  ;;  %5336 = vrot.lane.b32.xlu0 %v3758_v34, %s7540_s23  ;;  %v3950_v37 = vsub.f32 0.0, %v3758_v34  ;;  %v3948_v52 = vsub.f32 0.0, %v3750_v31  ;;  %5561 = vst.msk [vmem:[%s10123_s6 + $0x1a0] sm:$0xff] %vm5508_vm2, %v5229_v23  ;;  %v10556_v49 = vpop.f32.mrf.mxu1 }
 0x319   : > { %7386 = vpow2.f32 %v4304_v60  ;;  %v7363_v6 = vpop.eup %7362  ;;  %v4451_v54 = vadd.f32 1.0, %v7361_v1  ;;  %v4302_v21 = vmul.f32 1.442695, %v4073_v46  ;;  %v5235_v24 = vpop.permute.xlu1 %5234  ;;  %5338 = vrot.lane.b32.xlu1 %v3761_v40, %s7540_s23  ;;  %v3951_v57 = vsub.f32 0.0, %v3761_v40 }
 0x31a   : > { %7388 = vpow2.f32 %v4300_v45  ;;  %v7365_v25 = vpop.eup %7364  ;;  %v6007_v8 = vadd.f32 -0.001, %v4699_v43  ;;  %v4697_v44 = vmul.f32 1.002, %v7363_v6  ;;  %v4078_v18 = vmin.f32 %v3950_v37, 30.0  ;;  %5564 = vst.msk [vmem:[%s10123_s6 + $0x1b8] sm:$0xff] %vm5508_vm2, %v5235_v24  ;;  %v10574_v41 = vpop.f32.mrf.mxu1 }
 0x31b   : > { %7390 = vpow2.f32 %v4306_v19  ;;  %v4449_v61 = vadd.f32 1.0, %v7365_v25  ;;  %v4076_v0 = vmin.f32 %v3948_v52, 30.0  ;;  %v5241_v13 = vpop.permute.xlu0 %5240  ;;  %v4079_v10 = vmin.f32 %v3951_v57, 30.0 }
 0x31c   : > { %v7367_v14 = vpop.eup %7366  ;;  %7392 = vrcp.f32 %v4451_v54  ;;  %4955 = vst.msk [vmem:[%s9785_s27 + $0x2b8] sm:$0xff] %vm1123_vm0, %v6007_v8  ;;  %v6005_v48 = vadd.f32 -0.001, %v4697_v44  ;;  %5332 = vrot.lane.b32.xlu0 %v3750_v31, %s7540_s23  ;;  %v4312_v42 = vmul.f32 1.442695, %v4078_v18  ;;  %v3949_v56 = vsub.f32 0.0, %v3753_v15  ;;  %v10589_v25 = vpop.f32.mrf.mxu1 }
 0x31d   : > { %v7369_v63 = vpop.eup %7368  ;;  %v4702_v38 = vmul.f32 1.002, %v7367_v14  ;;  %7394 = vpow2.f32 %v4302_v21  ;;  %v4308_v58 = vmul.f32 1.442695, %v4076_v0  ;;  %v5231_v4 = vpop.permute.xlu1 %5230  ;;  %5567 = vst.msk [vmem:[%s10123_s6 + $0x1d0] sm:$0xff] %vm5508_vm2, %v5241_v13  ;;  %v3774_v51 = vadd.f32 %v10500_v20, %v10420_v36  ;;  %5334 = vrot.lane.b32.xlu1 %v3753_v15, %s7540_s23 }
 0x31e   : > { %v7371_v5 = vpop.eup %7370  ;;  %v4700_v17 = vmul.f32 1.002, %v7369_v63  ;;  %7396 = vrcp.f32 %v4449_v61  ;;  %4953 = vst.msk [vmem:[%s9785_s27 + $0x2a8] sm:$0xff] %vm1123_vm0, %v6005_v48  ;;  %v4314_v39 = vmul.f32 1.442695, %v4079_v10  ;;  %v4077_v60 = vmin.f32 %v3949_v56, 30.0  ;;  %v10602_v13 = vpop.f32.mrf.mxu1 }
 0x31f   : > { %v7373_v32 = vpop.eup %7372  ;;  %v6010_v12 = vadd.f32 -0.001, %v4702_v38  ;;  %v4454_v26 = vadd.f32 1.0, %v7371_v5  ;;  %7398 = vpow2.f32 %v4312_v42  ;;  %5562 = vst.msk [vmem:[%s10123_s6 + $0x1a8] sm:$0xff] %vm5508_vm2, %v5231_v4  ;;  %v3954_v45 = vsub.f32 0.0, %v3774_v51 }
 0x320   : > { %v7375_v22 = vpop.eup %7374  ;;  %v6008_v9 = vadd.f32 -0.001, %v4700_v17  ;;  %v4452_v29 = vadd.f32 1.0, %v7373_v32  ;;  %v3766_v36 = vadd.f32 %v10500_v20, %v10435_v62  ;;  %5344 = vrot.lane.b32.xlu0 %v3774_v51, %s7540_s23  ;;  %v4310_v34 = vmul.f32 1.442695, %v4077_v60  ;;  %v5237_v31 = vpop.permute.xlu0 %5236 }
 0x321   : > { %v7377_v55 = vpop.eup %7376  ;;  %4958 = vst.msk [vmem:[%s9785_s27 + $0x2d0] sm:$0xff] %vm1123_vm0, %v6010_v12  ;;  %v4703_v27 = vmul.f32 1.002, %v7375_v22  ;;  %7400 = vrcp.f32 %v4454_v26  ;;  %v5243_v53 = vpop.permute.xlu1 %5242  ;;  %v4082_v43 = vmin.f32 %v3954_v45, 30.0  ;;  %v3777_v6 = vadd.f32 %v10500_v20, %v10447_v50 }
 0x322   : > { %v7379_v30 = vpop.eup %7378  ;;  %4956 = vst.msk [vmem:[%s9785_s27 + $0x2c0] sm:$0xff] %vm1123_vm0, %v6008_v9  ;;  %v4701_v16 = vmul.f32 1.002, %v7377_v55  ;;  %7402 = vrcp.f32 %v4452_v29  ;;  %v3952_v46 = vsub.f32 0.0, %v3766_v36  ;;  %v3769_v23 = vadd.f32 %v10500_v20, %v10465_v35 }
 0x323   : > { %v7381_v47 = vpop.eup %7380  ;;  %v6011_v2 = vadd.f32 -0.001, %v4703_v27  ;;  %v4455_v59 = vadd.f32 1.0, %v7379_v30  ;;  %7404 = vpow2.f32 %v4308_v58  ;;  %5568 = vst.msk [vmem:[%s10123_s6 + $0x1d8] sm:$0xff] %vm5508_vm2, %v5243_v53  ;;  %5565 = vst.msk [vmem:[%s10123_s6 + $0x1c0] sm:$0xff] %vm5508_vm2, %v5237_v31  ;;  %5346 = vrot.lane.b32.xlu1 %v3777_v6, %s7540_s23  ;;  %v3955_v35 = vsub.f32 0.0, %v3777_v6 }
 0x324   : > { %v7383_v40 = vpop.eup %7382  ;;  %v6009_v15 = vadd.f32 -0.001, %v4701_v16  ;;  %v4453_v1 = vadd.f32 1.0, %v7381_v47  ;;  %7406 = vpow2.f32 %v4314_v39  ;;  %v4320_v52 = vmul.f32 1.442695, %v4082_v43  ;;  %5340 = vrot.lane.b32.xlu0 %v3766_v36, %s7540_s23  ;;  %v10616_v16 = vpop.f32.mrf.mxu1 }
 0x325   : > { %v7385_v62 = vpop.eup %7384  ;;  %4959 = vst.msk [vmem:[%s9785_s27 + $0x2d8] sm:$0xff] %vm1123_vm0, %v6011_v2  ;;  %v4706_v19 = vmul.f32 1.002, %v7383_v40  ;;  %7408 = vrcp.f32 %v4455_v59  ;;  %v4080_v50 = vmin.f32 %v3952_v46, 30.0  ;;  %v5239_v18 = vpop.permute.xlu1 %5238  ;;  %v3953_v57 = vsub.f32 0.0, %v3769_v23 }
 0x326   : > { %v7387_v54 = vpop.eup %7386  ;;  %4957 = vst.msk [vmem:[%s9785_s27 + $0x2c8] sm:$0xff] %vm1123_vm0, %v6009_v15  ;;  %v4704_v37 = vmul.f32 1.002, %v7385_v62  ;;  %7410 = vrcp.f32 %v4453_v1  ;;  %v5249_v0 = vpop.permute.xlu0 %5248  ;;  %v4083_v42 = vmin.f32 %v3955_v35, 30.0  ;;  %v3790_v58 = vadd.f32 %v10500_v20, %v10479_v7 }
 0x327   : > { %v7389_v8 = vpop.eup %7388  ;;  %v6014_v44 = vadd.f32 -0.001, %v4706_v19  ;;  %v4458_v21 = vadd.f32 1.0, %v7387_v54  ;;  %7412 = vpow2.f32 %v4310_v34  ;;  %v4316_v38 = vmul.f32 1.442695, %v4080_v50  ;;  %5566 = vst.msk [vmem:[%s10123_s6 + $0x1c8] sm:$0xff] %vm5508_vm2, %v5239_v18  ;;  %5342 = vrot.lane.b32.xlu1 %v3769_v23, %s7540_s23 }
 0x328   : > { %v7391_v24 = vpop.eup %7390  ;;  %v6012_v14 = vadd.f32 -0.001, %v4704_v37  ;;  %v4456_v61 = vadd.f32 1.0, %v7389_v8  ;;  %7414 = vpow2.f32 %v4320_v52  ;;  %5571 = vst.msk [vmem:[%s10123_s6 + $0x1f0] sm:$0xff] %vm5508_vm2, %v5249_v0  ;;  %v4081_v26 = vmin.f32 %v3953_v57, 30.0  ;;  %5352 = vrot.lane.b32.xlu0 %v3790_v58, %s7540_s23  ;;  %v10628_v52 = vpop.f32.mrf.mxu1 }
 0x329   : > { %v7393_v63 = vpop.eup %7392  ;;  %4962 = vst.msk [vmem:[%s9785_s27 + $0x2f0] sm:$0xff] %vm1123_vm0, %v6014_v44  ;;  %7416 = vrcp.f32 %v4458_v21  ;;  %v4459_v48 = vadd.f32 1.0, %v7391_v24  ;;  %v3782_v10 = vadd.f32 %v10500_v20, %v10493_v28  ;;  %v4322_v22 = vmul.f32 1.442695, %v4083_v42  ;;  %v5251_v7 = vpop.permute.xlu1 %5250 }
 0x32a   : > { %v7395_v5 = vpop.eup %7394  ;;  %4960 = vst.msk [vmem:[%s9785_s27 + $0x2e0] sm:$0xff] %vm1123_vm0, %v6012_v14  ;;  %v4707_v17 = vmul.f32 1.002, %v7393_v63  ;;  %7418 = vrcp.f32 %v4456_v61  ;;  %v5245_v9 = vpop.permute.xlu0 %5244  ;;  %v4318_v51 = vmul.f32 1.442695, %v4081_v26  ;;  %v3958_v55 = vsub.f32 0.0, %v3790_v58 }
 0x32b   : > { %v7397_v32 = vpop.eup %7396  ;;  %7420 = vrcp.f32 %v4459_v48  ;;  %v4457_v12 = vadd.f32 1.0, %v7395_v5  ;;  %v3956_v27 = vsub.f32 0.0, %v3782_v10  ;;  %5572 = vst.msk [vmem:[%s10123_s6 + $0x1f8] sm:$0xff] %vm5508_vm2, %v5251_v7  ;;  %5569 = vst.msk [vmem:[%s10123_s6 + $0x1e0] sm:$0xff] %vm5508_vm2, %v5245_v9  ;;  %v3793_v30 = vadd.f32 %v10500_v20, %v10518_v3 }
 0x32c   : > { %v6015_v56 = vadd.f32 -0.001, %v4707_v17  ;;  %v4705_v4 = vmul.f32 1.002, %v7397_v32  ;;  %7422 = vpow2.f32 %v4316_v38  ;;  %v7399_v29 = vpop.eup %7398  ;;  %v4086_v47 = vmin.f32 %v3958_v55, 30.0  ;;  %5348 = vrot.lane.b32.xlu0 %v3782_v10, %s7540_s23  ;;  %v10640_v17 = vpop.f32.mrf.mxu1 }
 0x32d   : > { %7424 = vrcp.f32 %v4457_v12  ;;  %v4462_v60 = vadd.f32 1.0, %v7399_v29  ;;  %v4084_v2 = vmin.f32 %v3956_v27, 30.0  ;;  %v3959_v53 = vsub.f32 0.0, %v3793_v30  ;;  %5354 = vrot.lane.b32.xlu1 %v3793_v30, %s7540_s23  ;;  %v5247_v3 = vpop.permute.xlu1 %5246 }
 0x32e   : > { %v7401_v28 = vpop.eup %7400  ;;  %4963 = vst.msk [vmem:[%s9785_s27 + $0x2f8] sm:$0xff] %vm1123_vm0, %v6015_v56  ;;  %v6013_v39 = vadd.f32 -0.001, %v4705_v4  ;;  %7426 = vpow2.f32 %v4322_v22  ;;  %v3785_v31 = vadd.f32 %v10500_v20, %v10526_v11  ;;  %v4328_v43 = vmul.f32 1.442695, %v4086_v47  ;;  %v5257_v19 = vpop.permute.xlu0 %5256 }
 0x32f   : > { %v7403_v45 = vpop.eup %7402  ;;  %v4710_v36 = vmul.f32 1.002, %v7401_v28  ;;  %7428 = vpow2.f32 %v4318_v51  ;;  %v3806_v62 = vadd.f32 %v10500_v20, %v10546_v33  ;;  %5570 = vst.msk [vmem:[%s10123_s6 + $0x1e8] sm:$0xff] %vm5508_vm2, %v5247_v3  ;;  %v4324_v54 = vmul.f32 1.442695, %v4084_v2  ;;  %5575 = vst.msk [vmem:[%s10123_s6 + $0x210] sm:$0xff] %vm5508_vm2, %v5257_v19 }
 0x330   : > { %v7405_v59 = vpop.eup %7404  ;;  %4961 = vst.msk [vmem:[%s9785_s27 + $0x2e8] sm:$0xff] %vm1123_vm0, %v6013_v39  ;;  %v4708_v34 = vmul.f32 1.002, %v7403_v45  ;;  %7430 = vrcp.f32 %v4462_v60  ;;  %v4087_v37 = vmin.f32 %v3959_v53, 30.0  ;;  %v3957_v44 = vsub.f32 0.0, %v3785_v31 }
 0x331   : > { %v7407_v40 = vpop.eup %7406  ;;  %v6018_v15 = vadd.f32 -0.001, %v4710_v36  ;;  %v4460_v1 = vadd.f32 1.0, %v7405_v59  ;;  %v3962_v33 = vsub.f32 0.0, %v3806_v62  ;;  %v3798_v14 = vadd.f32 %v10500_v20, %v10556_v49  ;;  %5350 = vrot.lane.b32.xlu1 %v3785_v31, %s7540_s23  ;;  %5360 = vrot.lane.b32.xlu0 %v3806_v62, %s7540_s23 }
 0x332   : > { %v7409_v46 = vpop.eup %7408  ;;  %v6016_v11 = vadd.f32 -0.001, %v4708_v34  ;;  %v4463_v6 = vadd.f32 1.0, %v7407_v40  ;;  %v4330_v24 = vmul.f32 1.442695, %v4087_v37  ;;  %v4085_v0 = vmin.f32 %v3957_v44, 30.0  ;;  %v5253_v63 = vpop.permute.xlu0 %5252 }
 0x333   : > { %v7411_v23 = vpop.eup %7410  ;;  %4966 = vst.msk [vmem:[%s9785_s27 + $0x310] sm:$0xff] %vm1123_vm0, %v6018_v15  ;;  %v4711_v8 = vmul.f32 1.002, %v7409_v46  ;;  %7432 = vrcp.f32 %v4460_v1  ;;  %v4090_v5 = vmin.f32 %v3962_v33, 30.0  ;;  %v3960_v32 = vsub.f32 0.0, %v3798_v14 }
 0x334   : > { %v7413_v21 = vpop.eup %7412  ;;  %4964 = vst.msk [vmem:[%s9785_s27 + $0x300] sm:$0xff] %vm1123_vm0, %v6016_v11  ;;  %v4709_v50 = vmul.f32 1.002, %v7411_v23  ;;  %7434 = vrcp.f32 %v4463_v6  ;;  %v4326_v58 = vmul.f32 1.442695, %v4085_v0  ;;  %v3809_v4 = vadd.f32 %v10500_v20, %v10574_v41  ;;  %v6452_v41 = vpop.f32.mrf.mxu1 }
 0x335   : > { %v7415_v61 = vpop.eup %7414  ;;  %v6019_v35 = vadd.f32 -0.001, %v4711_v8  ;;  %v4461_v18 = vadd.f32 1.0, %v7413_v21  ;;  %7436 = vpow2.f32 %v4328_v43  ;;  %5573 = vst.msk [vmem:[%s10123_s6 + $0x200] sm:$0xff] %vm5508_vm2, %v5253_v63  ;;  %v4336_v56 = vmul.f32 1.442695, %v4090_v5  ;;  %5356 = vrot.lane.b32.xlu0 %v3798_v14, %s7540_s23 }
 0x336   : > { %v7417_v48 = vpop.eup %7416  ;;  %v6017_v38 = vadd.f32 -0.001, %v4709_v50  ;;  %v4466_v57 = vadd.f32 1.0, %v7415_v61  ;;  %7438 = vpow2.f32 %v4324_v54  ;;  %v5259_v12 = vpop.permute.xlu1 %5258  ;;  %v4088_v29 = vmin.f32 %v3960_v32, 30.0  ;;  %5362 = vrot.lane.b32.xlu1 %v3809_v4, %s7540_s23 }
 0x337   : > { %v7419_v49 = vpop.eup %7418  ;;  %4967 = vst.msk [vmem:[%s9785_s27 + $0x318] sm:$0xff] %vm1123_vm0, %v6019_v35  ;;  %v4714_v42 = vmul.f32 1.002, %v7417_v48  ;;  %7440 = vrcp.f32 %v4461_v18  ;;  %v3963_v28 = vsub.f32 0.0, %v3809_v4  ;;  %v3801_v53 = vadd.f32 %v10500_v20, %v10589_v25  ;;  %v10669_v25 = vpop.f32.mrf.mxu1 }
 0x338   : > { %v7421_v26 = vpop.eup %7420  ;;  %4965 = vst.msk [vmem:[%s9785_s27 + $0x308] sm:$0xff] %vm1123_vm0, %v6017_v38  ;;  %v4712_v10 = vmul.f32 1.002, %v7419_v49  ;;  %7442 = vrcp.f32 %v4466_v57  ;;  %v4332_v45 = vmul.f32 1.442695, %v4088_v29  ;;  %v3822_v15 = vadd.f32 %v10500_v20, %v10602_v13 }
 0x339   : > { %5576 = vst.msk [vmem:[%s10123_s6 + $0x218] sm:$0xff] %vm5508_vm2, %v5259_v12  ;;  %v7423_v22 = vpop.eup %7422  ;;  %v6022_v7 = vadd.f32 -0.001, %v4714_v42  ;;  %v4715_v9 = vmul.f32 1.002, %v7421_v26  ;;  %7444 = vpow2.f32 %v4330_v24  ;;  %v5265_v47 = vpop.permute.xlu0 %5264  ;;  %v4091_v34 = vmin.f32 %v3963_v28, 30.0 }
 0x33a   : > { %v7425_v51 = vpop.eup %7424  ;;  %v6020_v55 = vadd.f32 -0.001, %v4712_v10  ;;  %v4464_v27 = vadd.f32 1.0, %v7423_v22  ;;  %7446 = vpow2.f32 %v4326_v58  ;;  %v5255_v36 = vpop.permute.xlu1 %5254  ;;  %5579 = vst.msk [vmem:[%s10123_s6 + $0x230] sm:$0xff] %vm5508_vm2, %v5265_v47  ;;  %v3961_v62 = vsub.f32 0.0, %v3801_v53  ;;  %5358 = vrot.lane.b32.xlu1 %v3801_v53, %s7540_s23  ;;  %5368 = vrot.lane.b32.xlu0 %v3822_v15, %s7540_s23 }
 0x33b   : > { %v7427_v39 = vpop.eup %7426  ;;  %4970 = vst.msk [vmem:[%s9785_s27 + $0x330] sm:$0xff] %vm1123_vm0, %v6022_v7  ;;  %v6023_v60 = vadd.f32 -0.001, %v4715_v9  ;;  %v4713_v30 = vmul.f32 1.002, %v7425_v51  ;;  %7448 = vpow2.f32 %v4336_v56  ;;  %v3966_v19 = vsub.f32 0.0, %v3822_v15  ;;  %v6453_v57 = vpop.f32.mrf.mxu1 }
 0x33c   : > { %v7429_v2 = vpop.eup %7428  ;;  %4968 = vst.msk [vmem:[%s9785_s27 + $0x320] sm:$0xff] %vm1123_vm0, %v6020_v55  ;;  %7450 = vrcp.f32 %v4464_v27  ;;  %v4467_v59 = vadd.f32 1.0, %v7427_v39  ;;  %v4338_v43 = vmul.f32 1.442695, %v4091_v34  ;;  %v3814_v46 = vadd.f32 %v10500_v20, %v10616_v16 }
 0x33d   : > { %5574 = vst.msk [vmem:[%s10123_s6 + $0x208] sm:$0xff] %vm5508_vm2, %v5255_v36  ;;  %v7431_v31 = vpop.eup %7430  ;;  %v6021_v3 = vadd.f32 -0.001, %v4713_v30  ;;  %v4465_v40 = vadd.f32 1.0, %v7429_v2  ;;  %7452 = vpow2.f32 %v4332_v45  ;;  %v3825_v13 = vadd.f32 %v10500_v20, %v10628_v52  ;;  %v5261_v6 = vpop.permute.xlu0 %5260 }
 0x33e   : > { %4971 = vst.msk [vmem:[%s9785_s27 + $0x338] sm:$0xff] %vm1123_vm0, %v6023_v60  ;;  %v4718_v1 = vmul.f32 1.002, %v7431_v31  ;;  %7454 = vrcp.f32 %v4467_v59  ;;  %v5267_v11 = vpop.permute.xlu1 %5266  ;;  %v4089_v23 = vmin.f32 %v3961_v62, 30.0  ;;  %v3817_v8 = vadd.f32 %v10500_v20, %v10640_v17  ;;  %5364 = vrot.lane.b32.xlu0 %v3814_v46, %s7540_s23  ;;  %v3832_v28 = vpop.f32.mrf.mxu1 }
 0x33f   : > { %4969 = vst.msk [vmem:[%s9785_s27 + $0x328] sm:$0xff] %vm1123_vm0, %v6021_v3  ;;  %7456 = vrcp.f32 %v4465_v40  ;;  %v4094_v33 = vmin.f32 %v3966_v19, 30.0  ;;  %v3964_v52 = vsub.f32 0.0, %v3814_v46  ;;  %v3967_v21 = vsub.f32 0.0, %v3825_v13  ;;  %5370 = vrot.lane.b32.xlu1 %v3825_v13, %s7540_s23 }
 0x340   : > { %v7433_v54 = vpop.eup %7432  ;;  %v6026_v37 = vadd.f32 -0.001, %v4718_v1  ;;  %7458 = vpow2.f32 %v4338_v43  ;;  %5580 = vst.msk [vmem:[%s10123_s6 + $0x238] sm:$0xff] %vm5508_vm2, %v5267_v11  ;;  %5577 = vst.msk [vmem:[%s10123_s6 + $0x220] sm:$0xff] %vm5508_vm2, %v5261_v6  ;;  %v4334_v14 = vmul.f32 1.442695, %v4089_v23  ;;  %v10688_v35 = vadd.f32 %v10500_v20, %v6452_v41 }
 0x341   : > { %v7435_v16 = vpop.eup %7434  ;;  %v4716_v44 = vmul.f32 1.002, %v7433_v54  ;;  %v3965_v61 = vsub.f32 0.0, %v3817_v8  ;;  %v4344_v48 = vmul.f32 1.442695, %v4094_v33  ;;  %v4092_v38 = vmin.f32 %v3964_v52, 30.0  ;;  %v5273_v32 = vpop.permute.xlu0 %5272 }
 0x342   : > { %v7437_v50 = vpop.eup %7436  ;;  %4974 = vst.msk [vmem:[%s9785_s27 + $0x350] sm:$0xff] %vm1123_vm0, %v6026_v37  ;;  %v4719_v24 = vmul.f32 1.002, %v7435_v16  ;;  %v5263_v5 = vpop.permute.xlu1 %5262  ;;  %7460 = vpow2.f32 %v4334_v14  ;;  %v4095_v58 = vmin.f32 %v3967_v21, 30.0  ;;  %v3970_v9 = vsub.f32 0.0, %v10688_v35 }
 0x343   : > { %v7439_v18 = vpop.eup %7438  ;;  %v6024_v0 = vadd.f32 -0.001, %v4716_v44  ;;  %v4470_v63 = vadd.f32 1.0, %v7437_v50  ;;  %5578 = vst.msk [vmem:[%s10123_s6 + $0x228] sm:$0xff] %vm5508_vm2, %v5263_v5  ;;  %v4340_v10 = vmul.f32 1.442695, %v4092_v38  ;;  %5366 = vrot.lane.b32.xlu1 %v3817_v8, %s7540_s23  ;;  %v3830_v59 = vadd.f32 %v10500_v20, %v10669_v25 }
 0x344   : > { %v7441_v17 = vpop.eup %7440  ;;  %v6027_v49 = vadd.f32 -0.001, %v4719_v24  ;;  %v4468_v42 = vadd.f32 1.0, %v7439_v18  ;;  %v4093_v56 = vmin.f32 %v3965_v61, 30.0  ;;  %5583 = vst.msk [vmem:[%s10123_s6 + $0x250] sm:$0xff] %vm5508_vm2, %v5273_v32  ;;  %v4098_v45 = vmin.f32 %v3970_v9, 30.0 }
 0x345   : > { %v7443_v12 = vpop.eup %7442  ;;  %4972 = vst.msk [vmem:[%s9785_s27 + $0x340] sm:$0xff] %vm1123_vm0, %v6024_v0  ;;  %v4717_v26 = vmul.f32 1.002, %v7441_v17  ;;  %7462 = vrcp.f32 %v4470_v63  ;;  %v4346_v7 = vmul.f32 1.442695, %v4095_v58  ;;  %v5269_v36 = vpop.permute.xlu0 %5268  ;;  %v3841_v34 = vadd.f32 %v10500_v20, %v6453_v57  ;;  %5372 = vrot.lane.b32.xlu0 %v3830_v59, %s7540_s23 }
 0x346   : > { %v7445_v4 = vpop.eup %7444  ;;  %4975 = vst.msk [vmem:[%s9785_s27 + $0x358] sm:$0xff] %vm1123_vm0, %v6027_v49  ;;  %v4722_v22 = vmul.f32 1.002, %v7443_v12  ;;  %7464 = vrcp.f32 %v4468_v42  ;;  %v4342_v27 = vmul.f32 1.442695, %v4093_v56  ;;  %v5275_v41 = vpop.permute.xlu1 %5274  ;;  %v3833_v40 = vadd.f32 %v10500_v20, %v3832_v28 }
 0x347   : > { %v7447_v29 = vpop.eup %7446  ;;  %v6025_v51 = vadd.f32 -0.001, %v4717_v26  ;;  %v4471_v55 = vadd.f32 1.0, %v7445_v4  ;;  %7466 = vpow2.f32 %v4344_v48  ;;  %5584 = vst.msk [vmem:[%s10123_s6 + $0x258] sm:$0xff] %vm5508_vm2, %v5275_v41  ;;  %5581 = vst.msk [vmem:[%s10123_s6 + $0x240] sm:$0xff] %vm5508_vm2, %v5269_v36  ;;  %v3968_v43 = vsub.f32 0.0, %v3830_v59 }
 0x348   : > { %v7449_v39 = vpop.eup %7448  ;;  %v6030_v60 = vadd.f32 -0.001, %v4722_v22  ;;  %v4469_v30 = vadd.f32 1.0, %v7447_v29  ;;  %7468 = vpow2.f32 %v4340_v10  ;;  %v4352_v3 = vmul.f32 1.442695, %v4098_v45  ;;  %5374 = vrot.lane.b32.xlu1 %v3833_v40, %s7540_s23 }
 0x349   : > { %v7451_v47 = vpop.eup %7450  ;;  %4973 = vst.msk [vmem:[%s9785_s27 + $0x348] sm:$0xff] %vm1123_vm0, %v6025_v51  ;;  %7470 = vrcp.f32 %v4471_v55  ;;  %v4474_v2 = vadd.f32 1.0, %v7449_v39  ;;  %v3971_v62 = vsub.f32 0.0, %v3841_v34  ;;  %v3969_v11 = vsub.f32 0.0, %v3833_v40  ;;  %5376 = vrot.lane.b32.xlu0 %v10688_v35, %s7540_s23 }
 0x34a   : > { %v7453_v53 = vpop.eup %7452  ;;  %4978 = vst.msk [vmem:[%s9785_s27 + $0x370] sm:$0xff] %vm1123_vm0, %v6030_v60  ;;  %v4720_v31 = vmul.f32 1.002, %v7451_v47  ;;  %7472 = vrcp.f32 %v4469_v30  ;;  %v5271_v25 = vpop.permute.xlu1 %5270  ;;  %v4096_v54 = vmin.f32 %v3968_v43, 30.0 }
 0x34b   : > { %v7455_v15 = vpop.eup %7454  ;;  %7474 = vrcp.f32 %v4474_v2  ;;  %v4472_v1 = vadd.f32 1.0, %v7453_v53  ;;  %5582 = vst.msk [vmem:[%s10123_s6 + $0x248] sm:$0xff] %vm5508_vm2, %v5271_v25  ;;  %v4099_v37 = vmin.f32 %v3971_v62, 30.0  ;;  %v4097_v44 = vmin.f32 %v3969_v11, 30.0 }
 0x34c   : > { %v7457_v19 = vpop.eup %7456  ;;  %v6028_v46 = vadd.f32 -0.001, %v4720_v31  ;;  %v4723_v13 = vmul.f32 1.002, %v7455_v15  ;;  %7476 = vpow2.f32 %v4346_v7  ;;  %v5281_v23 = vpop.permute.xlu0 %5280  ;;  %v4348_v52 = vmul.f32 1.442695, %v4096_v54  ;;  %5378 = vrot.lane.b32.xlu1 %v3841_v34, %s7540_s23 }
 0x34d   : > { %v7459_v20 = vpop.eup %7458  ;;  %v4721_v6 = vmul.f32 1.002, %v7457_v19  ;;  %7478 = vrcp.f32 %v4472_v1  ;;  %5587 = vst.msk [vmem:[%s10123_s6 + $0x270] sm:$0xff] %vm5508_vm2, %v5281_v23  ;;  %v4354_v21 = vmul.f32 1.442695, %v4099_v37 }
 0x34e   : > { %4976 = vst.msk [vmem:[%s9785_s27 + $0x360] sm:$0xff] %vm1123_vm0, %v6028_v46  ;;  %v6031_v8 = vadd.f32 -0.001, %v4723_v13  ;;  %v4475_v16 = vadd.f32 1.0, %v7459_v20  ;;  %7480 = vpow2.f32 %v4342_v27  ;;  %v5283_v50 = vpop.permute.xlu1 %5282  ;;  %v4350_v24 = vmul.f32 1.442695, %v4097_v44 }
 0x34f   : > { %v6029_v33 = vadd.f32 -0.001, %v4721_v6  ;;  %7482 = vpow2.f32 %v4352_v3  ;;  %5588 = vst.msk [vmem:[%s10123_s6 + $0x278] sm:$0xff] %vm5508_vm2, %v5283_v50  ;;  %v7461_v14 = vpop.eup %7460 }
 0x350   : > { %4979 = vst.msk [vmem:[%s9785_s27 + $0x378] sm:$0xff] %vm1123_vm0, %v6031_v8  ;;  %7484 = vrcp.f32 %v4475_v16  ;;  %v5277_v61 = vpop.permute.xlu0 %5276  ;;  %v4473_v0 = vadd.f32 1.0, %v7461_v14 }
 0x351   : > { %4977 = vst.msk [vmem:[%s9785_s27 + $0x368] sm:$0xff] %vm1123_vm0, %v6029_v33  ;;  %7486 = vpow2.f32 %v4348_v52 }
 0x352   : > { %v7463_v18 = vpop.eup %7462  ;;  %7488 = vpow2.f32 %v4354_v21  ;;  %5585 = vst.msk [vmem:[%s10123_s6 + $0x260] sm:$0xff] %vm5508_vm2, %v5277_v61  ;;  %v5279_v48 = vpop.permute.xlu1 %5278 }
 0x353   : > { %v7465_v35 = vpop.eup %7464  ;;  %v4726_v63 = vmul.f32 1.002, %v7463_v18  ;;  %7490 = vpow2.f32 %v4350_v24  ;;  %5586 = vst.msk [vmem:[%s10123_s6 + $0x268] sm:$0xff] %vm5508_vm2, %v5279_v48 }
 0x354   : > { %v7467_v38 = vpop.eup %7466  ;;  %v4724_v57 = vmul.f32 1.002, %v7465_v35  ;;  %7492 = vrcp.f32 %v4473_v0  ;;  %v5289_v12 = vpop.permute.xlu0 %5288 }
 0x355   : > { %v7469_v5 = vpop.eup %7468  ;;  %v6034_v17 = vadd.f32 -0.001, %v4726_v63  ;;  %v4478_v49 = vadd.f32 1.0, %v7467_v38  ;;  %5591 = vst.msk [vmem:[%s10123_s6 + $0x290] sm:$0xff] %vm5508_vm2, %v5289_v12 }
 0x356   : > { %v7471_v42 = vpop.eup %7470  ;;  %v6032_v58 = vadd.f32 -0.001, %v4724_v57  ;;  %v4476_v32 = vadd.f32 1.0, %v7469_v5 }
 0x357   : > { %v7473_v26 = vpop.eup %7472  ;;  %4982 = vst.msk [vmem:[%s9785_s27 + $0x390] sm:$0xff] %vm1123_vm0, %v6034_v17  ;;  %v4727_v10 = vmul.f32 1.002, %v7471_v42  ;;  %7494 = vrcp.f32 %v4478_v49 }
 0x358   : > { %v7475_v56 = vpop.eup %7474  ;;  %4980 = vst.msk [vmem:[%s9785_s27 + $0x380] sm:$0xff] %vm1123_vm0, %v6032_v58  ;;  %v4725_v4 = vmul.f32 1.002, %v7473_v26  ;;  %7496 = vrcp.f32 %v4476_v32  ;;  %v5285_v28 = vpop.permute.xlu0 %5284 }
 0x359   : > { %v7477_v22 = vpop.eup %7476  ;;  %v6035_v7 = vadd.f32 -0.001, %v4727_v10  ;;  %v4730_v9 = vmul.f32 1.002, %v7475_v56  ;;  %v5291_v27 = vpop.permute.xlu1 %5290  ;;  %5589 = vst.msk [vmem:[%s10123_s6 + $0x280] sm:$0xff] %vm5508_vm2, %v5285_v28 }
 0x35a   : > { %v7479_v29 = vpop.eup %7478  ;;  %v6033_v51 = vadd.f32 -0.001, %v4725_v4  ;;  %v4479_v55 = vadd.f32 1.0, %v7477_v22  ;;  %5592 = vst.msk [vmem:[%s10123_s6 + $0x298] sm:$0xff] %vm5508_vm2, %v5291_v27 }
 0x35b   : > { %v7481_v41 = vpop.eup %7480  ;;  %4983 = vst.msk [vmem:[%s9785_s27 + $0x398] sm:$0xff] %vm1123_vm0, %v6035_v7  ;;  %v6038_v39 = vadd.f32 -0.001, %v4730_v9  ;;  %v4728_v60 = vmul.f32 1.002, %v7479_v29 }
 0x35c   : > { %v7483_v30 = vpop.eup %7482  ;;  %4981 = vst.msk [vmem:[%s9785_s27 + $0x388] sm:$0xff] %vm1123_vm0, %v6033_v51  ;;  %7498 = vrcp.f32 %v4479_v55  ;;  %v4477_v45 = vadd.f32 1.0, %v7481_v41 }
 0x35d   : > { %v7485_v36 = vpop.eup %7484  ;;  %4986 = vst.msk [vmem:[%s9785_s27 + $0x3b0] sm:$0xff] %vm1123_vm0, %v6038_v39  ;;  %v6036_v47 = vadd.f32 -0.001, %v4728_v60  ;;  %v4482_v2 = vadd.f32 1.0, %v7483_v30  ;;  %v5287_v53 = vpop.permute.xlu1 %5286 }
 0x35e   : > { %v7487_v59 = vpop.eup %7486  ;;  %v4731_v34 = vmul.f32 1.002, %v7485_v36  ;;  %7500 = vrcp.f32 %v4477_v45  ;;  %5590 = vst.msk [vmem:[%s10123_s6 + $0x288] sm:$0xff] %vm5508_vm2, %v5287_v53  ;;  %v5297_v40 = vpop.permute.xlu0 %5296 }
 0x35f   : > { %v7489_v31 = vpop.eup %7488  ;;  %4984 = vst.msk [vmem:[%s9785_s27 + $0x3a0] sm:$0xff] %vm1123_vm0, %v6036_v47  ;;  %7502 = vrcp.f32 %v4482_v2  ;;  %v4480_v3 = vadd.f32 1.0, %v7487_v59 }
 0x360   : > { %v7491_v15 = vpop.eup %7490  ;;  %v6039_v1 = vadd.f32 -0.001, %v4731_v34  ;;  %v4483_v43 = vadd.f32 1.0, %v7489_v31  ;;  %5595 = vst.msk [vmem:[%s10123_s6 + $0x2b0] sm:$0xff] %vm5508_vm2, %v5297_v40 }
 0x361   : > { %v7493_v62 = vpop.eup %7492  ;;  %7504 = vrcp.f32 %v4480_v3  ;;  %v4481_v25 = vadd.f32 1.0, %v7491_v15  ;;  %v5299_v20 = vpop.permute.xlu1 %5298 }
 0x362   : > { %4987 = vst.msk [vmem:[%s9785_s27 + $0x3b8] sm:$0xff] %vm1123_vm0, %v6039_v1  ;;  %v4729_v19 = vmul.f32 1.002, %v7493_v62  ;;  %7506 = vrcp.f32 %v4483_v43  ;;  %v5293_v46 = vpop.permute.xlu0 %5292 }
 0x363   : > { %7508 = vrcp.f32 %v4481_v25  ;;  %5593 = vst.msk [vmem:[%s10123_s6 + $0x2a0] sm:$0xff] %vm5508_vm2, %v5293_v46  ;;  %5596 = vst.msk [vmem:[%s10123_s6 + $0x2b8] sm:$0xff] %vm5508_vm2, %v5299_v20 }
 0x364   : > { %v7495_v13 = vpop.eup %7494  ;;  %v6037_v11 = vadd.f32 -0.001, %v4729_v19 }
 0x365   : > { %v7497_v6 = vpop.eup %7496  ;;  %v4734_v54 = vmul.f32 1.002, %v7495_v13  ;;  %v5295_v44 = vpop.permute.xlu1 %5294 }
 0x366   : > { %4985 = vst.msk [vmem:[%s9785_s27 + $0x3a8] sm:$0xff] %vm1123_vm0, %v6037_v11  ;;  %v4732_v37 = vmul.f32 1.002, %v7497_v6  ;;  %v5305_v8 = vpop.permute.xlu0 %5304 }
 0x367   : > { %v6042_v23 = vadd.f32 -0.001, %v4734_v54  ;;  %5599 = vst.msk [vmem:[%s10123_s6 + $0x2d0] sm:$0xff] %vm5508_vm2, %v5305_v8  ;;  %5594 = vst.msk [vmem:[%s10123_s6 + $0x2a8] sm:$0xff] %vm5508_vm2, %v5295_v44 }
 0x368   : > { %v6040_v16 = vadd.f32 -0.001, %v4732_v37 }
 0x369   : > { %v7499_v33 = vpop.eup %7498  ;;  %4990 = vst.msk [vmem:[%s9785_s27 + $0x3d0] sm:$0xff] %vm1123_vm0, %v6042_v23 }
 0x36a   : > { %4988 = vst.msk [vmem:[%s9785_s27 + $0x3c0] sm:$0xff] %vm1123_vm0, %v6040_v16  ;;  %v4735_v52 = vmul.f32 1.002, %v7499_v33  ;;  %v5301_v50 = vpop.permute.xlu0 %5300 }
 0x36b   : > { %v7501_v21 = vpop.eup %7500  ;;  %5597 = vst.msk [vmem:[%s10123_s6 + $0x2c0] sm:$0xff] %vm5508_vm2, %v5301_v50  ;;  %v5307_v0 = vpop.permute.xlu1 %5306 }
 0x36c   : > { %v7503_v24 = vpop.eup %7502  ;;  %v6043_v14 = vadd.f32 -0.001, %v4735_v52  ;;  %v4733_v61 = vmul.f32 1.002, %v7501_v21  ;;  %5600 = vst.msk [vmem:[%s10123_s6 + $0x2d8] sm:$0xff] %vm5508_vm2, %v5307_v0 }
 0x36d   : > { %v4738_v18 = vmul.f32 1.002, %v7503_v24 }
 0x36e   : > { %v7505_v35 = vpop.eup %7504  ;;  %4991 = vst.msk [vmem:[%s9785_s27 + $0x3d8] sm:$0xff] %vm1123_vm0, %v6043_v14  ;;  %v6041_v63 = vadd.f32 -0.001, %v4733_v61 }
 0x36f   : > { %v7507_v48 = vpop.eup %7506  ;;  %v6046_v38 = vadd.f32 -0.001, %v4738_v18  ;;  %v4736_v57 = vmul.f32 1.002, %v7505_v35  ;;  %v5303_v58 = vpop.permute.xlu1 %5302 }
 0x370   : > { %v7509_v5 = vpop.eup %7508  ;;  %4989 = vst.msk [vmem:[%s9785_s27 + $0x3c8] sm:$0xff] %vm1123_vm0, %v6041_v63  ;;  %v4739_v17 = vmul.f32 1.002, %v7507_v48  ;;  %v5313_v32 = vpop.permute.xlu0 %5312 }
 0x371   : > { %4994 = vst.msk [vmem:[%s9785_s27 + $0x3f0] sm:$0xff] %vm1123_vm0, %v6046_v38  ;;  %v6044_v49 = vadd.f32 -0.001, %v4736_v57  ;;  %v4737_v42 = vmul.f32 1.002, %v7509_v5 }
 0x372   : > { %v6047_v12 = vadd.f32 -0.001, %v4739_v17  ;;  %5598 = vst.msk [vmem:[%s10123_s6 + $0x2c8] sm:$0xff] %vm5508_vm2, %v5303_v58  ;;  %5603 = vst.msk [vmem:[%s10123_s6 + $0x2f0] sm:$0xff] %vm5508_vm2, %v5313_v32 }
 0x373   : > { %4992 = vst.msk [vmem:[%s9785_s27 + $0x3e0] sm:$0xff] %vm1123_vm0, %v6044_v49  ;;  %v6045_v26 = vadd.f32 -0.001, %v4737_v42  ;;  %v5315_v56 = vpop.permute.xlu1 %5314 }
 0x374   : > { %4995 = vst.msk [vmem:[%s9785_s27 + $0x3f8] sm:$0xff] %vm1123_vm0, %v6047_v12  ;;  %v5309_v10 = vpop.permute.xlu0 %5308 }
 0x375   : > { %4993 = vst.msk [vmem:[%s9785_s27 + $0x3e8] sm:$0xff] %vm1123_vm0, %v6045_v26 }
 0x376   : > { %5601 = vst.msk [vmem:[%s10123_s6 + $0x2e0] sm:$0xff] %vm5508_vm2, %v5309_v10  ;;  %5604 = vst.msk [vmem:[%s10123_s6 + $0x2f8] sm:$0xff] %vm5508_vm2, %v5315_v56 }
 0x377   : > { %v5311_v22 = vpop.permute.xlu1 %5310 }
 0x378   : > { %v5321_v4 = vpop.permute.xlu0 %5320  ;;  %5602 = vst.msk [vmem:[%s10123_s6 + $0x2e8] sm:$0xff] %vm5508_vm2, %v5311_v22 }
 0x379   : > { %5607 = vst.msk [vmem:[%s10123_s6 + $0x310] sm:$0xff] %vm5508_vm2, %v5321_v4 }
 0x37b   : > { %v5323_v9 = vpop.permute.xlu1 %5322 }
 0x37c   : > { %v5317_v7 = vpop.permute.xlu0 %5316  ;;  %5608 = vst.msk [vmem:[%s10123_s6 + $0x318] sm:$0xff] %vm5508_vm2, %v5323_v9 }
 0x37d   : > { %5605 = vst.msk [vmem:[%s10123_s6 + $0x300] sm:$0xff] %vm5508_vm2, %v5317_v7 }
 0x37f   : > { %v5319_v29 = vpop.permute.xlu1 %5318 }
 0x380   : > { %5606 = vst.msk [vmem:[%s10123_s6 + $0x308] sm:$0xff] %vm5508_vm2, %v5319_v29  ;;  %v5329_v51 = vpop.permute.xlu0 %5328 }
 0x381   : > { %5611 = vst.msk [vmem:[%s10123_s6 + $0x330] sm:$0xff] %vm5508_vm2, %v5329_v51 }
 0x383   : > { %v5331_v55 = vpop.permute.xlu1 %5330 }
 0x384   : > { %5612 = vst.msk [vmem:[%s10123_s6 + $0x338] sm:$0xff] %vm5508_vm2, %v5331_v55  ;;  %v5325_v27 = vpop.permute.xlu0 %5324 }
 0x385   : > { %5609 = vst.msk [vmem:[%s10123_s6 + $0x320] sm:$0xff] %vm5508_vm2, %v5325_v27 }
 0x387   : > { %v5327_v28 = vpop.permute.xlu1 %5326 }
 0x388   : > { %5610 = vst.msk [vmem:[%s10123_s6 + $0x328] sm:$0xff] %vm5508_vm2, %v5327_v28 }
 0x38a   : > { %v5337_v41 = vpop.permute.xlu0 %5336 }
 0x38b   : > { %5615 = vst.msk [vmem:[%s10123_s6 + $0x350] sm:$0xff] %vm5508_vm2, %v5337_v41  ;;  %v5339_v39 = vpop.permute.xlu1 %5338 }
 0x38c   : > { %5616 = vst.msk [vmem:[%s10123_s6 + $0x358] sm:$0xff] %vm5508_vm2, %v5339_v39 }
 0x38e   : > { %v5333_v60 = vpop.permute.xlu0 %5332 }
 0x38f   : > { %5613 = vst.msk [vmem:[%s10123_s6 + $0x340] sm:$0xff] %vm5508_vm2, %v5333_v60  ;;  %v5335_v30 = vpop.permute.xlu1 %5334 }
 0x390   : > { %5614 = vst.msk [vmem:[%s10123_s6 + $0x348] sm:$0xff] %vm5508_vm2, %v5335_v30 }
 0x392   : > { %v5345_v45 = vpop.permute.xlu0 %5344 }
 0x393   : > { %5619 = vst.msk [vmem:[%s10123_s6 + $0x370] sm:$0xff] %vm5508_vm2, %v5345_v45 }
 0x395   : > { %v5347_v47 = vpop.permute.xlu1 %5346 }
 0x396   : > { %v5341_v36 = vpop.permute.xlu0 %5340  ;;  %5620 = vst.msk [vmem:[%s10123_s6 + $0x378] sm:$0xff] %vm5508_vm2, %v5347_v47 }
 0x397   : > { %5617 = vst.msk [vmem:[%s10123_s6 + $0x360] sm:$0xff] %vm5508_vm2, %v5341_v36 }
 0x399   : > { %v5343_v2 = vpop.permute.xlu1 %5342 }
 0x39a   : > { %5618 = vst.msk [vmem:[%s10123_s6 + $0x368] sm:$0xff] %vm5508_vm2, %v5343_v2  ;;  %v5353_v59 = vpop.permute.xlu0 %5352 }
 0x39b   : > { %5623 = vst.msk [vmem:[%s10123_s6 + $0x390] sm:$0xff] %vm5508_vm2, %v5353_v59 }
 0x39e   : > { %v5349_v53 = vpop.permute.xlu0 %5348 }
 0x39f   : > { %v5355_v34 = vpop.permute.xlu1 %5354  ;;  %5621 = vst.msk [vmem:[%s10123_s6 + $0x380] sm:$0xff] %vm5508_vm2, %v5349_v53 }
 0x3a0   : > { %5624 = vst.msk [vmem:[%s10123_s6 + $0x398] sm:$0xff] %vm5508_vm2, %v5355_v34 }
 0x3a3   : > { %v5351_v31 = vpop.permute.xlu1 %5350  ;;  %v5361_v3 = vpop.permute.xlu0 %5360 }
 0x3a4   : > { %5622 = vst.msk [vmem:[%s10123_s6 + $0x388] sm:$0xff] %vm5508_vm2, %v5351_v31  ;;  %5627 = vst.msk [vmem:[%s10123_s6 + $0x3b0] sm:$0xff] %vm5508_vm2, %v5361_v3 }
 0x3a7   : > { %v5357_v40 = vpop.permute.xlu0 %5356 }
 0x3a8   : > { %5625 = vst.msk [vmem:[%s10123_s6 + $0x3a0] sm:$0xff] %vm5508_vm2, %v5357_v40  ;;  %v5363_v15 = vpop.permute.xlu1 %5362 }
 0x3a9   : > { %5628 = vst.msk [vmem:[%s10123_s6 + $0x3b8] sm:$0xff] %vm5508_vm2, %v5363_v15 }
 0x3ac   : > { %v5359_v1 = vpop.permute.xlu1 %5358  ;;  %v5369_v43 = vpop.permute.xlu0 %5368 }
 0x3ad   : > { %5626 = vst.msk [vmem:[%s10123_s6 + $0x3a8] sm:$0xff] %vm5508_vm2, %v5359_v1  ;;  %5631 = vst.msk [vmem:[%s10123_s6 + $0x3d0] sm:$0xff] %vm5508_vm2, %v5369_v43 }
 0x3b0   : > { %v5365_v25 = vpop.permute.xlu0 %5364 }
 0x3b1   : > { %v5371_v62 = vpop.permute.xlu1 %5370  ;;  %5629 = vst.msk [vmem:[%s10123_s6 + $0x3c0] sm:$0xff] %vm5508_vm2, %v5365_v25 }
 0x3b2   : > { %5632 = vst.msk [vmem:[%s10123_s6 + $0x3d8] sm:$0xff] %vm5508_vm2, %v5371_v62 }
 0x3b5   : > { %v5367_v19 = vpop.permute.xlu1 %5366 }
 0x3b6   : > { %5630 = vst.msk [vmem:[%s10123_s6 + $0x3c8] sm:$0xff] %vm5508_vm2, %v5367_v19 }
 0x3b7   : > { %v5373_v46 = vpop.permute.xlu0 %5372 }
 0x3b8   : > { %5633 = vst.msk [vmem:[%s10123_s6 + $0x3e0] sm:$0xff] %vm5508_vm2, %v5373_v46 }
 0x3ba   : > { %v5375_v13 = vpop.permute.xlu1 %5374 }
 0x3bb   : > { %5634 = vst.msk [vmem:[%s10123_s6 + $0x3e8] sm:$0xff] %vm5508_vm2, %v5375_v13  ;;  %v5377_v11 = vpop.permute.xlu0 %5376 }
 0x3bc   : > { %5635 = vst.msk [vmem:[%s10123_s6 + $0x3f0] sm:$0xff] %vm5508_vm2, %v5377_v11 }
 0x3be   : > { %v5379_v20 = vpop.permute.xlu1 %5378 }
 0x3bf   : > { %5636 = vst.msk [vmem:[%s10123_s6 + $0x3f8] sm:$0xff] %vm5508_vm2, %v5379_v20 }
 0x3c0 PF: > { %s15_s17 = sadd.s32 1, %s7538_s17   ;;  %s10945_s15 = smov %s7534_s16 }
 0x3c1   : > { %p12_p5 = scmp.ge.s32.totalorder %s15_s17, 4   ;;  %s10946_s16 = smov %s10948_s18 }
 0x3c3   :  { %14 = sbr.rel (!%p12_p5) target bundleno = 2 (0x2), region = 74 }

</bundles_post_ra>
